<compile_context>
chip_gen: v5e
topology: v5e:2x2
jax: 0.10.0
libtpu: 0.0.40
codegen_flags: <defaults>
</compile_context>

<pallas_src>
import jax
import jax.numpy as jnp
from jax import lax
from jax.experimental import pallas as pl
from jax.experimental.pallas import tpu as pltpu

START_IDX = 1
END_IDX = 2  # only relevant for free=True early stop (not implemented)

# Model / problem dims (small, deterministic synthetic config)
B = 2          # batch
FEAT = 16      # features_size (channels of image feature map)
HH = 4         # feature-map height
WW = 4         # feature-map width
N = HH * WW    # spatial attention locations
HID = 32       # hidden_size
EMB = 16       # embedding_size
ATT = 16       # attention internal_size
VOCAB = 32     # vocab size
T = 8          # decoded sequence length (= reports.shape[-1] when free=False)

BP = 8                       # batch padded to a full sublane group
GIN = VOCAB + FEAT + HID     # fused gate GEMM contraction width = 80
G4 = 4 * HID                 # 128

# --- packed weight slab layout: (SLAB_ROWS, 128) f32, all row offsets sublane-aligned ---
R_WG = 0        # (GIN, 4*HID)  fused gate weights for LHS [oh | att_features | h]
R_BG = 80       # (1, 4*HID)    fused gate bias = b_ih + b_hh + bn_shift @ wih_e
R_WFFC = 88     # (FEAT, 2*HID) features_fc weight
R_BFFC = 104    # (1, 2*HID)
R_WVIS = 112    # (FEAT, ATT)   attention visual_fc weight
R_BVIS = 128    # (1, ATT)
R_WSTATE = 136  # (HID, ATT)    attention state_fc weight (bias=False)
R_WOUT = 168    # (1, ATT)      attention out_fc weight (bias=False)
R_WWORD = 176   # (HID, VOCAB)  word_fc weight
R_BWORD = 208   # (1, VOCAB)
SLAB_ROWS = 216


def decoder_kernel(feat_ref, slab_ref, seq_out_ref, scores_out_ref):
    f32 = jnp.float32

    # ---- static, sublane-aligned views into the packed parameter slab (loaded once) ----
    w_gates = slab_ref[R_WG:R_WG + GIN, :]                    # (80, 128)
    b_gates = slab_ref[R_BG:R_BG + 1, :]                      # (1, 128)
    w_ffc = slab_ref[R_WFFC:R_WFFC + FEAT, :2 * HID]          # (16, 64)
    b_ffc = slab_ref[R_BFFC:R_BFFC + 1, :2 * HID]             # (1, 64)
    w_vis = slab_ref[R_WVIS:R_WVIS + FEAT, :ATT]              # (16, 16)
    b_vis = slab_ref[R_BVIS:R_BVIS + 1, :ATT]                 # (1, 16)
    w_state = slab_ref[R_WSTATE:R_WSTATE + HID, :ATT]         # (32, 16)
    w_out = slab_ref[R_WOUT:R_WOUT + 1, :ATT]                 # (1, 16)
    w_word = slab_ref[R_WWORD:R_WWORD + HID, :VOCAB]          # (32, 32)
    b_word = slab_ref[R_BWORD:R_BWORD + 1, :VOCAB]            # (1, 32)

    feat = feat_ref[...]                                      # (BP, N, FEAT)

    # ---- initial state: features_fc(AdaptiveAvgPool2d((1,1)) + Flatten) ----
    pooled = jnp.mean(feat, axis=1)                                       # (BP, FEAT)
    init = jnp.dot(pooled, w_ffc, preferred_element_type=f32) + b_ffc     # (BP, 2*HID)
    h = init[:, :HID]
    c = init[:, HID:]

    # ---- time-invariant visual embedding: single GEMM over all B*N locations ----
    ve = (jnp.dot(feat.reshape(BP * N, FEAT), w_vis,
                  preferred_element_type=f32) + b_vis).reshape(BP, N, ATT)

    iota_f = lax.broadcasted_iota(jnp.int32, (BP, VOCAB), 1).astype(f32)
    oh = (iota_f == jnp.float32(START_IDX)).astype(f32)       # start token, one-hot

    # ---- T-step recurrence fully inside one kernel invocation (static unroll) ----
    for t in range(T):
        # AttentionTwoLayers
        state_emb = jnp.dot(h, w_state, preferred_element_type=f32)      # (BP, ATT)
        att = jnp.tanh(ve + state_emb[:, None, :])                        # (BP, N, ATT)
        logits = jnp.sum(att * w_out[None], axis=2)                       # (BP, N)
        m = jnp.max(logits, axis=1, keepdims=True)
        e = jnp.exp(logits - m)
        denom = jnp.sum(e, axis=1, keepdims=True)
        scores = e * pl.reciprocal(denom, approx=True)                    # softmax over H*W
        att_features = jnp.sum(feat * scores[:, :, None], axis=1)         # (BP, FEAT)

        # Fused LSTM gates (embedding+BN folded into w_gates): one (BP,80)x(80,128) MXU pass.
        lhs = jnp.concatenate([oh, att_features, h], axis=1)              # (BP, GIN)
        gates = jnp.dot(lhs, w_gates, preferred_element_type=f32) + b_gates
        i_g = jax.nn.sigmoid(gates[:, 0 * HID:1 * HID])
        f_g = jax.nn.sigmoid(gates[:, 1 * HID:2 * HID])
        g_g = jnp.tanh(gates[:, 2 * HID:3 * HID])
        o_g = jax.nn.sigmoid(gates[:, 3 * HID:4 * HID])
        c = f_g * c + i_g * g_g
        h = o_g * jnp.tanh(c)

        # word_fc
        pred = jnp.dot(h, w_word, preferred_element_type=f32) + b_word    # (BP, VOCAB)

        seq_out_ref[t] = pred
        scores_out_ref[t] = scores

        # greedy next word (eval mode => no teacher forcing); first-occurrence argmax
        max_val = jnp.max(pred, axis=1, keepdims=True)
        cand = jnp.where(pred == max_val, iota_f, jnp.float32(VOCAB))
        next_idx = jnp.min(cand, axis=1, keepdims=True)                   # (BP, 1)
        oh = (iota_f == next_idx).astype(f32)

    # TODO(synk): free=True early-stop (break when all rows emit END_IDX) is a
    # data-dependent loop exit and is not implemented; dropout_out / dropout_recursive are
    # train-mode only and inactive in this eval forward. For v7x, split a (>=16) batch
    # across the two TensorCores with a leading core-parallel grid axis; at B=2 the sync
    # would cost more than the work.


def make_params(key):
    ks = jax.random.split(key, 16)

    def init(k, shape, scale=0.1):
        return jax.random.normal(k, shape, dtype=jnp.float32) * scale

    p = {}
    p["features_fc_w"] = init(ks[0], (2 * HID, FEAT))
    p["features_fc_b"] = init(ks[1], (2 * HID,))
    p["att_visual_w"] = init(ks[2], (ATT, FEAT))
    p["att_visual_b"] = init(ks[3], (ATT,))
    p["att_state_w"] = init(ks[4], (ATT, HID))          # bias=False (double_bias=False)
    p["att_out_w"] = init(ks[5], (1, ATT))              # bias=False
    p["emb_table"] = init(ks[6], (VOCAB, EMB), scale=1.0)
    p["bn_gamma"] = 1.0 + init(ks[7], (EMB,))
    p["bn_beta"] = init(ks[8], (EMB,))
    p["bn_mean"] = init(ks[9], (EMB,))
    p["bn_var"] = 1.0 + jnp.abs(init(ks[10], (EMB,)))
    p["lstm_w_ih"] = init(ks[11], (4 * HID, EMB + FEAT))
    p["lstm_w_hh"] = init(ks[12], (4 * HID, HID))
    p["lstm_b_ih"] = init(ks[13], (4 * HID,))
    p["lstm_b_hh"] = init(ks[14], (4 * HID,))
    p["word_fc_w"] = init(ks[15], (VOCAB, HID))
    p["word_fc_b"] = init(ks[15], (VOCAB,))
    return p


@jax.jit
def lstm_att_decoder_v2_forward(image_features_nchw, params):
    Bx, Fx, Hx, Wx = image_features_nchw.shape
    # layout: NCHW -> (B, H*W, FEAT), then pad batch to 8 sublanes with zero rows.
    feat = jnp.transpose(image_features_nchw, (0, 2, 3, 1)).reshape(Bx, Hx * Wx, Fx)
    feat_p = jnp.zeros((BP, Hx * Wx, Fx), jnp.float32).at[:Bx].set(feat)

    # Glue: fold eval-BN + embedding into the LSTM gate weights, fuse [wih_e; wih_f; whh].
    eps = 1e-5
    bn_scale = params["bn_gamma"] / jnp.sqrt(params["bn_var"] + eps)      # (EMB,)
    bn_shift = params["bn_beta"] - params["bn_mean"] * bn_scale           # (EMB,)
    wih = params["lstm_w_ih"].T                                           # (EMB+FEAT, 4*HID)
    wih_e, wih_f = wih[:EMB], wih[EMB:]
    whh = params["lstm_w_hh"].T                                           # (HID, 4*HID)
    w_oh2g = (params["emb_table"] * bn_scale[None, :]) @ wih_e            # (VOCAB, 4*HID)
    w_gates = jnp.concatenate([w_oh2g, wih_f, whh], axis=0)               # (GIN, 4*HID)
    b_gates = params["lstm_b_ih"] + params["lstm_b_hh"] + bn_shift @ wih_e

    # Pack all parameters into one lane-padded slab (2 input DMAs total: feat + slab).
    slab = jnp.zeros((SLAB_ROWS, 128), jnp.float32)
    slab = slab.at[R_WG:R_WG + GIN, :G4].set(w_gates)
    slab = slab.at[R_BG, :G4].set(b_gates)
    slab = slab.at[R_WFFC:R_WFFC + FEAT, :2 * HID].set(params["features_fc_w"].T)
    slab = slab.at[R_BFFC, :2 * HID].set(params["features_fc_b"])
    slab = slab.at[R_WVIS:R_WVIS + FEAT, :ATT].set(params["att_visual_w"].T)
    slab = slab.at[R_BVIS, :ATT].set(params["att_visual_b"])
    slab = slab.at[R_WSTATE:R_WSTATE + HID, :ATT].set(params["att_state_w"].T)
    slab = slab.at[R_WOUT, :ATT].set(params["att_out_w"][0])
    slab = slab.at[R_WWORD:R_WWORD + HID, :VOCAB].set(params["word_fc_w"].T)
    slab = slab.at[R_BWORD, :VOCAB].set(params["word_fc_b"])

    inputs = (feat_p, slab)

    def full_spec(x):
        nd = x.ndim
        return pl.BlockSpec(x.shape, lambda i, nd=nd: (0,) * nd)

    out_shape = (
        jax.ShapeDtypeStruct((T, BP, VOCAB), jnp.float32),
        jax.ShapeDtypeStruct((T, BP, N), jnp.float32),
    )
    out_specs = [
        pl.BlockSpec((T, BP, VOCAB), lambda i: (0, 0, 0)),
        pl.BlockSpec((T, BP, N), lambda i: (0, 0, 0)),
    ]

    seq_tbv, scores_tbn = pl.pallas_call(
        decoder_kernel,
        out_shape=out_shape,
        grid_spec=pltpu.PrefetchScalarGridSpec(
            num_scalar_prefetch=0,
            grid=(1,),                       # recurrence collapsed into one invocation
            in_specs=[full_spec(x) for x in inputs],
            out_specs=out_specs),
        compiler_params=pltpu.CompilerParams(
            dimension_semantics=("arbitrary",)),
    )(*inputs)

    seq_out = jnp.transpose(seq_tbv[:, :Bx], (1, 0, 2))                          # (B, T, VOCAB)
    scores_out = jnp.transpose(scores_tbn[:, :Bx], (1, 0, 2)).reshape(Bx, T, Hx, Wx)
    return seq_out, scores_out


if __name__ == "__main__":
    key = jax.random.PRNGKey(0)
    kp, kx = jax.random.split(key)
    params = make_params(kp)
    image_features = jax.random.normal(kx, (B, FEAT, HH, WW), dtype=jnp.float32)

    seq_out, scores_out = lstm_att_decoder_v2_forward(image_features, params)
    jax.block_until_ready((seq_out, scores_out))

    assert seq_out.shape == (B, T, VOCAB), seq_out.shape
    assert scores_out.shape == (B, T, HH, WW), scores_out.shape
    assert bool(jnp.all(jnp.isfinite(seq_out)))
    assert bool(jnp.all(jnp.isfinite(scores_out)))
    # attention scores are a softmax over H*W -> rows sum to ~1 (approx reciprocal in kernel)
    assert bool(jnp.allclose(scores_out.reshape(B, T, -1).sum(-1), 1.0, atol=1e-2))
    print("KERNEL_OK")
</pallas_src>

<mosaic_0001>
module attributes {stable_mosaic.version = 11 : i64} {
  func.func @decoder_kernel(%arg0: i32, %arg1: memref<8x16x16xf32, #tpu.memory_space<vmem>>, %arg2: memref<216x128xf32, #tpu.memory_space<vmem>>, %arg3: memref<8x8x32xf32, #tpu.memory_space<vmem>>, %arg4: memref<8x8x16xf32, #tpu.memory_space<vmem>>) attributes {dimension_semantics = [#tpu.dimension_semantics<arbitrary>], iteration_bounds = array<i64: 1>, scalar_prefetch = 0 : i64, scratch_operands = 0 : i64, tpu.core_type = #tpu.core_type<tc>, window_params = [{pipeline_mode = #tpu.pipeline_mode<synchronous>, transform_indices = @transform_0, window_bounds = array<i64: 8, 16, 16>}, {pipeline_mode = #tpu.pipeline_mode<synchronous>, transform_indices = @transform_1, window_bounds = array<i64: 216, 128>}, {pipeline_mode = #tpu.pipeline_mode<synchronous>, transform_indices = @transform_2, window_bounds = array<i64: 8, 8, 32>}, {pipeline_mode = #tpu.pipeline_mode<synchronous>, transform_indices = @transform_3, window_bounds = array<i64: 8, 8, 16>}]} {
    %c0 = arith.constant 0 : index
    %c0_0 = arith.constant 0 : index
    %0 = vector.load %arg2[%c0, %c0_0] : memref<216x128xf32, #tpu.memory_space<vmem>>, vector<80x128xf32>
    %c80 = arith.constant 80 : index
    %c0_1 = arith.constant 0 : index
    %1 = vector.load %arg2[%c80, %c0_1] : memref<216x128xf32, #tpu.memory_space<vmem>>, vector<1x128xf32>
    %c88 = arith.constant 88 : index
    %c0_2 = arith.constant 0 : index
    %2 = vector.load %arg2[%c88, %c0_2] : memref<216x128xf32, #tpu.memory_space<vmem>>, vector<16x64xf32>
    %c104 = arith.constant 104 : index
    %c0_3 = arith.constant 0 : index
    %3 = vector.load %arg2[%c104, %c0_3] : memref<216x128xf32, #tpu.memory_space<vmem>>, vector<1x64xf32>
    %c112 = arith.constant 112 : index
    %c0_4 = arith.constant 0 : index
    %4 = vector.load %arg2[%c112, %c0_4] : memref<216x128xf32, #tpu.memory_space<vmem>>, vector<16x16xf32>
    %c128 = arith.constant 128 : index
    %c0_5 = arith.constant 0 : index
    %5 = vector.load %arg2[%c128, %c0_5] : memref<216x128xf32, #tpu.memory_space<vmem>>, vector<1x16xf32>
    %c136 = arith.constant 136 : index
    %c0_6 = arith.constant 0 : index
    %6 = vector.load %arg2[%c136, %c0_6] : memref<216x128xf32, #tpu.memory_space<vmem>>, vector<32x16xf32>
    %c168 = arith.constant 168 : index
    %c0_7 = arith.constant 0 : index
    %7 = vector.load %arg2[%c168, %c0_7] : memref<216x128xf32, #tpu.memory_space<vmem>>, vector<1x16xf32>
    %c176 = arith.constant 176 : index
    %c0_8 = arith.constant 0 : index
    %8 = vector.load %arg2[%c176, %c0_8] : memref<216x128xf32, #tpu.memory_space<vmem>>, vector<32x32xf32>
    %c208 = arith.constant 208 : index
    %c0_9 = arith.constant 0 : index
    %9 = vector.load %arg2[%c208, %c0_9] : memref<216x128xf32, #tpu.memory_space<vmem>>, vector<1x32xf32>
    %c0_10 = arith.constant 0 : index
    %c0_11 = arith.constant 0 : index
    %c0_12 = arith.constant 0 : index
    %10 = vector.load %arg1[%c0_10, %c0_11, %c0_12] : memref<8x16x16xf32, #tpu.memory_space<vmem>>, vector<8x16x16xf32>
    %cst = arith.constant dense<0.000000e+00> : vector<8x16xf32>
    %11 = vector.multi_reduction <add>, %10, %cst [1] : vector<8x16x16xf32> to vector<8x16xf32>
    %cst_13 = arith.constant 1.600000e+01 : f32
    %12 = vector.broadcast %cst_13 : f32 to vector<8x16xf32>
    %13 = arith.divf %11, %12 : vector<8x16xf32>
    %cst_14 = arith.constant dense<0.000000e+00> : vector<8x64xf32>
    %14 = tpu.matmul %13, %2, %cst_14 {dimension_numbers = #tpu.dot_dimension_numbers<[1], [0], [0], [1], [0, 0, 1, 1], [], []>} : vector<8x16xf32>, vector<16x64xf32>, vector<8x64xf32> -> vector<8x64xf32>
    %15 = vector.broadcast %3 : vector<1x64xf32> to vector<8x64xf32>
    %16 = arith.addf %14, %15 : vector<8x64xf32>
    %17 = vector.extract_strided_slice %16 {offsets = [0, 0], sizes = [8, 32], strides = [1, 1]} : vector<8x64xf32> to vector<8x32xf32>
    %18 = vector.extract_strided_slice %16 {offsets = [0, 32], sizes = [8, 32], strides = [1, 1]} : vector<8x64xf32> to vector<8x32xf32>
    %19 = vector.shape_cast %10 : vector<8x16x16xf32> to vector<128x16xf32>
    %cst_15 = arith.constant dense<0.000000e+00> : vector<128x16xf32>
    %20 = tpu.matmul %19, %4, %cst_15 {dimension_numbers = #tpu.dot_dimension_numbers<[1], [0], [0], [1], [0, 0, 1, 1], [], []>} : vector<128x16xf32>, vector<16x16xf32>, vector<128x16xf32> -> vector<128x16xf32>
    %21 = vector.broadcast %5 : vector<1x16xf32> to vector<128x16xf32>
    %22 = arith.addf %20, %21 : vector<128x16xf32>
    %23 = vector.shape_cast %22 : vector<128x16xf32> to vector<8x16x16xf32>
    %24 = tpu.iota {dimensions = array<i32: 1>} : vector<8x32xi32>
    %25 = arith.sitofp %24 : vector<8x32xi32> to vector<8x32xf32>
    %cst_16 = arith.constant 1.000000e+00 : f32
    %26 = vector.broadcast %cst_16 : f32 to vector<8x32xf32>
    %27 = arith.cmpf oeq, %25, %26 : vector<8x32xf32>
    %28 = arith.extui %27 : vector<8x32xi1> to vector<8x32xi32>
    %29 = arith.sitofp %28 : vector<8x32xi32> to vector<8x32xf32>
    %cst_17 = arith.constant dense<0.000000e+00> : vector<8x16xf32>
    %30 = tpu.matmul %17, %6, %cst_17 {dimension_numbers = #tpu.dot_dimension_numbers<[1], [0], [0], [1], [0, 0, 1, 1], [], []>} : vector<8x32xf32>, vector<32x16xf32>, vector<8x16xf32> -> vector<8x16xf32>
    %31 = vector.shape_cast %30 : vector<8x16xf32> to vector<8x1x16xf32>
    %32 = vector.broadcast %31 : vector<8x1x16xf32> to vector<8x16x16xf32>
    %33 = arith.addf %23, %32 : vector<8x16x16xf32>
    %34 = math.tanh %33 : vector<8x16x16xf32>
    %35 = vector.shape_cast %7 : vector<1x16xf32> to vector<1x1x16xf32>
    %36 = vector.broadcast %35 : vector<1x1x16xf32> to vector<8x16x16xf32>
    %37 = arith.mulf %34, %36 : vector<8x16x16xf32>
    %cst_18 = arith.constant dense<0.000000e+00> : vector<8x16xf32>
    %38 = vector.multi_reduction <add>, %37, %cst_18 [2] : vector<8x16x16xf32> to vector<8x16xf32>
    %cst_19 = arith.constant dense<0xFF800000> : vector<8xf32>
    %39 = vector.multi_reduction <maximumf>, %38, %cst_19 [1] : vector<8x16xf32> to vector<8xf32>
    %40 = vector.shape_cast %39 : vector<8xf32> to vector<8x1xf32>
    %41 = vector.broadcast %40 : vector<8x1xf32> to vector<8x16xf32>
    %42 = arith.subf %38, %41 : vector<8x16xf32>
    %43 = math.exp %42 : vector<8x16xf32>
    %cst_20 = arith.constant dense<0.000000e+00> : vector<8xf32>
    %44 = vector.multi_reduction <add>, %43, %cst_20 [1] : vector<8x16xf32> to vector<8xf32>
    %45 = vector.shape_cast %44 : vector<8xf32> to vector<8x1xf32>
    %46 = tpu.reciprocal %45 {approx = true} : vector<8x1xf32> -> vector<8x1xf32>
    %47 = vector.broadcast %46 : vector<8x1xf32> to vector<8x16xf32>
    %48 = arith.mulf %43, %47 : vector<8x16xf32>
    %49 = vector.shape_cast %48 : vector<8x16xf32> to vector<8x16x1xf32>
    %50 = vector.broadcast %49 : vector<8x16x1xf32> to vector<8x16x16xf32>
    %51 = arith.mulf %10, %50 : vector<8x16x16xf32>
    %cst_21 = arith.constant dense<0.000000e+00> : vector<8x16xf32>
    %52 = vector.multi_reduction <add>, %51, %cst_21 [1] : vector<8x16x16xf32> to vector<8x16xf32>
    %53 = tpu.concatenate %29, %52, %17 in 1 : vector<8x32xf32>, vector<8x16xf32>, vector<8x32xf32> -> vector<8x80xf32>
    %cst_22 = arith.constant dense<0.000000e+00> : vector<8x128xf32>
    %54 = tpu.matmul %53, %0, %cst_22 {dimension_numbers = #tpu.dot_dimension_numbers<[1], [0], [0], [1], [0, 0, 1, 1], [], []>} : vector<8x80xf32>, vector<80x128xf32>, vector<8x128xf32> -> vector<8x128xf32>
    %55 = vector.broadcast %1 : vector<1x128xf32> to vector<8x128xf32>
    %56 = arith.addf %54, %55 : vector<8x128xf32>
    %57 = vector.extract_strided_slice %56 {offsets = [0, 0], sizes = [8, 32], strides = [1, 1]} : vector<8x128xf32> to vector<8x32xf32>
    %58 = arith.negf %57 : vector<8x32xf32>
    %59 = math.exp %58 : vector<8x32xf32>
    %cst_23 = arith.constant 1.000000e+00 : f32
    %60 = vector.broadcast %cst_23 : f32 to vector<8x32xf32>
    %61 = arith.addf %60, %59 : vector<8x32xf32>
    %62 = arith.divf %60, %61 : vector<8x32xf32>
    %63 = vector.extract_strided_slice %56 {offsets = [0, 32], sizes = [8, 32], strides = [1, 1]} : vector<8x128xf32> to vector<8x32xf32>
    %64 = arith.negf %63 : vector<8x32xf32>
    %65 = math.exp %64 : vector<8x32xf32>
    %cst_24 = arith.constant 1.000000e+00 : f32
    %66 = vector.broadcast %cst_24 : f32 to vector<8x32xf32>
    %67 = arith.addf %66, %65 : vector<8x32xf32>
    %68 = arith.divf %66, %67 : vector<8x32xf32>
    %69 = vector.extract_strided_slice %56 {offsets = [0, 64], sizes = [8, 32], strides = [1, 1]} : vector<8x128xf32> to vector<8x32xf32>
    %70 = math.tanh %69 : vector<8x32xf32>
    %71 = vector.extract_strided_slice %56 {offsets = [0, 96], sizes = [8, 32], strides = [1, 1]} : vector<8x128xf32> to vector<8x32xf32>
    %72 = arith.negf %71 : vector<8x32xf32>
    %73 = math.exp %72 : vector<8x32xf32>
    %cst_25 = arith.constant 1.000000e+00 : f32
    %74 = vector.broadcast %cst_25 : f32 to vector<8x32xf32>
    %75 = arith.addf %74, %73 : vector<8x32xf32>
    %76 = arith.divf %74, %75 : vector<8x32xf32>
    %77 = arith.mulf %68, %18 : vector<8x32xf32>
    %78 = arith.mulf %62, %70 : vector<8x32xf32>
    %79 = arith.addf %77, %78 : vector<8x32xf32>
    %80 = math.tanh %79 : vector<8x32xf32>
    %81 = arith.mulf %76, %80 : vector<8x32xf32>
    %cst_26 = arith.constant dense<0.000000e+00> : vector<8x32xf32>
    %82 = tpu.matmul %81, %8, %cst_26 {dimension_numbers = #tpu.dot_dimension_numbers<[1], [0], [0], [1], [0, 0, 1, 1], [], []>} : vector<8x32xf32>, vector<32x32xf32>, vector<8x32xf32> -> vector<8x32xf32>
    %83 = vector.broadcast %9 : vector<1x32xf32> to vector<8x32xf32>
    %84 = arith.addf %82, %83 : vector<8x32xf32>
    %c0_27 = arith.constant 0 : index
    %c0_28 = arith.constant 0 : index
    %c0_29 = arith.constant 0 : index
    %85 = vector.load %arg3[%c0_27, %c0_28, %c0_29] : memref<8x8x32xf32, #tpu.memory_space<vmem>>, vector<1x8x32xf32>
    %86 = vector.shape_cast %85 : vector<1x8x32xf32> to vector<8x32xf32>
    %87 = vector.shape_cast %84 : vector<8x32xf32> to vector<1x8x32xf32>
    tpu.vector_store %arg3[%c0_27, %c0_28, %c0_29], %87 {strides = array<i32>} : memref<8x8x32xf32, #tpu.memory_space<vmem>>, vector<1x8x32xf32>,
    %c0_30 = arith.constant 0 : index
    %c0_31 = arith.constant 0 : index
    %c0_32 = arith.constant 0 : index
    %88 = vector.load %arg4[%c0_30, %c0_31, %c0_32] : memref<8x8x16xf32, #tpu.memory_space<vmem>>, vector<1x8x16xf32>
    %89 = vector.shape_cast %88 : vector<1x8x16xf32> to vector<8x16xf32>
    %90 = vector.shape_cast %48 : vector<8x16xf32> to vector<1x8x16xf32>
    tpu.vector_store %arg4[%c0_30, %c0_31, %c0_32], %90 {strides = array<i32>} : memref<8x8x16xf32, #tpu.memory_space<vmem>>, vector<1x8x16xf32>,
    %cst_33 = arith.constant dense<0xFF800000> : vector<8xf32>
    %91 = vector.multi_reduction <maximumf>, %84, %cst_33 [1] : vector<8x32xf32> to vector<8xf32>
    %92 = vector.shape_cast %91 : vector<8xf32> to vector<8x1xf32>
    %93 = vector.broadcast %92 : vector<8x1xf32> to vector<8x32xf32>
    %94 = arith.cmpf oeq, %84, %93 : vector<8x32xf32>
    %cst_34 = arith.constant 3.200000e+01 : f32
    %95 = vector.broadcast %cst_34 : f32 to vector<8x32xf32>
    %96 = arith.select %94, %25, %95 : vector<8x32xi1>, vector<8x32xf32>
    %cst_35 = arith.constant dense<0x7F800000> : vector<8xf32>
    %97 = vector.multi_reduction <minimumf>, %96, %cst_35 [1] : vector<8x32xf32> to vector<8xf32>
    %98 = vector.shape_cast %97 : vector<8xf32> to vector<8x1xf32>
    %99 = vector.broadcast %98 : vector<8x1xf32> to vector<8x32xf32>
    %100 = arith.cmpf oeq, %25, %99 : vector<8x32xf32>
    %101 = arith.extui %100 : vector<8x32xi1> to vector<8x32xi32>
    %102 = arith.sitofp %101 : vector<8x32xi32> to vector<8x32xf32>
    %cst_36 = arith.constant dense<0.000000e+00> : vector<8x16xf32>
    %103 = tpu.matmul %81, %6, %cst_36 {dimension_numbers = #tpu.dot_dimension_numbers<[1], [0], [0], [1], [0, 0, 1, 1], [], []>} : vector<8x32xf32>, vector<32x16xf32>, vector<8x16xf32> -> vector<8x16xf32>
    %104 = vector.shape_cast %103 : vector<8x16xf32> to vector<8x1x16xf32>
    %105 = vector.broadcast %104 : vector<8x1x16xf32> to vector<8x16x16xf32>
    %106 = arith.addf %23, %105 : vector<8x16x16xf32>
    %107 = math.tanh %106 : vector<8x16x16xf32>
    %108 = vector.shape_cast %7 : vector<1x16xf32> to vector<1x1x16xf32>
    %109 = vector.broadcast %108 : vector<1x1x16xf32> to vector<8x16x16xf32>
    %110 = arith.mulf %107, %109 : vector<8x16x16xf32>
    %cst_37 = arith.constant dense<0.000000e+00> : vector<8x16xf32>
    %111 = vector.multi_reduction <add>, %110, %cst_37 [2] : vector<8x16x16xf32> to vector<8x16xf32>
    %cst_38 = arith.constant dense<0xFF800000> : vector<8xf32>
    %112 = vector.multi_reduction <maximumf>, %111, %cst_38 [1] : vector<8x16xf32> to vector<8xf32>
    %113 = vector.shape_cast %112 : vector<8xf32> to vector<8x1xf32>
    %114 = vector.broadcast %113 : vector<8x1xf32> to vector<8x16xf32>
    %115 = arith.subf %111, %114 : vector<8x16xf32>
    %116 = math.exp %115 : vector<8x16xf32>
    %cst_39 = arith.constant dense<0.000000e+00> : vector<8xf32>
    %117 = vector.multi_reduction <add>, %116, %cst_39 [1] : vector<8x16xf32> to vector<8xf32>
    %118 = vector.shape_cast %117 : vector<8xf32> to vector<8x1xf32>
    %119 = tpu.reciprocal %118 {approx = true} : vector<8x1xf32> -> vector<8x1xf32>
    %120 = vector.broadcast %119 : vector<8x1xf32> to vector<8x16xf32>
    %121 = arith.mulf %116, %120 : vector<8x16xf32>
    %122 = vector.shape_cast %121 : vector<8x16xf32> to vector<8x16x1xf32>
    %123 = vector.broadcast %122 : vector<8x16x1xf32> to vector<8x16x16xf32>
    %124 = arith.mulf %10, %123 : vector<8x16x16xf32>
    %cst_40 = arith.constant dense<0.000000e+00> : vector<8x16xf32>
    %125 = vector.multi_reduction <add>, %124, %cst_40 [1] : vector<8x16x16xf32> to vector<8x16xf32>
    %126 = tpu.concatenate %102, %125, %81 in 1 : vector<8x32xf32>, vector<8x16xf32>, vector<8x32xf32> -> vector<8x80xf32>
    %cst_41 = arith.constant dense<0.000000e+00> : vector<8x128xf32>
    %127 = tpu.matmul %126, %0, %cst_41 {dimension_numbers = #tpu.dot_dimension_numbers<[1], [0], [0], [1], [0, 0, 1, 1], [], []>} : vector<8x80xf32>, vector<80x128xf32>, vector<8x128xf32> -> vector<8x128xf32>
    %128 = vector.broadcast %1 : vector<1x128xf32> to vector<8x128xf32>
    %129 = arith.addf %127, %128 : vector<8x128xf32>
    %130 = vector.extract_strided_slice %129 {offsets = [0, 0], sizes = [8, 32], strides = [1, 1]} : vector<8x128xf32> to vector<8x32xf32>
    %131 = arith.negf %130 : vector<8x32xf32>
    %132 = math.exp %131 : vector<8x32xf32>
    %cst_42 = arith.constant 1.000000e+00 : f32
    %133 = vector.broadcast %cst_42 : f32 to vector<8x32xf32>
    %134 = arith.addf %133, %132 : vector<8x32xf32>
    %135 = arith.divf %133, %134 : vector<8x32xf32>
    %136 = vector.extract_strided_slice %129 {offsets = [0, 32], sizes = [8, 32], strides = [1, 1]} : vector<8x128xf32> to vector<8x32xf32>
    %137 = arith.negf %136 : vector<8x32xf32>
    %138 = math.exp %137 : vector<8x32xf32>
    %cst_43 = arith.constant 1.000000e+00 : f32
    %139 = vector.broadcast %cst_43 : f32 to vector<8x32xf32>
    %140 = arith.addf %139, %138 : vector<8x32xf32>
    %141 = arith.divf %139, %140 : vector<8x32xf32>
    %142 = vector.extract_strided_slice %129 {offsets = [0, 64], sizes = [8, 32], strides = [1, 1]} : vector<8x128xf32> to vector<8x32xf32>
    %143 = math.tanh %142 : vector<8x32xf32>
    %144 = vector.extract_strided_slice %129 {offsets = [0, 96], sizes = [8, 32], strides = [1, 1]} : vector<8x128xf32> to vector<8x32xf32>
    %145 = arith.negf %144 : vector<8x32xf32>
    %146 = math.exp %145 : vector<8x32xf32>
    %cst_44 = arith.constant 1.000000e+00 : f32
    %147 = vector.broadcast %cst_44 : f32 to vector<8x32xf32>
    %148 = arith.addf %147, %146 : vector<8x32xf32>
    %149 = arith.divf %147, %148 : vector<8x32xf32>
    %150 = arith.mulf %141, %79 : vector<8x32xf32>
    %151 = arith.mulf %135, %143 : vector<8x32xf32>
    %152 = arith.addf %150, %151 : vector<8x32xf32>
    %153 = math.tanh %152 : vector<8x32xf32>
    %154 = arith.mulf %149, %153 : vector<8x32xf32>
    %cst_45 = arith.constant dense<0.000000e+00> : vector<8x32xf32>
    %155 = tpu.matmul %154, %8, %cst_45 {dimension_numbers = #tpu.dot_dimension_numbers<[1], [0], [0], [1], [0, 0, 1, 1], [], []>} : vector<8x32xf32>, vector<32x32xf32>, vector<8x32xf32> -> vector<8x32xf32>
    %156 = vector.broadcast %9 : vector<1x32xf32> to vector<8x32xf32>
    %157 = arith.addf %155, %156 : vector<8x32xf32>
    %c1 = arith.constant 1 : index
    %c0_46 = arith.constant 0 : index
    %c0_47 = arith.constant 0 : index
    %158 = vector.load %arg3[%c1, %c0_46, %c0_47] : memref<8x8x32xf32, #tpu.memory_space<vmem>>, vector<1x8x32xf32>
    %159 = vector.shape_cast %158 : vector<1x8x32xf32> to vector<8x32xf32>
    %160 = vector.shape_cast %157 : vector<8x32xf32> to vector<1x8x32xf32>
    tpu.vector_store %arg3[%c1, %c0_46, %c0_47], %160 {strides = array<i32>} : memref<8x8x32xf32, #tpu.memory_space<vmem>>, vector<1x8x32xf32>,
    %c1_48 = arith.constant 1 : index
    %c0_49 = arith.constant 0 : index
    %c0_50 = arith.constant 0 : index
    %161 = vector.load %arg4[%c1_48, %c0_49, %c0_50] : memref<8x8x16xf32, #tpu.memory_space<vmem>>, vector<1x8x16xf32>
    %162 = vector.shape_cast %161 : vector<1x8x16xf32> to vector<8x16xf32>
    %163 = vector.shape_cast %121 : vector<8x16xf32> to vector<1x8x16xf32>
    tpu.vector_store %arg4[%c1_48, %c0_49, %c0_50], %163 {strides = array<i32>} : memref<8x8x16xf32, #tpu.memory_space<vmem>>, vector<1x8x16xf32>,
    %cst_51 = arith.constant dense<0xFF800000> : vector<8xf32>
    %164 = vector.multi_reduction <maximumf>, %157, %cst_51 [1] : vector<8x32xf32> to vector<8xf32>
    %165 = vector.shape_cast %164 : vector<8xf32> to vector<8x1xf32>
    %166 = vector.broadcast %165 : vector<8x1xf32> to vector<8x32xf32>
    %167 = arith.cmpf oeq, %157, %166 : vector<8x32xf32>
    %cst_52 = arith.constant 3.200000e+01 : f32
    %168 = vector.broadcast %cst_52 : f32 to vector<8x32xf32>
    %169 = arith.select %167, %25, %168 : vector<8x32xi1>, vector<8x32xf32>
    %cst_53 = arith.constant dense<0x7F800000> : vector<8xf32>
    %170 = vector.multi_reduction <minimumf>, %169, %cst_53 [1] : vector<8x32xf32> to vector<8xf32>
    %171 = vector.shape_cast %170 : vector<8xf32> to vector<8x1xf32>
    %172 = vector.broadcast %171 : vector<8x1xf32> to vector<8x32xf32>
    %173 = arith.cmpf oeq, %25, %172 : vector<8x32xf32>
    %174 = arith.extui %173 : vector<8x32xi1> to vector<8x32xi32>
    %175 = arith.sitofp %174 : vector<8x32xi32> to vector<8x32xf32>
    %cst_54 = arith.constant dense<0.000000e+00> : vector<8x16xf32>
    %176 = tpu.matmul %154, %6, %cst_54 {dimension_numbers = #tpu.dot_dimension_numbers<[1], [0], [0], [1], [0, 0, 1, 1], [], []>} : vector<8x32xf32>, vector<32x16xf32>, vector<8x16xf32> -> vector<8x16xf32>
    %177 = vector.shape_cast %176 : vector<8x16xf32> to vector<8x1x16xf32>
    %178 = vector.broadcast %177 : vector<8x1x16xf32> to vector<8x16x16xf32>
    %179 = arith.addf %23, %178 : vector<8x16x16xf32>
    %180 = math.tanh %179 : vector<8x16x16xf32>
    %181 = vector.shape_cast %7 : vector<1x16xf32> to vector<1x1x16xf32>
    %182 = vector.broadcast %181 : vector<1x1x16xf32> to vector<8x16x16xf32>
    %183 = arith.mulf %180, %182 : vector<8x16x16xf32>
    %cst_55 = arith.constant dense<0.000000e+00> : vector<8x16xf32>
    %184 = vector.multi_reduction <add>, %183, %cst_55 [2] : vector<8x16x16xf32> to vector<8x16xf32>
    %cst_56 = arith.constant dense<0xFF800000> : vector<8xf32>
    %185 = vector.multi_reduction <maximumf>, %184, %cst_56 [1] : vector<8x16xf32> to vector<8xf32>
    %186 = vector.shape_cast %185 : vector<8xf32> to vector<8x1xf32>
    %187 = vector.broadcast %186 : vector<8x1xf32> to vector<8x16xf32>
    %188 = arith.subf %184, %187 : vector<8x16xf32>
    %189 = math.exp %188 : vector<8x16xf32>
    %cst_57 = arith.constant dense<0.000000e+00> : vector<8xf32>
    %190 = vector.multi_reduction <add>, %189, %cst_57 [1] : vector<8x16xf32> to vector<8xf32>
    %191 = vector.shape_cast %190 : vector<8xf32> to vector<8x1xf32>
    %192 = tpu.reciprocal %191 {approx = true} : vector<8x1xf32> -> vector<8x1xf32>
    %193 = vector.broadcast %192 : vector<8x1xf32> to vector<8x16xf32>
    %194 = arith.mulf %189, %193 : vector<8x16xf32>
    %195 = vector.shape_cast %194 : vector<8x16xf32> to vector<8x16x1xf32>
    %196 = vector.broadcast %195 : vector<8x16x1xf32> to vector<8x16x16xf32>
    %197 = arith.mulf %10, %196 : vector<8x16x16xf32>
    %cst_58 = arith.constant dense<0.000000e+00> : vector<8x16xf32>
    %198 = vector.multi_reduction <add>, %197, %cst_58 [1] : vector<8x16x16xf32> to vector<8x16xf32>
    %199 = tpu.concatenate %175, %198, %154 in 1 : vector<8x32xf32>, vector<8x16xf32>, vector<8x32xf32> -> vector<8x80xf32>
    %cst_59 = arith.constant dense<0.000000e+00> : vector<8x128xf32>
    %200 = tpu.matmul %199, %0, %cst_59 {dimension_numbers = #tpu.dot_dimension_numbers<[1], [0], [0], [1], [0, 0, 1, 1], [], []>} : vector<8x80xf32>, vector<80x128xf32>, vector<8x128xf32> -> vector<8x128xf32>
    %201 = vector.broadcast %1 : vector<1x128xf32> to vector<8x128xf32>
    %202 = arith.addf %200, %201 : vector<8x128xf32>
    %203 = vector.extract_strided_slice %202 {offsets = [0, 0], sizes = [8, 32], strides = [1, 1]} : vector<8x128xf32> to vector<8x32xf32>
    %204 = arith.negf %203 : vector<8x32xf32>
    %205 = math.exp %204 : vector<8x32xf32>
    %cst_60 = arith.constant 1.000000e+00 : f32
    %206 = vector.broadcast %cst_60 : f32 to vector<8x32xf32>
    %207 = arith.addf %206, %205 : vector<8x32xf32>
    %208 = arith.divf %206, %207 : vector<8x32xf32>
    %209 = vector.extract_strided_slice %202 {offsets = [0, 32], sizes = [8, 32], strides = [1, 1]} : vector<8x128xf32> to vector<8x32xf32>
    %210 = arith.negf %209 : vector<8x32xf32>
    %211 = math.exp %210 : vector<8x32xf32>
    %cst_61 = arith.constant 1.000000e+00 : f32
    %212 = vector.broadcast %cst_61 : f32 to vector<8x32xf32>
    %213 = arith.addf %212, %211 : vector<8x32xf32>
    %214 = arith.divf %212, %213 : vector<8x32xf32>
    %215 = vector.extract_strided_slice %202 {offsets = [0, 64], sizes = [8, 32], strides = [1, 1]} : vector<8x128xf32> to vector<8x32xf32>
    %216 = math.tanh %215 : vector<8x32xf32>
    %217 = vector.extract_strided_slice %202 {offsets = [0, 96], sizes = [8, 32], strides = [1, 1]} : vector<8x128xf32> to vector<8x32xf32>
    %218 = arith.negf %217 : vector<8x32xf32>
    %219 = math.exp %218 : vector<8x32xf32>
    %cst_62 = arith.constant 1.000000e+00 : f32
    %220 = vector.broadcast %cst_62 : f32 to vector<8x32xf32>
    %221 = arith.addf %220, %219 : vector<8x32xf32>
    %222 = arith.divf %220, %221 : vector<8x32xf32>
    %223 = arith.mulf %214, %152 : vector<8x32xf32>
    %224 = arith.mulf %208, %216 : vector<8x32xf32>
    %225 = arith.addf %223, %224 : vector<8x32xf32>
    %226 = math.tanh %225 : vector<8x32xf32>
    %227 = arith.mulf %222, %226 : vector<8x32xf32>
    %cst_63 = arith.constant dense<0.000000e+00> : vector<8x32xf32>
    %228 = tpu.matmul %227, %8, %cst_63 {dimension_numbers = #tpu.dot_dimension_numbers<[1], [0], [0], [1], [0, 0, 1, 1], [], []>} : vector<8x32xf32>, vector<32x32xf32>, vector<8x32xf32> -> vector<8x32xf32>
    %229 = vector.broadcast %9 : vector<1x32xf32> to vector<8x32xf32>
    %230 = arith.addf %228, %229 : vector<8x32xf32>
    %c2 = arith.constant 2 : index
    %c0_64 = arith.constant 0 : index
    %c0_65 = arith.constant 0 : index
    %231 = vector.load %arg3[%c2, %c0_64, %c0_65] : memref<8x8x32xf32, #tpu.memory_space<vmem>>, vector<1x8x32xf32>
    %232 = vector.shape_cast %231 : vector<1x8x32xf32> to vector<8x32xf32>
    %233 = vector.shape_cast %230 : vector<8x32xf32> to vector<1x8x32xf32>
    tpu.vector_store %arg3[%c2, %c0_64, %c0_65], %233 {strides = array<i32>} : memref<8x8x32xf32, #tpu.memory_space<vmem>>, vector<1x8x32xf32>,
    %c2_66 = arith.constant 2 : index
    %c0_67 = arith.constant 0 : index
    %c0_68 = arith.constant 0 : index
    %234 = vector.load %arg4[%c2_66, %c0_67, %c0_68] : memref<8x8x16xf32, #tpu.memory_space<vmem>>, vector<1x8x16xf32>
    %235 = vector.shape_cast %234 : vector<1x8x16xf32> to vector<8x16xf32>
    %236 = vector.shape_cast %194 : vector<8x16xf32> to vector<1x8x16xf32>
    tpu.vector_store %arg4[%c2_66, %c0_67, %c0_68], %236 {strides = array<i32>} : memref<8x8x16xf32, #tpu.memory_space<vmem>>, vector<1x8x16xf32>,
    %cst_69 = arith.constant dense<0xFF800000> : vector<8xf32>
    %237 = vector.multi_reduction <maximumf>, %230, %cst_69 [1] : vector<8x32xf32> to vector<8xf32>
    %238 = vector.shape_cast %237 : vector<8xf32> to vector<8x1xf32>
    %239 = vector.broadcast %238 : vector<8x1xf32> to vector<8x32xf32>
    %240 = arith.cmpf oeq, %230, %239 : vector<8x32xf32>
    %cst_70 = arith.constant 3.200000e+01 : f32
    %241 = vector.broadcast %cst_70 : f32 to vector<8x32xf32>
    %242 = arith.select %240, %25, %241 : vector<8x32xi1>, vector<8x32xf32>
    %cst_71 = arith.constant dense<0x7F800000> : vector<8xf32>
    %243 = vector.multi_reduction <minimumf>, %242, %cst_71 [1] : vector<8x32xf32> to vector<8xf32>
    %244 = vector.shape_cast %243 : vector<8xf32> to vector<8x1xf32>
    %245 = vector.broadcast %244 : vector<8x1xf32> to vector<8x32xf32>
    %246 = arith.cmpf oeq, %25, %245 : vector<8x32xf32>
    %247 = arith.extui %246 : vector<8x32xi1> to vector<8x32xi32>
    %248 = arith.sitofp %247 : vector<8x32xi32> to vector<8x32xf32>
    %cst_72 = arith.constant dense<0.000000e+00> : vector<8x16xf32>
    %249 = tpu.matmul %227, %6, %cst_72 {dimension_numbers = #tpu.dot_dimension_numbers<[1], [0], [0], [1], [0, 0, 1, 1], [], []>} : vector<8x32xf32>, vector<32x16xf32>, vector<8x16xf32> -> vector<8x16xf32>
    %250 = vector.shape_cast %249 : vector<8x16xf32> to vector<8x1x16xf32>
    %251 = vector.broadcast %250 : vector<8x1x16xf32> to vector<8x16x16xf32>
    %252 = arith.addf %23, %251 : vector<8x16x16xf32>
    %253 = math.tanh %252 : vector<8x16x16xf32>
    %254 = vector.shape_cast %7 : vector<1x16xf32> to vector<1x1x16xf32>
    %255 = vector.broadcast %254 : vector<1x1x16xf32> to vector<8x16x16xf32>
    %256 = arith.mulf %253, %255 : vector<8x16x16xf32>
    %cst_73 = arith.constant dense<0.000000e+00> : vector<8x16xf32>
    %257 = vector.multi_reduction <add>, %256, %cst_73 [2] : vector<8x16x16xf32> to vector<8x16xf32>
    %cst_74 = arith.constant dense<0xFF800000> : vector<8xf32>
    %258 = vector.multi_reduction <maximumf>, %257, %cst_74 [1] : vector<8x16xf32> to vector<8xf32>
    %259 = vector.shape_cast %258 : vector<8xf32> to vector<8x1xf32>
    %260 = vector.broadcast %259 : vector<8x1xf32> to vector<8x16xf32>
    %261 = arith.subf %257, %260 : vector<8x16xf32>
    %262 = math.exp %261 : vector<8x16xf32>
    %cst_75 = arith.constant dense<0.000000e+00> : vector<8xf32>
    %263 = vector.multi_reduction <add>, %262, %cst_75 [1] : vector<8x16xf32> to vector<8xf32>
    %264 = vector.shape_cast %263 : vector<8xf32> to vector<8x1xf32>
    %265 = tpu.reciprocal %264 {approx = true} : vector<8x1xf32> -> vector<8x1xf32>
    %266 = vector.broadcast %265 : vector<8x1xf32> to vector<8x16xf32>
    %267 = arith.mulf %262, %266 : vector<8x16xf32>
    %268 = vector.shape_cast %267 : vector<8x16xf32> to vector<8x16x1xf32>
    %269 = vector.broadcast %268 : vector<8x16x1xf32> to vector<8x16x16xf32>
    %270 = arith.mulf %10, %269 : vector<8x16x16xf32>
    %cst_76 = arith.constant dense<0.000000e+00> : vector<8x16xf32>
    %271 = vector.multi_reduction <add>, %270, %cst_76 [1] : vector<8x16x16xf32> to vector<8x16xf32>
    %272 = tpu.concatenate %248, %271, %227 in 1 : vector<8x32xf32>, vector<8x16xf32>, vector<8x32xf32> -> vector<8x80xf32>
    %cst_77 = arith.constant dense<0.000000e+00> : vector<8x128xf32>
    %273 = tpu.matmul %272, %0, %cst_77 {dimension_numbers = #tpu.dot_dimension_numbers<[1], [0], [0], [1], [0, 0, 1, 1], [], []>} : vector<8x80xf32>, vector<80x128xf32>, vector<8x128xf32> -> vector<8x128xf32>
    %274 = vector.broadcast %1 : vector<1x128xf32> to vector<8x128xf32>
    %275 = arith.addf %273, %274 : vector<8x128xf32>
    %276 = vector.extract_strided_slice %275 {offsets = [0, 0], sizes = [8, 32], strides = [1, 1]} : vector<8x128xf32> to vector<8x32xf32>
    %277 = arith.negf %276 : vector<8x32xf32>
    %278 = math.exp %277 : vector<8x32xf32>
    %cst_78 = arith.constant 1.000000e+00 : f32
    %279 = vector.broadcast %cst_78 : f32 to vector<8x32xf32>
    %280 = arith.addf %279, %278 : vector<8x32xf32>
    %281 = arith.divf %279, %280 : vector<8x32xf32>
    %282 = vector.extract_strided_slice %275 {offsets = [0, 32], sizes = [8, 32], strides = [1, 1]} : vector<8x128xf32> to vector<8x32xf32>
    %283 = arith.negf %282 : vector<8x32xf32>
    %284 = math.exp %283 : vector<8x32xf32>
    %cst_79 = arith.constant 1.000000e+00 : f32
    %285 = vector.broadcast %cst_79 : f32 to vector<8x32xf32>
    %286 = arith.addf %285, %284 : vector<8x32xf32>
    %287 = arith.divf %285, %286 : vector<8x32xf32>
    %288 = vector.extract_strided_slice %275 {offsets = [0, 64], sizes = [8, 32], strides = [1, 1]} : vector<8x128xf32> to vector<8x32xf32>
    %289 = math.tanh %288 : vector<8x32xf32>
    %290 = vector.extract_strided_slice %275 {offsets = [0, 96], sizes = [8, 32], strides = [1, 1]} : vector<8x128xf32> to vector<8x32xf32>
    %291 = arith.negf %290 : vector<8x32xf32>
    %292 = math.exp %291 : vector<8x32xf32>
    %cst_80 = arith.constant 1.000000e+00 : f32
    %293 = vector.broadcast %cst_80 : f32 to vector<8x32xf32>
    %294 = arith.addf %293, %292 : vector<8x32xf32>
    %295 = arith.divf %293, %294 : vector<8x32xf32>
    %296 = arith.mulf %287, %225 : vector<8x32xf32>
    %297 = arith.mulf %281, %289 : vector<8x32xf32>
    %298 = arith.addf %296, %297 : vector<8x32xf32>
    %299 = math.tanh %298 : vector<8x32xf32>
    %300 = arith.mulf %295, %299 : vector<8x32xf32>
    %cst_81 = arith.constant dense<0.000000e+00> : vector<8x32xf32>
    %301 = tpu.matmul %300, %8, %cst_81 {dimension_numbers = #tpu.dot_dimension_numbers<[1], [0], [0], [1], [0, 0, 1, 1], [], []>} : vector<8x32xf32>, vector<32x32xf32>, vector<8x32xf32> -> vector<8x32xf32>
    %302 = vector.broadcast %9 : vector<1x32xf32> to vector<8x32xf32>
    %303 = arith.addf %301, %302 : vector<8x32xf32>
    %c3 = arith.constant 3 : index
    %c0_82 = arith.constant 0 : index
    %c0_83 = arith.constant 0 : index
    %304 = vector.load %arg3[%c3, %c0_82, %c0_83] : memref<8x8x32xf32, #tpu.memory_space<vmem>>, vector<1x8x32xf32>
    %305 = vector.shape_cast %304 : vector<1x8x32xf32> to vector<8x32xf32>
    %306 = vector.shape_cast %303 : vector<8x32xf32> to vector<1x8x32xf32>
    tpu.vector_store %arg3[%c3, %c0_82, %c0_83], %306 {strides = array<i32>} : memref<8x8x32xf32, #tpu.memory_space<vmem>>, vector<1x8x32xf32>,
    %c3_84 = arith.constant 3 : index
    %c0_85 = arith.constant 0 : index
    %c0_86 = arith.constant 0 : index
    %307 = vector.load %arg4[%c3_84, %c0_85, %c0_86] : memref<8x8x16xf32, #tpu.memory_space<vmem>>, vector<1x8x16xf32>
    %308 = vector.shape_cast %307 : vector<1x8x16xf32> to vector<8x16xf32>
    %309 = vector.shape_cast %267 : vector<8x16xf32> to vector<1x8x16xf32>
    tpu.vector_store %arg4[%c3_84, %c0_85, %c0_86], %309 {strides = array<i32>} : memref<8x8x16xf32, #tpu.memory_space<vmem>>, vector<1x8x16xf32>,
    %cst_87 = arith.constant dense<0xFF800000> : vector<8xf32>
    %310 = vector.multi_reduction <maximumf>, %303, %cst_87 [1] : vector<8x32xf32> to vector<8xf32>
    %311 = vector.shape_cast %310 : vector<8xf32> to vector<8x1xf32>
    %312 = vector.broadcast %311 : vector<8x1xf32> to vector<8x32xf32>
    %313 = arith.cmpf oeq, %303, %312 : vector<8x32xf32>
    %cst_88 = arith.constant 3.200000e+01 : f32
    %314 = vector.broadcast %cst_88 : f32 to vector<8x32xf32>
    %315 = arith.select %313, %25, %314 : vector<8x32xi1>, vector<8x32xf32>
    %cst_89 = arith.constant dense<0x7F800000> : vector<8xf32>
    %316 = vector.multi_reduction <minimumf>, %315, %cst_89 [1] : vector<8x32xf32> to vector<8xf32>
    %317 = vector.shape_cast %316 : vector<8xf32> to vector<8x1xf32>
    %318 = vector.broadcast %317 : vector<8x1xf32> to vector<8x32xf32>
    %319 = arith.cmpf oeq, %25, %318 : vector<8x32xf32>
    %320 = arith.extui %319 : vector<8x32xi1> to vector<8x32xi32>
    %321 = arith.sitofp %320 : vector<8x32xi32> to vector<8x32xf32>
    %cst_90 = arith.constant dense<0.000000e+00> : vector<8x16xf32>
    %322 = tpu.matmul %300, %6, %cst_90 {dimension_numbers = #tpu.dot_dimension_numbers<[1], [0], [0], [1], [0, 0, 1, 1], [], []>} : vector<8x32xf32>, vector<32x16xf32>, vector<8x16xf32> -> vector<8x16xf32>
    %323 = vector.shape_cast %322 : vector<8x16xf32> to vector<8x1x16xf32>
    %324 = vector.broadcast %323 : vector<8x1x16xf32> to vector<8x16x16xf32>
    %325 = arith.addf %23, %324 : vector<8x16x16xf32>
    %326 = math.tanh %325 : vector<8x16x16xf32>
    %327 = vector.shape_cast %7 : vector<1x16xf32> to vector<1x1x16xf32>
    %328 = vector.broadcast %327 : vector<1x1x16xf32> to vector<8x16x16xf32>
    %329 = arith.mulf %326, %328 : vector<8x16x16xf32>
    %cst_91 = arith.constant dense<0.000000e+00> : vector<8x16xf32>
    %330 = vector.multi_reduction <add>, %329, %cst_91 [2] : vector<8x16x16xf32> to vector<8x16xf32>
    %cst_92 = arith.constant dense<0xFF800000> : vector<8xf32>
    %331 = vector.multi_reduction <maximumf>, %330, %cst_92 [1] : vector<8x16xf32> to vector<8xf32>
    %332 = vector.shape_cast %331 : vector<8xf32> to vector<8x1xf32>
    %333 = vector.broadcast %332 : vector<8x1xf32> to vector<8x16xf32>
    %334 = arith.subf %330, %333 : vector<8x16xf32>
    %335 = math.exp %334 : vector<8x16xf32>
    %cst_93 = arith.constant dense<0.000000e+00> : vector<8xf32>
    %336 = vector.multi_reduction <add>, %335, %cst_93 [1] : vector<8x16xf32> to vector<8xf32>
    %337 = vector.shape_cast %336 : vector<8xf32> to vector<8x1xf32>
    %338 = tpu.reciprocal %337 {approx = true} : vector<8x1xf32> -> vector<8x1xf32>
    %339 = vector.broadcast %338 : vector<8x1xf32> to vector<8x16xf32>
    %340 = arith.mulf %335, %339 : vector<8x16xf32>
    %341 = vector.shape_cast %340 : vector<8x16xf32> to vector<8x16x1xf32>
    %342 = vector.broadcast %341 : vector<8x16x1xf32> to vector<8x16x16xf32>
    %343 = arith.mulf %10, %342 : vector<8x16x16xf32>
    %cst_94 = arith.constant dense<0.000000e+00> : vector<8x16xf32>
    %344 = vector.multi_reduction <add>, %343, %cst_94 [1] : vector<8x16x16xf32> to vector<8x16xf32>
    %345 = tpu.concatenate %321, %344, %300 in 1 : vector<8x32xf32>, vector<8x16xf32>, vector<8x32xf32> -> vector<8x80xf32>
    %cst_95 = arith.constant dense<0.000000e+00> : vector<8x128xf32>
    %346 = tpu.matmul %345, %0, %cst_95 {dimension_numbers = #tpu.dot_dimension_numbers<[1], [0], [0], [1], [0, 0, 1, 1], [], []>} : vector<8x80xf32>, vector<80x128xf32>, vector<8x128xf32> -> vector<8x128xf32>
    %347 = vector.broadcast %1 : vector<1x128xf32> to vector<8x128xf32>
    %348 = arith.addf %346, %347 : vector<8x128xf32>
    %349 = vector.extract_strided_slice %348 {offsets = [0, 0], sizes = [8, 32], strides = [1, 1]} : vector<8x128xf32> to vector<8x32xf32>
    %350 = arith.negf %349 : vector<8x32xf32>
    %351 = math.exp %350 : vector<8x32xf32>
    %cst_96 = arith.constant 1.000000e+00 : f32
    %352 = vector.broadcast %cst_96 : f32 to vector<8x32xf32>
    %353 = arith.addf %352, %351 : vector<8x32xf32>
    %354 = arith.divf %352, %353 : vector<8x32xf32>
    %355 = vector.extract_strided_slice %348 {offsets = [0, 32], sizes = [8, 32], strides = [1, 1]} : vector<8x128xf32> to vector<8x32xf32>
    %356 = arith.negf %355 : vector<8x32xf32>
    %357 = math.exp %356 : vector<8x32xf32>
    %cst_97 = arith.constant 1.000000e+00 : f32
    %358 = vector.broadcast %cst_97 : f32 to vector<8x32xf32>
    %359 = arith.addf %358, %357 : vector<8x32xf32>
    %360 = arith.divf %358, %359 : vector<8x32xf32>
    %361 = vector.extract_strided_slice %348 {offsets = [0, 64], sizes = [8, 32], strides = [1, 1]} : vector<8x128xf32> to vector<8x32xf32>
    %362 = math.tanh %361 : vector<8x32xf32>
    %363 = vector.extract_strided_slice %348 {offsets = [0, 96], sizes = [8, 32], strides = [1, 1]} : vector<8x128xf32> to vector<8x32xf32>
    %364 = arith.negf %363 : vector<8x32xf32>
    %365 = math.exp %364 : vector<8x32xf32>
    %cst_98 = arith.constant 1.000000e+00 : f32
    %366 = vector.broadcast %cst_98 : f32 to vector<8x32xf32>
    %367 = arith.addf %366, %365 : vector<8x32xf32>
    %368 = arith.divf %366, %367 : vector<8x32xf32>
    %369 = arith.mulf %360, %298 : vector<8x32xf32>
    %370 = arith.mulf %354, %362 : vector<8x32xf32>
    %371 = arith.addf %369, %370 : vector<8x32xf32>
    %372 = math.tanh %371 : vector<8x32xf32>
    %373 = arith.mulf %368, %372 : vector<8x32xf32>
    %cst_99 = arith.constant dense<0.000000e+00> : vector<8x32xf32>
    %374 = tpu.matmul %373, %8, %cst_99 {dimension_numbers = #tpu.dot_dimension_numbers<[1], [0], [0], [1], [0, 0, 1, 1], [], []>} : vector<8x32xf32>, vector<32x32xf32>, vector<8x32xf32> -> vector<8x32xf32>
    %375 = vector.broadcast %9 : vector<1x32xf32> to vector<8x32xf32>
    %376 = arith.addf %374, %375 : vector<8x32xf32>
    %c4 = arith.constant 4 : index
    %c0_100 = arith.constant 0 : index
    %c0_101 = arith.constant 0 : index
    %377 = vector.load %arg3[%c4, %c0_100, %c0_101] : memref<8x8x32xf32, #tpu.memory_space<vmem>>, vector<1x8x32xf32>
    %378 = vector.shape_cast %377 : vector<1x8x32xf32> to vector<8x32xf32>
    %379 = vector.shape_cast %376 : vector<8x32xf32> to vector<1x8x32xf32>
    tpu.vector_store %arg3[%c4, %c0_100, %c0_101], %379 {strides = array<i32>} : memref<8x8x32xf32, #tpu.memory_space<vmem>>, vector<1x8x32xf32>,
    %c4_102 = arith.constant 4 : index
    %c0_103 = arith.constant 0 : index
    %c0_104 = arith.constant 0 : index
    %380 = vector.load %arg4[%c4_102, %c0_103, %c0_104] : memref<8x8x16xf32, #tpu.memory_space<vmem>>, vector<1x8x16xf32>
    %381 = vector.shape_cast %380 : vector<1x8x16xf32> to vector<8x16xf32>
    %382 = vector.shape_cast %340 : vector<8x16xf32> to vector<1x8x16xf32>
    tpu.vector_store %arg4[%c4_102, %c0_103, %c0_104], %382 {strides = array<i32>} : memref<8x8x16xf32, #tpu.memory_space<vmem>>, vector<1x8x16xf32>,
    %cst_105 = arith.constant dense<0xFF800000> : vector<8xf32>
    %383 = vector.multi_reduction <maximumf>, %376, %cst_105 [1] : vector<8x32xf32> to vector<8xf32>
    %384 = vector.shape_cast %383 : vector<8xf32> to vector<8x1xf32>
    %385 = vector.broadcast %384 : vector<8x1xf32> to vector<8x32xf32>
    %386 = arith.cmpf oeq, %376, %385 : vector<8x32xf32>
    %cst_106 = arith.constant 3.200000e+01 : f32
    %387 = vector.broadcast %cst_106 : f32 to vector<8x32xf32>
    %388 = arith.select %386, %25, %387 : vector<8x32xi1>, vector<8x32xf32>
    %cst_107 = arith.constant dense<0x7F800000> : vector<8xf32>
    %389 = vector.multi_reduction <minimumf>, %388, %cst_107 [1] : vector<8x32xf32> to vector<8xf32>
    %390 = vector.shape_cast %389 : vector<8xf32> to vector<8x1xf32>
    %391 = vector.broadcast %390 : vector<8x1xf32> to vector<8x32xf32>
    %392 = arith.cmpf oeq, %25, %391 : vector<8x32xf32>
    %393 = arith.extui %392 : vector<8x32xi1> to vector<8x32xi32>
    %394 = arith.sitofp %393 : vector<8x32xi32> to vector<8x32xf32>
    %cst_108 = arith.constant dense<0.000000e+00> : vector<8x16xf32>
    %395 = tpu.matmul %373, %6, %cst_108 {dimension_numbers = #tpu.dot_dimension_numbers<[1], [0], [0], [1], [0, 0, 1, 1], [], []>} : vector<8x32xf32>, vector<32x16xf32>, vector<8x16xf32> -> vector<8x16xf32>
    %396 = vector.shape_cast %395 : vector<8x16xf32> to vector<8x1x16xf32>
    %397 = vector.broadcast %396 : vector<8x1x16xf32> to vector<8x16x16xf32>
    %398 = arith.addf %23, %397 : vector<8x16x16xf32>
    %399 = math.tanh %398 : vector<8x16x16xf32>
    %400 = vector.shape_cast %7 : vector<1x16xf32> to vector<1x1x16xf32>
    %401 = vector.broadcast %400 : vector<1x1x16xf32> to vector<8x16x16xf32>
    %402 = arith.mulf %399, %401 : vector<8x16x16xf32>
    %cst_109 = arith.constant dense<0.000000e+00> : vector<8x16xf32>
    %403 = vector.multi_reduction <add>, %402, %cst_109 [2] : vector<8x16x16xf32> to vector<8x16xf32>
    %cst_110 = arith.constant dense<0xFF800000> : vector<8xf32>
    %404 = vector.multi_reduction <maximumf>, %403, %cst_110 [1] : vector<8x16xf32> to vector<8xf32>
    %405 = vector.shape_cast %404 : vector<8xf32> to vector<8x1xf32>
    %406 = vector.broadcast %405 : vector<8x1xf32> to vector<8x16xf32>
    %407 = arith.subf %403, %406 : vector<8x16xf32>
    %408 = math.exp %407 : vector<8x16xf32>
    %cst_111 = arith.constant dense<0.000000e+00> : vector<8xf32>
    %409 = vector.multi_reduction <add>, %408, %cst_111 [1] : vector<8x16xf32> to vector<8xf32>
    %410 = vector.shape_cast %409 : vector<8xf32> to vector<8x1xf32>
    %411 = tpu.reciprocal %410 {approx = true} : vector<8x1xf32> -> vector<8x1xf32>
    %412 = vector.broadcast %411 : vector<8x1xf32> to vector<8x16xf32>
    %413 = arith.mulf %408, %412 : vector<8x16xf32>
    %414 = vector.shape_cast %413 : vector<8x16xf32> to vector<8x16x1xf32>
    %415 = vector.broadcast %414 : vector<8x16x1xf32> to vector<8x16x16xf32>
    %416 = arith.mulf %10, %415 : vector<8x16x16xf32>
    %cst_112 = arith.constant dense<0.000000e+00> : vector<8x16xf32>
    %417 = vector.multi_reduction <add>, %416, %cst_112 [1] : vector<8x16x16xf32> to vector<8x16xf32>
    %418 = tpu.concatenate %394, %417, %373 in 1 : vector<8x32xf32>, vector<8x16xf32>, vector<8x32xf32> -> vector<8x80xf32>
    %cst_113 = arith.constant dense<0.000000e+00> : vector<8x128xf32>
    %419 = tpu.matmul %418, %0, %cst_113 {dimension_numbers = #tpu.dot_dimension_numbers<[1], [0], [0], [1], [0, 0, 1, 1], [], []>} : vector<8x80xf32>, vector<80x128xf32>, vector<8x128xf32> -> vector<8x128xf32>
    %420 = vector.broadcast %1 : vector<1x128xf32> to vector<8x128xf32>
    %421 = arith.addf %419, %420 : vector<8x128xf32>
    %422 = vector.extract_strided_slice %421 {offsets = [0, 0], sizes = [8, 32], strides = [1, 1]} : vector<8x128xf32> to vector<8x32xf32>
    %423 = arith.negf %422 : vector<8x32xf32>
    %424 = math.exp %423 : vector<8x32xf32>
    %cst_114 = arith.constant 1.000000e+00 : f32
    %425 = vector.broadcast %cst_114 : f32 to vector<8x32xf32>
    %426 = arith.addf %425, %424 : vector<8x32xf32>
    %427 = arith.divf %425, %426 : vector<8x32xf32>
    %428 = vector.extract_strided_slice %421 {offsets = [0, 32], sizes = [8, 32], strides = [1, 1]} : vector<8x128xf32> to vector<8x32xf32>
    %429 = arith.negf %428 : vector<8x32xf32>
    %430 = math.exp %429 : vector<8x32xf32>
    %cst_115 = arith.constant 1.000000e+00 : f32
    %431 = vector.broadcast %cst_115 : f32 to vector<8x32xf32>
    %432 = arith.addf %431, %430 : vector<8x32xf32>
    %433 = arith.divf %431, %432 : vector<8x32xf32>
    %434 = vector.extract_strided_slice %421 {offsets = [0, 64], sizes = [8, 32], strides = [1, 1]} : vector<8x128xf32> to vector<8x32xf32>
    %435 = math.tanh %434 : vector<8x32xf32>
    %436 = vector.extract_strided_slice %421 {offsets = [0, 96], sizes = [8, 32], strides = [1, 1]} : vector<8x128xf32> to vector<8x32xf32>
    %437 = arith.negf %436 : vector<8x32xf32>
    %438 = math.exp %437 : vector<8x32xf32>
    %cst_116 = arith.constant 1.000000e+00 : f32
    %439 = vector.broadcast %cst_116 : f32 to vector<8x32xf32>
    %440 = arith.addf %439, %438 : vector<8x32xf32>
    %441 = arith.divf %439, %440 : vector<8x32xf32>
    %442 = arith.mulf %433, %371 : vector<8x32xf32>
    %443 = arith.mulf %427, %435 : vector<8x32xf32>
    %444 = arith.addf %442, %443 : vector<8x32xf32>
    %445 = math.tanh %444 : vector<8x32xf32>
    %446 = arith.mulf %441, %445 : vector<8x32xf32>
    %cst_117 = arith.constant dense<0.000000e+00> : vector<8x32xf32>
    %447 = tpu.matmul %446, %8, %cst_117 {dimension_numbers = #tpu.dot_dimension_numbers<[1], [0], [0], [1], [0, 0, 1, 1], [], []>} : vector<8x32xf32>, vector<32x32xf32>, vector<8x32xf32> -> vector<8x32xf32>
    %448 = vector.broadcast %9 : vector<1x32xf32> to vector<8x32xf32>
    %449 = arith.addf %447, %448 : vector<8x32xf32>
    %c5 = arith.constant 5 : index
    %c0_118 = arith.constant 0 : index
    %c0_119 = arith.constant 0 : index
    %450 = vector.load %arg3[%c5, %c0_118, %c0_119] : memref<8x8x32xf32, #tpu.memory_space<vmem>>, vector<1x8x32xf32>
    %451 = vector.shape_cast %450 : vector<1x8x32xf32> to vector<8x32xf32>
    %452 = vector.shape_cast %449 : vector<8x32xf32> to vector<1x8x32xf32>
    tpu.vector_store %arg3[%c5, %c0_118, %c0_119], %452 {strides = array<i32>} : memref<8x8x32xf32, #tpu.memory_space<vmem>>, vector<1x8x32xf32>,
    %c5_120 = arith.constant 5 : index
    %c0_121 = arith.constant 0 : index
    %c0_122 = arith.constant 0 : index
    %453 = vector.load %arg4[%c5_120, %c0_121, %c0_122] : memref<8x8x16xf32, #tpu.memory_space<vmem>>, vector<1x8x16xf32>
    %454 = vector.shape_cast %453 : vector<1x8x16xf32> to vector<8x16xf32>
    %455 = vector.shape_cast %413 : vector<8x16xf32> to vector<1x8x16xf32>
    tpu.vector_store %arg4[%c5_120, %c0_121, %c0_122], %455 {strides = array<i32>} : memref<8x8x16xf32, #tpu.memory_space<vmem>>, vector<1x8x16xf32>,
    %cst_123 = arith.constant dense<0xFF800000> : vector<8xf32>
    %456 = vector.multi_reduction <maximumf>, %449, %cst_123 [1] : vector<8x32xf32> to vector<8xf32>
    %457 = vector.shape_cast %456 : vector<8xf32> to vector<8x1xf32>
    %458 = vector.broadcast %457 : vector<8x1xf32> to vector<8x32xf32>
    %459 = arith.cmpf oeq, %449, %458 : vector<8x32xf32>
    %cst_124 = arith.constant 3.200000e+01 : f32
    %460 = vector.broadcast %cst_124 : f32 to vector<8x32xf32>
    %461 = arith.select %459, %25, %460 : vector<8x32xi1>, vector<8x32xf32>
    %cst_125 = arith.constant dense<0x7F800000> : vector<8xf32>
    %462 = vector.multi_reduction <minimumf>, %461, %cst_125 [1] : vector<8x32xf32> to vector<8xf32>
    %463 = vector.shape_cast %462 : vector<8xf32> to vector<8x1xf32>
    %464 = vector.broadcast %463 : vector<8x1xf32> to vector<8x32xf32>
    %465 = arith.cmpf oeq, %25, %464 : vector<8x32xf32>
    %466 = arith.extui %465 : vector<8x32xi1> to vector<8x32xi32>
    %467 = arith.sitofp %466 : vector<8x32xi32> to vector<8x32xf32>
    %cst_126 = arith.constant dense<0.000000e+00> : vector<8x16xf32>
    %468 = tpu.matmul %446, %6, %cst_126 {dimension_numbers = #tpu.dot_dimension_numbers<[1], [0], [0], [1], [0, 0, 1, 1], [], []>} : vector<8x32xf32>, vector<32x16xf32>, vector<8x16xf32> -> vector<8x16xf32>
    %469 = vector.shape_cast %468 : vector<8x16xf32> to vector<8x1x16xf32>
    %470 = vector.broadcast %469 : vector<8x1x16xf32> to vector<8x16x16xf32>
    %471 = arith.addf %23, %470 : vector<8x16x16xf32>
    %472 = math.tanh %471 : vector<8x16x16xf32>
    %473 = vector.shape_cast %7 : vector<1x16xf32> to vector<1x1x16xf32>
    %474 = vector.broadcast %473 : vector<1x1x16xf32> to vector<8x16x16xf32>
    %475 = arith.mulf %472, %474 : vector<8x16x16xf32>
    %cst_127 = arith.constant dense<0.000000e+00> : vector<8x16xf32>
    %476 = vector.multi_reduction <add>, %475, %cst_127 [2] : vector<8x16x16xf32> to vector<8x16xf32>
    %cst_128 = arith.constant dense<0xFF800000> : vector<8xf32>
    %477 = vector.multi_reduction <maximumf>, %476, %cst_128 [1] : vector<8x16xf32> to vector<8xf32>
    %478 = vector.shape_cast %477 : vector<8xf32> to vector<8x1xf32>
    %479 = vector.broadcast %478 : vector<8x1xf32> to vector<8x16xf32>
    %480 = arith.subf %476, %479 : vector<8x16xf32>
    %481 = math.exp %480 : vector<8x16xf32>
    %cst_129 = arith.constant dense<0.000000e+00> : vector<8xf32>
    %482 = vector.multi_reduction <add>, %481, %cst_129 [1] : vector<8x16xf32> to vector<8xf32>
    %483 = vector.shape_cast %482 : vector<8xf32> to vector<8x1xf32>
    %484 = tpu.reciprocal %483 {approx = true} : vector<8x1xf32> -> vector<8x1xf32>
    %485 = vector.broadcast %484 : vector<8x1xf32> to vector<8x16xf32>
    %486 = arith.mulf %481, %485 : vector<8x16xf32>
    %487 = vector.shape_cast %486 : vector<8x16xf32> to vector<8x16x1xf32>
    %488 = vector.broadcast %487 : vector<8x16x1xf32> to vector<8x16x16xf32>
    %489 = arith.mulf %10, %488 : vector<8x16x16xf32>
    %cst_130 = arith.constant dense<0.000000e+00> : vector<8x16xf32>
    %490 = vector.multi_reduction <add>, %489, %cst_130 [1] : vector<8x16x16xf32> to vector<8x16xf32>
    %491 = tpu.concatenate %467, %490, %446 in 1 : vector<8x32xf32>, vector<8x16xf32>, vector<8x32xf32> -> vector<8x80xf32>
    %cst_131 = arith.constant dense<0.000000e+00> : vector<8x128xf32>
    %492 = tpu.matmul %491, %0, %cst_131 {dimension_numbers = #tpu.dot_dimension_numbers<[1], [0], [0], [1], [0, 0, 1, 1], [], []>} : vector<8x80xf32>, vector<80x128xf32>, vector<8x128xf32> -> vector<8x128xf32>
    %493 = vector.broadcast %1 : vector<1x128xf32> to vector<8x128xf32>
    %494 = arith.addf %492, %493 : vector<8x128xf32>
    %495 = vector.extract_strided_slice %494 {offsets = [0, 0], sizes = [8, 32], strides = [1, 1]} : vector<8x128xf32> to vector<8x32xf32>
    %496 = arith.negf %495 : vector<8x32xf32>
    %497 = math.exp %496 : vector<8x32xf32>
    %cst_132 = arith.constant 1.000000e+00 : f32
    %498 = vector.broadcast %cst_132 : f32 to vector<8x32xf32>
    %499 = arith.addf %498, %497 : vector<8x32xf32>
    %500 = arith.divf %498, %499 : vector<8x32xf32>
    %501 = vector.extract_strided_slice %494 {offsets = [0, 32], sizes = [8, 32], strides = [1, 1]} : vector<8x128xf32> to vector<8x32xf32>
    %502 = arith.negf %501 : vector<8x32xf32>
    %503 = math.exp %502 : vector<8x32xf32>
    %cst_133 = arith.constant 1.000000e+00 : f32
    %504 = vector.broadcast %cst_133 : f32 to vector<8x32xf32>
    %505 = arith.addf %504, %503 : vector<8x32xf32>
    %506 = arith.divf %504, %505 : vector<8x32xf32>
    %507 = vector.extract_strided_slice %494 {offsets = [0, 64], sizes = [8, 32], strides = [1, 1]} : vector<8x128xf32> to vector<8x32xf32>
    %508 = math.tanh %507 : vector<8x32xf32>
    %509 = vector.extract_strided_slice %494 {offsets = [0, 96], sizes = [8, 32], strides = [1, 1]} : vector<8x128xf32> to vector<8x32xf32>
    %510 = arith.negf %509 : vector<8x32xf32>
    %511 = math.exp %510 : vector<8x32xf32>
    %cst_134 = arith.constant 1.000000e+00 : f32
    %512 = vector.broadcast %cst_134 : f32 to vector<8x32xf32>
    %513 = arith.addf %512, %511 : vector<8x32xf32>
    %514 = arith.divf %512, %513 : vector<8x32xf32>
    %515 = arith.mulf %506, %444 : vector<8x32xf32>
    %516 = arith.mulf %500, %508 : vector<8x32xf32>
    %517 = arith.addf %515, %516 : vector<8x32xf32>
    %518 = math.tanh %517 : vector<8x32xf32>
    %519 = arith.mulf %514, %518 : vector<8x32xf32>
    %cst_135 = arith.constant dense<0.000000e+00> : vector<8x32xf32>
    %520 = tpu.matmul %519, %8, %cst_135 {dimension_numbers = #tpu.dot_dimension_numbers<[1], [0], [0], [1], [0, 0, 1, 1], [], []>} : vector<8x32xf32>, vector<32x32xf32>, vector<8x32xf32> -> vector<8x32xf32>
    %521 = vector.broadcast %9 : vector<1x32xf32> to vector<8x32xf32>
    %522 = arith.addf %520, %521 : vector<8x32xf32>
    %c6 = arith.constant 6 : index
    %c0_136 = arith.constant 0 : index
    %c0_137 = arith.constant 0 : index
    %523 = vector.load %arg3[%c6, %c0_136, %c0_137] : memref<8x8x32xf32, #tpu.memory_space<vmem>>, vector<1x8x32xf32>
    %524 = vector.shape_cast %523 : vector<1x8x32xf32> to vector<8x32xf32>
    %525 = vector.shape_cast %522 : vector<8x32xf32> to vector<1x8x32xf32>
    tpu.vector_store %arg3[%c6, %c0_136, %c0_137], %525 {strides = array<i32>} : memref<8x8x32xf32, #tpu.memory_space<vmem>>, vector<1x8x32xf32>,
    %c6_138 = arith.constant 6 : index
    %c0_139 = arith.constant 0 : index
    %c0_140 = arith.constant 0 : index
    %526 = vector.load %arg4[%c6_138, %c0_139, %c0_140] : memref<8x8x16xf32, #tpu.memory_space<vmem>>, vector<1x8x16xf32>
    %527 = vector.shape_cast %526 : vector<1x8x16xf32> to vector<8x16xf32>
    %528 = vector.shape_cast %486 : vector<8x16xf32> to vector<1x8x16xf32>
    tpu.vector_store %arg4[%c6_138, %c0_139, %c0_140], %528 {strides = array<i32>} : memref<8x8x16xf32, #tpu.memory_space<vmem>>, vector<1x8x16xf32>,
    %cst_141 = arith.constant dense<0xFF800000> : vector<8xf32>
    %529 = vector.multi_reduction <maximumf>, %522, %cst_141 [1] : vector<8x32xf32> to vector<8xf32>
    %530 = vector.shape_cast %529 : vector<8xf32> to vector<8x1xf32>
    %531 = vector.broadcast %530 : vector<8x1xf32> to vector<8x32xf32>
    %532 = arith.cmpf oeq, %522, %531 : vector<8x32xf32>
    %cst_142 = arith.constant 3.200000e+01 : f32
    %533 = vector.broadcast %cst_142 : f32 to vector<8x32xf32>
    %534 = arith.select %532, %25, %533 : vector<8x32xi1>, vector<8x32xf32>
    %cst_143 = arith.constant dense<0x7F800000> : vector<8xf32>
    %535 = vector.multi_reduction <minimumf>, %534, %cst_143 [1] : vector<8x32xf32> to vector<8xf32>
    %536 = vector.shape_cast %535 : vector<8xf32> to vector<8x1xf32>
    %537 = vector.broadcast %536 : vector<8x1xf32> to vector<8x32xf32>
    %538 = arith.cmpf oeq, %25, %537 : vector<8x32xf32>
    %539 = arith.extui %538 : vector<8x32xi1> to vector<8x32xi32>
    %540 = arith.sitofp %539 : vector<8x32xi32> to vector<8x32xf32>
    %cst_144 = arith.constant dense<0.000000e+00> : vector<8x16xf32>
    %541 = tpu.matmul %519, %6, %cst_144 {dimension_numbers = #tpu.dot_dimension_numbers<[1], [0], [0], [1], [0, 0, 1, 1], [], []>} : vector<8x32xf32>, vector<32x16xf32>, vector<8x16xf32> -> vector<8x16xf32>
    %542 = vector.shape_cast %541 : vector<8x16xf32> to vector<8x1x16xf32>
    %543 = vector.broadcast %542 : vector<8x1x16xf32> to vector<8x16x16xf32>
    %544 = arith.addf %23, %543 : vector<8x16x16xf32>
    %545 = math.tanh %544 : vector<8x16x16xf32>
    %546 = vector.shape_cast %7 : vector<1x16xf32> to vector<1x1x16xf32>
    %547 = vector.broadcast %546 : vector<1x1x16xf32> to vector<8x16x16xf32>
    %548 = arith.mulf %545, %547 : vector<8x16x16xf32>
    %cst_145 = arith.constant dense<0.000000e+00> : vector<8x16xf32>
    %549 = vector.multi_reduction <add>, %548, %cst_145 [2] : vector<8x16x16xf32> to vector<8x16xf32>
    %cst_146 = arith.constant dense<0xFF800000> : vector<8xf32>
    %550 = vector.multi_reduction <maximumf>, %549, %cst_146 [1] : vector<8x16xf32> to vector<8xf32>
    %551 = vector.shape_cast %550 : vector<8xf32> to vector<8x1xf32>
    %552 = vector.broadcast %551 : vector<8x1xf32> to vector<8x16xf32>
    %553 = arith.subf %549, %552 : vector<8x16xf32>
    %554 = math.exp %553 : vector<8x16xf32>
    %cst_147 = arith.constant dense<0.000000e+00> : vector<8xf32>
    %555 = vector.multi_reduction <add>, %554, %cst_147 [1] : vector<8x16xf32> to vector<8xf32>
    %556 = vector.shape_cast %555 : vector<8xf32> to vector<8x1xf32>
    %557 = tpu.reciprocal %556 {approx = true} : vector<8x1xf32> -> vector<8x1xf32>
    %558 = vector.broadcast %557 : vector<8x1xf32> to vector<8x16xf32>
    %559 = arith.mulf %554, %558 : vector<8x16xf32>
    %560 = vector.shape_cast %559 : vector<8x16xf32> to vector<8x16x1xf32>
    %561 = vector.broadcast %560 : vector<8x16x1xf32> to vector<8x16x16xf32>
    %562 = arith.mulf %10, %561 : vector<8x16x16xf32>
    %cst_148 = arith.constant dense<0.000000e+00> : vector<8x16xf32>
    %563 = vector.multi_reduction <add>, %562, %cst_148 [1] : vector<8x16x16xf32> to vector<8x16xf32>
    %564 = tpu.concatenate %540, %563, %519 in 1 : vector<8x32xf32>, vector<8x16xf32>, vector<8x32xf32> -> vector<8x80xf32>
    %cst_149 = arith.constant dense<0.000000e+00> : vector<8x128xf32>
    %565 = tpu.matmul %564, %0, %cst_149 {dimension_numbers = #tpu.dot_dimension_numbers<[1], [0], [0], [1], [0, 0, 1, 1], [], []>} : vector<8x80xf32>, vector<80x128xf32>, vector<8x128xf32> -> vector<8x128xf32>
    %566 = vector.broadcast %1 : vector<1x128xf32> to vector<8x128xf32>
    %567 = arith.addf %565, %566 : vector<8x128xf32>
    %568 = vector.extract_strided_slice %567 {offsets = [0, 0], sizes = [8, 32], strides = [1, 1]} : vector<8x128xf32> to vector<8x32xf32>
    %569 = arith.negf %568 : vector<8x32xf32>
    %570 = math.exp %569 : vector<8x32xf32>
    %cst_150 = arith.constant 1.000000e+00 : f32
    %571 = vector.broadcast %cst_150 : f32 to vector<8x32xf32>
    %572 = arith.addf %571, %570 : vector<8x32xf32>
    %573 = arith.divf %571, %572 : vector<8x32xf32>
    %574 = vector.extract_strided_slice %567 {offsets = [0, 32], sizes = [8, 32], strides = [1, 1]} : vector<8x128xf32> to vector<8x32xf32>
    %575 = arith.negf %574 : vector<8x32xf32>
    %576 = math.exp %575 : vector<8x32xf32>
    %cst_151 = arith.constant 1.000000e+00 : f32
    %577 = vector.broadcast %cst_151 : f32 to vector<8x32xf32>
    %578 = arith.addf %577, %576 : vector<8x32xf32>
    %579 = arith.divf %577, %578 : vector<8x32xf32>
    %580 = vector.extract_strided_slice %567 {offsets = [0, 64], sizes = [8, 32], strides = [1, 1]} : vector<8x128xf32> to vector<8x32xf32>
    %581 = math.tanh %580 : vector<8x32xf32>
    %582 = vector.extract_strided_slice %567 {offsets = [0, 96], sizes = [8, 32], strides = [1, 1]} : vector<8x128xf32> to vector<8x32xf32>
    %583 = arith.negf %582 : vector<8x32xf32>
    %584 = math.exp %583 : vector<8x32xf32>
    %cst_152 = arith.constant 1.000000e+00 : f32
    %585 = vector.broadcast %cst_152 : f32 to vector<8x32xf32>
    %586 = arith.addf %585, %584 : vector<8x32xf32>
    %587 = arith.divf %585, %586 : vector<8x32xf32>
    %588 = arith.mulf %579, %517 : vector<8x32xf32>
    %589 = arith.mulf %573, %581 : vector<8x32xf32>
    %590 = arith.addf %588, %589 : vector<8x32xf32>
    %591 = math.tanh %590 : vector<8x32xf32>
    %592 = arith.mulf %587, %591 : vector<8x32xf32>
    %cst_153 = arith.constant dense<0.000000e+00> : vector<8x32xf32>
    %593 = tpu.matmul %592, %8, %cst_153 {dimension_numbers = #tpu.dot_dimension_numbers<[1], [0], [0], [1], [0, 0, 1, 1], [], []>} : vector<8x32xf32>, vector<32x32xf32>, vector<8x32xf32> -> vector<8x32xf32>
    %594 = vector.broadcast %9 : vector<1x32xf32> to vector<8x32xf32>
    %595 = arith.addf %593, %594 : vector<8x32xf32>
    %c7 = arith.constant 7 : index
    %c0_154 = arith.constant 0 : index
    %c0_155 = arith.constant 0 : index
    %596 = vector.load %arg3[%c7, %c0_154, %c0_155] : memref<8x8x32xf32, #tpu.memory_space<vmem>>, vector<1x8x32xf32>
    %597 = vector.shape_cast %596 : vector<1x8x32xf32> to vector<8x32xf32>
    %598 = vector.shape_cast %595 : vector<8x32xf32> to vector<1x8x32xf32>
    tpu.vector_store %arg3[%c7, %c0_154, %c0_155], %598 {strides = array<i32>} : memref<8x8x32xf32, #tpu.memory_space<vmem>>, vector<1x8x32xf32>,
    %c7_156 = arith.constant 7 : index
    %c0_157 = arith.constant 0 : index
    %c0_158 = arith.constant 0 : index
    %599 = vector.load %arg4[%c7_156, %c0_157, %c0_158] : memref<8x8x16xf32, #tpu.memory_space<vmem>>, vector<1x8x16xf32>
    %600 = vector.shape_cast %599 : vector<1x8x16xf32> to vector<8x16xf32>
    %601 = vector.shape_cast %559 : vector<8x16xf32> to vector<1x8x16xf32>
    tpu.vector_store %arg4[%c7_156, %c0_157, %c0_158], %601 {strides = array<i32>} : memref<8x8x16xf32, #tpu.memory_space<vmem>>, vector<1x8x16xf32>,
    return
  }
  func.func @transform_0(%arg0: i32) -> (i32, i32, i32) {
    %c0_i32 = arith.constant 0 : i32
    %c0_i32_0 = arith.constant 0 : i32
    %c0_i32_1 = arith.constant 0 : i32
    %c0_i32_2 = arith.constant 0 : i32
    return %c0_i32, %c0_i32_0, %c0_i32_1 : i32, i32, i32
  }
  func.func @transform_1(%arg0: i32) -> (i32, i32) {
    %c0_i32 = arith.constant 0 : i32
    %c0_i32_0 = arith.constant 0 : i32
    %c0_i32_1 = arith.constant 0 : i32
    return %c0_i32, %c0_i32_0 : i32, i32
  }
  func.func @transform_2(%arg0: i32) -> (i32, i32, i32) {
    %c0_i32 = arith.constant 0 : i32
    %c0_i32_0 = arith.constant 0 : i32
    %c0_i32_1 = arith.constant 0 : i32
    %c0_i32_2 = arith.constant 0 : i32
    return %c0_i32, %c0_i32_0, %c0_i32_1 : i32, i32, i32
  }
  func.func @transform_3(%arg0: i32) -> (i32, i32, i32) {
    %c0_i32 = arith.constant 0 : i32
    %c0_i32_0 = arith.constant 0 : i32
    %c0_i32_1 = arith.constant 0 : i32
    %c0_i32_2 = arith.constant 0 : i32
    return %c0_i32, %c0_i32_0, %c0_i32_1 : i32, i32, i32
  }
}

</mosaic_0001>

<bundles_post_ra>
// kernel: lstm_att_decoder_v2_forward.1
= control target key start
LH: loop header
LB: loop body
LE: loop exit
PB: predicated region body
PF: predicated region fallthrough
CT: control target
= control target key end

     0   :  { %vm56_vm0 = vcmask 130048   ;;  %v6932_v13 = vmov 16.0   ;;  %vm153_vm2 = vcmask 1041409   ;;  %vm155_vm3 = vcmask 1042434   ;;  %s6934_s12 = smov 48   ;;  %s6935_s11 = smov 32   ;;  %s11109_s1 = inlined_call_operand.vmem [shape: f32[216,128], index: 1, kind: input, shape index: {}]   ;;  %s11110_s0 = inlined_call_operand.vmem [shape: f32[8,16,16], index: 0, kind: input, shape index: {}]   ;;  %s11111_s3 = inlined_call_operand.vmem [shape: f32[8,8,16], index: 3, kind: output, shape index: {1}]   ;;  %s11112_s2 = inlined_call_operand.vmem [shape: f32[8,8,32], index: 2, kind: output, shape index: {0}]  }
   0x1   :  { %v25_v0 = vld [vmem:[%s11109_s1 + $0x60] sm:$0xff]  ;;  %v24_v1 = vld [vmem:[%s11109_s1 + $0x58] sm:$0xff]  ;;  %v6971_v3 = vld [vmem:[%s11110_s0 + $0x8] sm:$0xff]  ;;  %6099 = vrcp.f32 %v6932_v13  ;;  %vm157_vm4 = vcmask 1043459   ;;  %vm159_vm5 = vcmask 1044484   ;;  %vm161_vm6 = vcmask 1045509  }
   0x2   :  { %v40_v2 = vld [vmem:[%s11110_s0] sm:$0xff]  ;;  %183 = vmatpush.msra.mxu2 %v25_v0  ;;  %v6976_v4 = vld [vmem:[%s11110_s0 + $0x10] sm:$0xff]  ;;  %v6981_v5 = vld [vmem:[%s11110_s0 + $0x18] sm:$0xff]  ;;  %v58_v10 = vsel %vm56_vm0, %v6971_v3, 0.0  ;;  %vm163_vm7 = vcmask 1046534   ;;  %vm165_vm8 = vcmask 1047559  }
   0x3   :  { %v57_v6 = vsel %vm56_vm0, %v40_v2, 0.0  ;;  %v6987_v7 = vld [vmem:[%s11110_s0 + $0x20] sm:$0xff]  ;;  %v6992_v8 = vld [vmem:[%s11110_s0 + $0x28] sm:$0xff]  ;;  %v6997_v9 = vld [vmem:[%s11110_s0 + $0x30] sm:$0xff]  ;;  %v66_v11 = vsel %vm56_vm0, %v6976_v4, 0.0  ;;  %v67_v12 = vsel %vm56_vm0, %v6981_v5, 0.0 }
   0x4   :  { %184 = vmatpush.msra.mxu2 %v24_v1  ;;  %v7008_v14 = vld [vmem:[%s11110_s0 + $0x38] sm:$0xff]  ;;  %v7013_v15 = vld [vmem:[%s11110_s0 + $0x40] sm:$0xff]  ;;  %v7018_v16 = vld [vmem:[%s11110_s0 + $0x48] sm:$0xff]  ;;  %v59_v17 = vadd.f32 %v58_v10, %v57_v6  ;;  %v68_v18 = vadd.f32 %v67_v12, %v66_v11  ;;  %v75_v19 = vsel %vm56_vm0, %v6987_v7, 0.0  ;;  %v76_v20 = vsel %vm56_vm0, %v6992_v8, 0.0  ;;  %s6937_s24 = smov 64  }
   0x5   :  { %v7027_v21 = vld [vmem:[%s11110_s0 + $0x50] sm:$0xff]  ;;  %v7032_v22 = vld [vmem:[%s11110_s0 + $0x58] sm:$0xff]  ;;  %v77_v23 = vadd.f32 %v76_v20, %v75_v19  ;;  %v84_v24 = vsel %vm56_vm0, %v6997_v9, 0.0  ;;  %v85_v25 = vsel %vm56_vm0, %v7008_v14, 0.0  ;;  %v93_v26 = vsel %vm56_vm0, %v7013_v15, 0.0  ;;  %v7043_v27 = vld [vmem:[%s11110_s0 + $0x60] sm:$0xff] }
   0x6   :  { %v53_v28 = vld [vmem:[%s11110_s0 + $0x68] sm:$0xff]  ;;  %v60_v29 = vrot.slane %v59_v17, 4  ;;  %v69_v30 = vrot.slane %v68_v18, 4  ;;  %v86_v31 = vadd.f32 %v85_v25, %v84_v24  ;;  %v94_v32 = vsel %vm56_vm0, %v7018_v16, 0.0  ;;  %v28_v37 = vld [vmem:[%s11109_s1 + $0x78] sm:$0xff]  ;;  %v27_v38 = vld [vmem:[%s11109_s1 + $0x70] sm:$0xff] }
   0x7   :  { %v78_v33 = vrot.slane %v77_v23, 4  ;;  %v95_v34 = vadd.f32 %v94_v32, %v93_v26  ;;  %v102_v35 = vsel %vm56_vm0, %v7027_v21, 0.0  ;;  %v103_v36 = vsel %vm56_vm0, %v7032_v22, 0.0  ;;  %252 = vmatpush.msra.mxu1 %v28_v37  ;;  %6082 = vmatpush.msra.mxu3 %v28_v37  ;;  %v6100_v43 = vpop.eup %6099  ;;  %v54_v44 = vld [vmem:[%s11110_s0 + $0x70] sm:$0xff]  ;;  %v7069_v49 = vld [vmem:[%s11110_s0 + $0x78] sm:$0xff]  ;;  %s6938_s22 = smov 80  }
   0x8   :  { %v61_v39 = vadd.f32 %v60_v29, %v59_v17  ;;  %v70_v40 = vadd.f32 %v69_v30, %v68_v18  ;;  %v87_v41 = vrot.slane %v86_v31, 4  ;;  %v104_v42 = vadd.f32 %v103_v36, %v102_v35 }
   0x9   :  { %v79_v45 = vadd.f32 %v78_v33, %v77_v23  ;;  %v96_v46 = vrot.slane %v95_v34, 4  ;;  %v111_v47 = vsel %vm56_vm0, %v7043_v27, 0.0  ;;  %v112_v48 = vsel %vm56_vm0, %v53_v28, 0.0  ;;  %253 = vmatpush.msra.mxu1 %v27_v38  ;;  %6083 = vmatpush.msra.mxu3 %v27_v38 }
   0xa   :  { %v62_v50 = vrot.slane %v61_v39, 2  ;;  %v88_v51 = vadd.f32 %v87_v41, %v86_v31  ;;  %v105_v52 = vrot.slane %v104_v42, 4  ;;  %v71_v53 = vrot.slane %v70_v40, 2  ;;  %6012 = vmatmul.msk.f32.vlgmr.msra.gmra.mxu1 %vm56_vm0, %v40_v2  ;;  %6025 = vmatmul.msk.f32.vlgmr.msra.gmra.mxu3 %vm56_vm0, %v53_v28 }
   0xb   :  { %v80_v54 = vrot.slane %v79_v45, 2  ;;  %v97_v55 = vadd.f32 %v96_v46, %v95_v34  ;;  %v113_v56 = vadd.f32 %v112_v48, %v111_v47  ;;  %v120_v59 = vsel %vm56_vm0, %v54_v44, 0.0 }
   0xc   :  { %v89_v57 = vrot.slane %v88_v51, 2  ;;  %v106_v58 = vadd.f32 %v105_v52, %v104_v42  ;;  %v121_v62 = vsel %vm56_vm0, %v7069_v49, 0.0  ;;  %v63_v63 = vadd.f32 %v62_v50, %v61_v39 }
   0xd   :  { %v98_v60 = vrot.slane %v97_v55, 2  ;;  %v114_v61 = vrot.slane %v113_v56, 4  ;;  %v72_v1 = vadd.f32 %v71_v53, %v70_v40  ;;  %v81_v6 = vadd.f32 %v80_v54, %v79_v45 }
   0xe   :  { %v107_v0 = vrot.slane %v106_v58, 2  ;;  %v122_v11 = vadd.f32 %v121_v62, %v120_v59  ;;  %v90_v12 = vadd.f32 %v89_v57, %v88_v51  ;;  %v64_v19 = vrot.slane %v63_v63, 1 }
   0xf   :  { %v115_v10 = vadd.f32 %v114_v61, %v113_v56  ;;  %v99_v13 = vadd.f32 %v98_v60, %v97_v55  ;;  %v130_v20 = vmul.f32 16.0, %v6100_v43  ;;  %v73_v23 = vrot.slane %v72_v1, 1  ;;  %v33_v60 = vld [vmem:[%s11109_s1 + $0xa0] sm:$0xff]  ;;  %v32_v61 = vld [vmem:[%s11109_s1 + $0x98] sm:$0xff] }
  0x10   :  { %v108_v2 = vadd.f32 %v107_v0, %v106_v58  ;;  %v123_v18 = vrot.slane %v122_v11, 4  ;;  %v82_v24 = vrot.slane %v81_v6, 1  ;;  %v91_v28 = vrot.slane %v90_v12, 1  ;;  %325 = vmatpush.msrb.mxu2 %v33_v60 }
  0x11   :  { %v116_v17 = vrot.slane %v115_v10, 2  ;;  %v100_v29 = vrot.slane %v99_v13, 1  ;;  %v131_v30 = vsub.f32 1.0, %v130_v20  ;;  %v65_v33 = vadd.f32 %v64_v19, %v63_v63 }
  0x12   :  { %v124_v26 = vadd.f32 %v123_v18, %v122_v11  ;;  %6013 = vmatmul.msk.f32.gmra.mxu1 %vm56_vm0, %v6971_v3  ;;  %6026 = vmatmul.msk.f32.gmra.mxu3 %vm56_vm0, %v54_v44  ;;  %v109_v31 = vrot.slane %v108_v2, 1  ;;  %v74_v36 = vadd.f32 %v73_v23, %v72_v1  ;;  %v83_v37 = vadd.f32 %v82_v24, %v81_v6 }
  0x13   :  { %v117_v25 = vadd.f32 %v116_v17, %v115_v10  ;;  %v132_v35 = vmul.f32 %v6100_v43, %v131_v30  ;;  %vm134_vm1 = vweird.f32 %v6100_v43  ;;  %v92_v39 = vadd.f32 %v91_v28, %v90_v12  ;;  %326 = vmatpush.msrb.mxu2 %v32_v61  ;;  %v7133_v10 = vld [vmem:[%s11109_s1 + $0x80] ss:$0 sm:$0xff] }
  0x14   :  { %v125_v32 = vrot.slane %v124_v26, 2  ;;  %v101_v40 = vadd.f32 %v100_v29, %v99_v13  ;;  %v110_v42 = vadd.f32 %v109_v31, %v108_v2  ;;  %vm309_vm9 = vcmask 261120  }
  0x15   :  { %v118_v34 = vrot.slane %v117_v25, 1  ;;  %v133_v41 = vadd.f32 %v6100_v43, %v132_v35  ;;  %vm473_vm10 = vcmask 130112   ;;  %vm895_vm12 = vcmask 392192  }
  0x16   :  { %v126_v38 = vadd.f32 %v125_v32, %v124_v26  ;;  %vm898_vm13 = vcmask 654336  }
  0x17   :  { %v119_v3 = vadd.f32 %v118_v34, %v117_v25  ;;  %v135_v46 = vsel %vm134_vm1, %v6100_v43, %v133_v41 }
  0x18   :  { %v127_v45 = vrot.slane %v126_v38, 1  ;;  %v136_v47 = vmul.f32 %v135_v46, %v65_v33  ;;  %v137_v48 = vmul.f32 %v135_v46, %v74_v36  ;;  %v138_v50 = vmul.f32 %v135_v46, %v83_v37  ;;  %v7168_v36 = vld [vmem:[%s11109_s1 + $0xa8] ss:$0 sm:$0xff] }
  0x19   :  { %v139_v51 = vmul.f32 %v135_v46, %v92_v39  ;;  %v140_v52 = vmul.f32 %v135_v46, %v101_v40  ;;  %v141_v53 = vmul.f32 %v135_v46, %v110_v42  ;;  %v142_v43 = vmul.f32 %v135_v46, %v119_v3 }
  0x1a   :  { %v128_v44 = vadd.f32 %v127_v45, %v126_v38  ;;  %6014 = vmatmul.msk.f32.gmra.mxu1 %vm56_vm0, %v6976_v4  ;;  %6027 = vmatmul.msk.f32.gmra.mxu3 %vm56_vm0, %v7069_v49  ;;  %v154_v54 = vsel %vm153_vm2, %v137_v48, %v136_v47 }
  0x1b   :  { %v156_v55 = vsel %vm155_vm3, %v138_v50, %v154_v54 }
  0x1c   :  { %v143_v56 = vmul.f32 %v135_v46, %v128_v44  ;;  %v158_v57 = vsel %vm157_vm4, %v139_v51, %v156_v55 }
  0x1d   :  { %v160_v4 = vsel %vm159_vm5, %v140_v52, %v158_v57 }
  0x1e   :  { %v162_v58 = vsel %vm161_vm6, %v141_v53, %v160_v4 }
  0x1f   :  { %v164_v59 = vsel %vm163_vm7, %v142_v43, %v162_v58 }
  0x20   :  { %v166_v49 = vsel %vm165_vm8, %v143_v56, %v164_v59 }
  0x21   :  { %6011 = vmatmul.msk.f32.vlgmr.msra.gmra.mxu2 %vm56_vm0, %v166_v49 }
  0x22   :  { %6015 = vmatmul.msk.f32.gmra.mxu1 %vm56_vm0, %v6981_v5  ;;  %v31_v5 = vld [vmem:[%s11109_s1 + $0x90] sm:$0xff] }
  0x23   :  { %327 = vmatpush.msrb.mxu2 %v31_v5 }
  0x2a   :  { %6016 = vmatmul.msk.f32.gmra.mxu1 %vm56_vm0, %v6987_v7  ;;  %v30_v7 = vld [vmem:[%s11109_s1 + $0x88] sm:$0xff] }
  0x2b   :  { %328 = vmatpush.msrb.mxu2 %v30_v7 }
  0x2d   :  { %1042 = vmatpush.msra.mxu2 %v33_v60 }
  0x2f   :  { %1043 = vmatpush.msra.mxu2 %v32_v61 }
  0x31   :  { %1044 = vmatpush.msra.mxu2 %v31_v5 }
  0x32   :  { %6017 = vmatmul.msk.f32.gmra.mxu1 %vm56_vm0, %v6992_v8  ;;  %v6094_v8 = vld [vmem:[%s11109_s1 + $0x68] ss:$0 sm:$0xff] }
  0x33   :  { %1045 = vmatpush.msra.mxu2 %v30_v7 }
  0x3a   :  { %6018 = vmatmul.msk.f32.gmra.mxu1 %vm56_vm0, %v6997_v9 }
  0x42   :  { %6019 = vmatmul.msk.f32.gmra.mxu1 %vm56_vm0, %v7008_v14 }
  0x4a   :  { %6020 = vmatmul.msk.f32.gmra.mxu1 %vm56_vm0, %v7013_v15 }
  0x52   :  { %6021 = vmatmul.msk.f32.gmra.mxu1 %vm56_vm0, %v7018_v16 }
  0x5a   :  { %6022 = vmatmul.msk.f32.gmra.mxu1 %vm56_vm0, %v7027_v21 }
  0x62   :  { %6023 = vmatmul.msk.f32.gmra.mxu1 %vm56_vm0, %v7032_v22 }
  0x6a   :  { %6024 = vmatmul.msk.f32.gmra.mxu1 %vm56_vm0, %v7043_v27 }
  0x87   :  { %v255_v15 = vpop.f32.mrf.mxu1 }
  0x88   :  { %v7138_v12 = vadd.f32 %v7133_v10, %v255_v15 }
  0x8d   :  { %v294_v39 = vpop.f32.mrf.mxu3 }
  0x8f   :  { %v258_v16 = vpop.f32.mrf.mxu1 }
  0x90   :  { %v7144_v18 = vadd.f32 %v7133_v10, %v258_v16 }
  0x97   :  { %v261_v21 = vpop.f32.mrf.mxu1 }
  0x98   :  { %v7147_v19 = vadd.f32 %v7133_v10, %v261_v21 }
  0x9f   :  { %v264_v22 = vpop.f32.mrf.mxu1 }
  0xa0   :  { %v7161_v33 = vadd.f32 %v7133_v10, %v264_v22 }
  0xa4   :  { %v186_v9 = vpop.f32.mrf.mxu2 }
  0xa5   :  { %v7126_v14 = vadd.f32 %v6094_v8, %v186_v9  ;;  %v297_v8 = vpop.f32.mrf.mxu3 }
  0xa7   :  { %6029 = vmatmul.msk.f32.vlgmr.msrb.gmra.mxu2 %vm309_vm9, %v7126_v14  ;;  %v267_v27 = vpop.f32.mrf.mxu1 }
  0xa8   :  { %v7150_v23 = vadd.f32 %v7133_v10, %v267_v27 }
  0xaf   :  { %v270_v62 = vpop.f32.mrf.mxu1 }
  0xb0   :  { %v7154_v28 = vadd.f32 %v7133_v10, %v270_v62 }
  0xb7   :  { %v273_v63 = vpop.f32.mrf.mxu1 }
  0xb8   :  { %v7172_v41 = vadd.f32 %v7133_v10, %v273_v63 }
  0xbf   :  { %v276_v0 = vpop.f32.mrf.mxu1 }
  0xc0   :  { %v7180_v50 = vadd.f32 %v7133_v10, %v276_v0 }
  0xc7   :  { %v279_v1 = vpop.f32.mrf.mxu1 }
  0xc8   :  { %v7176_v44 = vadd.f32 %v7133_v10, %v279_v1 }
  0xcf   :  { %v282_v6 = vpop.f32.mrf.mxu1 }
  0xd0   :  { %v7190_v58 = vadd.f32 %v7133_v10, %v282_v6 }
  0xd7   :  { %v285_v20 = vpop.f32.mrf.mxu1 }
  0xd8   :  { %v7198_v7 = vadd.f32 %v7133_v10, %v285_v20 }
  0xdf   :  { %v288_v45 = vpop.f32.mrf.mxu1 }
  0xe0   :  { %v7195_v61 = vadd.f32 %v7133_v10, %v288_v45 }
  0xe7   :  { %v291_v22 = vpop.f32.mrf.mxu1 }
 0x12a   :  { %v7135_v11 = vpop.f32.mrf.mxu2 }
 0x12b   :  { %v341_v13 = vperm.slane %v7135_v11, 0  ;;  %v335_v2 = vrot.slane %v7135_v11, 2  ;;  %v334_v17 = vrot.slane %v7135_v11, 1  ;;  %v336_v29 = vrot.slane %v7135_v11, 3 }
 0x12c   :  { %v337_v35 = vrot.slane %v7135_v11, 4  ;;  %v338_v55 = vrot.slane %v7135_v11, 5  ;;  %v339_v21 = vrot.slane %v7135_v11, 6  ;;  %v340_v0 = vrot.slane %v7135_v11, 7 }
 0x12d   :  { %v357_v24 = vadd.f32 %v341_v13, %v7138_v12  ;;  %v343_v25 = vperm.slane %v335_v2, 0  ;;  %v342_v26 = vperm.slane %v334_v17, 0  ;;  %v358_v32 = vadd.f32 %v341_v13, %v7144_v18 }
 0x12e   :  { %v344_v38 = vperm.slane %v336_v29, 0  ;;  %v345_v42 = vperm.slane %v337_v35, 0  ;;  %v346_v5 = vperm.slane %v338_v55, 0  ;;  %v7210_v2 = vadd.f32 %v7133_v10, %v291_v22 }
 0x12f   :  { %6101 = vtanh.f32 %v357_v24  ;;  %v361_v30 = vadd.f32 %v343_v25, %v7150_v23  ;;  %v359_v31 = vadd.f32 %v342_v26, %v7147_v19  ;;  %v362_v34 = vadd.f32 %v343_v25, %v7154_v28 }
 0x130   :  { %v360_v37 = vadd.f32 %v342_v26, %v7161_v33  ;;  %v363_v47 = vadd.f32 %v344_v38, %v7172_v41  ;;  %v365_v43 = vadd.f32 %v345_v42, %v7176_v44  ;;  %v364_v57 = vadd.f32 %v344_v38, %v7180_v50 }
 0x131   :  { %6103 = vtanh.f32 %v361_v30  ;;  %v366_v16 = vadd.f32 %v345_v42, %v7190_v58  ;;  %v368_v63 = vadd.f32 %v346_v5, %v7195_v61  ;;  %v367_v6 = vadd.f32 %v346_v5, %v7198_v7 }
 0x132   :  { %6105 = vtanh.f32 %v359_v31  ;;  %v347_v20 = vperm.slane %v339_v21, 0  ;;  %v7215_v26 = vadd.f32 %v7133_v10, %v297_v8  ;;  %v348_v11 = vperm.slane %v340_v0, 0 }
 0x133   :  { %6107 = vtanh.f32 %v358_v32  ;;  %v7218_v29 = vadd.f32 %v7133_v10, %v294_v39 }
 0x134   :  { %6109 = vtanh.f32 %v362_v34  ;;  %v369_v32 = vadd.f32 %v347_v20, %v7210_v2  ;;  %v300_v34 = vpop.f32.mrf.mxu3  ;;  %v371_v38 = vadd.f32 %v348_v11, %v7215_v26 }
 0x135   :  { %v6102_v40 = vpop.eup %6101  ;;  %6111 = vtanh.f32 %v360_v37  ;;  %v370_v42 = vadd.f32 %v347_v20, %v7218_v29  ;;  %v7228_v45 = vadd.f32 %v7133_v10, %v300_v34 }
 0x136   :  { %v390_v3 = vmul.f32 %v6102_v40, %v7168_v36  ;;  %6113 = vtanh.f32 %v363_v47 }
 0x137   :  { %v6104_v46 = vpop.eup %6103  ;;  %6115 = vtanh.f32 %v365_v43 }
 0x138   :  { %v6106_v48 = vpop.eup %6105  ;;  %v406_v51 = vsel %vm56_vm0, %v390_v3, 0.0  ;;  %v394_v52 = vmul.f32 %v6104_v46, %v7168_v36  ;;  %6117 = vtanh.f32 %v364_v57 }
 0x139   :  { %v6108_v53 = vpop.eup %6107  ;;  %407 = vadd.xlane.f32.xlu0 %v406_v51  ;;  %v392_v54 = vmul.f32 %v6106_v48, %v7168_v36  ;;  %6119 = vtanh.f32 %v366_v16 }
 0x13a   :  { %v418_v56 = vsel %vm56_vm0, %v394_v52, 0.0  ;;  %v6110_v4 = vpop.eup %6109  ;;  %v391_v60 = vmul.f32 %v6108_v53, %v7168_v36  ;;  %6121 = vtanh.f32 %v368_v63  ;;  %v372_v52 = vadd.f32 %v348_v11, %v7228_v45 }
 0x13b   :  { %419 = vadd.xlane.f32.xlu2 %v418_v56  ;;  %v412_v59 = vsel %vm56_vm0, %v392_v54, 0.0  ;;  %v6112_v49 = vpop.eup %6111  ;;  %v395_v9 = vmul.f32 %v6110_v4, %v7168_v36  ;;  %6123 = vtanh.f32 %v367_v6  ;;  %v303_v6 = vlaneseq }
 0x13c   :  { %413 = vadd.xlane.f32.xlu1 %v412_v59  ;;  %v393_v15 = vmul.f32 %v6112_v49, %v7168_v36  ;;  %v409_v27 = vsel %vm56_vm0, %v391_v60, 0.0  ;;  %v6114_v62 = vpop.eup %6113  ;;  %6125 = vtanh.f32 %v369_v32 }
 0x13d   :  { %v421_v1 = vsel %vm56_vm0, %v395_v9, 0.0  ;;  %v6116_v13 = vpop.eup %6115  ;;  %v396_v25 = vmul.f32 %v6114_v62, %v7168_v36  ;;  %6127 = vtanh.f32 %v371_v38 }
 0x13e   :  { %v415_v17 = vsel %vm56_vm0, %v393_v15, 0.0  ;;  %v6118_v24 = vpop.eup %6117  ;;  %v398_v30 = vmul.f32 %v6116_v13, %v7168_v36  ;;  %6129 = vtanh.f32 %v370_v42 }
 0x13f   :  { %v397_v31 = vmul.f32 %v6118_v24, %v7168_v36  ;;  %v424_v35 = vsel %vm56_vm0, %v396_v25, 0.0  ;;  %v6120_v37 = vpop.eup %6119  ;;  %6131 = vtanh.f32 %v372_v52 }
 0x140   :  { %v430_v40 = vsel %vm56_vm0, %v398_v30, 0.0  ;;  %v6122_v39 = vpop.eup %6121  ;;  %v399_v47 = vmul.f32 %v6120_v37, %v7168_v36 }
 0x141   :  { %410 = vadd.xlane.f32.xlu0 %v409_v27  ;;  %v427_v3 = vsel %vm56_vm0, %v397_v31, 0.0  ;;  %v6124_v46 = vpop.eup %6123  ;;  %v401_v48 = vmul.f32 %v6122_v39, %v7168_v36 }
 0x142   :  { %v400_v51 = vmul.f32 %v6124_v46, %v7168_v36  ;;  %v433_v53 = vsel %vm56_vm0, %v399_v47, 0.0  ;;  %v6126_v10 = vpop.eup %6125 }
 0x143   :  { %422 = vadd.xlane.f32.xlu2 %v421_v1  ;;  %v439_v54 = vsel %vm56_vm0, %v401_v48, 0.0  ;;  %v6128_v43 = vpop.eup %6127  ;;  %v402_v57 = vmul.f32 %v6126_v10, %v7168_v36 }
 0x144   :  { %416 = vadd.xlane.f32.xlu1 %v415_v17  ;;  %v436_v55 = vsel %vm56_vm0, %v400_v51, 0.0  ;;  %v6130_v56 = vpop.eup %6129  ;;  %v404_v4 = vmul.f32 %v6128_v43, %v7168_v36 }
 0x145   :  { %v403_v59 = vmul.f32 %v6130_v56, %v7168_v36  ;;  %v442_v49 = vsel %vm56_vm0, %v402_v57, 0.0  ;;  %v6132_v60 = vpop.eup %6131 }
 0x146   :  { %v448_v5 = vsel %vm56_vm0, %v404_v4, 0.0  ;;  %v405_v9 = vmul.f32 %v6132_v60, %v7168_v36  ;;  %v7258_v36 = vand.u32 127, %v303_v6 }
 0x147   :  { %v445_v8 = vsel %vm56_vm0, %v403_v59, 0.0 }
 0x148   :  { %v451_v15 = vsel %vm56_vm0, %v405_v9, 0.0  ;;  %v7263_v20 = vadd.s32 4294967288, %v7258_v36 }
 0x149   :  { %425 = vadd.xlane.f32.xlu0 %v424_v35 }
 0x14b   :  { %431 = vadd.xlane.f32.xlu2 %v430_v40 }
 0x14c   :  { %428 = vadd.xlane.f32.xlu1 %v427_v3 }
 0x151   :  { %434 = vadd.xlane.f32.xlu0 %v433_v53 }
 0x153   :  { %440 = vadd.xlane.f32.xlu2 %v439_v54 }
 0x154   :  { %437 = vadd.xlane.f32.xlu1 %v436_v55 }
 0x159   :  { %443 = vadd.xlane.f32.xlu0 %v442_v49 }
 0x15b   :  { %449 = vadd.xlane.f32.xlu2 %v448_v5 }
 0x15c   :  { %446 = vadd.xlane.f32.xlu1 %v445_v8 }
 0x161   :  { %452 = vadd.xlane.f32.xlu0 %v451_v15 }
 0x1ac   :  { %v408_v16 = vpop.xlane.xlu0 %407 }
 0x1ad   :  { %v470_v34 = vperm.slane %v408_v16, %v7258_v36 }
 0x1ae   :  { %v7246_v21 = vpop.xlane.xlu2 %419 }
 0x1af   :  { %v414_v22 = vpop.xlane.xlu1 %413  ;;  %v478_v38 = vperm.slane %v7246_v21, %v7258_v36 }
 0x1b0   :  { %v475_v30 = vperm.slane %v414_v22, %v7258_v36 }
 0x1b4   :  { %v411_v27 = vpop.xlane.xlu0 %410 }
 0x1b5   :  { %v472_v31 = vperm.slane %v411_v27, %v7263_v20 }
 0x1b6   :  { %v7248_v62 = vpop.xlane.xlu2 %422 }
 0x1b7   :  { %v7250_v63 = vpop.xlane.xlu1 %416  ;;  %v479_v32 = vperm.slane %v7248_v62, %v7263_v20  ;;  %v474_v39 = vsel %vm473_vm10, %v472_v31, %v470_v34 }
 0x1b8   :  { %v476_v24 = vperm.slane %v7250_v63, %v7263_v20 }
 0x1b9   :  { %v480_v46 = vsel %vm473_vm10, %v479_v32, %v478_v38  ;;  %v6933_v32 = vmov 0  }
 0x1ba   :  { %v477_v35 = vsel %vm473_vm10, %v476_v24, %v475_v30  ;;  %6093 = vset.pattern.permute.xlu1 %v6933_v32  ;;  %6092 = vset.pattern.permute.xlu0 %v6933_v32 }
 0x1bb   :  { %v496_v47 = vsel %vm153_vm2, %v477_v35, %v474_v39  ;;  %6091 = vset.pattern.permute.xlu2 %v6933_v32 }
 0x1bc   :  { %v7252_v0 = vpop.xlane.xlu0 %425  ;;  %v497_v55 = vsel %vm155_vm3, %v480_v46, %v496_v47 }
 0x1bd   :  { %v481_v3 = vperm.slane %v7252_v0, %v7258_v36 }
 0x1be   :  { %v7254_v1 = vpop.xlane.xlu2 %431 }
 0x1bf   :  { %v7256_v13 = vpop.xlane.xlu1 %428  ;;  %v484_v48 = vperm.slane %v7254_v1, %v7258_v36 }
 0x1c0   :  { %v482_v37 = vperm.slane %v7256_v13, %v7263_v20 }
 0x1c2   :  { %v483_v51 = vsel %vm473_vm10, %v482_v37, %v481_v3 }
 0x1c3   :  { %v498_v56 = vsel %vm157_vm4, %v483_v51, %v497_v55 }
 0x1c4   :  { %v7260_v17 = vpop.xlane.xlu0 %434 }
 0x1c5   :  { %v485_v40 = vperm.slane %v7260_v17, %v7263_v20 }
 0x1c6   :  { %v7269_v11 = vpop.xlane.xlu2 %440 }
 0x1c7   :  { %v7267_v25 = vpop.xlane.xlu1 %437  ;;  %v488_v52 = vperm.slane %v7269_v11, %v7263_v20  ;;  %v486_v54 = vsel %vm473_vm10, %v485_v40, %v484_v48 }
 0x1c8   :  { %v487_v53 = vperm.slane %v7267_v25, %v7258_v36  ;;  %v499_v49 = vsel %vm159_vm5, %v486_v54, %v498_v56 }
 0x1ca   :  { %v489_v59 = vsel %vm473_vm10, %v488_v52, %v487_v53 }
 0x1cb   :  { %v500_v15 = vsel %vm161_vm6, %v489_v59, %v499_v49 }
 0x1cc   :  { %v7283_v42 = vpop.xlane.xlu0 %443 }
 0x1cd   :  { %v490_v57 = vperm.slane %v7283_v42, %v7258_v36 }
 0x1ce   :  { %v7306_v4 = vpop.xlane.xlu2 %449 }
 0x1cf   :  { %v7297_v10 = vpop.xlane.xlu1 %446  ;;  %v493_v8 = vperm.slane %v7306_v4, %v7258_v36 }
 0x1d0   :  { %v491_v43 = vperm.slane %v7297_v10, %v7263_v20 }
 0x1d2   :  { %v492_v5 = vsel %vm473_vm10, %v491_v43, %v490_v57 }
 0x1d3   :  { %v501_v24 = vsel %vm163_vm7, %v492_v5, %v500_v15 }
 0x1d4   :  { %v7310_v60 = vpop.xlane.xlu0 %452 }
 0x1d5   :  { %v494_v9 = vperm.slane %v7310_v60, %v7263_v20 }
 0x1d7   :  { %v495_v6 = vsel %vm473_vm10, %v494_v9, %v493_v8 }
 0x1d8   :  { %v502_v30 = vsel %vm165_vm8, %v495_v6, %v501_v24 }
 0x1d9   :  { %v504_v31 = vsel %vm56_vm0, %v502_v30, -inf }
 0x1da   :  { %505 = vmax.xlane.f32.xlu1 %v504_v31 }
 0x24d   :  { %v7322_v34 = vpop.xlane.xlu1 %505 }
 0x24e   :  { %v509_v35 = vperm.slane %v7322_v34, 1  ;;  %v508_v37 = vperm.slane %v7322_v34, 0  ;;  %v510_v3 = vperm.slane %v7322_v34, 2  ;;  %v512_v46 = vperm.slane %v7322_v34, 4 }
 0x24f   :  { %v515_v8 = vperm.slane %v7322_v34, 7  ;;  %v514_v31 = vperm.slane %v7322_v34, 6 }
 0x250   :  { %v526_v38 = vsub.f32 %v414_v22, %v509_v35  ;;  %v525_v40 = vsub.f32 %v411_v27, %v508_v37  ;;  %v524_v39 = vsub.f32 %v408_v16, %v508_v37  ;;  %v529_v52 = vsub.f32 %v7248_v62, %v510_v3 }
 0x251   :  { %v532_v53 = vsub.f32 %v7254_v1, %v512_v46  ;;  %v527_v54 = vsub.f32 %v7250_v63, %v509_v35  ;;  %v511_v22 = vperm.slane %v7322_v34, 3  ;;  %v513_v27 = vperm.slane %v7322_v34, 5 }
 0x252   :  { %v544_v47 = vmul.f32 1.442695, %v526_v38  ;;  %v542_v48 = vmul.f32 1.442695, %v525_v40  ;;  %v540_v51 = vmul.f32 1.442695, %v524_v39  ;;  %v528_v59 = vsub.f32 %v7246_v21, %v510_v3 }
 0x253   :  { %v550_v43 = vmul.f32 1.442695, %v529_v52  ;;  %v556_v16 = vmul.f32 1.442695, %v532_v53  ;;  %v546_v56 = vmul.f32 1.442695, %v527_v54  ;;  %v531_v63 = vsub.f32 %v7256_v13, %v511_v22 }
 0x254   :  { %6133 = vpow2.f32 %v544_v47  ;;  %v535_v1 = vsub.f32 %v7269_v11, %v513_v27  ;;  %v548_v15 = vmul.f32 1.442695, %v528_v59  ;;  %v534_v11 = vsub.f32 %v7267_v25, %v513_v27 }
 0x255   :  { %6135 = vpow2.f32 %v542_v48  ;;  %v554_v49 = vmul.f32 1.442695, %v531_v63  ;;  %v538_v21 = vsub.f32 %v7306_v4, %v515_v8  ;;  %v530_v24 = vsub.f32 %v7252_v0, %v511_v22 }
 0x256   :  { %6137 = vpow2.f32 %v540_v51  ;;  %v562_v5 = vmul.f32 1.442695, %v535_v1  ;;  %v560_v30 = vmul.f32 1.442695, %v534_v11  ;;  %v537_v4 = vsub.f32 %v7297_v10, %v514_v31 }
 0x257   :  { %6139 = vpow2.f32 %v550_v43  ;;  %v568_v32 = vmul.f32 1.442695, %v538_v21  ;;  %v552_v37 = vmul.f32 1.442695, %v530_v24  ;;  %v533_v0 = vsub.f32 %v7260_v17, %v512_v46 }
 0x258   :  { %6141 = vpow2.f32 %v556_v16  ;;  %v566_v34 = vmul.f32 1.442695, %v537_v4  ;;  %v536_v10 = vsub.f32 %v7283_v42, %v514_v31  ;;  %v539_v51 = vsub.f32 %v7310_v60, %v515_v8 }
 0x259   :  { %6143 = vpow2.f32 %v546_v56  ;;  %v558_v39 = vmul.f32 1.442695, %v533_v0 }
 0x25a   :  { %v7333_v55 = vpop.eup %6133  ;;  %6145 = vpow2.f32 %v554_v49  ;;  %v564_v17 = vmul.f32 1.442695, %v536_v10  ;;  %v570_v52 = vmul.f32 1.442695, %v539_v51 }
 0x25b   :  { %v7335_v57 = vpop.eup %6135  ;;  %595 = vperm.xlu1 %6093, %v7333_v55   ;;  %6147 = vpow2.f32 %v562_v5 }
 0x25c   :  { %v7338_v62 = vpop.eup %6137  ;;  %592 = vperm.xlu0 %6092, %v7335_v57   ;;  %6149 = vpow2.f32 %v548_v15 }
 0x25d   :  { %589 = vperm.xlu2 %6091, %v7338_v62   ;;  %v7346_v9 = vpop.eup %6139  ;;  %6151 = vpow2.f32 %v560_v30 }
 0x25e   :  { %v7348_v6 = vpop.eup %6141  ;;  %6153 = vpow2.f32 %v568_v32 }
 0x25f   :  { %v7351_v13 = vpop.eup %6143  ;;  %6155 = vpow2.f32 %v552_v37 }
 0x260   :  { %v7359_v35 = vpop.eup %6145  ;;  %6157 = vpow2.f32 %v566_v34 }
 0x261   :  { %v7361_v38 = vpop.eup %6147  ;;  %6159 = vpow2.f32 %v558_v39 }
 0x262   :  { %v7364_v25 = vpop.eup %6149  ;;  %6161 = vpow2.f32 %v564_v17 }
 0x263   :  { %604 = vperm.xlu1 %6093, %v7346_v9   ;;  %v7370_v40 = vpop.eup %6151  ;;  %6163 = vpow2.f32 %v570_v52 }
 0x264   :  { %613 = vperm.xlu0 %6092, %v7348_v6   ;;  %v7372_v3 = vpop.eup %6153 }
 0x265   :  { %598 = vperm.xlu2 %6091, %v7351_v13   ;;  %v7375_v47 = vpop.eup %6155 }
 0x266   :  { %v7380_v48 = vpop.eup %6157 }
 0x267   :  { %v7383_v46 = vpop.eup %6159 }
 0x268   :  { %v7387_v53 = vpop.eup %6161 }
 0x269   :  { %v7390_v54 = vpop.eup %6163 }
 0x26b   :  { %610 = vperm.xlu1 %6093, %v7359_v35  }
 0x26c   :  { %622 = vperm.xlu0 %6092, %v7361_v38  }
 0x26d   :  { %601 = vperm.xlu2 %6091, %v7364_v25  }
 0x273   :  { %619 = vperm.xlu1 %6093, %v7370_v40  }
 0x274   :  { %631 = vperm.xlu0 %6092, %v7372_v3  }
 0x275   :  { %607 = vperm.xlu2 %6091, %v7375_v47  }
 0x27b   :  { %628 = vperm.xlu1 %6093, %v7380_v48  }
 0x27d   :  { %616 = vperm.xlu2 %6091, %v7383_v46  }
 0x285   :  { %625 = vperm.xlu2 %6091, %v7387_v53  }
 0x28d   :  { %634 = vperm.xlu2 %6091, %v7390_v54  }
 0x2b7   :  { %v590_v42 = vpop.permute.xlu2 %589 }
 0x2b8   :  { %v636_v21 = vperm.slane %v590_v42, %v7258_v36 }
 0x2bf   :  { %v599_v43 = vpop.permute.xlu2 %598 }
 0x2c0   :  { %v640_v24 = vperm.slane %v599_v43, %v7263_v20 }
 0x2c7   :  { %v602_v22 = vpop.permute.xlu2 %601 }
 0x2c8   :  { %v642_v32 = vperm.slane %v602_v22, %v7258_v36 }
 0x2cd   :  { %v596_v16 = vpop.permute.xlu1 %595 }
 0x2ce   :  { %v593_v27 = vpop.permute.xlu0 %592  ;;  %v639_v8 = vperm.slane %v596_v16, %v7258_v36 }
 0x2cf   :  { %v608_v56 = vpop.permute.xlu2 %607  ;;  %v637_v15 = vperm.slane %v593_v27, %v7263_v20 }
 0x2d0   :  { %v641_v37 = vsel %vm473_vm10, %v640_v24, %v639_v8  ;;  %v645_v0 = vperm.slane %v608_v56, %v7258_v36 }
 0x2d1   :  { %v638_v4 = vsel %vm473_vm10, %v637_v15, %v636_v21 }
 0x2d2   :  { %v660_v17 = vsel %vm153_vm2, %v641_v37, %v638_v4 }
 0x2d5   :  { %v605_v63 = vpop.permute.xlu1 %604 }
 0x2d6   :  { %v614_v1 = vpop.permute.xlu0 %613  ;;  %v643_v11 = vperm.slane %v605_v63, %v7263_v20 }
 0x2d7   :  { %v617_v59 = vpop.permute.xlu2 %616  ;;  %v648_v51 = vperm.slane %v614_v1, %v7258_v36 }
 0x2d8   :  { %v644_v34 = vsel %vm473_vm10, %v643_v11, %v642_v32  ;;  %v649_v52 = vperm.slane %v617_v59, %v7263_v20 }
 0x2d9   :  { %v661_v22 = vsel %vm155_vm3, %v644_v34, %v660_v17 }
 0x2da   :  { %v650_v15 = vsel %vm473_vm10, %v649_v52, %v648_v51 }
 0x2dd   :  { %v611_v60 = vpop.permute.xlu1 %610 }
 0x2de   :  { %v623_v49 = vpop.permute.xlu0 %622  ;;  %v646_v30 = vperm.slane %v611_v60, %v7263_v20 }
 0x2df   :  { %v626_v5 = vpop.permute.xlu2 %625  ;;  %v652_v16 = vperm.slane %v623_v49, %v7263_v20 }
 0x2e0   :  { %v647_v39 = vsel %vm473_vm10, %v646_v30, %v645_v0  ;;  %v654_v1 = vperm.slane %v626_v5, %v7258_v36 }
 0x2e1   :  { %v662_v27 = vsel %vm157_vm4, %v647_v39, %v661_v22 }
 0x2e2   :  { %v663_v11 = vsel %vm159_vm5, %v650_v15, %v662_v27 }
 0x2e5   :  { %v620_v31 = vpop.permute.xlu1 %619 }
 0x2e6   :  { %v651_v10 = vperm.slane %v620_v31, %v7258_v36  ;;  %v632_v42 = vpop.permute.xlu0 %631 }
 0x2e7   :  { %v635_v43 = vpop.permute.xlu2 %634  ;;  %v657_v63 = vperm.slane %v632_v42, %v7258_v36 }
 0x2e8   :  { %v653_v56 = vsel %vm473_vm10, %v652_v16, %v651_v10  ;;  %v658_v60 = vperm.slane %v635_v43, %v7263_v20 }
 0x2e9   :  { %v664_v49 = vsel %vm161_vm6, %v653_v56, %v663_v11  ;;  %v6695_v11 = vld [vmem:[%s11110_s0 + $0x10] sm:$0xff] }
 0x2ea   :  { %v659_v24 = vsel %vm473_vm10, %v658_v60, %v657_v63 }
 0x2ed   :  { %v629_v8 = vpop.permute.xlu1 %628 }
 0x2ee   :  { %v655_v59 = vperm.slane %v629_v8, %v7263_v20 }
 0x2f0   :  { %v656_v21 = vsel %vm473_vm10, %v655_v59, %v654_v1  ;;  %v6694_v1 = vld [vmem:[%s11110_s0 + $0x8] sm:$0xff] }
 0x2f1   :  { %v665_v30 = vsel %vm163_vm7, %v656_v21, %v664_v49 }
 0x2f2   :  { %v666_v31 = vsel %vm165_vm8, %v659_v24, %v665_v30  ;;  %v6696_v30 = vld [vmem:[%s11110_s0 + $0x18] sm:$0xff] }
 0x2f3   :  { %v668_v32 = vsel %vm56_vm0, %v666_v31, 0.0 }
 0x2f4   :  { %669 = vadd.xlane.f32.xlu1 %v668_v32 }
 0x367   :  { %v670_v37 = vpop.xlane.xlu1 %669 }
 0x368   :  { %6165 = vrcp.f32 %v670_v37 }
 0x36e   :  { %v6166_v5 = vpop.eup %6165 }
 0x36f   :  { %v678_v4 = vperm.slane %v6166_v5, 5  ;;  %v673_v0 = vperm.slane %v6166_v5, 0  ;;  %v674_v17 = vperm.slane %v6166_v5, 1  ;;  %v675_v42 = vperm.slane %v6166_v5, 2 }
 0x370   :  { %v679_v27 = vperm.slane %v6166_v5, 6  ;;  %v680_v56 = vperm.slane %v6166_v5, 7 }
 0x371   :  { %v699_v34 = vmul.f32 %v7370_v40, %v678_v4  ;;  %v690_v39 = vmul.f32 %v7335_v57, %v673_v0  ;;  %v689_v10 = vmul.f32 %v7338_v62, %v673_v0  ;;  %v692_v51 = vmul.f32 %v7351_v13, %v674_v17  ;;  %v6697_v0 = vld [vmem:[%s11110_s0 + $0x20] sm:$0xff] }
 0x372   :  { %v691_v52 = vmul.f32 %v7333_v55, %v674_v17  ;;  %v694_v40 = vmul.f32 %v7346_v9, %v675_v42  ;;  %v693_v57 = vmul.f32 %v7364_v25, %v675_v42  ;;  %v676_v62 = vperm.slane %v6166_v5, 3 }
 0x373   :  { %757 = vperm.xlu1 %6093, %v699_v34   ;;  %712 = vperm.xlu2 %6091, %v690_v39   ;;  %v677_v55 = vperm.slane %v6166_v5, 4  ;;  %v701_v9 = vmul.f32 %v7387_v53, %v679_v27  ;;  %v700_v25 = vmul.f32 %v7361_v38, %v678_v4  ;;  %v6698_v39 = vld [vmem:[%s11110_s0 + $0x30] sm:$0xff] }
 0x374   :  { %707 = vperm.xlu0 %6092, %v689_v10   ;;  %v696_v43 = vmul.f32 %v7359_v35, %v676_v62  ;;  %v695_v22 = vmul.f32 %v7375_v47, %v676_v62  ;;  %v703_v35 = vmul.f32 %v7372_v3, %v680_v56  ;;  %v702_v47 = vmul.f32 %v7380_v48, %v679_v27  ;;  %v6701_v62 = vld [vmem:[%s11110_s0 + $0x38] sm:$0xff] }
 0x375   :  { %v698_v13 = vmul.f32 %v7383_v46, %v677_v55  ;;  %v697_v16 = vmul.f32 %v7348_v6, %v677_v55  ;;  %v704_v46 = vmul.f32 %v7390_v54, %v680_v56  ;;  %v6693_v54 = vld [vmem:[%s11110_s0] sm:$0xff] }
 0x37b   :  { %891 = vrot.lane.b32.xlu1 %v7126_v14, %s6934_s12  ;;  %722 = vperm.xlu2 %6091, %v692_v51   ;;  %v6699_v51 = vld [vmem:[%s11110_s0 + $0x28] sm:$0xff] }
 0x37c   :  { %717 = vperm.xlu0 %6092, %v691_v52  }
 0x383   :  { %732 = vperm.xlu2 %6091, %v694_v40   ;;  %v6700_v40 = vld [vmem:[%s11110_s0 + $0x40] sm:$0xff] }
 0x384   :  { %727 = vperm.xlu0 %6092, %v693_v57  }
 0x38b   :  { %742 = vperm.xlu2 %6091, %v696_v43  }
 0x38c   :  { %737 = vperm.xlu0 %6092, %v695_v22  }
 0x393   :  { %752 = vperm.xlu2 %6091, %v698_v13   ;;  %v6702_v13 = vld [vmem:[%s11110_s0 + $0x48] sm:$0xff] }
 0x394   :  { %747 = vperm.xlu0 %6092, %v697_v16  }
 0x39b   :  { %767 = vperm.xlu2 %6091, %v701_v9   ;;  %v6703_v9 = vld [vmem:[%s11110_s0 + $0x50] sm:$0xff] }
 0x39c   :  { %762 = vperm.xlu0 %6092, %v700_v25  }
 0x3a3   :  { %777 = vperm.xlu2 %6091, %v703_v35  }
 0x3a4   :  { %772 = vperm.xlu0 %6092, %v702_v47  }
 0x3ac   :  { %782 = vperm.xlu0 %6092, %v704_v46  }
 0x3cd   :  { %v7442_v6 = vpop.permute.xlu2 %712 }
 0x3ce   :  { %v786_v59 = vmul.f32 %v6694_v1, %v7442_v6 }
 0x3d0   :  { %v802_v37 = vsel %vm56_vm0, %v786_v59, 0.0 }
 0x3d5   :  { %v7446_v60 = vpop.permute.xlu2 %722 }
 0x3d6   :  { %v788_v31 = vmul.f32 %v6696_v30, %v7446_v60 }
 0x3d8   :  { %v811_v17 = vsel %vm56_vm0, %v788_v31, 0.0 }
 0x3dd   :  { %v7450_v38 = vpop.permute.xlu2 %732 }
 0x3de   :  { %v790_v52 = vmul.f32 %v6699_v51, %v7450_v38  ;;  %v990_v51 = vperm.slane %v7446_v60, %v7263_v20 }
 0x3e0   :  { %v820_v35 = vsel %vm56_vm0, %v790_v52, 0.0 }
 0x3e5   :  { %v7454_v3 = vpop.permute.xlu2 %742  ;;  %v7494_v42 = vpop.permute.xlu1 %757 }
 0x3e6   :  { %v7444_v63 = vpop.permute.xlu0 %707  ;;  %v792_v43 = vmul.f32 %v6701_v62, %v7454_v3  ;;  %v795_v25 = vmul.f32 %v6703_v9, %v7494_v42  ;;  %v993_v62 = vperm.slane %v7450_v38, %v7263_v20  ;;  %v7567_v38 = vld [vmem:[%s11109_s1 + $0x30] sm:$0xff] }
 0x3e7   :  { %v785_v15 = vmul.f32 %v6693_v54, %v7444_v63 }
 0x3e8   :  { %v829_v54 = vsel %vm56_vm0, %v792_v43, 0.0 }
 0x3e9   :  { %v801_v49 = vsel %vm56_vm0, %v785_v15, 0.0 }
 0x3ea   :  { %v803_v5 = vadd.f32 %v802_v37, %v801_v49  ;;  %v846_v37 = vsel %vm56_vm0, %v795_v25, 0.0 }
 0x3ec   :  { %v804_v55 = vrot.slane %v803_v5, 4 }
 0x3ed   :  { %v7471_v24 = vpop.permute.xlu2 %752 }
 0x3ee   :  { %v7448_v53 = vpop.permute.xlu0 %717  ;;  %v794_v16 = vmul.f32 %v6702_v13, %v7471_v24  ;;  %v805_v49 = vadd.f32 %v804_v55, %v803_v5  ;;  %v7538_v5 = vld [vmem:[%s11109_s1 + $0x40] sm:$0xff] }
 0x3ef   :  { %v787_v21 = vmul.f32 %v6695_v11, %v7448_v53  ;;  %v6704_v11 = vld [vmem:[%s11110_s0 + $0x58] sm:$0xff] }
 0x3f0   :  { %v838_v30 = vsel %vm56_vm0, %v794_v16, 0.0  ;;  %v806_v43 = vrot.slane %v805_v49, 2 }
 0x3f1   :  { %v810_v4 = vsel %vm56_vm0, %v787_v21, 0.0 }
 0x3f2   :  { %v812_v22 = vadd.f32 %v811_v17, %v810_v4  ;;  %v989_v4 = vperm.slane %v7448_v53, %v7258_v36  ;;  %v987_v53 = vperm.slane %v7442_v6, %v7263_v20  ;;  %v996_v6 = vperm.slane %v7454_v3, %v7263_v20 }
 0x3f4   :  { %v813_v15 = vrot.slane %v812_v22, 4  ;;  %v991_v60 = vsel %vm473_vm10, %v990_v51, %v989_v4 }
 0x3f5   :  { %v7519_v1 = vpop.permute.xlu2 %767 }
 0x3f6   :  { %v7452_v8 = vpop.permute.xlu0 %727  ;;  %v814_v52 = vadd.f32 %v813_v15, %v812_v22  ;;  %v6705_v22 = vld [vmem:[%s11110_s0 + $0x60] sm:$0xff] }
 0x3f7   :  { %v789_v34 = vmul.f32 %v6697_v0, %v7452_v8  ;;  %v797_v13 = vmul.f32 %v6705_v22, %v7519_v1  ;;  %v992_v3 = vperm.slane %v7452_v8, %v7258_v36  ;;  %v7585_v8 = vadd.f32 %v806_v43, %v805_v49  ;;  %v7598_v49 = vld [vmem:[%s11109_s1 + $0x20] sm:$0xff]  ;;  %v7609_v43 = vld [vmem:[%s11109_s1 + $0x18] sm:$0xff] }
 0x3f9   :  { %v819_v27 = vsel %vm56_vm0, %v789_v34, 0.0 }
 0x3fa   :  { %v821_v59 = vadd.f32 %v820_v35, %v819_v27  ;;  %v999_v27 = vperm.slane %v7471_v24, %v7263_v20  ;;  %v7583_v24 = vld [vmem:[%s11109_s1 + $0x28] sm:$0xff] }
 0x3fe   :  { %v7456_v48 = vpop.permute.xlu0 %737 }
 0x3ff   :  { %v791_v10 = vmul.f32 %v6698_v39, %v7456_v48  ;;  %v7533_v39 = vld [vmem:[%s11109_s1 + $0x48] sm:$0xff] }
 0x400   :  { %908 = vmatpush.msrb.mxu3 %v7533_v39 }
 0x401   :  { %v828_v56 = vsel %vm56_vm0, %v791_v10, 0.0  ;;  %v986_v10 = vperm.slane %v7444_v63, %v7258_v36  ;;  %v1001_v63 = vperm.slane %v7494_v42, %v7258_v36 }
 0x402   :  { %v830_v31 = vadd.f32 %v829_v54, %v828_v56  ;;  %909 = vmatpush.msrb.mxu3 %v7538_v5  ;;  %v815_v56 = vrot.slane %v814_v52, 2  ;;  %v6706_v54 = vld [vmem:[%s11110_s0 + $0x68] sm:$0xff] }
 0x403   :  { %v988_v42 = vsel %vm473_vm10, %v987_v53, %v986_v10 }
 0x404   :  { %v831_v55 = vrot.slane %v830_v31, 4  ;;  %v816_v51 = vadd.f32 %v815_v56, %v814_v52 }
 0x406   :  { %v7477_v32 = vpop.permute.xlu0 %747 }
 0x407   :  { %v793_v57 = vmul.f32 %v6700_v40, %v7477_v32  ;;  %v822_v40 = vrot.slane %v821_v59, 4 }
 0x409   :  { %v837_v47 = vsel %vm56_vm0, %v793_v57, 0.0  ;;  %v7550_v57 = vld [vmem:[%s11109_s1 + $0x38] sm:$0xff]  ;;  %v823_v35 = vadd.f32 %v822_v40, %v821_v59  ;;  %v998_v59 = vperm.slane %v7477_v32, %v7258_v36 }
 0x40a   :  { %v839_v0 = vadd.f32 %v838_v30, %v837_v47  ;;  %910 = vmatpush.msrb.mxu3 %v7550_v57  ;;  %v995_v47 = vperm.slane %v7456_v48, %v7258_v36  ;;  %v855_v48 = vsel %vm56_vm0, %v797_v13, 0.0  ;;  %v778_v30 = vpop.permute.xlu2 %777 }
 0x40c   :  { %v840_v16 = vrot.slane %v839_v0, 4  ;;  %911 = vmatpush.msrb.mxu3 %v7567_v38  ;;  %v997_v40 = vsel %vm473_vm10, %v996_v6, %v995_v47  ;;  %v1007_v6 = vperm.slane %v778_v30, %v7258_v36 }
 0x40e   :  { %v7516_v46 = vpop.permute.xlu0 %762  ;;  %912 = vmatpush.msrb.mxu3 %v7583_v24 }
 0x40f   :  { %v796_v21 = vmul.f32 %v6704_v11, %v7516_v46  ;;  %v1010_v11 = vsel %vm153_vm2, %v991_v60, %v988_v42  ;;  %v1002_v4 = vperm.slane %v7516_v46, %v7263_v20  ;;  %v824_v46 = vrot.slane %v823_v35, 2 }
 0x410   :  { %v1000_v60 = vsel %vm473_vm10, %v999_v27, %v998_v59  ;;  %913 = vmatpush.msrb.mxu3 %v7598_v49 }
 0x411   :  { %v847_v34 = vsel %vm56_vm0, %v796_v21, 0.0  ;;  %v832_v21 = vadd.f32 %v831_v55, %v830_v31  ;;  %v994_v31 = vsel %vm473_vm10, %v993_v62, %v992_v3  ;;  %v1003_v13 = vsel %vm473_vm10, %v1002_v4, %v1001_v63  ;;  %v6708_v63 = vld [vmem:[%s11110_s0 + $0x78] sm:$0xff] }
 0x412   :  { %v848_v17 = vadd.f32 %v847_v34, %v846_v37  ;;  %v841_v37 = vadd.f32 %v840_v16, %v839_v0  ;;  %v1004_v0 = vperm.slane %v7519_v1, %v7258_v36  ;;  %v1011_v1 = vsel %vm155_vm3, %v994_v31, %v1010_v11  ;;  %v7622_v16 = vld [vmem:[%s11109_s1 + $0x10] sm:$0xff]  ;;  %914 = vmatpush.msrb.mxu3 %v7609_v43  ;;  %v7635_v11 = vld [vmem:[%s11109_s1 + $0x8] sm:$0xff] }
 0x413   :  { %v833_v55 = vrot.slane %v832_v21, 2  ;;  %v1012_v42 = vsel %vm157_vm4, %v997_v40, %v1011_v1  ;;  %v825_v56 = vadd.f32 %v824_v46, %v823_v35 }
 0x414   :  { %v849_v9 = vrot.slane %v848_v17, 4  ;;  %v842_v22 = vrot.slane %v841_v37, 2  ;;  %v1013_v47 = vsel %vm159_vm5, %v1000_v60, %v1012_v42  ;;  %915 = vmatpush.msrb.mxu3 %v7622_v16 }
 0x416   :  { %v773_v25 = vpop.permute.xlu0 %772  ;;  %v850_v10 = vadd.f32 %v849_v9, %v848_v17  ;;  %v6707_v17 = vld [vmem:[%s11110_s0 + $0x70] sm:$0xff]  ;;  %v843_v4 = vadd.f32 %v842_v22, %v841_v37  ;;  %916 = vmatpush.msrb.mxu3 %v7635_v11 }
 0x417   :  { %v798_v15 = vmul.f32 %v6706_v54, %v773_v25  ;;  %v1005_v53 = vperm.slane %v773_v25, %v7263_v20  ;;  %v799_v62 = vmul.f32 %v6707_v17, %v778_v30  ;;  %v1014_v30 = vsel %vm161_vm6, %v1003_v13, %v1013_v47 }
 0x418   :  { %v851_v3 = vrot.slane %v850_v10, 2  ;;  %v808_v17 = vrot.slane %v7585_v8, 1  ;;  %v844_v60 = vrot.slane %v843_v4, 1 }
 0x419   :  { %v856_v34 = vsel %vm56_vm0, %v798_v15, 0.0  ;;  %v1006_v27 = vsel %vm473_vm10, %v1005_v53, %v1004_v0  ;;  %v864_v59 = vsel %vm56_vm0, %v799_v62, 0.0  ;;  %v817_v53 = vrot.slane %v816_v51, 1 }
 0x41a   :  { %v857_v32 = vadd.f32 %v856_v34, %v855_v48  ;;  %v834_v48 = vadd.f32 %v833_v55, %v832_v21  ;;  %v1015_v34 = vsel %vm163_vm7, %v1006_v27, %v1014_v30  ;;  %v852_v0 = vadd.f32 %v851_v3, %v850_v10 }
 0x41b   :  { %v826_v21 = vrot.slane %v825_v56, 1  ;;  %v809_v13 = vadd.f32 %v808_v17, %v7585_v8  ;;  %v845_v27 = vadd.f32 %v844_v60, %v843_v4  ;;  %v7668_v4 = vld [vmem:[%s11109_s1 + $0xa0] sm:$0xff] }
 0x41c   :  { %v858_v52 = vrot.slane %v857_v32, 4  ;;  %v835_v62 = vrot.slane %v834_v48, 1  ;;  %v853_v1 = vrot.slane %v852_v0, 1 }
 0x41e   :  { %v859_v9 = vadd.f32 %v858_v52, %v857_v32  ;;  %v783_v25 = vpop.permute.xlu0 %782  ;;  %v818_v52 = vadd.f32 %v817_v53, %v816_v51  ;;  %v836_v42 = vadd.f32 %v835_v62, %v834_v48  ;;  %v7690_v53 = vcvt.s32.f32 %v7258_v36  ;;  %v6097_v62 = vld [vmem:[%s11109_s1 + $0x50] ss:$0 sm:$0xff] }
 0x41f   :  { %v800_v54 = vmul.f32 %v6708_v63, %v783_v25  ;;  %v1008_v15 = vperm.slane %v783_v25, %v7263_v20  ;;  %v854_v25 = vadd.f32 %v853_v1, %v852_v0  ;;  %v6936_v0 = vmov 0.0  }
 0x420   :  { %v860_v35 = vrot.slane %v859_v9, 2  ;;  %v881_v63 = vsel %vm153_vm2, %v818_v52, %v809_v13  ;;  %vm306_vm11 = vcmp.eq.f32.partialorder %v7690_v53, 1.0 }
 0x421   :  { %v865_v31 = vsel %vm56_vm0, %v800_v54, 0.0  ;;  %v1009_v32 = vsel %vm473_vm10, %v1008_v15, %v1007_v6  ;;  %v827_v6 = vadd.f32 %v826_v21, %v825_v56  ;;  %v892_v21 = vpop.permute.xlu1 %891 }
 0x422   :  { %v866_v46 = vadd.f32 %v865_v31, %v864_v59  ;;  %v1016_v40 = vsel %vm165_vm8, %v1009_v32, %v1015_v34  ;;  %v861_v37 = vadd.f32 %v860_v35, %v859_v9  ;;  %v7662_v35 = vld [vmem:[%s11109_s1] sm:$0xff]  ;;  %v7674_v34 = vld [vmem:[%s11109_s1 + $0x98] sm:$0xff]  ;;  %v7680_v31 = vld [vmem:[%s11109_s1 + $0x90] sm:$0xff] }
 0x423   :  { %1018 = vst.msk [vmem:[%s11111_s3] sm:$0xff] %vm56_vm0, %v1016_v40  ;;  %v882_v54 = vsel %vm155_vm3, %v827_v6, %v881_v63  ;;  %917 = vmatpush.msrb.mxu3 %v7662_v35  ;;  %v7686_v32 = vld [vmem:[%s11109_s1 + $0x88] sm:$0xff] }
 0x424   :  { %v867_v55 = vrot.slane %v866_v46, 4  ;;  %v862_v22 = vrot.slane %v861_v37, 1  ;;  %v883_v59 = vsel %vm157_vm4, %v836_v42, %v882_v54 }
 0x425   :  { %v884_v51 = vsel %vm159_vm5, %v845_v27, %v883_v59  ;;  %1754 = vmatpush.msra.mxu3 %v7668_v4 }
 0x426   :  { %v868_v10 = vadd.f32 %v867_v55, %v866_v46  ;;  %v863_v9 = vadd.f32 %v862_v22, %v861_v37  ;;  %v885_v56 = vsel %vm161_vm6, %v854_v25, %v884_v51  ;;  %v6028_v46 = vsel %vm306_vm11, 1.0, %v6936_v0 }
 0x427   :  { %1755 = vmatpush.msra.mxu3 %v7674_v34 }
 0x428   :  { %v869_v3 = vrot.slane %v868_v10, 2  ;;  %v886_v8 = vsel %vm163_vm7, %v863_v9, %v885_v56 }
 0x429   :  { %1756 = vmatpush.msra.mxu3 %v7680_v31 }
 0x42a   :  { %v870_v47 = vadd.f32 %v869_v3, %v868_v10 }
 0x42b   :  { %1757 = vmatpush.msra.mxu3 %v7686_v32 }
 0x42c   :  { %v871_v15 = vrot.slane %v870_v47, 1 }
 0x42e   :  { %v872_v30 = vadd.f32 %v871_v15, %v870_v47 }
 0x430   :  { %v887_v48 = vsel %vm165_vm8, %v872_v30, %v886_v8 }
 0x431   :  { %888 = vrot.lane.b32.xlu2 %v887_v48, %s6935_s11  ;;  %v38_v48 = vld [vmem:[%s11109_s1 + $0xc8] sm:$0xff] }
 0x432   :  { %977 = vmatpush.msra.mxu0 %v38_v48  ;;  %1687 = vmatpush.msrb.mxu2 %v38_v48 }
 0x48b   :  { %v889_v40 = vpop.permute.xlu2 %888 }
 0x48c   :  { %v894_v37 = vsel %vm309_vm9, %v6028_v46, %v889_v40  ;;  %v37_v46 = vld [vmem:[%s11109_s1 + $0xc0] sm:$0xff]  ;;  %v35_v40 = vld [vmem:[%s11109_s1 + $0xb0] sm:$0xff] }
 0x48d   :  { %v896_v17 = vsel %vm895_vm12, %v894_v37, %v892_v21  ;;  %978 = vmatpush.msra.mxu0 %v37_v46  ;;  %1688 = vmatpush.msrb.mxu2 %v37_v46 }
 0x48e   :  { %6030 = vmatmul.msk.f32.vlgmr.msrb.gmra.mxu3 %vm898_vm13, %v896_v17 }
 0x48f   :  { %2399 = vmatpush.msrb.mxu3 %v38_v48 }
 0x491   :  { %2400 = vmatpush.msrb.mxu3 %v37_v46 }
 0x511   :  { %v919_v55 = vpop.f32.mrf.mxu3 }
 0x512   :  { %v920_v60 = vadd.f32 %v6097_v62, %v919_v55 }
 0x514   :  { %6167 = vtanh.f32 %v920_v60  ;;  %v6031_v1 = vmul.f32 -1.442695, %v920_v60 }
 0x516   :  { %6169 = vpow2.f32 %v6031_v1 }
 0x51a   :  { %v6168_v52 = vpop.eup %6167 }
 0x51b   :  { %944 = vrot.lane.b32.xlu0 %v6168_v52, %s6937_s24 }
 0x51c   :  { %v6170_v10 = vpop.eup %6169 }
 0x51d   :  { %v925_v6 = vadd.f32 1.0, %v6170_v10 }
 0x51f   :  { %6171 = vrcp.f32 %v925_v6  ;;  %v937_v25 = vand.u32 2147483648, %v925_v6  ;;  %vm931_vm15 = vweird.f32 %v925_v6  ;;  %v935_v47 = vand.u32 2147483647, %v925_v6 }
 0x521   :  { %v938_v9 = vor.u32 1.1754944e-38, %v937_v25  ;;  %vm936_vm11 = vcmp.eq.f32.partialorder %v935_v47, 8.507059e+37 }
 0x525   :  { %v6172_v22 = vpop.eup %6171 }
 0x526   :  { %v927_v13 = vmul.f32 %v6172_v22, %v925_v6  ;;  %vm932_vm14 = vweird.f32 %v6172_v22 }
 0x527   :  { %vm933_vm1 = vmor %vm931_vm15, %vm932_vm14 }
 0x528   :  { %v928_v42 = vsub.f32 1.0, %v927_v13 }
 0x52a   :  { %v929_v3 = vmul.f32 %v6172_v22, %v928_v42 }
 0x52c   :  { %v930_v27 = vadd.f32 %v6172_v22, %v929_v3 }
 0x52e   :  { %v934_v63 = vsel %vm933_vm1, %v6172_v22, %v930_v27  ;;  %v7775_v22 = vld [vmem:[%s11109_s1 + $0xa8] ss:$0 sm:$0xff] }
 0x52f   :  { %v939_v15 = vsel %vm936_vm11, %v938_v9, %v934_v63 }
 0x530   :  { %v942_v51 = vmul.f32 %v939_v15, %v7126_v14  ;;  %v36_v14 = vld [vmem:[%s11109_s1 + $0xb8] sm:$0xff] }
 0x531   :  { %979 = vmatpush.msra.mxu0 %v36_v14  ;;  %1689 = vmatpush.msrb.mxu2 %v36_v14 }
 0x532   :  { %2401 = vmatpush.msrb.mxu3 %v36_v14 }
 0x533   :  { %980 = vmatpush.msra.mxu0 %v35_v40  ;;  %1690 = vmatpush.msrb.mxu2 %v35_v40 }
 0x534   :  { %2402 = vmatpush.msrb.mxu3 %v35_v40 }
 0x535   :  { %1619 = vmatpush.msrb.mxu0 %v7533_v39 }
 0x537   :  { %1620 = vmatpush.msrb.mxu0 %v7538_v5 }
 0x539   :  { %1621 = vmatpush.msrb.mxu0 %v7550_v57 }
 0x53b   :  { %1622 = vmatpush.msrb.mxu0 %v7567_v38 }
 0x53d   :  { %1623 = vmatpush.msrb.mxu0 %v7583_v24 }
 0x53f   :  { %1624 = vmatpush.msrb.mxu0 %v7598_v49 }
 0x541   :  { %1625 = vmatpush.msrb.mxu0 %v7609_v43 }
 0x543   :  { %1626 = vmatpush.msrb.mxu0 %v7622_v16 }
 0x545   :  { %1627 = vmatpush.msrb.mxu0 %v7635_v11 }
 0x547   :  { %1628 = vmatpush.msrb.mxu0 %v7662_v35 }
 0x58d   :  { %v945_v54 = vpop.permute.xlu0 %944 }
 0x58e   :  { %v947_v59 = vmul.f32 %v945_v54, %v939_v15 }
 0x590   :  { %949 = vrot.lane.b32.xlu2 %v947_v59, %s6935_s11 }
 0x5ea   :  { %v950_v30 = vpop.permute.xlu2 %949 }
 0x5eb   :  { %v7703_v56 = vadd.f32 %v950_v30, %v942_v51 }
 0x5ed   :  { %6173 = vtanh.f32 %v7703_v56 }
 0x5f3   :  { %v6174_v8 = vpop.eup %6173 }
 0x5f4   :  { %955 = vrot.lane.b32.xlu1 %v6174_v8, %s6937_s24 }
 0x666   :  { %v956_v21 = vpop.permute.xlu1 %955 }
 0x667   :  { %v7729_v37 = vmul.f32 %v956_v21, %v939_v15 }
 0x669   :  { %961 = vrot.lane.b32.xlu0 %v7729_v37, %s6935_s11 }
 0x6db   :  { %v962_v17 = vpop.permute.xlu0 %961 }
 0x6dc   :  { %6032 = vmatmul.msk.f32.vlgmr.msra.gmra.mxu0 %vm309_vm9, %v962_v17  ;;  %6034 = vmatmul.msk.f32.vlgmr.msra.gmra.mxu2 %vm309_vm9, %v962_v17 }
 0x6dd   :  { %2331 = vmatpush.msra.mxu2 %v7533_v39  ;;  %2466 = vmatpush.msra.mxu0 %v7668_v4  ;;  %v6098_v39 = vld [vmem:[%s11109_s1 + $0xd0] ss:$0 sm:$0xff] }
 0x6df   :  { %2332 = vmatpush.msra.mxu2 %v7538_v5  ;;  %2467 = vmatpush.msra.mxu0 %v7674_v34 }
 0x6e1   :  { %2333 = vmatpush.msra.mxu2 %v7550_v57  ;;  %2468 = vmatpush.msra.mxu0 %v7680_v31 }
 0x6e3   :  { %2334 = vmatpush.msra.mxu2 %v7567_v38  ;;  %2469 = vmatpush.msra.mxu0 %v7686_v32 }
 0x6e5   :  { %2335 = vmatpush.msra.mxu2 %v7583_v24 }
 0x6e7   :  { %2336 = vmatpush.msra.mxu2 %v7598_v49 }
 0x6e9   :  { %2337 = vmatpush.msra.mxu2 %v7609_v43 }
 0x6eb   :  { %2338 = vmatpush.msra.mxu2 %v7622_v16 }
 0x6ed   :  { %2339 = vmatpush.msra.mxu2 %v7635_v11 }
 0x6ef   :  { %2340 = vmatpush.msra.mxu2 %v7662_v35 }
 0x759   :  { %v982_v5 = vpop.f32.mrf.mxu0 }
 0x75a   :  { %v7752_v57 = vadd.f32 %v6098_v39, %v982_v5 }
 0x75c   :  { %985 = vst.msk [vmem:[%s11112_s2] sm:$0xff] %vm309_vm9, %v7752_v57 }
 0x75f   :  { %v7759_v38 = vpop.f32.mrf.mxu2 }
 0x760   :  { %v1058_v24 = vperm.slane %v7759_v38, 0  ;;  %v1051_v49 = vrot.slane %v7759_v38, 1  ;;  %v1052_v43 = vrot.slane %v7759_v38, 2  ;;  %v1053_v16 = vrot.slane %v7759_v38, 3 }
 0x761   :  { %v1054_v52 = vrot.slane %v7759_v38, 4  ;;  %v1055_v25 = vrot.slane %v7759_v38, 5  ;;  %v1056_v51 = vrot.slane %v7759_v38, 6 }
 0x762   :  { %v1075_v11 = vadd.f32 %v1058_v24, %v7144_v18  ;;  %v1074_v35 = vadd.f32 %v1058_v24, %v7138_v12  ;;  %v1059_v4 = vperm.slane %v1051_v49, 0  ;;  %v1060_v34 = vperm.slane %v1052_v43, 0 }
 0x763   :  { %v1061_v31 = vperm.slane %v1053_v16, 0  ;;  %v1062_v10 = vperm.slane %v1054_v52, 0  ;;  %v1063_v46 = vperm.slane %v1055_v25, 0  ;;  %v1064_v21 = vperm.slane %v1056_v51, 0 }
 0x764   :  { %6175 = vtanh.f32 %v1075_v11  ;;  %v1076_v32 = vadd.f32 %v1059_v4, %v7147_v19  ;;  %v1078_v62 = vadd.f32 %v1060_v34, %v7150_v23  ;;  %v1077_v55 = vadd.f32 %v1059_v4, %v7161_v33 }
 0x765   :  { %6177 = vtanh.f32 %v1074_v35  ;;  %v1080_v60 = vadd.f32 %v1061_v31, %v7172_v41  ;;  %v1081_v27 = vadd.f32 %v1061_v31, %v7180_v50  ;;  %v1079_v9 = vadd.f32 %v1060_v34, %v7154_v28 }
 0x766   :  { %6179 = vtanh.f32 %v1076_v32  ;;  %v1083_v59 = vadd.f32 %v1062_v10, %v7190_v58  ;;  %v1084_v39 = vadd.f32 %v1063_v46, %v7198_v7  ;;  %v1082_v24 = vadd.f32 %v1062_v10, %v7176_v44 }
 0x767   :  { %6181 = vtanh.f32 %v1078_v62  ;;  %v1086_v16 = vadd.f32 %v1064_v21, %v7210_v2  ;;  %v1057_v11 = vrot.slane %v7759_v38, 7  ;;  %v1085_v52 = vadd.f32 %v1063_v46, %v7195_v61 }
 0x768   :  { %6183 = vtanh.f32 %v1077_v55 }
 0x769   :  { %6185 = vtanh.f32 %v1080_v60  ;;  %v1065_v62 = vperm.slane %v1057_v11, 0  ;;  %v1087_v60 = vadd.f32 %v1064_v21, %v7218_v29 }
 0x76a   :  { %v6176_v1 = vpop.eup %6175  ;;  %6187 = vtanh.f32 %v1081_v27 }
 0x76b   :  { %v6178_v6 = vpop.eup %6177  ;;  %v1107_v13 = vmul.f32 %v7775_v22, %v6176_v1  ;;  %6189 = vtanh.f32 %v1079_v9  ;;  %v1088_v9 = vadd.f32 %v1065_v62, %v7215_v26 }
 0x76c   :  { %v6180_v42 = vpop.eup %6179  ;;  %v1106_v3 = vmul.f32 %v7775_v22, %v6178_v6  ;;  %6191 = vtanh.f32 %v1083_v59  ;;  %v1089_v6 = vadd.f32 %v1065_v62, %v7228_v45 }
 0x76d   :  { %v1125_v47 = vsel %vm56_vm0, %v1107_v13, 0.0  ;;  %v1108_v63 = vmul.f32 %v7775_v22, %v6180_v42  ;;  %v6182_v54 = vpop.eup %6181  ;;  %6193 = vtanh.f32 %v1084_v39 }
 0x76e   :  { %1126 = vadd.xlane.f32.xlu1 %v1125_v47  ;;  %v1122_v15 = vsel %vm56_vm0, %v1106_v3, 0.0  ;;  %v6184_v30 = vpop.eup %6183  ;;  %v1110_v14 = vmul.f32 %v7775_v22, %v6182_v54  ;;  %6195 = vtanh.f32 %v1082_v24 }
 0x76f   :  { %1123 = vadd.xlane.f32.xlu2 %v1122_v15  ;;  %v1128_v8 = vsel %vm56_vm0, %v1108_v63, 0.0  ;;  %v6186_v48 = vpop.eup %6185  ;;  %v1109_v40 = vmul.f32 %v7775_v22, %v6184_v30  ;;  %6197 = vtanh.f32 %v1086_v16 }
 0x770   :  { %1129 = vadd.xlane.f32.xlu0 %v1128_v8  ;;  %v1112_v17 = vmul.f32 %v7775_v22, %v6186_v48  ;;  %v1134_v5 = vsel %vm56_vm0, %v1110_v14, 0.0  ;;  %v6188_v49 = vpop.eup %6187  ;;  %6199 = vtanh.f32 %v1087_v60 }
 0x771   :  { %v1131_v43 = vsel %vm56_vm0, %v1109_v40, 0.0  ;;  %v6190_v35 = vpop.eup %6189  ;;  %v1113_v31 = vmul.f32 %v7775_v22, %v6188_v49  ;;  %6201 = vtanh.f32 %v1085_v52 }
 0x772   :  { %v1140_v4 = vsel %vm56_vm0, %v1112_v17, 0.0  ;;  %v6192_v34 = vpop.eup %6191  ;;  %v1111_v32 = vmul.f32 %v7775_v22, %v6190_v35  ;;  %6203 = vtanh.f32 %v1089_v6 }
 0x773   :  { %v1115_v55 = vmul.f32 %v7775_v22, %v6192_v34  ;;  %v1143_v38 = vsel %vm56_vm0, %v1113_v31, 0.0  ;;  %v6194_v1 = vpop.eup %6193  ;;  %6205 = vtanh.f32 %v1088_v9 }
 0x774   :  { %v1137_v10 = vsel %vm56_vm0, %v1111_v32, 0.0  ;;  %v6196_v13 = vpop.eup %6195  ;;  %v1116_v27 = vmul.f32 %v7775_v22, %v6194_v1 }
 0x775   :  { %v1149_v42 = vsel %vm56_vm0, %v1115_v55, 0.0  ;;  %v6198_v3 = vpop.eup %6197  ;;  %v1114_v25 = vmul.f32 %v7775_v22, %v6196_v13 }
 0x776   :  { %1135 = vadd.xlane.f32.xlu1 %v1134_v5  ;;  %v1118_v47 = vmul.f32 %v7775_v22, %v6198_v3  ;;  %v1152_v63 = vsel %vm56_vm0, %v1116_v27, 0.0  ;;  %v6200_v54 = vpop.eup %6199 }
 0x777   :  { %1132 = vadd.xlane.f32.xlu2 %v1131_v43  ;;  %v1146_v15 = vsel %vm56_vm0, %v1114_v25, 0.0  ;;  %v6202_v59 = vpop.eup %6201  ;;  %v1119_v8 = vmul.f32 %v7775_v22, %v6200_v54 }
 0x778   :  { %1141 = vadd.xlane.f32.xlu0 %v1140_v4  ;;  %v1158_v51 = vsel %vm56_vm0, %v1118_v47, 0.0  ;;  %v6204_v30 = vpop.eup %6203  ;;  %v1117_v48 = vmul.f32 %v7775_v22, %v6202_v59 }
 0x779   :  { %v1121_v46 = vmul.f32 %v7775_v22, %v6204_v30  ;;  %v1161_v14 = vsel %vm56_vm0, %v1119_v8, 0.0  ;;  %v6206_v21 = vpop.eup %6205 }
 0x77a   :  { %v1155_v40 = vsel %vm56_vm0, %v1117_v48, 0.0  ;;  %v1120_v39 = vmul.f32 %v7775_v22, %v6206_v21 }
 0x77b   :  { %v1167_v17 = vsel %vm56_vm0, %v1121_v46, 0.0 }
 0x77c   :  { %v1164_v5 = vsel %vm56_vm0, %v1120_v39, 0.0 }
 0x77e   :  { %1144 = vadd.xlane.f32.xlu1 %v1143_v38 }
 0x77f   :  { %1138 = vadd.xlane.f32.xlu2 %v1137_v10 }
 0x780   :  { %1150 = vadd.xlane.f32.xlu0 %v1149_v42 }
 0x786   :  { %1153 = vadd.xlane.f32.xlu1 %v1152_v63 }
 0x787   :  { %1147 = vadd.xlane.f32.xlu2 %v1146_v15 }
 0x788   :  { %1159 = vadd.xlane.f32.xlu0 %v1158_v51 }
 0x78e   :  { %1162 = vadd.xlane.f32.xlu1 %v1161_v14 }
 0x78f   :  { %1156 = vadd.xlane.f32.xlu2 %v1155_v40 }
 0x790   :  { %1168 = vadd.xlane.f32.xlu0 %v1167_v17 }
 0x797   :  { %1165 = vadd.xlane.f32.xlu2 %v1164_v5 }
 0x7e1   :  { %v1127_v24 = vpop.xlane.xlu1 %1126 }
 0x7e2   :  { %v1124_v49 = vpop.xlane.xlu2 %1123  ;;  %v1187_v38 = vperm.slane %v1127_v24, %v7263_v20 }
 0x7e3   :  { %v1130_v43 = vpop.xlane.xlu0 %1129  ;;  %v1186_v52 = vperm.slane %v1124_v49, %v7258_v36 }
 0x7e4   :  { %v1189_v1 = vperm.slane %v1130_v43, %v7258_v36 }
 0x7e5   :  { %v1188_v25 = vsel %vm473_vm10, %v1187_v38, %v1186_v52 }
 0x7e9   :  { %v1136_v16 = vpop.xlane.xlu1 %1135 }
 0x7ea   :  { %v1133_v11 = vpop.xlane.xlu2 %1132  ;;  %v1192_v10 = vperm.slane %v1136_v16, %v7258_v36 }
 0x7eb   :  { %v1142_v35 = vpop.xlane.xlu0 %1141  ;;  %v1190_v22 = vperm.slane %v1133_v11, %v7263_v20 }
 0x7ec   :  { %v1195_v47 = vperm.slane %v1142_v35, %v7258_v36 }
 0x7ed   :  { %v1191_v6 = vsel %vm473_vm10, %v1190_v22, %v1189_v1 }
 0x7ee   :  { %v1210_v54 = vsel %vm153_vm2, %v1191_v6, %v1188_v25 }
 0x7f1   :  { %v7822_v4 = vpop.xlane.xlu1 %1144 }
 0x7f2   :  { %v7824_v34 = vpop.xlane.xlu2 %1138  ;;  %v1196_v13 = vperm.slane %v7822_v4, %v7263_v20 }
 0x7f3   :  { %v7826_v31 = vpop.xlane.xlu0 %1150  ;;  %v1193_v55 = vperm.slane %v7824_v34, %v7263_v20 }
 0x7f4   :  { %v1199_v15 = vperm.slane %v7826_v31, %v7263_v20  ;;  %v1197_v59 = vsel %vm473_vm10, %v1196_v13, %v1195_v47 }
 0x7f5   :  { %v1194_v42 = vsel %vm473_vm10, %v1193_v55, %v1192_v10 }
 0x7f6   :  { %v1211_v51 = vsel %vm155_vm3, %v1194_v42, %v1210_v54 }
 0x7f7   :  { %v1212_v21 = vsel %vm157_vm4, %v1197_v59, %v1211_v51 }
 0x7f9   :  { %v7828_v32 = vpop.xlane.xlu1 %1153 }
 0x7fa   :  { %v7830_v62 = vpop.xlane.xlu2 %1147  ;;  %v1201_v30 = vperm.slane %v7828_v32, %v7258_v36 }
 0x7fb   :  { %v7835_v60 = vpop.xlane.xlu0 %1159  ;;  %v1198_v3 = vperm.slane %v7830_v62, %v7258_v36 }
 0x7fc   :  { %v1204_v14 = vperm.slane %v7835_v60, %v7258_v36 }
 0x7fd   :  { %v1200_v8 = vsel %vm473_vm10, %v1199_v15, %v1198_v3 }
 0x7fe   :  { %v1213_v17 = vsel %vm159_vm5, %v1200_v8, %v1212_v21 }
 0x801   :  { %v7851_v63 = vpop.xlane.xlu1 %1162 }
 0x802   :  { %v7847_v27 = vpop.xlane.xlu2 %1156  ;;  %v1205_v48 = vperm.slane %v7851_v63, %v7263_v20 }
 0x803   :  { %v1202_v9 = vperm.slane %v7847_v27, %v7263_v20  ;;  %v7868_v40 = vpop.xlane.xlu0 %1168 }
 0x804   :  { %v1206_v5 = vsel %vm473_vm10, %v1205_v48, %v1204_v14  ;;  %v1208_v55 = vperm.slane %v7868_v40, %v7263_v20 }
 0x805   :  { %v1203_v46 = vsel %vm473_vm10, %v1202_v9, %v1201_v30 }
 0x806   :  { %v1214_v22 = vsel %vm161_vm6, %v1203_v46, %v1213_v17 }
 0x807   :  { %v1215_v1 = vsel %vm163_vm7, %v1206_v5, %v1214_v22 }
 0x80a   :  { %v7872_v39 = vpop.xlane.xlu2 %1165 }
 0x80b   :  { %v1207_v38 = vperm.slane %v7872_v39, %v7258_v36 }
 0x80d   :  { %v1209_v52 = vsel %vm473_vm10, %v1208_v55, %v1207_v38 }
 0x80e   :  { %v1216_v10 = vsel %vm165_vm8, %v1209_v52, %v1215_v1 }
 0x80f   :  { %v1218_v6 = vsel %vm56_vm0, %v1216_v10, -inf }
 0x810   :  { %1219 = vmax.xlane.f32.xlu1 %v1218_v6 }
 0x883   :  { %v7884_v13 = vpop.xlane.xlu1 %1219 }
 0x884   :  { %v1223_v42 = vperm.slane %v7884_v13, 1  ;;  %v1222_v3 = vperm.slane %v7884_v13, 0  ;;  %v1225_v54 = vperm.slane %v7884_v13, 3  ;;  %v1224_v15 = vperm.slane %v7884_v13, 2 }
 0x885   :  { %v1226_v21 = vperm.slane %v7884_v13, 4  ;;  %v1228_v55 = vperm.slane %v7884_v13, 6  ;;  %v1227_v10 = vperm.slane %v7884_v13, 5 }
 0x886   :  { %v1240_v25 = vsub.f32 %v1130_v43, %v1223_v42  ;;  %v1239_v47 = vsub.f32 %v1127_v24, %v1222_v3  ;;  %v1238_v9 = vsub.f32 %v1124_v49, %v1222_v3  ;;  %v1244_v8 = vsub.f32 %v1142_v35, %v1225_v54 }
 0x887   :  { %v1241_v48 = vsub.f32 %v1133_v11, %v1223_v42  ;;  %v1242_v46 = vsub.f32 %v1136_v16, %v1224_v15  ;;  %v1247_v11 = vsub.f32 %v7826_v31, %v1226_v21  ;;  %v1243_v16 = vsub.f32 %v7824_v34, %v1224_v15 }
 0x888   :  { %v1258_v59 = vmul.f32 1.442695, %v1240_v25  ;;  %v1256_v51 = vmul.f32 1.442695, %v1239_v47  ;;  %v1254_v30 = vmul.f32 1.442695, %v1238_v9  ;;  %v1245_v35 = vsub.f32 %v7822_v4, %v1225_v54 }
 0x889   :  { %v1266_v14 = vmul.f32 1.442695, %v1244_v8  ;;  %v1260_v17 = vmul.f32 1.442695, %v1241_v48  ;;  %v1262_v24 = vmul.f32 1.442695, %v1242_v46  ;;  %v1250_v4 = vsub.f32 %v7835_v60, %v1228_v55 }
 0x88a   :  { %6207 = vpow2.f32 %v1258_v59  ;;  %v1272_v22 = vmul.f32 1.442695, %v1247_v11  ;;  %v1264_v38 = vmul.f32 1.442695, %v1243_v16  ;;  %v1268_v1 = vmul.f32 1.442695, %v1245_v35 }
 0x88b   :  { %6209 = vpow2.f32 %v1256_v51  ;;  %v1246_v34 = vsub.f32 %v7830_v62, %v1226_v21  ;;  %v1248_v42 = vsub.f32 %v7828_v32, %v1227_v10  ;;  %v1278_v3 = vmul.f32 1.442695, %v1250_v4 }
 0x88c   :  { %6211 = vpow2.f32 %v1254_v30  ;;  %v1229_v25 = vperm.slane %v7884_v13, 7  ;;  %v1249_v32 = vsub.f32 %v7847_v27, %v1227_v10  ;;  %v1251_v13 = vsub.f32 %v7851_v63, %v1228_v55 }
 0x88d   :  { %6213 = vpow2.f32 %v1266_v14  ;;  %v1270_v47 = vmul.f32 1.442695, %v1246_v34  ;;  %v1274_v54 = vmul.f32 1.442695, %v1248_v42 }
 0x88e   :  { %6215 = vpow2.f32 %v1260_v17  ;;  %v1253_v62 = vsub.f32 %v7868_v40, %v1229_v25  ;;  %v1276_v51 = vmul.f32 1.442695, %v1249_v32  ;;  %v1280_v8 = vmul.f32 1.442695, %v1251_v13 }
 0x88f   :  { %6217 = vpow2.f32 %v1262_v24  ;;  %v1252_v27 = vsub.f32 %v7872_v39, %v1229_v25 }
 0x890   :  { %v7891_v43 = vpop.eup %6207  ;;  %6219 = vpow2.f32 %v1272_v22  ;;  %v1284_v59 = vmul.f32 1.442695, %v1253_v62 }
 0x891   :  { %v7893_v49 = vpop.eup %6209  ;;  %1309 = vperm.xlu1 %6093, %v7891_v43   ;;  %6221 = vpow2.f32 %v1264_v38  ;;  %v1282_v63 = vmul.f32 1.442695, %v1252_v27 }
 0x892   :  { %v7896_v5 = vpop.eup %6211  ;;  %1306 = vperm.xlu0 %6092, %v7893_v49   ;;  %6223 = vpow2.f32 %v1268_v1 }
 0x893   :  { %1303 = vperm.xlu2 %6091, %v7896_v5   ;;  %v7904_v52 = vpop.eup %6213  ;;  %6225 = vpow2.f32 %v1278_v3 }
 0x894   :  { %v7907_v6 = vpop.eup %6215  ;;  %6227 = vpow2.f32 %v1270_v47 }
 0x895   :  { %v7910_v31 = vpop.eup %6217  ;;  %6229 = vpow2.f32 %v1274_v54 }
 0x896   :  { %v7918_v9 = vpop.eup %6219  ;;  %6231 = vpow2.f32 %v1284_v59 }
 0x897   :  { %v7920_v15 = vpop.eup %6221  ;;  %6233 = vpow2.f32 %v1276_v51 }
 0x898   :  { %v7923_v60 = vpop.eup %6223  ;;  %6235 = vpow2.f32 %v1280_v8 }
 0x899   :  { %1321 = vperm.xlu1 %6093, %v7904_v52   ;;  %v7930_v30 = vpop.eup %6225  ;;  %6237 = vpow2.f32 %v1282_v63 }
 0x89a   :  { %1312 = vperm.xlu0 %6092, %v7907_v6   ;;  %v7932_v48 = vpop.eup %6227 }
 0x89b   :  { %1315 = vperm.xlu2 %6091, %v7910_v31   ;;  %v7935_v46 = vpop.eup %6229 }
 0x89c   :  { %v7940_v40 = vpop.eup %6231 }
 0x89d   :  { %v7942_v14 = vpop.eup %6233 }
 0x89e   :  { %v7945_v21 = vpop.eup %6235 }
 0x89f   :  { %v7949_v17 = vpop.eup %6237 }
 0x8a1   :  { %1330 = vperm.xlu1 %6093, %v7918_v9  }
 0x8a2   :  { %1318 = vperm.xlu0 %6092, %v7920_v15  }
 0x8a3   :  { %1324 = vperm.xlu2 %6091, %v7923_v60  }
 0x8a9   :  { %1339 = vperm.xlu1 %6093, %v7930_v30  }
 0x8aa   :  { %1327 = vperm.xlu0 %6092, %v7932_v48  }
 0x8ab   :  { %1333 = vperm.xlu2 %6091, %v7935_v46  }
 0x8b1   :  { %1348 = vperm.xlu1 %6093, %v7940_v40  }
 0x8b2   :  { %1336 = vperm.xlu0 %6092, %v7942_v14  }
 0x8b3   :  { %1342 = vperm.xlu2 %6091, %v7945_v21  }
 0x8ba   :  { %1345 = vperm.xlu0 %6092, %v7949_v17  }
 0x8ed   :  { %v1304_v39 = vpop.permute.xlu2 %1303 }
 0x8ee   :  { %v1350_v62 = vperm.slane %v1304_v39, %v7258_v36 }
 0x8f5   :  { %v1316_v16 = vpop.permute.xlu2 %1315 }
 0x8f6   :  { %v1356_v54 = vperm.slane %v1316_v16, %v7258_v36 }
 0x8fd   :  { %v1325_v38 = vpop.permute.xlu2 %1324 }
 0x8fe   :  { %v1360_v16 = vperm.slane %v1325_v38, %v7263_v20 }
 0x903   :  { %v1310_v24 = vpop.permute.xlu1 %1309 }
 0x904   :  { %v1307_v11 = vpop.permute.xlu0 %1306  ;;  %v1353_v25 = vperm.slane %v1310_v24, %v7258_v36 }
 0x905   :  { %v1334_v4 = vpop.permute.xlu2 %1333  ;;  %v1351_v47 = vperm.slane %v1307_v11, %v7263_v20 }
 0x906   :  { %v1365_v39 = vperm.slane %v1334_v4, %v7258_v36 }
 0x907   :  { %v1352_v8 = vsel %vm473_vm10, %v1351_v47, %v1350_v62 }
 0x90b   :  { %v1322_v35 = vpop.permute.xlu1 %1321 }
 0x90c   :  { %v1313_v22 = vpop.permute.xlu0 %1312  ;;  %v1359_v27 = vperm.slane %v1322_v35, %v7258_v36 }
 0x90d   :  { %v1354_v34 = vperm.slane %v1313_v22, %v7263_v20 }
 0x90f   :  { %v1355_v32 = vsel %vm473_vm10, %v1354_v34, %v1353_v25  ;;  %v1343_v34 = vpop.permute.xlu2 %1342 }
 0x910   :  { %v1374_v24 = vsel %vm153_vm2, %v1355_v32, %v1352_v8  ;;  %v1369_v38 = vperm.slane %v1343_v34, %v7263_v20 }
 0x913   :  { %v1331_v1 = vpop.permute.xlu1 %1330 }
 0x914   :  { %v1319_v55 = vpop.permute.xlu0 %1318  ;;  %v1363_v11 = vperm.slane %v1331_v1, %v7263_v20 }
 0x915   :  { %v1357_v42 = vperm.slane %v1319_v55, %v7263_v20 }
 0x917   :  { %v1358_v13 = vsel %vm473_vm10, %v1357_v42, %v1356_v54 }
 0x918   :  { %v1375_v22 = vsel %vm155_vm3, %v1358_v13, %v1374_v24 }
 0x91b   :  { %v1340_v3 = vpop.permute.xlu1 %1339 }
 0x91c   :  { %v1328_v10 = vpop.permute.xlu0 %1327  ;;  %v1368_v35 = vperm.slane %v1340_v3, %v7258_v36 }
 0x91d   :  { %v1362_v59 = vperm.slane %v1328_v10, %v7258_v36  ;;  %v1361_v10 = vsel %vm473_vm10, %v1360_v16, %v1359_v27 }
 0x91e   :  { %v1376_v47 = vsel %vm157_vm4, %v1361_v10, %v1375_v22  ;;  %v1370_v13 = vsel %vm473_vm10, %v1369_v38, %v1368_v35 }
 0x91f   :  { %v1364_v55 = vsel %vm473_vm10, %v1363_v11, %v1362_v59 }
 0x920   :  { %v1377_v1 = vsel %vm159_vm5, %v1364_v55, %v1376_v47 }
 0x923   :  { %v1349_v25 = vpop.permute.xlu1 %1348 }
 0x924   :  { %v1337_v51 = vpop.permute.xlu0 %1336  ;;  %v1372_v62 = vperm.slane %v1349_v25, %v7263_v20 }
 0x925   :  { %v1366_v63 = vperm.slane %v1337_v51, %v7263_v20 }
 0x927   :  { %v1367_v42 = vsel %vm473_vm10, %v1366_v63, %v1365_v39 }
 0x928   :  { %v1378_v4 = vsel %vm161_vm6, %v1367_v42, %v1377_v1 }
 0x929   :  { %v1379_v3 = vsel %vm163_vm7, %v1370_v13, %v1378_v4 }
 0x92c   :  { %v1346_v54 = vpop.permute.xlu0 %1345 }
 0x92d   :  { %v1371_v32 = vperm.slane %v1346_v54, %v7258_v36 }
 0x92f   :  { %v1373_v59 = vsel %vm473_vm10, %v1372_v62, %v1371_v32  ;;  %v6714_v32 = vld [vmem:[%s11110_s0 + $0x8] sm:$0xff] }
 0x930   :  { %v1380_v51 = vsel %vm165_vm8, %v1373_v59, %v1379_v3  ;;  %v6715_v59 = vld [vmem:[%s11110_s0] sm:$0xff] }
 0x931   :  { %v1382_v8 = vsel %vm56_vm0, %v1380_v51, 0.0  ;;  %v6716_v51 = vld [vmem:[%s11110_s0 + $0x18] sm:$0xff] }
 0x932   :  { %1383 = vadd.xlane.f32.xlu2 %v1382_v8 }
 0x9a5   :  { %v1384_v27 = vpop.xlane.xlu2 %1383 }
 0x9a6   :  { %6239 = vrcp.f32 %v1384_v27  ;;  %v6717_v27 = vld [vmem:[%s11110_s0 + $0x10] sm:$0xff] }
 0x9ac   :  { %v6240_v63 = vpop.eup %6239 }
 0x9ad   :  { %v1392_v24 = vperm.slane %v6240_v63, 5  ;;  %v1387_v11 = vperm.slane %v6240_v63, 0  ;;  %v1388_v55 = vperm.slane %v6240_v63, 1  ;;  %v1389_v42 = vperm.slane %v6240_v63, 2 }
 0x9ae   :  { %v1391_v47 = vperm.slane %v6240_v63, 4  ;;  %v1393_v1 = vperm.slane %v6240_v63, 6  ;;  %v1394_v38 = vperm.slane %v6240_v63, 7 }
 0x9af   :  { %v1413_v16 = vmul.f32 %v7935_v46, %v1392_v24  ;;  %v1404_v39 = vmul.f32 %v7893_v49, %v1387_v11  ;;  %v1403_v22 = vmul.f32 %v7896_v5, %v1387_v11  ;;  %v1406_v10 = vmul.f32 %v7907_v6, %v1388_v55 }
 0x9b0   :  { %v1405_v34 = vmul.f32 %v7891_v43, %v1388_v55  ;;  %v1408_v35 = vmul.f32 %v7920_v15, %v1389_v42  ;;  %v1407_v25 = vmul.f32 %v7910_v31, %v1389_v42  ;;  %v1390_v49 = vperm.slane %v6240_v63, 3 }
 0x9b1   :  { %1471 = vperm.xlu2 %6091, %v1413_v16   ;;  %1426 = vperm.xlu1 %6093, %v1404_v39   ;;  %v1412_v6 = vmul.f32 %v7918_v9, %v1391_v47  ;;  %v1411_v43 = vmul.f32 %v7932_v48, %v1391_v47  ;;  %v1415_v15 = vmul.f32 %v7930_v30, %v1393_v1  ;;  %v1019_v48 = vsel %vm309_vm9, %v7752_v57, -inf  ;;  %v6718_v16 = vld [vmem:[%s11110_s0 + $0x28] sm:$0xff]  ;;  %v6721_v47 = vld [vmem:[%s11110_s0 + $0x30] sm:$0xff] }
 0x9b2   :  { %1421 = vperm.xlu0 %6092, %v1403_v22   ;;  %v1410_v5 = vmul.f32 %v7923_v60, %v1390_v49  ;;  %v1409_v46 = vmul.f32 %v7904_v52, %v1390_v49  ;;  %v1414_v31 = vmul.f32 %v7942_v14, %v1392_v24  ;;  %v1417_v60 = vmul.f32 %v7949_v17, %v1394_v38  ;;  %v6719_v22 = vld [vmem:[%s11110_s0 + $0x20] sm:$0xff] }
 0x9b3   :  { %v1416_v52 = vmul.f32 %v7945_v21, %v1393_v1  ;;  %v1418_v9 = vmul.f32 %v7940_v40, %v1394_v38 }
 0x9b9   :  { %1436 = vperm.xlu1 %6093, %v1406_v10  }
 0x9ba   :  { %1431 = vperm.xlu0 %6092, %v1405_v34  }
 0x9c1   :  { %1446 = vperm.xlu1 %6093, %v1408_v35  }
 0x9c2   :  { %1441 = vperm.xlu0 %6092, %v1407_v25  }
 0x9c9   :  { %1456 = vperm.xlu1 %6093, %v1410_v5   ;;  %v6720_v5 = vld [vmem:[%s11110_s0 + $0x38] sm:$0xff] }
 0x9ca   :  { %1451 = vperm.xlu0 %6092, %v1409_v46  }
 0x9d1   :  { %1466 = vperm.xlu1 %6093, %v1412_v6  }
 0x9d2   :  { %1461 = vperm.xlu0 %6092, %v1411_v43   ;;  %v6722_v43 = vld [vmem:[%s11110_s0 + $0x48] sm:$0xff] }
 0x9d9   :  { %1481 = vperm.xlu1 %6093, %v1415_v15   ;;  %v6723_v15 = vld [vmem:[%s11110_s0 + $0x40] sm:$0xff] }
 0x9da   :  { %1476 = vperm.xlu0 %6092, %v1414_v31  }
 0x9e1   :  { %1491 = vperm.xlu1 %6093, %v1417_v60  }
 0x9e2   :  { %1486 = vperm.xlu0 %6092, %v1416_v52  }
 0x9ea   :  { %1496 = vperm.xlu0 %6092, %v1418_v9   ;;  %v6724_v9 = vld [vmem:[%s11110_s0 + $0x50] sm:$0xff] }
 0xa0b   :  { %1020 = vmax.xlane.f32.xlu1 %v1019_v48  ;;  %v8050_v25 = vpop.permute.xlu2 %1471 }
 0xa0c   :  { %v1509_v48 = vmul.f32 %v6724_v9, %v8050_v25 }
 0xa23   :  { %v8002_v54 = vpop.permute.xlu1 %1426 }
 0xa24   :  { %v8004_v30 = vpop.permute.xlu0 %1421  ;;  %v1500_v13 = vmul.f32 %v6714_v32, %v8002_v54 }
 0xa25   :  { %v1499_v3 = vmul.f32 %v6715_v59, %v8004_v30 }
 0xa26   :  { %v1516_v24 = vsel %vm56_vm0, %v1500_v13, 0.0 }
 0xa27   :  { %v1515_v11 = vsel %vm56_vm0, %v1499_v3, 0.0 }
 0xa28   :  { %v1517_v49 = vadd.f32 %v1516_v24, %v1515_v11  ;;  %v1560_v24 = vsel %vm56_vm0, %v1509_v48, 0.0 }
 0xa2a   :  { %v1518_v32 = vrot.slane %v1517_v49, 4 }
 0xa2b   :  { %v8006_v14 = vpop.permute.xlu1 %1436 }
 0xa2c   :  { %v8008_v4 = vpop.permute.xlu0 %1431  ;;  %v1502_v8 = vmul.f32 %v6716_v51, %v8006_v14 }
 0xa2d   :  { %v1501_v63 = vmul.f32 %v6717_v27, %v8008_v4 }
 0xa2e   :  { %v1525_v42 = vsel %vm56_vm0, %v1502_v8, 0.0 }
 0xa2f   :  { %v1524_v35 = vsel %vm56_vm0, %v1501_v63, 0.0 }
 0xa30   :  { %v1526_v38 = vadd.f32 %v1525_v42, %v1524_v35  ;;  %v1697_v42 = vperm.slane %v8004_v30, %v7258_v36 }
 0xa32   :  { %v1527_v27 = vrot.slane %v1526_v38, 4 }
 0xa33   :  { %v8010_v17 = vpop.permute.xlu1 %1446 }
 0xa34   :  { %v8012_v21 = vpop.permute.xlu0 %1441  ;;  %v1504_v39 = vmul.f32 %v6718_v16, %v8010_v17  ;;  %v6725_v16 = vld [vmem:[%s11110_s0 + $0x58] sm:$0xff] }
 0xa35   :  { %v1503_v55 = vmul.f32 %v6719_v22, %v8012_v21  ;;  %v1698_v22 = vperm.slane %v8002_v54, %v7263_v20  ;;  %v1712_v54 = vperm.slane %v8050_v25, %v7258_v36 }
 0xa36   :  { %v1534_v60 = vsel %vm56_vm0, %v1504_v39, 0.0 }
 0xa37   :  { %v1533_v52 = vsel %vm56_vm0, %v1503_v55, 0.0  ;;  %v1519_v55 = vadd.f32 %v1518_v32, %v1517_v49  ;;  %v1699_v30 = vsel %vm473_vm10, %v1698_v22, %v1697_v42  ;;  %v1703_v32 = vperm.slane %v8012_v21, %v7258_v36 }
 0xa38   :  { %v1535_v3 = vadd.f32 %v1534_v60, %v1533_v52 }
 0xa39   :  { %v1520_v49 = vrot.slane %v1519_v55, 2 }
 0xa3b   :  { %v8014_v62 = vpop.permute.xlu1 %1456 }
 0xa3c   :  { %v8016_v40 = vpop.permute.xlu0 %1451  ;;  %v1506_v46 = vmul.f32 %v6720_v5, %v8014_v62 }
 0xa3d   :  { %v1505_v6 = vmul.f32 %v6721_v47, %v8016_v40  ;;  %v1700_v47 = vperm.slane %v8008_v4, %v7258_v36 }
 0xa3e   :  { %v1543_v13 = vsel %vm56_vm0, %v1506_v46, 0.0  ;;  %v1701_v46 = vperm.slane %v8006_v14, %v7263_v20  ;;  %v6726_v14 = vld [vmem:[%s11110_s0 + $0x60] sm:$0xff] }
 0xa3f   :  { %v1542_v59 = vsel %vm56_vm0, %v1505_v6, 0.0  ;;  %v1536_v6 = vrot.slane %v1535_v3, 4 }
 0xa40   :  { %v1544_v11 = vadd.f32 %v1543_v13, %v1542_v59  ;;  %v1702_v52 = vsel %vm473_vm10, %v1701_v46, %v1700_v47  ;;  %v1707_v59 = vperm.slane %v8014_v62, %v7263_v20 }
 0xa41   :  { %v1537_v9 = vadd.f32 %v1536_v6, %v1535_v3  ;;  %v1706_v3 = vperm.slane %v8016_v40, %v7258_v36 }
 0xa43   :  { %v8044_v10 = vpop.permute.xlu1 %1466 }
 0xa44   :  { %v8046_v34 = vpop.permute.xlu0 %1461  ;;  %v1508_v1 = vmul.f32 %v6722_v43, %v8044_v10 }
 0xa45   :  { %v1507_v31 = vmul.f32 %v6723_v15, %v8046_v34  ;;  %v1709_v21 = vperm.slane %v8046_v34, %v7258_v36  ;;  %v1708_v34 = vsel %vm473_vm10, %v1707_v59, %v1706_v3 }
 0xa46   :  { %v1552_v51 = vsel %vm56_vm0, %v1508_v1, 0.0  ;;  %v1528_v1 = vadd.f32 %v1527_v27, %v1526_v38  ;;  %v1704_v38 = vperm.slane %v8010_v17, %v7263_v20  ;;  %v1710_v17 = vperm.slane %v8044_v10, %v7263_v20 }
 0xa47   :  { %v1551_v8 = vsel %vm56_vm0, %v1507_v31, 0.0  ;;  %v1545_v31 = vrot.slane %v1544_v11, 4  ;;  %v1721_v10 = vsel %vm153_vm2, %v1702_v52, %v1699_v30 }
 0xa48   :  { %v1553_v35 = vadd.f32 %v1552_v51, %v1551_v8  ;;  %v1529_v48 = vrot.slane %v1528_v1, 2  ;;  %v6727_v8 = vld [vmem:[%s11110_s0 + $0x68] sm:$0xff]  ;;  %v1705_v22 = vsel %vm473_vm10, %v1704_v38, %v1703_v32 }
 0xa49   :  { %v1546_v51 = vadd.f32 %v1545_v31, %v1544_v11  ;;  %v1711_v31 = vsel %vm473_vm10, %v1710_v17, %v1709_v21 }
 0xa4a   :  { %v1554_v60 = vrot.slane %v1553_v35, 4  ;;  %v1530_v6 = vadd.f32 %v1529_v48, %v1528_v1  ;;  %v6728_v1 = vld [vmem:[%s11110_s0 + $0x70] sm:$0xff] }
 0xa4b   :  { %v1482_v5 = vpop.permute.xlu1 %1481 }
 0xa4c   :  { %v1477_v63 = vpop.permute.xlu0 %1476  ;;  %v1511_v4 = vmul.f32 %v6726_v14, %v1482_v5  ;;  %v1722_v14 = vsel %vm155_vm3, %v1705_v22, %v1721_v10 }
 0xa4d   :  { %v1510_v39 = vmul.f32 %v6725_v16, %v1477_v63  ;;  %v1555_v16 = vadd.f32 %v1554_v60, %v1553_v35  ;;  %v1713_v11 = vperm.slane %v1477_v63, %v7263_v20  ;;  %v1547_v35 = vrot.slane %v1546_v51, 2 }
 0xa4e   :  { %v1569_v62 = vsel %vm56_vm0, %v1511_v4, 0.0  ;;  %v1715_v63 = vperm.slane %v1482_v5, %v7258_v36  ;;  %v1723_v30 = vsel %vm157_vm4, %v1708_v34, %v1722_v14 }
 0xa4f   :  { %v1561_v43 = vsel %vm56_vm0, %v1510_v39, 0.0  ;;  %v1538_v39 = vrot.slane %v1537_v9, 2  ;;  %v1724_v5 = vsel %vm159_vm5, %v1711_v31, %v1723_v30  ;;  %v1548_v59 = vadd.f32 %v1547_v35, %v1546_v51 }
 0xa50   :  { %v1562_v15 = vadd.f32 %v1561_v43, %v1560_v24  ;;  %v1521_v24 = vadd.f32 %v1520_v49, %v1519_v55  ;;  %v1556_v43 = vrot.slane %v1555_v16, 2 }
 0xa51   :  { %v1539_v60 = vadd.f32 %v1538_v39, %v1537_v9 }
 0xa52   :  { %v1563_v25 = vrot.slane %v1562_v15, 4  ;;  %v1557_v3 = vadd.f32 %v1556_v43, %v1555_v16  ;;  %v1522_v16 = vrot.slane %v1521_v24, 1 }
 0xa53   :  { %v1492_v46 = vpop.permute.xlu1 %1491 }
 0xa54   :  { %v1487_v13 = vpop.permute.xlu0 %1486  ;;  %v1564_v42 = vadd.f32 %v1563_v25, %v1562_v15  ;;  %v1714_v15 = vsel %vm473_vm10, %v1713_v11, %v1712_v54  ;;  %v1513_v4 = vmul.f32 %v6728_v1, %v1492_v46  ;;  %v1718_v9 = vperm.slane %v1492_v46, %v7258_v36  ;;  %v6729_v54 = vld [vmem:[%s11110_s0 + $0x78] sm:$0xff] }
 0xa55   :  { %v1512_v27 = vmul.f32 %v6727_v8, %v1487_v13  ;;  %v1716_v55 = vperm.slane %v1487_v13, %v7263_v20  ;;  %v1725_v8 = vsel %vm161_vm6, %v1714_v15, %v1724_v5  ;;  %v1531_v11 = vrot.slane %v1530_v6, 1 }
 0xa56   :  { %v1565_v52 = vrot.slane %v1564_v42, 2  ;;  %v1578_v17 = vsel %vm56_vm0, %v1513_v4, 0.0  ;;  %v1558_v35 = vrot.slane %v1557_v3, 1 }
 0xa57   :  { %v1570_v40 = vsel %vm56_vm0, %v1512_v27, 0.0  ;;  %v1717_v38 = vsel %vm473_vm10, %v1716_v55, %v1715_v63  ;;  %v1549_v55 = vrot.slane %v1548_v59, 1  ;;  %v1532_v34 = vadd.f32 %v1531_v11, %v1530_v6  ;;  %v6733_v11 = vld [vmem:[%s11109_s1 + $0xb0] sm:$0xff] }
 0xa58   :  { %v1571_v47 = vadd.f32 %v1570_v40, %v1569_v62  ;;  %v1726_v21 = vsel %vm163_vm7, %v1717_v38, %v1725_v8  ;;  %v1566_v40 = vadd.f32 %v1565_v52, %v1564_v42  ;;  %v1523_v42 = vadd.f32 %v1522_v16, %v1521_v24 }
 0xa59   :  { %v1550_v14 = vadd.f32 %v1549_v55, %v1548_v59  ;;  %v1559_v1 = vadd.f32 %v1558_v35, %v1557_v3 }
 0xa5a   :  { %v1572_v49 = vrot.slane %v1571_v47, 4  ;;  %v1567_v43 = vrot.slane %v1566_v40, 1  ;;  %v1595_v52 = vsel %vm153_vm2, %v1532_v34, %v1523_v42 }
 0xa5c   :  { %v1573_v48 = vadd.f32 %v1572_v49, %v1571_v47  ;;  %v1497_v32 = vpop.permute.xlu0 %1496  ;;  %v1540_v47 = vrot.slane %v1539_v60, 1  ;;  %v1568_v4 = vadd.f32 %v1567_v43, %v1566_v40 }
 0xa5d   :  { %v1514_v25 = vmul.f32 %v6729_v54, %v1497_v32  ;;  %v1719_v13 = vperm.slane %v1497_v32, %v7263_v20 }
 0xa5e   :  { %v1574_v27 = vrot.slane %v1573_v48, 2  ;;  %v1541_v63 = vadd.f32 %v1540_v47, %v1539_v60 }
 0xa5f   :  { %v1579_v39 = vsel %vm56_vm0, %v1514_v25, 0.0  ;;  %v1720_v62 = vsel %vm473_vm10, %v1719_v13, %v1718_v9 }
 0xa60   :  { %v1580_v22 = vadd.f32 %v1579_v39, %v1578_v17  ;;  %v1727_v46 = vsel %vm165_vm8, %v1720_v62, %v1726_v21  ;;  %v1575_v51 = vadd.f32 %v1574_v27, %v1573_v48  ;;  %v1596_v48 = vsel %vm155_vm3, %v1541_v63, %v1595_v52  ;;  %v6732_v62 = vld [vmem:[%s11109_s1 + $0xb8] sm:$0xff] }
 0xa61   :  { %6039 = vst.msk [vmem:[%s11111_s3 + $0x8] sm:$0xff] %vm56_vm0, %v1727_v46  ;;  %v1597_v5 = vsel %vm157_vm4, %v1550_v14, %v1596_v48 }
 0xa62   :  { %v1581_v10 = vrot.slane %v1580_v22, 4  ;;  %v1576_v49 = vrot.slane %v1575_v51, 1  ;;  %v1598_v6 = vsel %vm159_vm5, %v1559_v1, %v1597_v5 }
 0xa63   :  { %v1599_v60 = vsel %vm161_vm6, %v1568_v4, %v1598_v6 }
 0xa64   :  { %v1582_v31 = vadd.f32 %v1581_v10, %v1580_v22  ;;  %v1577_v38 = vadd.f32 %v1576_v49, %v1575_v51  ;;  %v6734_v22 = vld [vmem:[%s11109_s1 + $0x50] ss:$0 sm:$0xff] }
 0xa66   :  { %v1583_v15 = vrot.slane %v1582_v31, 2  ;;  %v1600_v24 = vsel %vm163_vm7, %v1577_v38, %v1599_v60  ;;  %v6737_v60 = vld [vmem:[%s11109_s1 + $0x40] sm:$0xff] }
 0xa68   :  { %v1584_v30 = vadd.f32 %v1583_v15, %v1582_v31 }
 0xa6a   :  { %v1585_v32 = vrot.slane %v1584_v30, 1 }
 0xa6c   :  { %v1586_v9 = vadd.f32 %v1585_v32, %v1584_v30 }
 0xa6e   :  { %v1601_v54 = vsel %vm165_vm8, %v1586_v9, %v1600_v24  ;;  %v6736_v9 = vld [vmem:[%s11109_s1 + $0xa0] sm:$0xff]  ;;  %v6738_v24 = vld [vmem:[%s11109_s1 + $0x98] sm:$0xff] }
 0xa6f   :  { %1602 = vrot.lane.b32.xlu0 %v1601_v54, %s6935_s11  ;;  %v6739_v54 = vld [vmem:[%s11109_s1 + $0x38] sm:$0xff] }
 0xa77   :  { %1605 = vrot.lane.b32.xlu0 %v7729_v37, %s6938_s22  ;;  %v6730_v37 = vld [vmem:[%s11109_s1 + $0xc8] sm:$0xff] }
 0xa7e   :  { %v1021_v25 = vpop.xlane.xlu1 %1020 }
 0xa7f   :  { %vm1022_vm14 = vcmp.eq.f32.partialorder %v7752_v57, %v1021_v25  ;;  %v6731_v57 = vld [vmem:[%s11109_s1 + $0xc0] sm:$0xff]  ;;  %v6740_v25 = vld [vmem:[%s11109_s1 + $0x90] sm:$0xff] }
 0xa80   :  { %v1023_v13 = vsel %vm1022_vm14, %v7690_v53, 32.0 }
 0xa81   :  { %v1024_v59 = vsel %vm309_vm9, %v1023_v13, inf  ;;  %v6741_v13 = vld [vmem:[%s11109_s1 + $0x30] sm:$0xff] }
 0xa82   :  { %1025 = vmin.xlane.f32.xlu2 %v1024_v59  ;;  %v6742_v59 = vld [vmem:[%s11109_s1 + $0x88] sm:$0xff] }
 0xae1   :  { %v1603_v3 = vpop.permute.xlu0 %1602 }
 0xae9   :  { %v1606_v17 = vpop.permute.xlu0 %1605 }
 0xaf5   :  { %v1026_v8 = vpop.xlane.xlu2 %1025 }
 0xaf6   :  { %vm1027_vm15 = vcmp.eq.f32.partialorder %v7690_v53, %v1026_v8  ;;  %v6744_v8 = vld [vmem:[%s11109_s1 + $0x20] sm:$0xff] }
 0xaf7   :  { %v6033_v27 = vsel %vm1027_vm15, 1.0, %v6936_v0 }
 0xaf8   :  { %v1608_v21 = vsel %vm309_vm9, %v6033_v27, %v1603_v3  ;;  %v6743_v3 = vld [vmem:[%s11109_s1 + $0x28] sm:$0xff]  ;;  %v6745_v27 = vld [vmem:[%s11109_s1 + $0x18] sm:$0xff] }
 0xaf9   :  { %v1609_v39 = vsel %vm895_vm12, %v1608_v21, %v1606_v17  ;;  %v6746_v17 = vld [vmem:[%s11109_s1 + $0x10] sm:$0xff]  ;;  %v6747_v21 = vld [vmem:[%s11109_s1 + $0x8] sm:$0xff] }
 0xafa   :  { %6035 = vmatmul.msk.f32.vlgmr.msrb.gmra.mxu0 %vm898_vm13, %v1609_v39  ;;  %v6748_v39 = vld [vmem:[%s11109_s1] sm:$0xff] }
 0xafb   :  { %3111 = vmatpush.msrb.mxu0 %v6730_v37 }
 0xafd   :  { %3112 = vmatpush.msrb.mxu0 %v6731_v57 }
 0xaff   :  { %3113 = vmatpush.msrb.mxu0 %v6732_v62  ;;  %v6749_v62 = vld [vmem:[%s11109_s1 + $0xd0] ss:$0 sm:$0xff] }
 0xb01   :  { %3114 = vmatpush.msrb.mxu0 %v6733_v11 }
 0xb77   :  { %v1630_v40 = vpop.f32.mrf.mxu0 }
 0xb78   :  { %v1631_v46 = vadd.f32 %v6734_v22, %v1630_v40 }
 0xb7a   :  { %6241 = vtanh.f32 %v1631_v46  ;;  %v6036_v51 = vmul.f32 -1.442695, %v1631_v46 }
 0xb7c   :  { %6243 = vpow2.f32 %v6036_v51 }
 0xb80   :  { %v6242_v47 = vpop.eup %6241 }
 0xb81   :  { %1655 = vrot.lane.b32.xlu0 %v6242_v47, %s6937_s24 }
 0xb82   :  { %v6244_v16 = vpop.eup %6243 }
 0xb83   :  { %v1636_v55 = vadd.f32 1.0, %v6244_v16 }
 0xb85   :  { %6245 = vrcp.f32 %v1636_v55  ;;  %v1648_v63 = vand.u32 2147483648, %v1636_v55  ;;  %vm1642_vm11 = vweird.f32 %v1636_v55  ;;  %v1646_v49 = vand.u32 2147483647, %v1636_v55 }
 0xb87   :  { %v1649_v14 = vor.u32 1.1754944e-38, %v1648_v63  ;;  %vm1647_vm15 = vcmp.eq.f32.partialorder %v1646_v49, 8.507059e+37 }
 0xb8b   :  { %v6246_v10 = vpop.eup %6245 }
 0xb8c   :  { %v1638_v35 = vmul.f32 %v6246_v10, %v1636_v55  ;;  %vm1643_vm1 = vweird.f32 %v6246_v10 }
 0xb8d   :  { %vm1644_vm14 = vmor %vm1642_vm11, %vm1643_vm1 }
 0xb8e   :  { %v1639_v34 = vsub.f32 1.0, %v1638_v35 }
 0xb90   :  { %v1640_v43 = vmul.f32 %v6246_v10, %v1639_v34 }
 0xb92   :  { %v1641_v31 = vadd.f32 %v6246_v10, %v1640_v43 }
 0xb94   :  { %v1645_v42 = vsel %vm1644_vm14, %v6246_v10, %v1641_v31 }
 0xb95   :  { %v1650_v1 = vsel %vm1647_vm15, %v1649_v14, %v1645_v42 }
 0xb96   :  { %v1653_v30 = vmul.f32 %v1650_v1, %v7703_v56  ;;  %v6735_v56 = vld [vmem:[%s11109_s1 + $0x48] sm:$0xff] }
 0xbf3   :  { %v1656_v15 = vpop.permute.xlu0 %1655 }
 0xbf4   :  { %v1658_v4 = vmul.f32 %v1656_v15, %v1650_v1 }
 0xbf6   :  { %1660 = vrot.lane.b32.xlu0 %v1658_v4, %s6935_s11 }
 0xc68   :  { %v1661_v52 = vpop.permute.xlu0 %1660 }
 0xc69   :  { %v8181_v38 = vadd.f32 %v1661_v52, %v1653_v30  ;;  %v8265_v30 = vld [vmem:[%s11109_s1 + $0xa8] ss:$0 sm:$0xff] }
 0xc6b   :  { %6247 = vtanh.f32 %v8181_v38 }
 0xc71   :  { %v6248_v48 = vpop.eup %6247 }
 0xc72   :  { %1666 = vrot.lane.b32.xlu0 %v6248_v48, %s6937_s24 }
 0xce4   :  { %v1667_v32 = vpop.permute.xlu0 %1666 }
 0xce5   :  { %v8185_v5 = vmul.f32 %v1667_v32, %v1650_v1 }
 0xce7   :  { %1671 = vrot.lane.b32.xlu1 %v8185_v5, %s6935_s11 }
 0xd59   :  { %v1672_v6 = vpop.permute.xlu1 %1671 }
 0xd5a   :  { %6037 = vmatmul.msk.f32.vlgmr.msrb.gmra.mxu2 %vm309_vm9, %v1672_v6  ;;  %6041 = vmatmul.msk.f32.vlgmr.msra.gmra.mxu3 %vm309_vm9, %v1672_v6 }
 0xd5b   :  { %3043 = vmatpush.msra.mxu3 %v6735_v56  ;;  %3178 = vmatpush.msrb.mxu2 %v6736_v9 }
 0xd5d   :  { %3044 = vmatpush.msra.mxu3 %v6737_v60  ;;  %3179 = vmatpush.msrb.mxu2 %v6738_v24 }
 0xd5f   :  { %3045 = vmatpush.msra.mxu3 %v6739_v54  ;;  %3180 = vmatpush.msrb.mxu2 %v6740_v25 }
 0xd61   :  { %3046 = vmatpush.msra.mxu3 %v6741_v13  ;;  %3181 = vmatpush.msrb.mxu2 %v6742_v59 }
 0xd63   :  { %3047 = vmatpush.msra.mxu3 %v6743_v3 }
 0xd65   :  { %3048 = vmatpush.msra.mxu3 %v6744_v8 }
 0xd67   :  { %3049 = vmatpush.msra.mxu3 %v6745_v27 }
 0xd69   :  { %3050 = vmatpush.msra.mxu3 %v6746_v17 }
 0xd6b   :  { %3051 = vmatpush.msra.mxu3 %v6747_v21 }
 0xd6d   :  { %3052 = vmatpush.msra.mxu3 %v6748_v39 }
 0xddd   :  { %v1692_v37 = vpop.f32.mrf.mxu2  ;;  %v8233_v57 = vpop.f32.mrf.mxu3 }
 0xdde   :  { %v8238_v11 = vadd.f32 %v6749_v62, %v1692_v37  ;;  %v1770_v40 = vperm.slane %v8233_v57, 0  ;;  %v1764_v22 = vrot.slane %v8233_v57, 2  ;;  %v1766_v46 = vrot.slane %v8233_v57, 4 }
 0xddf   :  { %v1763_v47 = vrot.slane %v8233_v57, 1  ;;  %v1769_v51 = vrot.slane %v8233_v57, 7  ;;  %v1767_v49 = vrot.slane %v8233_v57, 5  ;;  %v1768_v56 = vrot.slane %v8233_v57, 6 }
 0xde0   :  { %6038 = vst.msk [vmem:[%s11112_s2 + $0x8] sm:$0xff] %vm309_vm9, %v8238_v11  ;;  %v1787_v16 = vadd.f32 %v1770_v40, %v7144_v18  ;;  %v1786_v55 = vadd.f32 %v1770_v40, %v7138_v12  ;;  %v1772_v10 = vperm.slane %v1764_v22, 0  ;;  %v8252_v35 = vperm.slane %v1766_v46, 0 }
 0xde1   :  { %v1771_v34 = vperm.slane %v1763_v47, 0  ;;  %v1777_v43 = vperm.slane %v1769_v51, 0  ;;  %v8260_v15 = vperm.slane %v1767_v49, 0  ;;  %v1776_v8 = vperm.slane %v1768_v56, 0 }
 0xde2   :  { %6249 = vtanh.f32 %v1787_v16  ;;  %v1790_v31 = vadd.f32 %v1772_v10, %v7150_v23  ;;  %v1794_v63 = vadd.f32 %v8252_v35, %v7176_v44  ;;  %v1791_v62 = vadd.f32 %v1772_v10, %v7154_v28 }
 0xde3   :  { %6251 = vtanh.f32 %v1786_v55  ;;  %v1788_v42 = vadd.f32 %v1771_v34, %v7147_v19  ;;  %v1800_v14 = vadd.f32 %v1777_v43, %v7215_v26  ;;  %v1796_v6 = vadd.f32 %v8260_v15, %v7198_v7 }
 0xde4   :  { %6253 = vtanh.f32 %v1790_v31  ;;  %v1789_v24 = vadd.f32 %v1771_v34, %v7161_v33  ;;  %v1798_v39 = vadd.f32 %v1776_v8, %v7210_v2  ;;  %v1765_v40 = vrot.slane %v8233_v57, 3 }
 0xde5   :  { %6255 = vtanh.f32 %v1794_v63  ;;  %v1801_v10 = vadd.f32 %v1777_v43, %v7228_v45 }
 0xde6   :  { %6257 = vtanh.f32 %v1788_v42  ;;  %v1773_v55 = vperm.slane %v1765_v40, 0 }
 0xde7   :  { %6259 = vtanh.f32 %v1800_v14 }
 0xde8   :  { %v6250_v1 = vpop.eup %6249  ;;  %6261 = vtanh.f32 %v1796_v6  ;;  %v1792_v31 = vadd.f32 %v1773_v55, %v7172_v41  ;;  %v1793_v43 = vadd.f32 %v1773_v55, %v7180_v50 }
 0xde9   :  { %v6252_v4 = vpop.eup %6251  ;;  %v1819_v52 = vmul.f32 %v8265_v30, %v6250_v1  ;;  %6263 = vtanh.f32 %v1789_v24 }
 0xdea   :  { %v6254_v48 = vpop.eup %6253  ;;  %v1818_v32 = vmul.f32 %v8265_v30, %v6252_v4  ;;  %6265 = vtanh.f32 %v1798_v39 }
 0xdeb   :  { %v1837_v9 = vsel %vm56_vm0, %v1819_v52, 0.0  ;;  %v1822_v60 = vmul.f32 %v8265_v30, %v6254_v48  ;;  %v6256_v54 = vpop.eup %6255  ;;  %6267 = vtanh.f32 %v1791_v62 }
 0xdec   :  { %1838 = vadd.xlane.f32.xlu0 %v1837_v9  ;;  %v1834_v25 = vsel %vm56_vm0, %v1818_v32, 0.0  ;;  %v6258_v13 = vpop.eup %6257  ;;  %v1826_v27 = vmul.f32 %v8265_v30, %v6256_v54  ;;  %6269 = vtanh.f32 %v1801_v10 }
 0xded   :  { %1835 = vadd.xlane.f32.xlu2 %v1834_v25  ;;  %v1846_v59 = vsel %vm56_vm0, %v1822_v60, 0.0  ;;  %v6260_v3 = vpop.eup %6259  ;;  %v1820_v17 = vmul.f32 %v8265_v30, %v6258_v13  ;;  %6271 = vtanh.f32 %v1792_v31  ;;  %v1795_v60 = vadd.f32 %v8252_v35, %v7190_v58 }
 0xdee   :  { %1847 = vadd.xlane.f32.xlu1 %v1846_v59  ;;  %v1832_v21 = vmul.f32 %v8265_v30, %v6260_v3  ;;  %v1858_v37 = vsel %vm56_vm0, %v1826_v27, 0.0  ;;  %v6262_v22 = vpop.eup %6261  ;;  %6273 = vtanh.f32 %v1793_v43  ;;  %v1797_v13 = vadd.f32 %v8260_v15, %v7195_v61 }
 0xdef   :  { %v1840_v46 = vsel %vm56_vm0, %v1820_v17, 0.0  ;;  %v6264_v47 = vpop.eup %6263  ;;  %v1828_v16 = vmul.f32 %v8265_v30, %v6262_v22  ;;  %6275 = vtanh.f32 %v1795_v60  ;;  %v1799_v35 = vadd.f32 %v1776_v8, %v7218_v29 }
 0xdf0   :  { %v1876_v51 = vsel %vm56_vm0, %v1832_v21, 0.0  ;;  %v1821_v34 = vmul.f32 %v8265_v30, %v6264_v47  ;;  %v6266_v63 = vpop.eup %6265  ;;  %6277 = vtanh.f32 %v1797_v13 }
 0xdf1   :  { %v1864_v57 = vsel %vm56_vm0, %v1828_v16, 0.0  ;;  %v6268_v42 = vpop.eup %6267  ;;  %v1830_v14 = vmul.f32 %v8265_v30, %v6266_v63  ;;  %6279 = vtanh.f32 %v1799_v35 }
 0xdf2   :  { %v1843_v49 = vsel %vm56_vm0, %v1821_v34, 0.0  ;;  %v1823_v1 = vmul.f32 %v8265_v30, %v6268_v42  ;;  %v6270_v52 = vpop.eup %6269 }
 0xdf3   :  { %v1870_v4 = vsel %vm56_vm0, %v1830_v14, 0.0  ;;  %v6272_v32 = vpop.eup %6271  ;;  %v1833_v6 = vmul.f32 %v8265_v30, %v6270_v52 }
 0xdf4   :  { %1859 = vadd.xlane.f32.xlu0 %v1858_v37  ;;  %v1849_v48 = vsel %vm56_vm0, %v1823_v1, 0.0  ;;  %v1824_v56 = vmul.f32 %v8265_v30, %v6272_v32  ;;  %v6274_v54 = vpop.eup %6273 }
 0xdf5   :  { %1841 = vadd.xlane.f32.xlu2 %v1840_v46  ;;  %v1879_v9 = vsel %vm56_vm0, %v1833_v6, 0.0  ;;  %v1825_v25 = vmul.f32 %v8265_v30, %v6274_v54  ;;  %v6276_v3 = vpop.eup %6275 }
 0xdf6   :  { %1877 = vadd.xlane.f32.xlu1 %v1876_v51  ;;  %v1852_v24 = vsel %vm56_vm0, %v1824_v56, 0.0  ;;  %v1827_v27 = vmul.f32 %v8265_v30, %v6276_v3  ;;  %v6278_v21 = vpop.eup %6277 }
 0xdf7   :  { %v1855_v59 = vsel %vm56_vm0, %v1825_v25, 0.0  ;;  %v1829_v39 = vmul.f32 %v8265_v30, %v6278_v21  ;;  %v6280_v62 = vpop.eup %6279 }
 0xdf8   :  { %v1861_v17 = vsel %vm56_vm0, %v1827_v27, 0.0  ;;  %v1831_v15 = vmul.f32 %v8265_v30, %v6280_v62 }
 0xdf9   :  { %v1867_v37 = vsel %vm56_vm0, %v1829_v39, 0.0 }
 0xdfa   :  { %v1873_v40 = vsel %vm56_vm0, %v1831_v15, 0.0 }
 0xdfc   :  { %1865 = vadd.xlane.f32.xlu0 %v1864_v57 }
 0xdfd   :  { %1844 = vadd.xlane.f32.xlu2 %v1843_v49 }
 0xe04   :  { %1871 = vadd.xlane.f32.xlu0 %v1870_v4 }
 0xe05   :  { %1850 = vadd.xlane.f32.xlu2 %v1849_v48 }
 0xe0c   :  { %1880 = vadd.xlane.f32.xlu0 %v1879_v9 }
 0xe0d   :  { %1853 = vadd.xlane.f32.xlu2 %v1852_v24 }
 0xe15   :  { %1856 = vadd.xlane.f32.xlu2 %v1855_v59 }
 0xe1d   :  { %1862 = vadd.xlane.f32.xlu2 %v1861_v17 }
 0xe25   :  { %1868 = vadd.xlane.f32.xlu2 %v1867_v37 }
 0xe2d   :  { %1874 = vadd.xlane.f32.xlu2 %v1873_v40 }
 0xe5f   :  { %v1839_v8 = vpop.xlane.xlu0 %1838 }
 0xe60   :  { %v1836_v22 = vpop.xlane.xlu2 %1835  ;;  %v1899_v14 = vperm.slane %v1839_v8, %v7263_v20 }
 0xe61   :  { %v1848_v30 = vpop.xlane.xlu1 %1847  ;;  %v1898_v1 = vperm.slane %v1836_v22, %v7258_v36 }
 0xe62   :  { %v1904_v52 = vperm.slane %v1848_v30, %v7258_v36 }
 0xe63   :  { %v1900_v54 = vsel %vm473_vm10, %v1899_v14, %v1898_v1 }
 0xe67   :  { %v8314_v16 = vpop.xlane.xlu0 %1859 }
 0xe68   :  { %v1842_v46 = vpop.xlane.xlu2 %1841  ;;  %v1910_v9 = vperm.slane %v8314_v16, %v7258_v36 }
 0xe69   :  { %v1901_v4 = vperm.slane %v1842_v46, %v7258_v36  ;;  %v8352_v59 = vpop.xlane.xlu1 %1877 }
 0xe6a   :  { %v1919_v40 = vperm.slane %v8352_v59, %v7258_v36 }
 0xe6f   :  { %v8320_v10 = vpop.xlane.xlu0 %1865 }
 0xe70   :  { %v1845_v47 = vpop.xlane.xlu2 %1844  ;;  %v1913_v25 = vperm.slane %v8320_v10, %v7258_v36 }
 0xe71   :  { %v1902_v63 = vperm.slane %v1845_v47, %v7263_v20 }
 0xe73   :  { %v1903_v32 = vsel %vm473_vm10, %v1902_v63, %v1901_v4 }
 0xe74   :  { %v1922_v3 = vsel %vm153_vm2, %v1903_v32, %v1900_v54 }
 0xe77   :  { %v8324_v31 = vpop.xlane.xlu0 %1871 }
 0xe78   :  { %v1851_v51 = vpop.xlane.xlu2 %1850  ;;  %v1916_v37 = vperm.slane %v8324_v31, %v7258_v36 }
 0xe79   :  { %v1905_v42 = vperm.slane %v1851_v51, %v7263_v20 }
 0xe7b   :  { %v1906_v60 = vsel %vm473_vm10, %v1905_v42, %v1904_v52 }
 0xe7c   :  { %v1923_v35 = vsel %vm155_vm3, %v1906_v60, %v1922_v3 }
 0xe7f   :  { %v8346_v24 = vpop.xlane.xlu0 %1880 }
 0xe80   :  { %v8316_v55 = vpop.xlane.xlu2 %1853  ;;  %v1920_v17 = vperm.slane %v8346_v24, %v7263_v20 }
 0xe81   :  { %v1907_v6 = vperm.slane %v8316_v55, %v7258_v36 }
 0xe82   :  { %v1921_v1 = vsel %vm473_vm10, %v1920_v17, %v1919_v40 }
 0xe88   :  { %v8318_v34 = vpop.xlane.xlu2 %1856 }
 0xe89   :  { %v1908_v43 = vperm.slane %v8318_v34, %v7263_v20 }
 0xe8b   :  { %v1909_v13 = vsel %vm473_vm10, %v1908_v43, %v1907_v6 }
 0xe8c   :  { %v1924_v62 = vsel %vm157_vm4, %v1909_v13, %v1923_v35 }
 0xe90   :  { %v8322_v57 = vpop.xlane.xlu2 %1862 }
 0xe91   :  { %v1911_v48 = vperm.slane %v8322_v57, %v7263_v20 }
 0xe93   :  { %v1912_v27 = vsel %vm473_vm10, %v1911_v48, %v1910_v9 }
 0xe94   :  { %v1925_v63 = vsel %vm159_vm5, %v1912_v27, %v1924_v62 }
 0xe98   :  { %v8327_v49 = vpop.xlane.xlu2 %1868 }
 0xe99   :  { %v1914_v56 = vperm.slane %v8327_v49, %v7263_v20 }
 0xe9b   :  { %v1915_v21 = vsel %vm473_vm10, %v1914_v56, %v1913_v25 }
 0xe9c   :  { %v1926_v14 = vsel %vm161_vm6, %v1915_v21, %v1925_v63 }
 0xea0   :  { %v8360_v39 = vpop.xlane.xlu2 %1874 }
 0xea1   :  { %v1917_v15 = vperm.slane %v8360_v39, %v7263_v20 }
 0xea3   :  { %v1918_v42 = vsel %vm473_vm10, %v1917_v15, %v1916_v37 }
 0xea4   :  { %v1927_v4 = vsel %vm163_vm7, %v1918_v42, %v1926_v14 }
 0xea5   :  { %v1928_v43 = vsel %vm165_vm8, %v1921_v1, %v1927_v4 }
 0xea6   :  { %v1930_v52 = vsel %vm56_vm0, %v1928_v43, -inf }
 0xea7   :  { %1931 = vmax.xlane.f32.xlu2 %v1930_v52 }
 0xf1a   :  { %v8376_v48 = vpop.xlane.xlu2 %1931 }
 0xf1b   :  { %v1934_v32 = vperm.slane %v8376_v48, 0  ;;  %v1935_v6 = vperm.slane %v8376_v48, 1  ;;  %v1936_v54 = vperm.slane %v8376_v48, 2  ;;  %v1937_v21 = vperm.slane %v8376_v48, 3 }
 0xf1c   :  { %v1938_v15 = vperm.slane %v8376_v48, 4  ;;  %v1939_v14 = vperm.slane %v8376_v48, 5 }
 0xf1d   :  { %v1951_v56 = vsub.f32 %v1839_v8, %v1934_v32  ;;  %v1952_v9 = vsub.f32 %v1842_v46, %v1935_v6  ;;  %v1950_v60 = vsub.f32 %v1836_v22, %v1934_v32  ;;  %v1953_v3 = vsub.f32 %v1845_v47, %v1935_v6 }
 0xf1e   :  { %v1955_v35 = vsub.f32 %v1851_v51, %v1936_v54  ;;  %v1954_v17 = vsub.f32 %v1848_v30, %v1936_v54  ;;  %v1956_v47 = vsub.f32 %v8316_v55, %v1937_v21  ;;  %v1958_v30 = vsub.f32 %v8314_v16, %v1938_v15 }
 0xf1f   :  { %v1968_v25 = vmul.f32 1.442695, %v1951_v56  ;;  %v1970_v13 = vmul.f32 1.442695, %v1952_v9  ;;  %v1966_v27 = vmul.f32 1.442695, %v1950_v60  ;;  %v1957_v40 = vsub.f32 %v8318_v34, %v1937_v21 }
 0xf20   :  { %v1972_v37 = vmul.f32 1.442695, %v1953_v3  ;;  %v1976_v62 = vmul.f32 1.442695, %v1955_v35  ;;  %v1974_v46 = vmul.f32 1.442695, %v1954_v17  ;;  %v1959_v16 = vsub.f32 %v8322_v57, %v1938_v15 }
 0xf21   :  { %6281 = vpow2.f32 %v1968_v25  ;;  %v1978_v63 = vmul.f32 1.442695, %v1956_v47  ;;  %v1982_v42 = vmul.f32 1.442695, %v1958_v30  ;;  %v1980_v4 = vmul.f32 1.442695, %v1957_v40 }
 0xf22   :  { %6283 = vpow2.f32 %v1970_v13  ;;  %v1961_v34 = vsub.f32 %v8327_v49, %v1939_v14  ;;  %v1960_v52 = vsub.f32 %v8320_v10, %v1939_v14  ;;  %v1940_v32 = vperm.slane %v8376_v48, 6 }
 0xf23   :  { %6285 = vpow2.f32 %v1966_v27  ;;  %v1984_v6 = vmul.f32 1.442695, %v1959_v16  ;;  %v1941_v56 = vperm.slane %v8376_v48, 7 }
 0xf24   :  { %6287 = vpow2.f32 %v1972_v37  ;;  %v1988_v9 = vmul.f32 1.442695, %v1961_v34  ;;  %v1986_v54 = vmul.f32 1.442695, %v1960_v52  ;;  %v1962_v49 = vsub.f32 %v8324_v31, %v1940_v32 }
 0xf25   :  { %6289 = vpow2.f32 %v1976_v62  ;;  %v1964_v10 = vsub.f32 %v8352_v59, %v1941_v56  ;;  %v1963_v48 = vsub.f32 %v8360_v39, %v1940_v32  ;;  %v1965_v17 = vsub.f32 %v8346_v24, %v1941_v56 }
 0xf26   :  { %6291 = vpow2.f32 %v1974_v46  ;;  %v1990_v13 = vmul.f32 1.442695, %v1962_v49 }
 0xf27   :  { %v8383_v8 = vpop.eup %6281  ;;  %6293 = vpow2.f32 %v1978_v63  ;;  %v1994_v3 = vmul.f32 1.442695, %v1964_v10  ;;  %v1992_v31 = vmul.f32 1.442695, %v1963_v48  ;;  %v1996_v39 = vmul.f32 1.442695, %v1965_v17 }
 0xf28   :  { %v8385_v22 = vpop.eup %6283  ;;  %2018 = vperm.xlu0 %6092, %v8383_v8   ;;  %6295 = vpow2.f32 %v1982_v42 }
 0xf29   :  { %2021 = vperm.xlu2 %6091, %v8385_v22   ;;  %v8390_v51 = vpop.eup %6285  ;;  %6297 = vpow2.f32 %v1980_v4 }
 0xf2a   :  { %2015 = vperm.xlu1 %6093, %v8390_v51   ;;  %v8396_v1 = vpop.eup %6287  ;;  %6299 = vpow2.f32 %v1984_v6 }
 0xf2b   :  { %v8398_v55 = vpop.eup %6289  ;;  %6301 = vpow2.f32 %v1988_v9 }
 0xf2c   :  { %v8403_v43 = vpop.eup %6291  ;;  %6303 = vpow2.f32 %v1986_v54 }
 0xf2d   :  { %v8410_v60 = vpop.eup %6293  ;;  %6305 = vpow2.f32 %v1990_v13 }
 0xf2e   :  { %v8412_v57 = vpop.eup %6295  ;;  %6307 = vpow2.f32 %v1994_v3 }
 0xf2f   :  { %v8417_v25 = vpop.eup %6297  ;;  %6309 = vpow2.f32 %v1992_v31 }
 0xf30   :  { %2024 = vperm.xlu0 %6092, %v8396_v1   ;;  %v8422_v27 = vpop.eup %6299  ;;  %6311 = vpow2.f32 %v1996_v39 }
 0xf31   :  { %2030 = vperm.xlu2 %6091, %v8398_v55   ;;  %v8424_v35 = vpop.eup %6301 }
 0xf32   :  { %2027 = vperm.xlu1 %6093, %v8403_v43   ;;  %v8429_v59 = vpop.eup %6303 }
 0xf33   :  { %v8432_v21 = vpop.eup %6305 }
 0xf34   :  { %v8434_v37 = vpop.eup %6307 }
 0xf35   :  { %v8438_v24 = vpop.eup %6309 }
 0xf36   :  { %v8441_v62 = vpop.eup %6311 }
 0xf38   :  { %2033 = vperm.xlu0 %6092, %v8410_v60  }
 0xf39   :  { %2039 = vperm.xlu2 %6091, %v8412_v57  }
 0xf3a   :  { %2036 = vperm.xlu1 %6093, %v8417_v25  }
 0xf40   :  { %2042 = vperm.xlu0 %6092, %v8422_v27  }
 0xf41   :  { %2048 = vperm.xlu2 %6091, %v8424_v35  }
 0xf42   :  { %2045 = vperm.xlu1 %6093, %v8429_v59  }
 0xf48   :  { %2051 = vperm.xlu0 %6092, %v8432_v21  }
 0xf49   :  { %2057 = vperm.xlu2 %6091, %v8434_v37  }
 0xf4a   :  { %2054 = vperm.xlu1 %6093, %v8438_v24  }
 0xf50   :  { %2060 = vperm.xlu0 %6092, %v8441_v62  }
 0xf83   :  { %v2022_v15 = vpop.permute.xlu2 %2021 }
 0xf84   :  { %v2065_v6 = vperm.slane %v2022_v15, %v7258_v36 }
 0xf8b   :  { %v2031_v30 = vpop.permute.xlu2 %2030 }
 0xf8c   :  { %v2069_v13 = vperm.slane %v2031_v30, %v7263_v20 }
 0xf93   :  { %v2040_v14 = vpop.permute.xlu2 %2039 }
 0xf94   :  { %v2074_v39 = vperm.slane %v2040_v14, %v7258_v36 }
 0xf9a   :  { %v2019_v46 = vpop.permute.xlu0 %2018 }
 0xf9b   :  { %v2049_v32 = vpop.permute.xlu2 %2048  ;;  %v2063_v56 = vperm.slane %v2019_v46, %v7263_v20 }
 0xf9c   :  { %v2016_v47 = vpop.permute.xlu1 %2015 }
 0xf9d   :  { %v2062_v9 = vperm.slane %v2016_v47, %v7258_v36 }
 0xf9f   :  { %v2064_v17 = vsel %vm473_vm10, %v2063_v56, %v2062_v9 }
 0xfa2   :  { %v2025_v40 = vpop.permute.xlu0 %2024 }
 0xfa3   :  { %v2066_v34 = vperm.slane %v2025_v40, %v7263_v20  ;;  %v2058_v14 = vpop.permute.xlu2 %2057 }
 0xfa4   :  { %v2028_v63 = vpop.permute.xlu1 %2027 }
 0xfa5   :  { %v2068_v54 = vperm.slane %v2028_v63, %v7258_v36  ;;  %v2067_v49 = vsel %vm473_vm10, %v2066_v34, %v2065_v6 }
 0xfa6   :  { %v2086_v15 = vsel %vm153_vm2, %v2067_v49, %v2064_v17  ;;  %v2083_v49 = vperm.slane %v2058_v14, %v7258_v36 }
 0xfa7   :  { %v2070_v46 = vsel %vm473_vm10, %v2069_v13, %v2068_v54 }
 0xfa8   :  { %v2087_v34 = vsel %vm155_vm3, %v2070_v46, %v2086_v15 }
 0xfaa   :  { %v2034_v42 = vpop.permute.xlu0 %2033 }
 0xfab   :  { %v2071_v10 = vperm.slane %v2034_v42, %v7258_v36 }
 0xfac   :  { %v2037_v4 = vpop.permute.xlu1 %2036 }
 0xfad   :  { %v2072_v48 = vperm.slane %v2037_v4, %v7263_v20 }
 0xfaf   :  { %v2073_v47 = vsel %vm473_vm10, %v2072_v48, %v2071_v10 }
 0xfb0   :  { %v2088_v6 = vsel %vm157_vm4, %v2073_v47, %v2087_v34 }
 0xfb2   :  { %v2043_v16 = vpop.permute.xlu0 %2042 }
 0xfb3   :  { %v2075_v3 = vperm.slane %v2043_v16, %v7263_v20  ;;  %v2078_v16 = vperm.slane %v2049_v32, %v7263_v20 }
 0xfb4   :  { %v2046_v52 = vpop.permute.xlu1 %2045 }
 0xfb5   :  { %v2077_v40 = vperm.slane %v2046_v52, %v7258_v36  ;;  %v2076_v42 = vsel %vm473_vm10, %v2075_v3, %v2074_v39 }
 0xfb6   :  { %v2089_v9 = vsel %vm159_vm5, %v2076_v42, %v2088_v6 }
 0xfb7   :  { %v2079_v56 = vsel %vm473_vm10, %v2078_v16, %v2077_v40 }
 0xfb8   :  { %v2090_v48 = vsel %vm161_vm6, %v2079_v56, %v2089_v9 }
 0xfba   :  { %v2052_v31 = vpop.permute.xlu0 %2051 }
 0xfbb   :  { %v2080_v30 = vperm.slane %v2052_v31, %v7258_v36 }
 0xfbc   :  { %v2055_v63 = vpop.permute.xlu1 %2054 }
 0xfbd   :  { %v2081_v4 = vperm.slane %v2055_v63, %v7263_v20 }
 0xfbf   :  { %v2082_v52 = vsel %vm473_vm10, %v2081_v4, %v2080_v30 }
 0xfc0   :  { %v2091_v13 = vsel %vm163_vm7, %v2082_v52, %v2090_v48 }
 0xfc2   :  { %v2061_v54 = vpop.permute.xlu0 %2060 }
 0xfc3   :  { %v2084_v10 = vperm.slane %v2061_v54, %v7263_v20 }
 0xfc5   :  { %v2085_v32 = vsel %vm473_vm10, %v2084_v10, %v2083_v49  ;;  %v6751_v10 = vld [vmem:[%s11110_s0 + $0x18] sm:$0xff] }
 0xfc6   :  { %v2092_v3 = vsel %vm165_vm8, %v2085_v32, %v2091_v13  ;;  %v6752_v32 = vld [vmem:[%s11110_s0 + $0x8] sm:$0xff] }
 0xfc7   :  { %v2094_v31 = vsel %vm56_vm0, %v2092_v3, 0.0  ;;  %v6753_v3 = vld [vmem:[%s11110_s0 + $0x10] sm:$0xff] }
 0xfc8   :  { %2095 = vadd.xlane.f32.xlu1 %v2094_v31 }
0x103b   :  { %v2096_v17 = vpop.xlane.xlu1 %2095 }
0x103c   :  { %6313 = vrcp.f32 %v2096_v17  ;;  %v6754_v17 = vld [vmem:[%s11110_s0] sm:$0xff] }
0x1042   :  { %v6314_v39 = vpop.eup %6313 }
0x1043   :  { %v2104_v15 = vperm.slane %v6314_v39, 5  ;;  %v2099_v46 = vperm.slane %v6314_v39, 0  ;;  %v2100_v42 = vperm.slane %v6314_v39, 1  ;;  %v2101_v16 = vperm.slane %v6314_v39, 2 }
0x1044   :  { %v2103_v6 = vperm.slane %v6314_v39, 4  ;;  %v2105_v56 = vperm.slane %v6314_v39, 6  ;;  %v2106_v9 = vperm.slane %v6314_v39, 7 }
0x1045   :  { %v2125_v47 = vmul.f32 %v8429_v59, %v2104_v15  ;;  %v2116_v40 = vmul.f32 %v8383_v8, %v2099_v46  ;;  %v2115_v63 = vmul.f32 %v8390_v51, %v2099_v46  ;;  %v2118_v30 = vmul.f32 %v8396_v1, %v2100_v42 }
0x1046   :  { %v2117_v4 = vmul.f32 %v8385_v22, %v2100_v42  ;;  %v2120_v34 = vmul.f32 %v8398_v55, %v2101_v16  ;;  %v2119_v14 = vmul.f32 %v8403_v43, %v2101_v16  ;;  %v2102_v8 = vperm.slane %v6314_v39, 3  ;;  %v6756_v42 = vld [vmem:[%s11110_s0 + $0x20] sm:$0xff]  ;;  %v6757_v16 = vld [vmem:[%s11110_s0 + $0x38] sm:$0xff] }
0x1047   :  { %2183 = vperm.xlu1 %6093, %v2125_v47   ;;  %2138 = vperm.xlu0 %6092, %v2116_v40   ;;  %v2124_v1 = vmul.f32 %v8422_v27, %v2103_v6  ;;  %v2123_v22 = vmul.f32 %v8412_v57, %v2103_v6  ;;  %v2127_v55 = vmul.f32 %v8432_v21, %v2105_v56  ;;  %v1731_v57 = vsel %vm309_vm9, %v8238_v11, -inf }
0x1048   :  { %2133 = vperm.xlu2 %6091, %v2115_v63   ;;  %v2122_v51 = vmul.f32 %v8417_v25, %v2102_v8  ;;  %v2121_v59 = vmul.f32 %v8410_v60, %v2102_v8  ;;  %v2126_v43 = vmul.f32 %v8424_v35, %v2104_v15  ;;  %v2129_v25 = vmul.f32 %v8434_v37, %v2106_v9  ;;  %v6755_v15 = vld [vmem:[%s11110_s0 + $0x28] sm:$0xff] }
0x1049   :  { %v2128_v60 = vmul.f32 %v8438_v24, %v2105_v56  ;;  %v2130_v27 = vmul.f32 %v8441_v62, %v2106_v9 }
0x104f   :  { %2148 = vperm.xlu0 %6092, %v2118_v30  }
0x1050   :  { %2143 = vperm.xlu2 %6091, %v2117_v4  }
0x1057   :  { %2158 = vperm.xlu0 %6092, %v2120_v34  }
0x1058   :  { %2153 = vperm.xlu2 %6091, %v2119_v14  }
0x105f   :  { %2168 = vperm.xlu0 %6092, %v2122_v51   ;;  %v6758_v51 = vld [vmem:[%s11110_s0 + $0x30] sm:$0xff] }
0x1060   :  { %2163 = vperm.xlu2 %6091, %v2121_v59  }
0x1067   :  { %2178 = vperm.xlu0 %6092, %v2124_v1  }
0x1068   :  { %2173 = vperm.xlu2 %6091, %v2123_v22  }
0x106f   :  { %2193 = vperm.xlu0 %6092, %v2127_v55  }
0x1070   :  { %2188 = vperm.xlu2 %6091, %v2126_v43  }
0x1077   :  { %2203 = vperm.xlu0 %6092, %v2129_v25   ;;  %v6759_v25 = vld [vmem:[%s11110_s0 + $0x58] sm:$0xff] }
0x1078   :  { %2198 = vperm.xlu2 %6091, %v2128_v60  }
0x1080   :  { %2208 = vperm.xlu2 %6091, %v2130_v27  }
0x10a1   :  { %1732 = vmax.xlane.f32.xlu0 %v1731_v57 }
0x10a2   :  { %v8494_v54 = vpop.permute.xlu2 %2133 }
0x10a3   :  { %v2211_v39 = vmul.f32 %v6754_v17, %v8494_v54 }
0x10a5   :  { %v2227_v8 = vsel %vm56_vm0, %v2211_v39, 0.0  ;;  %v6762_v39 = vld [vmem:[%s11110_s0 + $0x48] sm:$0xff] }
0x10aa   :  { %v8496_v21 = vpop.permute.xlu2 %2143 }
0x10ab   :  { %v2213_v31 = vmul.f32 %v6753_v3, %v8496_v21 }
0x10ad   :  { %v2236_v14 = vsel %vm56_vm0, %v2213_v31, 0.0 }
0x10b2   :  { %v8498_v35 = vpop.permute.xlu2 %2153 }
0x10b3   :  { %v2215_v30 = vmul.f32 %v6756_v42, %v8498_v35 }
0x10b5   :  { %v2245_v56 = vsel %vm56_vm0, %v2215_v30, 0.0 }
0x10b9   :  { %v8500_v52 = vpop.permute.xlu0 %2138  ;;  %v8552_v55 = vpop.permute.xlu1 %2183 }
0x10ba   :  { %v8502_v37 = vpop.permute.xlu2 %2163  ;;  %v2212_v13 = vmul.f32 %v6752_v32, %v8500_v52  ;;  %v6761_v32 = vld [vmem:[%s11110_s0 + $0x50] sm:$0xff] }
0x10bb   :  { %v2217_v59 = vmul.f32 %v6758_v51, %v8502_v37 }
0x10bc   :  { %v2228_v4 = vsel %vm56_vm0, %v2212_v13, 0.0  ;;  %v2221_v13 = vmul.f32 %v6761_v32, %v8552_v55 }
0x10bd   :  { %v2229_v22 = vadd.f32 %v2228_v4, %v2227_v8  ;;  %v2254_v27 = vsel %vm56_vm0, %v2217_v59, 0.0 }
0x10be   :  { %v2272_v8 = vsel %vm56_vm0, %v2221_v13, 0.0 }
0x10bf   :  { %v2230_v3 = vrot.slane %v2229_v22, 4 }
0x10c1   :  { %v8504_v24 = vpop.permute.xlu0 %2148  ;;  %v2231_v51 = vadd.f32 %v2230_v3, %v2229_v22 }
0x10c2   :  { %v8506_v49 = vpop.permute.xlu2 %2173  ;;  %v2214_v48 = vmul.f32 %v6751_v10, %v8504_v24  ;;  %v6760_v10 = vld [vmem:[%s11110_s0 + $0x40] sm:$0xff] }
0x10c3   :  { %v2421_v32 = vperm.slane %v8506_v49, %v7258_v36 }
0x10c4   :  { %v2237_v47 = vsel %vm56_vm0, %v2214_v48, 0.0  ;;  %v2219_v48 = vmul.f32 %v6760_v10, %v8506_v49  ;;  %v2232_v10 = vrot.slane %v2231_v51, 2 }
0x10c5   :  { %v2238_v6 = vadd.f32 %v2237_v47, %v2236_v14 }
0x10c7   :  { %v2239_v57 = vrot.slane %v2238_v6, 4 }
0x10c9   :  { %v8508_v62 = vpop.permute.xlu0 %2158  ;;  %v2240_v4 = vadd.f32 %v2239_v57, %v2238_v6  ;;  %v2415_v6 = vperm.slane %v8498_v35, %v7258_v36 }
0x10ca   :  { %v2216_v46 = vmul.f32 %v6755_v15, %v8508_v62  ;;  %v8531_v40 = vpop.permute.xlu2 %2188 }
0x10cb   :  { %v2222_v60 = vmul.f32 %v6759_v25, %v8531_v40 }
0x10cc   :  { %v2246_v1 = vsel %vm56_vm0, %v2216_v46, 0.0  ;;  %v2410_v46 = vperm.slane %v8500_v52, %v7263_v20  ;;  %v2409_v52 = vperm.slane %v8494_v54, %v7258_v36 }
0x10cd   :  { %v2247_v9 = vadd.f32 %v2246_v1, %v2245_v56  ;;  %v2273_v42 = vsel %vm56_vm0, %v2222_v60, 0.0  ;;  %v2412_v56 = vperm.slane %v8496_v21, %v7258_v36  ;;  %v2416_v60 = vperm.slane %v8508_v62, %v7263_v20  ;;  %v6763_v21 = vld [vmem:[%s11110_s0 + $0x68] sm:$0xff] }
0x10cf   :  { %v2248_v47 = vrot.slane %v2247_v9, 4 }
0x10d1   :  { %v8533_v63 = vpop.permute.xlu0 %2168  ;;  %v2249_v25 = vadd.f32 %v2248_v47, %v2247_v9 }
0x10d2   :  { %v2218_v34 = vmul.f32 %v6757_v16, %v8533_v63  ;;  %v8574_v30 = vpop.permute.xlu2 %2198  ;;  %v2413_v16 = vperm.slane %v8504_v24, %v7263_v20  ;;  %v2418_v24 = vperm.slane %v8502_v37, %v7258_v36  ;;  %v2419_v54 = vperm.slane %v8533_v63, %v7263_v20  ;;  %v6764_v63 = vld [vmem:[%s11110_s0 + $0x60] sm:$0xff] }
0x10d3   :  { %v2224_v35 = vmul.f32 %v6763_v21, %v8574_v30  ;;  %v2411_v37 = vsel %vm473_vm10, %v2410_v46, %v2409_v52  ;;  %v2250_v47 = vrot.slane %v2249_v25, 2  ;;  %v2424_v52 = vperm.slane %v8552_v55, %v7258_v36  ;;  %v6765_v55 = vld [vmem:[%s11110_s0 + $0x78] sm:$0xff] }
0x10d4   :  { %v2255_v43 = vsel %vm56_vm0, %v2218_v34, 0.0  ;;  %v2263_v34 = vsel %vm56_vm0, %v2219_v48, 0.0  ;;  %v2414_v57 = vsel %vm473_vm10, %v2413_v16, %v2412_v56  ;;  %v2420_v46 = vsel %vm473_vm10, %v2419_v54, %v2418_v24 }
0x10d5   :  { %v2256_v31 = vadd.f32 %v2255_v43, %v2254_v27  ;;  %v2274_v43 = vadd.f32 %v2273_v42, %v2272_v8  ;;  %v2241_v27 = vrot.slane %v2240_v4, 2  ;;  %v2417_v42 = vsel %vm473_vm10, %v2416_v60, %v2415_v6 }
0x10d6   :  { %v2282_v49 = vsel %vm56_vm0, %v2224_v35, 0.0  ;;  %v2251_v6 = vadd.f32 %v2250_v47, %v2249_v25  ;;  %v2428_v60 = vperm.slane %v8574_v30, %v7263_v20 }
0x10d7   :  { %v2257_v59 = vrot.slane %v2256_v31, 4  ;;  %v2275_v13 = vrot.slane %v2274_v43, 4 }
0x10d9   :  { %v2179_v17 = vpop.permute.xlu0 %2178  ;;  %v2258_v9 = vadd.f32 %v2257_v59, %v2256_v31  ;;  %v2425_v31 = vperm.slane %v8531_v40, %v7263_v20  ;;  %v2276_v40 = vadd.f32 %v2275_v13, %v2274_v43  ;;  %v2252_v13 = vrot.slane %v2251_v6, 1 }
0x10da   :  { %v2220_v15 = vmul.f32 %v6762_v39, %v2179_v17  ;;  %v2422_v48 = vperm.slane %v2179_v17, %v7263_v20  ;;  %v2242_v17 = vadd.f32 %v2241_v27, %v2240_v4  ;;  %v2209_v8 = vpop.permute.xlu2 %2208  ;;  %v2233_v27 = vadd.f32 %v2232_v10, %v2231_v51  ;;  %v6766_v51 = vld [vmem:[%s11110_s0 + $0x70] sm:$0xff] }
0x10db   :  { %v2226_v21 = vmul.f32 %v6765_v55, %v2209_v8  ;;  %v2431_v30 = vperm.slane %v2209_v8, %v7263_v20 }
0x10dc   :  { %v2264_v14 = vsel %vm56_vm0, %v2220_v15, 0.0  ;;  %v2433_v15 = vsel %vm153_vm2, %v2414_v57, %v2411_v37  ;;  %v2426_v57 = vsel %vm473_vm10, %v2425_v31, %v2424_v52  ;;  %v2243_v35 = vrot.slane %v2242_v17, 1 }
0x10dd   :  { %v2265_v1 = vadd.f32 %v2264_v14, %v2263_v34  ;;  %v2259_v34 = vrot.slane %v2258_v9, 2  ;;  %v2423_v14 = vsel %vm473_vm10, %v2422_v48, %v2421_v32  ;;  %v2434_v56 = vsel %vm155_vm3, %v2417_v42, %v2433_v15 }
0x10de   :  { %v2435_v24 = vsel %vm157_vm4, %v2420_v46, %v2434_v56  ;;  %v2234_v31 = vrot.slane %v2233_v27, 1  ;;  %v2244_v8 = vadd.f32 %v2243_v35, %v2242_v17  ;;  %v2253_v52 = vadd.f32 %v2252_v13, %v2251_v6 }
0x10df   :  { %v2266_v22 = vrot.slane %v2265_v1, 4  ;;  %v2436_v54 = vsel %vm159_vm5, %v2423_v14, %v2435_v24  ;;  %v2260_v43 = vadd.f32 %v2259_v34, %v2258_v9  ;;  %v2291_v9 = vsel %vm56_vm0, %v2226_v21, 0.0 }
0x10e0   :  { %v2437_v15 = vsel %vm161_vm6, %v2426_v57, %v2436_v54  ;;  %v2235_v56 = vadd.f32 %v2234_v31, %v2233_v27  ;;  %v6771_v31 = vld [vmem:[%s11109_s1 + $0x50] ss:$0 sm:$0xff] }
0x10e1   :  { %v2194_v62 = vpop.permute.xlu0 %2193  ;;  %v2267_v3 = vadd.f32 %v2266_v22, %v2265_v1  ;;  %v2261_v46 = vrot.slane %v2260_v43, 1 }
0x10e2   :  { %v2223_v39 = vmul.f32 %v6764_v63, %v2194_v62  ;;  %v2427_v1 = vperm.slane %v2194_v62, %v7258_v36  ;;  %v2277_v63 = vrot.slane %v2276_v40, 2  ;;  %v2307_v55 = vsel %vm153_vm2, %v2244_v8, %v2235_v56 }
0x10e3   :  { %v2268_v4 = vrot.slane %v2267_v3, 2  ;;  %v2308_v21 = vsel %vm155_vm3, %v2253_v52, %v2307_v55 }
0x10e4   :  { %v2281_v16 = vsel %vm56_vm0, %v2223_v39, 0.0  ;;  %v2429_v25 = vsel %vm473_vm10, %v2428_v60, %v2427_v1 }
0x10e5   :  { %v2283_v59 = vadd.f32 %v2282_v49, %v2281_v16  ;;  %v2269_v62 = vadd.f32 %v2268_v4, %v2267_v3  ;;  %v2438_v47 = vsel %vm163_vm7, %v2429_v25, %v2437_v15  ;;  %v2262_v4 = vadd.f32 %v2261_v46, %v2260_v43 }
0x10e7   :  { %v2284_v22 = vrot.slane %v2283_v59, 4  ;;  %v2270_v34 = vrot.slane %v2269_v62, 1  ;;  %v2309_v25 = vsel %vm157_vm4, %v2262_v4, %v2308_v21 }
0x10e9   :  { %v2285_v37 = vadd.f32 %v2284_v22, %v2283_v59  ;;  %v2204_v48 = vpop.permute.xlu0 %2203  ;;  %v2278_v59 = vadd.f32 %v2277_v63, %v2276_v40  ;;  %v2271_v60 = vadd.f32 %v2270_v34, %v2269_v62 }
0x10ea   :  { %v2225_v10 = vmul.f32 %v6766_v51, %v2204_v48  ;;  %v2430_v32 = vperm.slane %v2204_v48, %v7258_v36 }
0x10eb   :  { %v2286_v39 = vrot.slane %v2285_v37, 2  ;;  %v2279_v57 = vrot.slane %v2278_v59, 1  ;;  %v2310_v17 = vsel %vm159_vm5, %v2271_v60, %v2309_v25 }
0x10ec   :  { %v2290_v3 = vsel %vm56_vm0, %v2225_v10, 0.0  ;;  %v2432_v42 = vsel %vm473_vm10, %v2431_v30, %v2430_v32 }
0x10ed   :  { %v2292_v49 = vadd.f32 %v2291_v9, %v2290_v3  ;;  %v2439_v16 = vsel %vm165_vm8, %v2432_v42, %v2438_v47  ;;  %v2287_v14 = vadd.f32 %v2286_v39, %v2285_v37  ;;  %v2280_v40 = vadd.f32 %v2279_v57, %v2278_v59  ;;  %v6769_v47 = vld [vmem:[%s11109_s1 + $0xb8] sm:$0xff]  ;;  %v6770_v3 = vld [vmem:[%s11109_s1 + $0xb0] sm:$0xff] }
0x10ee   :  { %6046 = vst.msk [vmem:[%s11111_s3 + $0x10] sm:$0xff] %vm56_vm0, %v2439_v16 }
0x10ef   :  { %v2293_v1 = vrot.slane %v2292_v49, 4  ;;  %v2288_v22 = vrot.slane %v2287_v14, 1  ;;  %v2311_v27 = vsel %vm161_vm6, %v2280_v40, %v2310_v17 }
0x10f1   :  { %v2294_v24 = vadd.f32 %v2293_v1, %v2292_v49  ;;  %v2289_v48 = vadd.f32 %v2288_v22, %v2287_v14 }
0x10f3   :  { %v2295_v54 = vrot.slane %v2294_v24, 2  ;;  %v2312_v43 = vsel %vm163_vm7, %v2289_v48, %v2311_v27  ;;  %v6774_v27 = vld [vmem:[%s11109_s1 + $0x40] sm:$0xff] }
0x10f5   :  { %v2296_v37 = vadd.f32 %v2295_v54, %v2294_v24 }
0x10f7   :  { %v2297_v35 = vrot.slane %v2296_v37, 1 }
0x10f9   :  { %v2298_v6 = vadd.f32 %v2297_v35, %v2296_v37 }
0x10fb   :  { %v2313_v62 = vsel %vm165_vm8, %v2298_v6, %v2312_v43  ;;  %v6773_v6 = vld [vmem:[%s11109_s1 + $0xa0] sm:$0xff]  ;;  %v6775_v43 = vld [vmem:[%s11109_s1 + $0x98] sm:$0xff] }
0x10fc   :  { %2314 = vrot.lane.b32.xlu2 %v2313_v62, %s6935_s11  ;;  %v6776_v62 = vld [vmem:[%s11109_s1 + $0x38] sm:$0xff] }
0x1104   :  { %2317 = vrot.lane.b32.xlu2 %v8185_v5, %s6938_s22  ;;  %v6767_v5 = vld [vmem:[%s11109_s1 + $0xc8] sm:$0xff] }
0x1114   :  { %v1733_v30 = vpop.xlane.xlu0 %1732 }
0x1115   :  { %vm1734_vm1 = vcmp.eq.f32.partialorder %v8238_v11, %v1733_v30  ;;  %v6768_v11 = vld [vmem:[%s11109_s1 + $0xc0] sm:$0xff]  ;;  %v6777_v30 = vld [vmem:[%s11109_s1 + $0x90] sm:$0xff] }
0x1116   :  { %v1735_v51 = vsel %vm1734_vm1, %v7690_v53, 32.0 }
0x1117   :  { %v1736_v10 = vsel %vm309_vm9, %v1735_v51, inf  ;;  %v6778_v51 = vld [vmem:[%s11109_s1 + $0x30] sm:$0xff] }
0x1118   :  { %1737 = vmin.xlane.f32.xlu1 %v1736_v10  ;;  %v6779_v10 = vld [vmem:[%s11109_s1 + $0x88] sm:$0xff] }
0x1156   :  { %v2315_v32 = vpop.permute.xlu2 %2314 }
0x115e   :  { %v2318_v39 = vpop.permute.xlu2 %2317 }
0x118b   :  { %v1738_v13 = vpop.xlane.xlu1 %1737 }
0x118c   :  { %vm1739_vm11 = vcmp.eq.f32.partialorder %v7690_v53, %v1738_v13  ;;  %v6781_v13 = vld [vmem:[%s11109_s1 + $0x20] sm:$0xff] }
0x118d   :  { %v6040_v63 = vsel %vm1739_vm11, 1.0, %v6936_v0 }
0x118e   :  { %v2320_v15 = vsel %vm309_vm9, %v6040_v63, %v2315_v32  ;;  %v6780_v32 = vld [vmem:[%s11109_s1 + $0x28] sm:$0xff]  ;;  %v6782_v63 = vld [vmem:[%s11109_s1 + $0x18] sm:$0xff] }
0x118f   :  { %v2321_v9 = vsel %vm895_vm12, %v2320_v15, %v2318_v39  ;;  %v6783_v39 = vld [vmem:[%s11109_s1 + $0x10] sm:$0xff]  ;;  %v6784_v15 = vld [vmem:[%s11109_s1 + $0x8] sm:$0xff] }
0x1190   :  { %6042 = vmatmul.msk.f32.vlgmr.msra.gmra.mxu2 %vm898_vm13, %v2321_v9  ;;  %v6785_v9 = vld [vmem:[%s11109_s1] sm:$0xff] }
0x1191   :  { %3823 = vmatpush.msra.mxu2 %v6767_v5 }
0x1193   :  { %3824 = vmatpush.msra.mxu2 %v6768_v11 }
0x1195   :  { %3825 = vmatpush.msra.mxu2 %v6769_v47 }
0x1197   :  { %3826 = vmatpush.msra.mxu2 %v6770_v3 }
0x1213   :  { %v2342_v42 = vpop.f32.mrf.mxu2 }
0x1214   :  { %v2343_v46 = vadd.f32 %v6771_v31, %v2342_v42 }
0x1216   :  { %6315 = vtanh.f32 %v2343_v46  ;;  %v6043_v16 = vmul.f32 -1.442695, %v2343_v46 }
0x1218   :  { %6317 = vpow2.f32 %v6043_v16 }
0x121c   :  { %v6316_v49 = vpop.eup %6315 }
0x121d   :  { %2367 = vrot.lane.b32.xlu2 %v6316_v49, %s6937_s24 }
0x121e   :  { %v6318_v34 = vpop.eup %6317 }
0x121f   :  { %v2348_v14 = vadd.f32 1.0, %v6318_v34 }
0x1221   :  { %6319 = vrcp.f32 %v2348_v14  ;;  %v2360_v4 = vand.u32 2147483648, %v2348_v14  ;;  %vm2354_vm15 = vweird.f32 %v2348_v14  ;;  %v2358_v24 = vand.u32 2147483647, %v2348_v14 }
0x1223   :  { %v2361_v22 = vor.u32 1.1754944e-38, %v2360_v4  ;;  %vm2359_vm11 = vcmp.eq.f32.partialorder %v2358_v24, 8.507059e+37  ;;  %v6786_v4 = vld [vmem:[%s11109_s1 + $0xd0] ss:$0 sm:$0xff] }
0x1227   :  { %v6320_v8 = vpop.eup %6319 }
0x1228   :  { %v2350_v59 = vmul.f32 %v6320_v8, %v2348_v14  ;;  %vm2355_vm14 = vweird.f32 %v6320_v8 }
0x1229   :  { %vm2356_vm1 = vmor %vm2354_vm15, %vm2355_vm14 }
0x122a   :  { %v2351_v1 = vsub.f32 1.0, %v2350_v59 }
0x122c   :  { %v2352_v52 = vmul.f32 %v6320_v8, %v2351_v1 }
0x122e   :  { %v2353_v56 = vadd.f32 %v6320_v8, %v2352_v52 }
0x1230   :  { %v2357_v60 = vsel %vm2356_vm1, %v6320_v8, %v2353_v56 }
0x1231   :  { %v2362_v54 = vsel %vm2359_vm11, %v2361_v22, %v2357_v60 }
0x1232   :  { %v2365_v21 = vmul.f32 %v2362_v54, %v8181_v38  ;;  %v6772_v38 = vld [vmem:[%s11109_s1 + $0x48] sm:$0xff] }
0x1277   :  { %v2368_v57 = vpop.permute.xlu2 %2367 }
0x1278   :  { %v2370_v55 = vmul.f32 %v2368_v57, %v2362_v54 }
0x127a   :  { %2372 = vrot.lane.b32.xlu2 %v2370_v55, %s6935_s11 }
0x12d4   :  { %v2373_v37 = vpop.permute.xlu2 %2372 }
0x12d5   :  { %v8677_v25 = vadd.f32 %v2373_v37, %v2365_v21 }
0x12d7   :  { %6321 = vtanh.f32 %v8677_v25 }
0x12dd   :  { %v6322_v48 = vpop.eup %6321 }
0x12de   :  { %2378 = vrot.lane.b32.xlu2 %v6322_v48, %s6937_s24  ;;  %v8764_v48 = vld [vmem:[%s11109_s1 + $0xa8] ss:$0 sm:$0xff] }
0x1338   :  { %v2379_v17 = vpop.permute.xlu2 %2378 }
0x1339   :  { %v8681_v40 = vmul.f32 %v2379_v17, %v2362_v54 }
0x133b   :  { %2383 = vrot.lane.b32.xlu0 %v8681_v40, %s6935_s11 }
0x13ad   :  { %v2384_v35 = vpop.permute.xlu0 %2383 }
0x13ae   :  { %6044 = vmatmul.msk.f32.vlgmr.msrb.gmra.mxu3 %vm309_vm9, %v2384_v35  ;;  %6048 = vmatmul.msk.f32.vlgmr.msra.gmra.mxu0 %vm309_vm9, %v2384_v35 }
0x13af   :  { %3755 = vmatpush.msra.mxu0 %v6772_v38  ;;  %3890 = vmatpush.msrb.mxu3 %v6773_v6 }
0x13b1   :  { %3756 = vmatpush.msra.mxu0 %v6774_v27  ;;  %3891 = vmatpush.msrb.mxu3 %v6775_v43 }
0x13b3   :  { %3757 = vmatpush.msra.mxu0 %v6776_v62  ;;  %3892 = vmatpush.msrb.mxu3 %v6777_v30 }
0x13b5   :  { %3758 = vmatpush.msra.mxu0 %v6778_v51  ;;  %3893 = vmatpush.msrb.mxu3 %v6779_v10 }
0x13b7   :  { %3759 = vmatpush.msra.mxu0 %v6780_v32 }
0x13b9   :  { %3760 = vmatpush.msra.mxu0 %v6781_v13 }
0x13bb   :  { %3761 = vmatpush.msra.mxu0 %v6782_v63 }
0x13bd   :  { %3762 = vmatpush.msra.mxu0 %v6783_v39 }
0x13bf   :  { %3763 = vmatpush.msra.mxu0 %v6784_v15 }
0x13c1   :  { %3764 = vmatpush.msra.mxu0 %v6785_v9 }
0x142b   :  { %v8729_v5 = vpop.f32.mrf.mxu0 }
0x142c   :  { %v2482_v11 = vperm.slane %v8729_v5, 0  ;;  %v2475_v47 = vrot.slane %v8729_v5, 1  ;;  %v2478_v3 = vrot.slane %v8729_v5, 4  ;;  %v2480_v42 = vrot.slane %v8729_v5, 6 }
0x142d   :  { %v2479_v59 = vrot.slane %v8729_v5, 5  ;;  %v2476_v56 = vrot.slane %v8729_v5, 2  ;;  %v2481_v22 = vrot.slane %v8729_v5, 7 }
0x142e   :  { %v2499_v31 = vadd.f32 %v2482_v11, %v7144_v18  ;;  %v2498_v46 = vadd.f32 %v2482_v11, %v7138_v12  ;;  %v2483_v49 = vperm.slane %v2475_v47, 0  ;;  %v8737_v16 = vperm.slane %v2478_v3, 0 }
0x142f   :  { %v2488_v34 = vperm.slane %v2480_v42, 0  ;;  %v8757_v57 = vperm.slane %v2479_v59, 0  ;;  %v2484_v54 = vperm.slane %v2476_v56, 0  ;;  %v8759_v21 = vperm.slane %v2481_v22, 0 }
0x1430   :  { %6323 = vtanh.f32 %v2499_v31  ;;  %v2501_v14 = vadd.f32 %v2483_v49, %v7161_v33  ;;  %v2506_v8 = vadd.f32 %v8737_v16, %v7176_v44  ;;  %v2500_v52 = vadd.f32 %v2483_v49, %v7147_v19 }
0x1431   :  { %v2404_v1 = vpop.f32.mrf.mxu3  ;;  %6325 = vtanh.f32 %v2498_v46  ;;  %v2510_v60 = vadd.f32 %v2488_v34, %v7210_v2  ;;  %v2508_v6 = vadd.f32 %v8757_v57, %v7198_v7  ;;  %v2502_v62 = vadd.f32 %v2484_v54, %v7150_v23 }
0x1432   :  { %v8748_v24 = vadd.f32 %v6786_v4, %v2404_v1  ;;  %6327 = vtanh.f32 %v2501_v14  ;;  %v2513_v10 = vadd.f32 %v8759_v21, %v7228_v45  ;;  %v2511_v11 = vadd.f32 %v2488_v34, %v7218_v29 }
0x1433   :  { %6329 = vtanh.f32 %v2506_v8  ;;  %v2503_v3 = vadd.f32 %v2484_v54, %v7154_v28  ;;  %v2477_v42 = vrot.slane %v8729_v5, 3 }
0x1434   :  { %6045 = vst.msk [vmem:[%s11112_s2 + $0x10] sm:$0xff] %vm309_vm9, %v8748_v24  ;;  %6331 = vtanh.f32 %v2500_v52 }
0x1435   :  { %6333 = vtanh.f32 %v2510_v60  ;;  %v2485_v34 = vperm.slane %v2477_v42, 0 }
0x1436   :  { %v6324_v55 = vpop.eup %6323  ;;  %6335 = vtanh.f32 %v2508_v6 }
0x1437   :  { %v6326_v37 = vpop.eup %6325  ;;  %v2531_v17 = vmul.f32 %v8764_v48, %v6324_v55  ;;  %6337 = vtanh.f32 %v2502_v62  ;;  %v2504_v56 = vadd.f32 %v2485_v34, %v7172_v41 }
0x1438   :  { %v6328_v35 = vpop.eup %6327  ;;  %v2530_v38 = vmul.f32 %v8764_v48, %v6326_v37  ;;  %6339 = vtanh.f32 %v2513_v10  ;;  %v2509_v10 = vadd.f32 %v8757_v57, %v7195_v61 }
0x1439   :  { %v2549_v27 = vsel %vm56_vm0, %v2531_v17, 0.0  ;;  %v2533_v43 = vmul.f32 %v8764_v48, %v6328_v35  ;;  %v6330_v30 = vpop.eup %6329  ;;  %6341 = vtanh.f32 %v2511_v11  ;;  %v2505_v35 = vadd.f32 %v2485_v34, %v7180_v50 }
0x143a   :  { %2550 = vadd.xlane.f32.xlu2 %v2549_v27  ;;  %v2546_v51 = vsel %vm56_vm0, %v2530_v38, 0.0  ;;  %v6332_v32 = vpop.eup %6331  ;;  %v2538_v39 = vmul.f32 %v8764_v48, %v6330_v30  ;;  %6343 = vtanh.f32 %v2503_v3 }
0x143b   :  { %2547 = vadd.xlane.f32.xlu1 %v2546_v51  ;;  %v2555_v13 = vsel %vm56_vm0, %v2533_v43, 0.0  ;;  %v6334_v63 = vpop.eup %6333  ;;  %v2532_v15 = vmul.f32 %v8764_v48, %v6332_v32  ;;  %6345 = vtanh.f32 %v2504_v56  ;;  %v2507_v43 = vadd.f32 %v8737_v16, %v7190_v58 }
0x143c   :  { %2556 = vadd.xlane.f32.xlu0 %v2555_v13  ;;  %v2542_v9 = vmul.f32 %v8764_v48, %v6334_v63  ;;  %v2570_v47 = vsel %vm56_vm0, %v2538_v39, 0.0  ;;  %v6336_v31 = vpop.eup %6335  ;;  %6347 = vtanh.f32 %v2505_v35  ;;  %v2512_v16 = vadd.f32 %v8759_v21, %v7215_v26 }
0x143d   :  { %v2552_v46 = vsel %vm56_vm0, %v2532_v15, 0.0  ;;  %v6338_v49 = vpop.eup %6337  ;;  %v2540_v59 = vmul.f32 %v8764_v48, %v6336_v31  ;;  %6349 = vtanh.f32 %v2507_v43 }
0x143e   :  { %v2582_v14 = vsel %vm56_vm0, %v2542_v9, 0.0  ;;  %v6340_v8 = vpop.eup %6339  ;;  %v2534_v1 = vmul.f32 %v8764_v48, %v6338_v49  ;;  %6351 = vtanh.f32 %v2509_v10 }
0x143f   :  { %v2545_v52 = vmul.f32 %v8764_v48, %v6340_v8  ;;  %v2576_v5 = vsel %vm56_vm0, %v2540_v59, 0.0  ;;  %v6342_v4 = vpop.eup %6341  ;;  %6353 = vtanh.f32 %v2512_v16 }
0x1440   :  { %v2558_v60 = vsel %vm56_vm0, %v2534_v1, 0.0  ;;  %v6344_v22 = vpop.eup %6343  ;;  %v2543_v55 = vmul.f32 %v8764_v48, %v6342_v4 }
0x1441   :  { %v2591_v54 = vsel %vm56_vm0, %v2545_v52, 0.0  ;;  %v2535_v37 = vmul.f32 %v8764_v48, %v6344_v22  ;;  %v6346_v6 = vpop.eup %6345 }
0x1442   :  { %2571 = vadd.xlane.f32.xlu2 %v2570_v47  ;;  %v2585_v17 = vsel %vm56_vm0, %v2543_v55, 0.0  ;;  %v2536_v27 = vmul.f32 %v8764_v48, %v6346_v6  ;;  %v6348_v30 = vpop.eup %6347 }
0x1443   :  { %2553 = vadd.xlane.f32.xlu1 %v2552_v46  ;;  %v2561_v38 = vsel %vm56_vm0, %v2535_v37, 0.0  ;;  %v2537_v51 = vmul.f32 %v8764_v48, %v6348_v30  ;;  %v6350_v13 = vpop.eup %6349 }
0x1444   :  { %2583 = vadd.xlane.f32.xlu0 %v2582_v14  ;;  %v2564_v62 = vsel %vm56_vm0, %v2536_v27, 0.0  ;;  %v2539_v63 = vmul.f32 %v8764_v48, %v6350_v13  ;;  %v6352_v15 = vpop.eup %6351 }
0x1445   :  { %v2567_v32 = vsel %vm56_vm0, %v2537_v51, 0.0  ;;  %v2541_v9 = vmul.f32 %v8764_v48, %v6352_v15  ;;  %v6354_v57 = vpop.eup %6353 }
0x1446   :  { %v2573_v39 = vsel %vm56_vm0, %v2539_v63, 0.0  ;;  %v2544_v47 = vmul.f32 %v8764_v48, %v6354_v57 }
0x1447   :  { %v2579_v11 = vsel %vm56_vm0, %v2541_v9, 0.0 }
0x1448   :  { %v2588_v3 = vsel %vm56_vm0, %v2544_v47, 0.0 }
0x144a   :  { %2577 = vadd.xlane.f32.xlu2 %v2576_v5 }
0x144b   :  { %2559 = vadd.xlane.f32.xlu1 %v2558_v60 }
0x144c   :  { %2592 = vadd.xlane.f32.xlu0 %v2591_v54 }
0x1452   :  { %2586 = vadd.xlane.f32.xlu2 %v2585_v17 }
0x1453   :  { %2562 = vadd.xlane.f32.xlu1 %v2561_v38 }
0x145b   :  { %2565 = vadd.xlane.f32.xlu1 %v2564_v62 }
0x1463   :  { %2568 = vadd.xlane.f32.xlu1 %v2567_v32 }
0x146b   :  { %2574 = vadd.xlane.f32.xlu1 %v2573_v39 }
0x1473   :  { %2580 = vadd.xlane.f32.xlu1 %v2579_v11 }
0x147b   :  { %2589 = vadd.xlane.f32.xlu1 %v2588_v3 }
0x14ad   :  { %v2551_v49 = vpop.xlane.xlu2 %2550 }
0x14ae   :  { %v2548_v42 = vpop.xlane.xlu1 %2547  ;;  %v2611_v4 = vperm.slane %v2551_v49, %v7263_v20 }
0x14af   :  { %v2557_v34 = vpop.xlane.xlu0 %2556  ;;  %v2610_v60 = vperm.slane %v2548_v42, %v7258_v36 }
0x14b0   :  { %v2614_v22 = vperm.slane %v2557_v34, %v7263_v20 }
0x14b1   :  { %v2612_v62 = vsel %vm473_vm10, %v2611_v4, %v2610_v60 }
0x14b5   :  { %v8816_v8 = vpop.xlane.xlu2 %2571 }
0x14b6   :  { %v2554_v31 = vpop.xlane.xlu1 %2553  ;;  %v2622_v27 = vperm.slane %v8816_v8, %v7258_v36 }
0x14b7   :  { %v8824_v48 = vpop.xlane.xlu0 %2583  ;;  %v2613_v5 = vperm.slane %v2554_v31, %v7258_v36 }
0x14b8   :  { %v2628_v57 = vperm.slane %v8824_v48, %v7258_v36 }
0x14b9   :  { %v2615_v35 = vsel %vm473_vm10, %v2614_v22, %v2613_v5 }
0x14ba   :  { %v2634_v32 = vsel %vm153_vm2, %v2615_v35, %v2612_v62 }
0x14bd   :  { %v8822_v52 = vpop.xlane.xlu2 %2577 }
0x14be   :  { %v2560_v46 = vpop.xlane.xlu1 %2559  ;;  %v2625_v30 = vperm.slane %v8822_v52, %v7258_v36 }
0x14bf   :  { %v2616_v55 = vperm.slane %v2560_v46, %v7258_v36  ;;  %v8856_v39 = vpop.xlane.xlu0 %2592 }
0x14c0   :  { %v2632_v5 = vperm.slane %v8856_v39, %v7263_v20 }
0x14c5   :  { %v8849_v51 = vpop.xlane.xlu2 %2586 }
0x14c6   :  { %v2563_v21 = vpop.xlane.xlu1 %2562  ;;  %v2629_v15 = vperm.slane %v8849_v51, %v7263_v20 }
0x14c7   :  { %v2617_v56 = vperm.slane %v2563_v21, %v7263_v20 }
0x14c8   :  { %v2630_v4 = vsel %vm473_vm10, %v2629_v15, %v2628_v57 }
0x14c9   :  { %v2618_v43 = vsel %vm473_vm10, %v2617_v56, %v2616_v55 }
0x14ca   :  { %v2635_v63 = vsel %vm155_vm3, %v2618_v43, %v2634_v32 }
0x14ce   :  { %v8814_v14 = vpop.xlane.xlu1 %2565 }
0x14cf   :  { %v2619_v38 = vperm.slane %v8814_v14, %v7258_v36 }
0x14d6   :  { %v8818_v59 = vpop.xlane.xlu1 %2568 }
0x14d7   :  { %v2620_v54 = vperm.slane %v8818_v59, %v7263_v20 }
0x14d9   :  { %v2621_v10 = vsel %vm473_vm10, %v2620_v54, %v2619_v38 }
0x14da   :  { %v2636_v9 = vsel %vm157_vm4, %v2621_v10, %v2635_v63 }
0x14de   :  { %v8820_v1 = vpop.xlane.xlu1 %2574 }
0x14df   :  { %v2623_v37 = vperm.slane %v8820_v1, %v7263_v20 }
0x14e1   :  { %v2624_v13 = vsel %vm473_vm10, %v2623_v37, %v2622_v27 }
0x14e2   :  { %v2637_v11 = vsel %vm159_vm5, %v2624_v13, %v2636_v9 }
0x14e6   :  { %v8836_v17 = vpop.xlane.xlu1 %2580 }
0x14e7   :  { %v2626_v6 = vperm.slane %v8836_v17, %v7263_v20 }
0x14e9   :  { %v2627_v16 = vsel %vm473_vm10, %v2626_v6, %v2625_v30 }
0x14ea   :  { %v2638_v3 = vsel %vm161_vm6, %v2627_v16, %v2637_v11 }
0x14eb   :  { %v2639_v22 = vsel %vm163_vm7, %v2630_v4, %v2638_v3 }
0x14ee   :  { %v8864_v47 = vpop.xlane.xlu1 %2589 }
0x14ef   :  { %v2631_v56 = vperm.slane %v8864_v47, %v7258_v36 }
0x14f1   :  { %v2633_v60 = vsel %vm473_vm10, %v2632_v5, %v2631_v56 }
0x14f2   :  { %v2640_v54 = vsel %vm165_vm8, %v2633_v60, %v2639_v22 }
0x14f3   :  { %v2642_v55 = vsel %vm56_vm0, %v2640_v54, -inf }
0x14f4   :  { %2643 = vmax.xlane.f32.xlu2 %v2642_v55 }
0x1567   :  { %v8876_v37 = vpop.xlane.xlu2 %2643 }
0x1568   :  { %v2646_v35 = vperm.slane %v8876_v37, 0  ;;  %v2647_v38 = vperm.slane %v8876_v37, 1  ;;  %v2648_v62 = vperm.slane %v8876_v37, 2  ;;  %v2650_v15 = vperm.slane %v8876_v37, 4 }
0x1569   :  { %v2649_v11 = vperm.slane %v8876_v37, 3  ;;  %v2651_v5 = vperm.slane %v8876_v37, 5 }
0x156a   :  { %v2662_v6 = vsub.f32 %v2548_v42, %v2646_v35  ;;  %v2663_v27 = vsub.f32 %v2551_v49, %v2646_v35  ;;  %v2664_v43 = vsub.f32 %v2554_v31, %v2647_v38  ;;  %v2667_v13 = vsub.f32 %v2563_v21, %v2648_v62 }
0x156b   :  { %v2665_v63 = vsub.f32 %v2557_v34, %v2647_v38  ;;  %v2666_v16 = vsub.f32 %v2560_v46, %v2648_v62  ;;  %v2670_v21 = vsub.f32 %v8816_v8, %v2650_v15  ;;  %v2668_v46 = vsub.f32 %v8814_v14, %v2649_v11 }
0x156c   :  { %v2678_v30 = vmul.f32 1.442695, %v2662_v6  ;;  %v2680_v10 = vmul.f32 1.442695, %v2663_v27  ;;  %v2682_v32 = vmul.f32 1.442695, %v2664_v43  ;;  %v2669_v34 = vsub.f32 %v8818_v59, %v2649_v11 }
0x156d   :  { %v2688_v9 = vmul.f32 1.442695, %v2667_v13  ;;  %v2684_v57 = vmul.f32 1.442695, %v2665_v63  ;;  %v2686_v31 = vmul.f32 1.442695, %v2666_v16  ;;  %v2673_v14 = vsub.f32 %v8836_v17, %v2651_v5 }
0x156e   :  { %6355 = vpow2.f32 %v2682_v32  ;;  %v2694_v56 = vmul.f32 1.442695, %v2670_v21  ;;  %v2690_v4 = vmul.f32 1.442695, %v2668_v46  ;;  %v2692_v22 = vmul.f32 1.442695, %v2669_v34 }
0x156f   :  { %6357 = vpow2.f32 %v2680_v10  ;;  %v2671_v59 = vsub.f32 %v8820_v1, %v2650_v15  ;;  %v2672_v55 = vsub.f32 %v8822_v52, %v2651_v5  ;;  %v2653_v35 = vperm.slane %v8876_v37, 7 }
0x1570   :  { %6359 = vpow2.f32 %v2678_v30  ;;  %v2700_v38 = vmul.f32 1.442695, %v2673_v14  ;;  %v2652_v6 = vperm.slane %v8876_v37, 6 }
0x1571   :  { %6361 = vpow2.f32 %v2688_v9  ;;  %v2696_v27 = vmul.f32 1.442695, %v2671_v59  ;;  %v2698_v17 = vmul.f32 1.442695, %v2672_v55  ;;  %v2676_v30 = vsub.f32 %v8864_v47, %v2653_v35 }
0x1572   :  { %6363 = vpow2.f32 %v2684_v57  ;;  %v2674_v52 = vsub.f32 %v8824_v48, %v2652_v6  ;;  %v2675_v37 = vsub.f32 %v8849_v51, %v2652_v6  ;;  %v2677_v48 = vsub.f32 %v8856_v39, %v2653_v35 }
0x1573   :  { %6365 = vpow2.f32 %v2686_v31  ;;  %v2706_v10 = vmul.f32 1.442695, %v2676_v30 }
0x1574   :  { %v8883_v42 = vpop.eup %6355  ;;  %6367 = vpow2.f32 %v2694_v56  ;;  %v2702_v32 = vmul.f32 1.442695, %v2674_v52  ;;  %v2704_v63 = vmul.f32 1.442695, %v2675_v37  ;;  %v2708_v51 = vmul.f32 1.442695, %v2677_v48 }
0x1575   :  { %v8885_v49 = vpop.eup %6357  ;;  %2733 = vperm.xlu2 %6091, %v8883_v42   ;;  %6369 = vpow2.f32 %v2690_v4 }
0x1576   :  { %v8888_v3 = vpop.eup %6359  ;;  %2730 = vperm.xlu0 %6092, %v8885_v49   ;;  %6371 = vpow2.f32 %v2692_v22 }
0x1577   :  { %2727 = vperm.xlu1 %6093, %v8888_v3   ;;  %v8896_v60 = vpop.eup %6361  ;;  %6373 = vpow2.f32 %v2700_v38 }
0x1578   :  { %v8898_v54 = vpop.eup %6363  ;;  %6375 = vpow2.f32 %v2696_v27 }
0x1579   :  { %v8901_v8 = vpop.eup %6365  ;;  %6377 = vpow2.f32 %v2698_v17 }
0x157a   :  { %v8910_v43 = vpop.eup %6367  ;;  %6379 = vpow2.f32 %v2706_v10 }
0x157b   :  { %v8912_v62 = vpop.eup %6369  ;;  %6381 = vpow2.f32 %v2702_v32 }
0x157c   :  { %v8915_v1 = vpop.eup %6371  ;;  %6383 = vpow2.f32 %v2704_v63 }
0x157d   :  { %2742 = vperm.xlu2 %6091, %v8896_v60   ;;  %v8922_v13 = vpop.eup %6373  ;;  %6385 = vpow2.f32 %v2708_v51 }
0x157e   :  { %2736 = vperm.xlu0 %6092, %v8898_v54   ;;  %v8924_v16 = vpop.eup %6375 }
0x157f   :  { %2739 = vperm.xlu1 %6093, %v8901_v8   ;;  %v8927_v47 = vpop.eup %6377 }
0x1580   :  { %v8932_v15 = vpop.eup %6379 }
0x1581   :  { %v8934_v9 = vpop.eup %6381 }
0x1582   :  { %v8937_v11 = vpop.eup %6383 }
0x1583   :  { %v8941_v57 = vpop.eup %6385 }
0x1585   :  { %2751 = vperm.xlu2 %6091, %v8910_v43  }
0x1586   :  { %2745 = vperm.xlu0 %6092, %v8912_v62  }
0x1587   :  { %2748 = vperm.xlu1 %6093, %v8915_v1  }
0x158d   :  { %2760 = vperm.xlu2 %6091, %v8922_v13  }
0x158e   :  { %2754 = vperm.xlu0 %6092, %v8924_v16  }
0x158f   :  { %2757 = vperm.xlu1 %6093, %v8927_v47  }
0x1595   :  { %2769 = vperm.xlu2 %6091, %v8932_v15  }
0x1596   :  { %2763 = vperm.xlu0 %6092, %v8934_v9  }
0x1597   :  { %2766 = vperm.xlu1 %6093, %v8937_v11  }
0x159e   :  { %2772 = vperm.xlu0 %6092, %v8941_v57  }
0x15cf   :  { %v2734_v39 = vpop.permute.xlu2 %2733 }
0x15d0   :  { %v2777_v38 = vperm.slane %v2734_v39, %v7258_v36 }
0x15d7   :  { %v2743_v46 = vpop.permute.xlu2 %2742 }
0x15d8   :  { %v2781_v10 = vperm.slane %v2743_v46, %v7263_v20 }
0x15df   :  { %v2752_v22 = vpop.permute.xlu2 %2751 }
0x15e0   :  { %v2786_v39 = vperm.slane %v2752_v22, %v7258_v36 }
0x15e7   :  { %v2761_v35 = vpop.permute.xlu2 %2760 }
0x15e8   :  { %v2731_v31 = vpop.permute.xlu0 %2730 }
0x15e9   :  { %v2728_v21 = vpop.permute.xlu1 %2727  ;;  %v2775_v6 = vperm.slane %v2731_v31, %v7263_v20 }
0x15ea   :  { %v2774_v27 = vperm.slane %v2728_v21, %v7258_v36 }
0x15ec   :  { %v2776_v48 = vsel %vm473_vm10, %v2775_v6, %v2774_v27 }
0x15f0   :  { %v2737_v34 = vpop.permute.xlu0 %2736 }
0x15f1   :  { %v2740_v5 = vpop.permute.xlu1 %2739  ;;  %v2778_v55 = vperm.slane %v2737_v34, %v7263_v20 }
0x15f2   :  { %v2780_v17 = vperm.slane %v2740_v5, %v7258_v36 }
0x15f3   :  { %v2779_v30 = vsel %vm473_vm10, %v2778_v55, %v2777_v38  ;;  %v2770_v38 = vpop.permute.xlu2 %2769 }
0x15f4   :  { %v2798_v31 = vsel %vm153_vm2, %v2779_v30, %v2776_v48  ;;  %v2782_v21 = vsel %vm473_vm10, %v2781_v10, %v2780_v17  ;;  %v2795_v30 = vperm.slane %v2770_v38, %v7258_v36 }
0x15f5   :  { %v2799_v55 = vsel %vm155_vm3, %v2782_v21, %v2798_v31 }
0x15f8   :  { %v2746_v56 = vpop.permute.xlu0 %2745 }
0x15f9   :  { %v2749_v4 = vpop.permute.xlu1 %2748  ;;  %v2783_v52 = vperm.slane %v2746_v56, %v7258_v36 }
0x15fa   :  { %v2784_v37 = vperm.slane %v2749_v4, %v7263_v20 }
0x15fc   :  { %v2785_v34 = vsel %vm473_vm10, %v2784_v37, %v2783_v52 }
0x15fd   :  { %v2800_v22 = vsel %vm157_vm4, %v2785_v34, %v2799_v55 }
0x1600   :  { %v2755_v14 = vpop.permute.xlu0 %2754 }
0x1601   :  { %v2758_v59 = vpop.permute.xlu1 %2757  ;;  %v2787_v32 = vperm.slane %v2755_v14, %v7263_v20  ;;  %v2790_v14 = vperm.slane %v2761_v35, %v7263_v20 }
0x1602   :  { %v2789_v5 = vperm.slane %v2758_v59, %v7258_v36 }
0x1603   :  { %v2788_v56 = vsel %vm473_vm10, %v2787_v32, %v2786_v39 }
0x1604   :  { %v2801_v6 = vsel %vm159_vm5, %v2788_v56, %v2800_v22  ;;  %v2791_v27 = vsel %vm473_vm10, %v2790_v14, %v2789_v5 }
0x1605   :  { %v2802_v37 = vsel %vm161_vm6, %v2791_v27, %v2801_v6 }
0x1608   :  { %v2764_v63 = vpop.permute.xlu0 %2763 }
0x1609   :  { %v2767_v51 = vpop.permute.xlu1 %2766  ;;  %v2792_v46 = vperm.slane %v2764_v63, %v7258_v36 }
0x160a   :  { %v2793_v4 = vperm.slane %v2767_v51, %v7263_v20 }
0x160c   :  { %v2794_v17 = vsel %vm473_vm10, %v2793_v4, %v2792_v46 }
0x160d   :  { %v2803_v10 = vsel %vm163_vm7, %v2794_v17, %v2802_v37 }
0x1610   :  { %v2773_v59 = vpop.permute.xlu0 %2772 }
0x1611   :  { %v2796_v52 = vperm.slane %v2773_v59, %v7263_v20 }
0x1613   :  { %v2797_v35 = vsel %vm473_vm10, %v2796_v52, %v2795_v30  ;;  %v6788_v52 = vld [vmem:[%s11110_s0 + $0x18] sm:$0xff] }
0x1614   :  { %v2804_v32 = vsel %vm165_vm8, %v2797_v35, %v2803_v10  ;;  %v6789_v35 = vld [vmem:[%s11110_s0 + $0x8] sm:$0xff] }
0x1615   :  { %v2806_v63 = vsel %vm56_vm0, %v2804_v32, 0.0  ;;  %v6790_v32 = vld [vmem:[%s11110_s0 + $0x10] sm:$0xff] }
0x1616   :  { %2807 = vadd.xlane.f32.xlu1 %v2806_v63 }
0x1689   :  { %v2808_v48 = vpop.xlane.xlu1 %2807 }
0x168a   :  { %6387 = vrcp.f32 %v2808_v48  ;;  %v6791_v48 = vld [vmem:[%s11110_s0] sm:$0xff] }
0x1690   :  { %v6388_v51 = vpop.eup %6387 }
0x1691   :  { %v2816_v39 = vperm.slane %v6388_v51, 5  ;;  %v2811_v31 = vperm.slane %v6388_v51, 0  ;;  %v2812_v56 = vperm.slane %v6388_v51, 1  ;;  %v2813_v14 = vperm.slane %v6388_v51, 2 }
0x1692   :  { %v2815_v22 = vperm.slane %v6388_v51, 4  ;;  %v2817_v6 = vperm.slane %v6388_v51, 6  ;;  %v2818_v27 = vperm.slane %v6388_v51, 7 }
0x1693   :  { %v2838_v21 = vmul.f32 %v8922_v13, %v2816_v39  ;;  %v2828_v34 = vmul.f32 %v8885_v49, %v2811_v31  ;;  %v2827_v5 = vmul.f32 %v8888_v3, %v2811_v31  ;;  %v2830_v46 = vmul.f32 %v8898_v54, %v2812_v56 }
0x1694   :  { %v2829_v4 = vmul.f32 %v8883_v42, %v2812_v56  ;;  %v2832_v55 = vmul.f32 %v8896_v60, %v2813_v14  ;;  %v2831_v38 = vmul.f32 %v8901_v8, %v2813_v14  ;;  %v2814_v49 = vperm.slane %v6388_v51, 3  ;;  %v6793_v56 = vld [vmem:[%s11110_s0 + $0x20] sm:$0xff]  ;;  %v6794_v14 = vld [vmem:[%s11110_s0 + $0x38] sm:$0xff] }
0x1695   :  { %2900 = vperm.xlu1 %6093, %v2838_v21   ;;  %2850 = vperm.xlu0 %6092, %v2828_v34   ;;  %v2836_v54 = vmul.f32 %v8924_v16, %v2815_v22  ;;  %v2835_v42 = vmul.f32 %v8910_v43, %v2815_v22  ;;  %v2839_v60 = vmul.f32 %v8934_v9, %v2817_v6  ;;  %v2443_v43 = vsel %vm309_vm9, %v8748_v24, -inf }
0x1696   :  { %2845 = vperm.xlu2 %6091, %v2827_v5   ;;  %v2834_v3 = vmul.f32 %v8915_v1, %v2814_v49  ;;  %v2833_v13 = vmul.f32 %v8912_v62, %v2814_v49  ;;  %v2837_v8 = vmul.f32 %v8927_v47, %v2816_v39  ;;  %v2841_v1 = vmul.f32 %v8932_v15, %v2818_v27  ;;  %v6792_v39 = vld [vmem:[%s11110_s0 + $0x28] sm:$0xff] }
0x1697   :  { %v2840_v62 = vmul.f32 %v8937_v11, %v2817_v6  ;;  %v2842_v16 = vmul.f32 %v8941_v57, %v2818_v27 }
0x169d   :  { %2860 = vperm.xlu0 %6092, %v2830_v46  }
0x169e   :  { %2855 = vperm.xlu2 %6091, %v2829_v4  }
0x16a5   :  { %2870 = vperm.xlu0 %6092, %v2832_v55  }
0x16a6   :  { %2865 = vperm.xlu2 %6091, %v2831_v38  }
0x16ad   :  { %2880 = vperm.xlu0 %6092, %v2834_v3   ;;  %v6795_v3 = vld [vmem:[%s11110_s0 + $0x30] sm:$0xff] }
0x16ae   :  { %2875 = vperm.xlu2 %6091, %v2833_v13  }
0x16b5   :  { %2890 = vperm.xlu0 %6092, %v2836_v54  }
0x16b6   :  { %2885 = vperm.xlu2 %6091, %v2835_v42  }
0x16bd   :  { %2905 = vperm.xlu0 %6092, %v2839_v60  }
0x16be   :  { %2895 = vperm.xlu2 %6091, %v2837_v8  }
0x16c5   :  { %2915 = vperm.xlu0 %6092, %v2841_v1   ;;  %v6796_v1 = vld [vmem:[%s11110_s0 + $0x50] sm:$0xff] }
0x16c6   :  { %2910 = vperm.xlu2 %6091, %v2840_v62  }
0x16ce   :  { %2920 = vperm.xlu2 %6091, %v2842_v16  }
0x16ef   :  { %2444 = vmax.xlane.f32.xlu0 %v2443_v43 }
0x16f0   :  { %v8994_v17 = vpop.permute.xlu2 %2845 }
0x16f1   :  { %v2923_v51 = vmul.f32 %v6791_v48, %v8994_v17 }
0x16f3   :  { %v2939_v49 = vsel %vm56_vm0, %v2923_v51, 0.0  ;;  %v6799_v51 = vld [vmem:[%s11110_s0 + $0x48] sm:$0xff] }
0x16f8   :  { %v8996_v9 = vpop.permute.xlu2 %2855 }
0x16f9   :  { %v2925_v63 = vmul.f32 %v6790_v32, %v8996_v9 }
0x16fb   :  { %v2948_v38 = vsel %vm56_vm0, %v2925_v63, 0.0 }
0x1700   :  { %v8998_v47 = vpop.permute.xlu2 %2865 }
0x1701   :  { %v2927_v46 = vmul.f32 %v6793_v56, %v8998_v47 }
0x1703   :  { %v2957_v6 = vsel %vm56_vm0, %v2927_v46, 0.0 }
0x1707   :  { %v9000_v59 = vpop.permute.xlu0 %2850  ;;  %v9052_v60 = vpop.permute.xlu1 %2900 }
0x1708   :  { %v9002_v15 = vpop.permute.xlu2 %2875  ;;  %v2924_v10 = vmul.f32 %v6789_v35, %v9000_v59  ;;  %v6798_v35 = vld [vmem:[%s11110_s0 + $0x58] sm:$0xff] }
0x1709   :  { %v2929_v13 = vmul.f32 %v6795_v3, %v9002_v15 }
0x170a   :  { %v2940_v4 = vsel %vm56_vm0, %v2924_v10, 0.0  ;;  %v2934_v10 = vmul.f32 %v6798_v35, %v9052_v60 }
0x170b   :  { %v2941_v42 = vadd.f32 %v2940_v4, %v2939_v49  ;;  %v2966_v16 = vsel %vm56_vm0, %v2929_v13, 0.0 }
0x170c   :  { %v2985_v49 = vsel %vm56_vm0, %v2934_v10, 0.0 }
0x170d   :  { %v2942_v32 = vrot.slane %v2941_v42, 4 }
0x170f   :  { %v9004_v11 = vpop.permute.xlu0 %2860  ;;  %v2943_v3 = vadd.f32 %v2942_v32, %v2941_v42 }
0x1710   :  { %v9006_v30 = vpop.permute.xlu2 %2885  ;;  %v2926_v37 = vmul.f32 %v6788_v52, %v9004_v11  ;;  %v6797_v52 = vld [vmem:[%s11110_s0 + $0x40] sm:$0xff] }
0x1711   :  { %v3133_v35 = vperm.slane %v9006_v30, %v7258_v36 }
0x1712   :  { %v2949_v21 = vsel %vm56_vm0, %v2926_v37, 0.0  ;;  %v2931_v37 = vmul.f32 %v6797_v52, %v9006_v30  ;;  %v2944_v52 = vrot.slane %v2943_v3, 2 }
0x1713   :  { %v2950_v22 = vadd.f32 %v2949_v21, %v2948_v38 }
0x1715   :  { %v2951_v43 = vrot.slane %v2950_v22, 4 }
0x1717   :  { %v9008_v57 = vpop.permute.xlu0 %2870  ;;  %v2952_v4 = vadd.f32 %v2951_v43, %v2950_v22  ;;  %v3127_v22 = vperm.slane %v8998_v47, %v7258_v36 }
0x1718   :  { %v2928_v31 = vmul.f32 %v6792_v39, %v9008_v57  ;;  %v9031_v34 = vpop.permute.xlu2 %2895 }
0x1719   :  { %v2933_v62 = vmul.f32 %v6796_v1, %v9031_v34 }
0x171a   :  { %v2958_v54 = vsel %vm56_vm0, %v2928_v31, 0.0  ;;  %v3122_v31 = vperm.slane %v9000_v59, %v7263_v20  ;;  %v3121_v59 = vperm.slane %v8994_v17, %v7258_v36 }
0x171b   :  { %v2959_v27 = vadd.f32 %v2958_v54, %v2957_v6  ;;  %v2984_v56 = vsel %vm56_vm0, %v2933_v62, 0.0  ;;  %v3124_v6 = vperm.slane %v8996_v9, %v7258_v36  ;;  %v3128_v62 = vperm.slane %v9008_v57, %v7263_v20  ;;  %v6800_v9 = vld [vmem:[%s11110_s0 + $0x68] sm:$0xff] }
0x171d   :  { %v2960_v21 = vrot.slane %v2959_v27, 4 }
0x171f   :  { %v9033_v5 = vpop.permute.xlu0 %2880  ;;  %v2961_v1 = vadd.f32 %v2960_v21, %v2959_v27 }
0x1720   :  { %v2930_v55 = vmul.f32 %v6794_v14, %v9033_v5  ;;  %v9074_v46 = vpop.permute.xlu2 %2910  ;;  %v3125_v14 = vperm.slane %v9004_v11, %v7263_v20  ;;  %v3130_v11 = vperm.slane %v9002_v15, %v7258_v36  ;;  %v3131_v17 = vperm.slane %v9033_v5, %v7263_v20  ;;  %v6801_v5 = vld [vmem:[%s11110_s0 + $0x60] sm:$0xff] }
0x1721   :  { %v2936_v47 = vmul.f32 %v6800_v9, %v9074_v46  ;;  %v3123_v15 = vsel %vm473_vm10, %v3122_v31, %v3121_v59  ;;  %v2962_v21 = vrot.slane %v2961_v1, 2  ;;  %v3137_v59 = vperm.slane %v9052_v60, %v7263_v20  ;;  %v6802_v60 = vld [vmem:[%s11110_s0 + $0x78] sm:$0xff] }
0x1722   :  { %v2967_v8 = vsel %vm56_vm0, %v2930_v55, 0.0  ;;  %v2975_v55 = vsel %vm56_vm0, %v2931_v37, 0.0  ;;  %v3126_v43 = vsel %vm473_vm10, %v3125_v14, %v3124_v6  ;;  %v3132_v31 = vsel %vm473_vm10, %v3131_v17, %v3130_v11 }
0x1723   :  { %v2968_v63 = vadd.f32 %v2967_v8, %v2966_v16  ;;  %v2986_v8 = vadd.f32 %v2985_v49, %v2984_v56  ;;  %v2953_v16 = vrot.slane %v2952_v4, 2  ;;  %v3129_v56 = vsel %vm473_vm10, %v3128_v62, %v3127_v22 }
0x1724   :  { %v2994_v30 = vsel %vm56_vm0, %v2936_v47, 0.0  ;;  %v2963_v22 = vadd.f32 %v2962_v21, %v2961_v1  ;;  %v3140_v62 = vperm.slane %v9074_v46, %v7263_v20 }
0x1725   :  { %v2969_v13 = vrot.slane %v2968_v63, 4  ;;  %v2987_v10 = vrot.slane %v2986_v8, 4 }
0x1727   :  { %v2891_v48 = vpop.permute.xlu0 %2890  ;;  %v2970_v27 = vadd.f32 %v2969_v13, %v2968_v63  ;;  %v3136_v63 = vperm.slane %v9031_v34, %v7258_v36  ;;  %v2988_v34 = vadd.f32 %v2987_v10, %v2986_v8  ;;  %v2964_v10 = vrot.slane %v2963_v22, 1 }
0x1728   :  { %v2932_v39 = vmul.f32 %v6799_v51, %v2891_v48  ;;  %v3134_v37 = vperm.slane %v2891_v48, %v7263_v20  ;;  %v2954_v48 = vadd.f32 %v2953_v16, %v2952_v4  ;;  %v2921_v49 = vpop.permute.xlu2 %2920  ;;  %v2945_v16 = vadd.f32 %v2944_v52, %v2943_v3  ;;  %v6803_v3 = vld [vmem:[%s11110_s0 + $0x70] sm:$0xff] }
0x1729   :  { %v2938_v9 = vmul.f32 %v6802_v60, %v2921_v49  ;;  %v3143_v46 = vperm.slane %v2921_v49, %v7263_v20 }
0x172a   :  { %v2976_v38 = vsel %vm56_vm0, %v2932_v39, 0.0  ;;  %v3145_v39 = vsel %vm153_vm2, %v3126_v43, %v3123_v15  ;;  %v3138_v43 = vsel %vm473_vm10, %v3137_v59, %v3136_v63  ;;  %v2955_v47 = vrot.slane %v2954_v48, 1 }
0x172b   :  { %v2977_v54 = vadd.f32 %v2976_v38, %v2975_v55  ;;  %v2971_v55 = vrot.slane %v2970_v27, 2  ;;  %v3135_v38 = vsel %vm473_vm10, %v3134_v37, %v3133_v35  ;;  %v3146_v6 = vsel %vm155_vm3, %v3129_v56, %v3145_v39 }
0x172c   :  { %v3147_v11 = vsel %vm157_vm4, %v3132_v31, %v3146_v6  ;;  %v2946_v63 = vrot.slane %v2945_v16, 1  ;;  %v2956_v49 = vadd.f32 %v2955_v47, %v2954_v48  ;;  %v2965_v59 = vadd.f32 %v2964_v10, %v2963_v22 }
0x172d   :  { %v2978_v42 = vrot.slane %v2977_v54, 4  ;;  %v3148_v17 = vsel %vm159_vm5, %v3135_v38, %v3147_v11  ;;  %v2972_v8 = vadd.f32 %v2971_v55, %v2970_v27  ;;  %v3003_v27 = vsel %vm56_vm0, %v2938_v9, 0.0 }
0x172e   :  { %v3149_v39 = vsel %vm161_vm6, %v3138_v43, %v3148_v17  ;;  %v2947_v6 = vadd.f32 %v2946_v63, %v2945_v16  ;;  %v6808_v63 = vld [vmem:[%s11109_s1 + $0x50] ss:$0 sm:$0xff] }
0x172f   :  { %v2906_v57 = vpop.permute.xlu0 %2905  ;;  %v2979_v32 = vadd.f32 %v2978_v42, %v2977_v54  ;;  %v2973_v31 = vrot.slane %v2972_v8, 1 }
0x1730   :  { %v2935_v51 = vmul.f32 %v6801_v5, %v2906_v57  ;;  %v3139_v54 = vperm.slane %v2906_v57, %v7258_v36  ;;  %v2989_v5 = vrot.slane %v2988_v34, 2  ;;  %v3019_v60 = vsel %vm153_vm2, %v2956_v49, %v2947_v6 }
0x1731   :  { %v2980_v4 = vrot.slane %v2979_v32, 2  ;;  %v3020_v9 = vsel %vm155_vm3, %v2965_v59, %v3019_v60 }
0x1732   :  { %v2993_v14 = vsel %vm56_vm0, %v2935_v51, 0.0  ;;  %v3141_v1 = vsel %vm473_vm10, %v3140_v62, %v3139_v54 }
0x1733   :  { %v2995_v13 = vadd.f32 %v2994_v30, %v2993_v14  ;;  %v2981_v57 = vadd.f32 %v2980_v4, %v2979_v32  ;;  %v3150_v21 = vsel %vm163_vm7, %v3141_v1, %v3149_v39  ;;  %v2974_v4 = vadd.f32 %v2973_v31, %v2972_v8 }
0x1735   :  { %v2996_v42 = vrot.slane %v2995_v13, 4  ;;  %v2982_v55 = vrot.slane %v2981_v57, 1  ;;  %v3021_v1 = vsel %vm157_vm4, %v2974_v4, %v3020_v9 }
0x1737   :  { %v2997_v15 = vadd.f32 %v2996_v42, %v2995_v13  ;;  %v2916_v37 = vpop.permute.xlu0 %2915  ;;  %v2990_v13 = vadd.f32 %v2989_v5, %v2988_v34  ;;  %v2983_v62 = vadd.f32 %v2982_v55, %v2981_v57 }
0x1738   :  { %v2937_v52 = vmul.f32 %v6803_v3, %v2916_v37  ;;  %v3142_v35 = vperm.slane %v2916_v37, %v7258_v36 }
0x1739   :  { %v2998_v51 = vrot.slane %v2997_v15, 2  ;;  %v2991_v43 = vrot.slane %v2990_v13, 1  ;;  %v3022_v48 = vsel %vm159_vm5, %v2983_v62, %v3021_v1 }
0x173a   :  { %v3002_v32 = vsel %vm56_vm0, %v2937_v52, 0.0  ;;  %v3144_v56 = vsel %vm473_vm10, %v3143_v46, %v3142_v35 }
0x173b   :  { %v3004_v30 = vadd.f32 %v3003_v27, %v3002_v32  ;;  %v3151_v14 = vsel %vm165_vm8, %v3144_v56, %v3150_v21  ;;  %v2999_v38 = vadd.f32 %v2998_v51, %v2997_v15  ;;  %v2992_v34 = vadd.f32 %v2991_v43, %v2990_v13  ;;  %v6806_v21 = vld [vmem:[%s11109_s1 + $0xb8] sm:$0xff]  ;;  %v6807_v32 = vld [vmem:[%s11109_s1 + $0xb0] sm:$0xff] }
0x173c   :  { %6053 = vst.msk [vmem:[%s11111_s3 + $0x18] sm:$0xff] %vm56_vm0, %v3151_v14 }
0x173d   :  { %v3005_v54 = vrot.slane %v3004_v30, 4  ;;  %v3000_v42 = vrot.slane %v2999_v38, 1  ;;  %v3023_v16 = vsel %vm161_vm6, %v2992_v34, %v3022_v48 }
0x173f   :  { %v3006_v11 = vadd.f32 %v3005_v54, %v3004_v30  ;;  %v3001_v37 = vadd.f32 %v3000_v42, %v2999_v38 }
0x1741   :  { %v3007_v17 = vrot.slane %v3006_v11, 2  ;;  %v3024_v8 = vsel %vm163_vm7, %v3001_v37, %v3023_v16  ;;  %v6811_v16 = vld [vmem:[%s11109_s1 + $0x40] sm:$0xff] }
0x1743   :  { %v3008_v15 = vadd.f32 %v3007_v17, %v3006_v11 }
0x1745   :  { %v3009_v47 = vrot.slane %v3008_v15, 1 }
0x1747   :  { %v3010_v22 = vadd.f32 %v3009_v47, %v3008_v15 }
0x1749   :  { %v3025_v57 = vsel %vm165_vm8, %v3010_v22, %v3024_v8  ;;  %v6810_v22 = vld [vmem:[%s11109_s1 + $0xa0] sm:$0xff]  ;;  %v6812_v8 = vld [vmem:[%s11109_s1 + $0x98] sm:$0xff] }
0x174a   :  { %3026 = vrot.lane.b32.xlu1 %v3025_v57, %s6935_s11  ;;  %v6813_v57 = vld [vmem:[%s11109_s1 + $0x38] sm:$0xff] }
0x1752   :  { %3029 = vrot.lane.b32.xlu1 %v8681_v40, %s6938_s22  ;;  %v6804_v40 = vld [vmem:[%s11109_s1 + $0xc8] sm:$0xff] }
0x1762   :  { %v2445_v46 = vpop.xlane.xlu0 %2444 }
0x1763   :  { %vm2446_vm14 = vcmp.eq.f32.partialorder %v8748_v24, %v2445_v46  ;;  %v6805_v24 = vld [vmem:[%s11109_s1 + $0xc0] sm:$0xff]  ;;  %v6814_v46 = vld [vmem:[%s11109_s1 + $0x90] sm:$0xff] }
0x1764   :  { %v2447_v3 = vsel %vm2446_vm14, %v7690_v53, 32.0 }
0x1765   :  { %v2448_v52 = vsel %vm309_vm9, %v2447_v3, inf  ;;  %v6815_v3 = vld [vmem:[%s11109_s1 + $0x30] sm:$0xff] }
0x1766   :  { %2449 = vmin.xlane.f32.xlu2 %v2448_v52  ;;  %v6816_v52 = vld [vmem:[%s11109_s1 + $0x88] sm:$0xff] }
0x17bc   :  { %v3027_v35 = vpop.permute.xlu1 %3026 }
0x17c4   :  { %v3030_v51 = vpop.permute.xlu1 %3029 }
0x17d9   :  { %v2450_v10 = vpop.xlane.xlu2 %2449 }
0x17da   :  { %vm2451_vm15 = vcmp.eq.f32.partialorder %v7690_v53, %v2450_v10  ;;  %v6818_v10 = vld [vmem:[%s11109_s1 + $0x20] sm:$0xff] }
0x17db   :  { %v6047_v5 = vsel %vm2451_vm15, 1.0, %v6936_v0 }
0x17dc   :  { %v3032_v39 = vsel %vm309_vm9, %v6047_v5, %v3027_v35  ;;  %v6817_v35 = vld [vmem:[%s11109_s1 + $0x28] sm:$0xff]  ;;  %v6819_v5 = vld [vmem:[%s11109_s1 + $0x18] sm:$0xff] }
0x17dd   :  { %v3033_v27 = vsel %vm895_vm12, %v3032_v39, %v3030_v51  ;;  %v6820_v51 = vld [vmem:[%s11109_s1 + $0x10] sm:$0xff]  ;;  %v6821_v39 = vld [vmem:[%s11109_s1 + $0x8] sm:$0xff] }
0x17de   :  { %6049 = vmatmul.msk.f32.vlgmr.msra.gmra.mxu3 %vm898_vm13, %v3033_v27  ;;  %v6822_v27 = vld [vmem:[%s11109_s1] sm:$0xff] }
0x17df   :  { %4535 = vmatpush.msra.mxu3 %v6804_v40 }
0x17e1   :  { %4536 = vmatpush.msra.mxu3 %v6805_v24  ;;  %v6823_v24 = vld [vmem:[%s11109_s1 + $0xd0] ss:$0 sm:$0xff] }
0x17e3   :  { %4537 = vmatpush.msra.mxu3 %v6806_v21 }
0x17e5   :  { %4538 = vmatpush.msra.mxu3 %v6807_v32 }
0x1861   :  { %v3054_v56 = vpop.f32.mrf.mxu3 }
0x1862   :  { %v3055_v31 = vadd.f32 %v6808_v63, %v3054_v56 }
0x1864   :  { %6389 = vtanh.f32 %v3055_v31  ;;  %v6050_v14 = vmul.f32 -1.442695, %v3055_v31 }
0x1866   :  { %6391 = vpow2.f32 %v6050_v14 }
0x186a   :  { %v6390_v30 = vpop.eup %6389 }
0x186b   :  { %3079 = vrot.lane.b32.xlu1 %v6390_v30, %s6937_s24 }
0x186c   :  { %v6392_v55 = vpop.eup %6391 }
0x186d   :  { %v3060_v38 = vadd.f32 1.0, %v6392_v55 }
0x186f   :  { %6393 = vrcp.f32 %v3060_v38  ;;  %v3072_v4 = vand.u32 2147483648, %v3060_v38  ;;  %vm3066_vm11 = vweird.f32 %v3060_v38  ;;  %v3070_v11 = vand.u32 2147483647, %v3060_v38 }
0x1871   :  { %v3073_v42 = vor.u32 1.1754944e-38, %v3072_v4  ;;  %vm3071_vm15 = vcmp.eq.f32.partialorder %v3070_v11, 8.507059e+37 }
0x1875   :  { %v6394_v49 = vpop.eup %6393 }
0x1876   :  { %v3062_v13 = vmul.f32 %v6394_v49, %v3060_v38  ;;  %vm3067_vm1 = vweird.f32 %v6394_v49 }
0x1877   :  { %vm3068_vm14 = vmor %vm3066_vm11, %vm3067_vm1 }
0x1878   :  { %v3063_v54 = vsub.f32 1.0, %v3062_v13 }
0x187a   :  { %v3064_v59 = vmul.f32 %v6394_v49, %v3063_v54 }
0x187c   :  { %v3065_v6 = vadd.f32 %v6394_v49, %v3064_v59 }
0x187e   :  { %v3069_v62 = vsel %vm3068_vm14, %v6394_v49, %v3065_v6 }
0x187f   :  { %v3074_v17 = vsel %vm3071_vm15, %v3073_v42, %v3069_v62 }
0x1880   :  { %v3077_v9 = vmul.f32 %v3074_v17, %v8677_v25  ;;  %v6809_v25 = vld [vmem:[%s11109_s1 + $0x48] sm:$0xff] }
0x18dd   :  { %v3080_v43 = vpop.permute.xlu1 %3079 }
0x18de   :  { %v3082_v60 = vmul.f32 %v3080_v43, %v3074_v17 }
0x18e0   :  { %3084 = vrot.lane.b32.xlu1 %v3082_v60, %s6935_s11 }
0x1952   :  { %v3085_v15 = vpop.permute.xlu1 %3084 }
0x1953   :  { %v9177_v1 = vadd.f32 %v3085_v15, %v3077_v9 }
0x1955   :  { %6395 = vtanh.f32 %v9177_v1 }
0x195b   :  { %v6396_v37 = vpop.eup %6395 }
0x195c   :  { %3090 = vrot.lane.b32.xlu1 %v6396_v37, %s6937_s24  ;;  %v9264_v37 = vld [vmem:[%s11109_s1 + $0xa8] ss:$0 sm:$0xff] }
0x19ce   :  { %v3091_v48 = vpop.permute.xlu1 %3090 }
0x19cf   :  { %v9181_v34 = vmul.f32 %v3091_v48, %v3074_v17 }
0x19d1   :  { %3095 = vrot.lane.b32.xlu0 %v9181_v34, %s6935_s11 }
0x1a43   :  { %v3096_v47 = vpop.permute.xlu0 %3095 }
0x1a44   :  { %6051 = vmatmul.msk.f32.vlgmr.msrb.gmra.mxu0 %vm309_vm9, %v3096_v47  ;;  %6055 = vmatmul.msk.f32.vlgmr.msrb.gmra.mxu2 %vm309_vm9, %v3096_v47 }
0x1a45   :  { %4467 = vmatpush.msrb.mxu2 %v6809_v25  ;;  %4602 = vmatpush.msrb.mxu0 %v6810_v22 }
0x1a47   :  { %4468 = vmatpush.msrb.mxu2 %v6811_v16  ;;  %4603 = vmatpush.msrb.mxu0 %v6812_v8 }
0x1a49   :  { %4469 = vmatpush.msrb.mxu2 %v6813_v57  ;;  %4604 = vmatpush.msrb.mxu0 %v6814_v46 }
0x1a4b   :  { %4470 = vmatpush.msrb.mxu2 %v6815_v3  ;;  %4605 = vmatpush.msrb.mxu0 %v6816_v52 }
0x1a4d   :  { %4471 = vmatpush.msrb.mxu2 %v6817_v35 }
0x1a4f   :  { %4472 = vmatpush.msrb.mxu2 %v6818_v10 }
0x1a51   :  { %4473 = vmatpush.msrb.mxu2 %v6819_v5 }
0x1a53   :  { %4474 = vmatpush.msrb.mxu2 %v6820_v51 }
0x1a55   :  { %4475 = vmatpush.msrb.mxu2 %v6821_v39 }
0x1a57   :  { %4476 = vmatpush.msrb.mxu2 %v6822_v27 }
0x1ac1   :  { %v3116_v40 = vpop.f32.mrf.mxu0 }
0x1ac2   :  { %v9232_v21 = vadd.f32 %v6823_v24, %v3116_v40 }
0x1ac4   :  { %6052 = vst.msk [vmem:[%s11112_s2 + $0x18] sm:$0xff] %vm309_vm9, %v9232_v21 }
0x1ac7   :  { %v9239_v32 = vpop.f32.mrf.mxu2 }
0x1ac8   :  { %v3194_v56 = vperm.slane %v9239_v32, 0  ;;  %v3188_v63 = vrot.slane %v9239_v32, 2  ;;  %v3190_v31 = vrot.slane %v9239_v32, 4  ;;  %v3187_v30 = vrot.slane %v9239_v32, 1 }
0x1ac9   :  { %v3192_v14 = vrot.slane %v9239_v32, 6  ;;  %v3191_v11 = vrot.slane %v9239_v32, 5  ;;  %v3193_v43 = vrot.slane %v9239_v32, 7 }
0x1aca   :  { %v3211_v55 = vadd.f32 %v3194_v56, %v7144_v18  ;;  %v3210_v38 = vadd.f32 %v3194_v56, %v7138_v12  ;;  %v3196_v49 = vperm.slane %v3188_v63, 0  ;;  %v9248_v13 = vperm.slane %v3190_v31, 0 }
0x1acb   :  { %v3195_v54 = vperm.slane %v3187_v30, 0  ;;  %v3200_v59 = vperm.slane %v3192_v14, 0  ;;  %v9257_v17 = vperm.slane %v3191_v11, 0  ;;  %v9259_v9 = vperm.slane %v3193_v43, 0 }
0x1acc   :  { %6397 = vtanh.f32 %v3211_v55  ;;  %v3214_v6 = vadd.f32 %v3196_v49, %v7150_v23  ;;  %v3218_v4 = vadd.f32 %v9248_v13, %v7176_v44  ;;  %v3215_v56 = vadd.f32 %v3196_v49, %v7154_v28 }
0x1acd   :  { %6399 = vtanh.f32 %v3210_v38  ;;  %v3212_v62 = vadd.f32 %v3195_v54, %v7147_v19  ;;  %v3222_v42 = vadd.f32 %v3200_v59, %v7210_v2  ;;  %v3220_v22 = vadd.f32 %v9257_v17, %v7198_v7 }
0x1ace   :  { %6401 = vtanh.f32 %v3214_v6  ;;  %v3213_v57 = vadd.f32 %v3195_v54, %v7161_v33  ;;  %v3225_v52 = vadd.f32 %v9259_v9, %v7228_v45  ;;  %v3223_v40 = vadd.f32 %v3200_v59, %v7218_v29 }
0x1acf   :  { %6403 = vtanh.f32 %v3218_v4  ;;  %v3189_v63 = vrot.slane %v9239_v32, 3 }
0x1ad0   :  { %6405 = vtanh.f32 %v3212_v62 }
0x1ad1   :  { %6407 = vtanh.f32 %v3222_v42  ;;  %v3197_v59 = vperm.slane %v3189_v63, 0 }
0x1ad2   :  { %v6398_v60 = vpop.eup %6397  ;;  %6409 = vtanh.f32 %v3220_v22 }
0x1ad3   :  { %v6400_v15 = vpop.eup %6399  ;;  %v3243_v48 = vmul.f32 %v9264_v37, %v6398_v60  ;;  %6411 = vtanh.f32 %v3213_v57  ;;  %v3216_v4 = vadd.f32 %v3197_v59, %v7172_v41 }
0x1ad4   :  { %v6402_v47 = vpop.eup %6401  ;;  %v3242_v25 = vmul.f32 %v9264_v37, %v6400_v15  ;;  %6413 = vtanh.f32 %v3225_v52  ;;  %v3221_v52 = vadd.f32 %v9257_v17, %v7195_v61 }
0x1ad5   :  { %v3261_v16 = vsel %vm56_vm0, %v3243_v48, 0.0  ;;  %v3246_v8 = vmul.f32 %v9264_v37, %v6402_v47  ;;  %v6404_v46 = vpop.eup %6403  ;;  %6415 = vtanh.f32 %v3223_v40  ;;  %v3217_v47 = vadd.f32 %v3197_v59, %v7180_v50 }
0x1ad6   :  { %3262 = vadd.xlane.f32.xlu1 %v3261_v16  ;;  %v3258_v3 = vsel %vm56_vm0, %v3242_v25, 0.0  ;;  %v6406_v35 = vpop.eup %6405  ;;  %v3250_v51 = vmul.f32 %v9264_v37, %v6404_v46  ;;  %6417 = vtanh.f32 %v3215_v56 }
0x1ad7   :  { %3259 = vadd.xlane.f32.xlu2 %v3258_v3  ;;  %v3270_v10 = vsel %vm56_vm0, %v3246_v8, 0.0  ;;  %v6408_v5 = vpop.eup %6407  ;;  %v3244_v39 = vmul.f32 %v9264_v37, %v6406_v35  ;;  %6419 = vtanh.f32 %v3216_v4  ;;  %v3219_v8 = vadd.f32 %v9248_v13, %v7190_v58 }
0x1ad8   :  { %3271 = vadd.xlane.f32.xlu0 %v3270_v10  ;;  %v3254_v27 = vmul.f32 %v9264_v37, %v6408_v5  ;;  %v3282_v24 = vsel %vm56_vm0, %v3250_v51, 0.0  ;;  %v6410_v31 = vpop.eup %6409  ;;  %6421 = vtanh.f32 %v3217_v47  ;;  %v3224_v13 = vadd.f32 %v9259_v9, %v7215_v26 }
0x1ad9   :  { %v3264_v30 = vsel %vm56_vm0, %v3244_v39, 0.0  ;;  %v6412_v14 = vpop.eup %6411  ;;  %v3252_v54 = vmul.f32 %v9264_v37, %v6410_v31  ;;  %6423 = vtanh.f32 %v3219_v8 }
0x1ada   :  { %v3294_v55 = vsel %vm56_vm0, %v3254_v27, 0.0  ;;  %v6414_v38 = vpop.eup %6413  ;;  %v3245_v6 = vmul.f32 %v9264_v37, %v6412_v14  ;;  %6425 = vtanh.f32 %v3221_v52 }
0x1adb   :  { %v3257_v49 = vmul.f32 %v9264_v37, %v6414_v38  ;;  %v3288_v32 = vsel %vm56_vm0, %v3252_v54, 0.0  ;;  %v6416_v11 = vpop.eup %6415  ;;  %6427 = vtanh.f32 %v3224_v13 }
0x1adc   :  { %v3267_v62 = vsel %vm56_vm0, %v3245_v6, 0.0  ;;  %v6418_v42 = vpop.eup %6417  ;;  %v3255_v60 = vmul.f32 %v9264_v37, %v6416_v11 }
0x1add   :  { %v3303_v43 = vsel %vm56_vm0, %v3257_v49, 0.0  ;;  %v3247_v15 = vmul.f32 %v9264_v37, %v6418_v42  ;;  %v6420_v22 = vpop.eup %6419 }
0x1ade   :  { %3283 = vadd.xlane.f32.xlu1 %v3282_v24  ;;  %v3297_v48 = vsel %vm56_vm0, %v3255_v60, 0.0  ;;  %v3248_v16 = vmul.f32 %v9264_v37, %v6420_v22  ;;  %v6422_v46 = vpop.eup %6421 }
0x1adf   :  { %3265 = vadd.xlane.f32.xlu2 %v3264_v30  ;;  %v3273_v25 = vsel %vm56_vm0, %v3247_v15, 0.0  ;;  %v3249_v3 = vmul.f32 %v9264_v37, %v6422_v46  ;;  %v6424_v10 = vpop.eup %6423 }
0x1ae0   :  { %3295 = vadd.xlane.f32.xlu0 %v3294_v55  ;;  %v3276_v57 = vsel %vm56_vm0, %v3248_v16, 0.0  ;;  %v3251_v5 = vmul.f32 %v9264_v37, %v6424_v10  ;;  %v6426_v39 = vpop.eup %6425 }
0x1ae1   :  { %v3279_v35 = vsel %vm56_vm0, %v3249_v3, 0.0  ;;  %v3253_v27 = vmul.f32 %v9264_v37, %v6426_v39  ;;  %v6428_v17 = vpop.eup %6427 }
0x1ae2   :  { %v3285_v51 = vsel %vm56_vm0, %v3251_v5, 0.0  ;;  %v3256_v24 = vmul.f32 %v9264_v37, %v6428_v17 }
0x1ae3   :  { %v3291_v40 = vsel %vm56_vm0, %v3253_v27, 0.0 }
0x1ae4   :  { %v3300_v56 = vsel %vm56_vm0, %v3256_v24, 0.0 }
0x1ae6   :  { %3289 = vadd.xlane.f32.xlu1 %v3288_v32 }
0x1ae7   :  { %3268 = vadd.xlane.f32.xlu2 %v3267_v62 }
0x1ae8   :  { %3304 = vadd.xlane.f32.xlu0 %v3303_v43 }
0x1aee   :  { %3298 = vadd.xlane.f32.xlu1 %v3297_v48 }
0x1aef   :  { %3274 = vadd.xlane.f32.xlu2 %v3273_v25 }
0x1af7   :  { %3277 = vadd.xlane.f32.xlu2 %v3276_v57 }
0x1aff   :  { %3280 = vadd.xlane.f32.xlu2 %v3279_v35 }
0x1b07   :  { %3286 = vadd.xlane.f32.xlu2 %v3285_v51 }
0x1b0f   :  { %3292 = vadd.xlane.f32.xlu2 %v3291_v40 }
0x1b17   :  { %3301 = vadd.xlane.f32.xlu2 %v3300_v56 }
0x1b49   :  { %v3263_v14 = vpop.xlane.xlu1 %3262 }
0x1b4a   :  { %v3260_v63 = vpop.xlane.xlu2 %3259  ;;  %v3323_v11 = vperm.slane %v3263_v14, %v7263_v20 }
0x1b4b   :  { %v3272_v59 = vpop.xlane.xlu0 %3271  ;;  %v3322_v62 = vperm.slane %v3260_v63, %v7258_v36 }
0x1b4c   :  { %v3328_v60 = vperm.slane %v3272_v59, %v7258_v36 }
0x1b4d   :  { %v3324_v57 = vsel %vm473_vm10, %v3323_v11, %v3322_v62 }
0x1b51   :  { %v9316_v38 = vpop.xlane.xlu1 %3283 }
0x1b52   :  { %v3266_v31 = vpop.xlane.xlu2 %3265  ;;  %v3334_v16 = vperm.slane %v9316_v38, %v7258_v36 }
0x1b53   :  { %v9324_v37 = vpop.xlane.xlu0 %3295  ;;  %v3325_v42 = vperm.slane %v3266_v31, %v7258_v36 }
0x1b54   :  { %v3340_v17 = vperm.slane %v9324_v37, %v7258_v36 }
0x1b59   :  { %v9322_v49 = vpop.xlane.xlu1 %3289 }
0x1b5a   :  { %v3269_v30 = vpop.xlane.xlu2 %3268  ;;  %v3337_v46 = vperm.slane %v9322_v49, %v7258_v36 }
0x1b5b   :  { %v3326_v32 = vperm.slane %v3269_v30, %v7263_v20  ;;  %v9356_v51 = vpop.xlane.xlu0 %3304 }
0x1b5d   :  { %v3327_v47 = vsel %vm473_vm10, %v3326_v32, %v3325_v42  ;;  %v3344_v32 = vperm.slane %v9356_v51, %v7263_v20 }
0x1b5e   :  { %v3346_v35 = vsel %vm153_vm2, %v3327_v47, %v3324_v57 }
0x1b61   :  { %v9349_v3 = vpop.xlane.xlu1 %3298 }
0x1b62   :  { %v3275_v9 = vpop.xlane.xlu2 %3274  ;;  %v3341_v39 = vperm.slane %v9349_v3, %v7263_v20 }
0x1b63   :  { %v3329_v4 = vperm.slane %v3275_v9, %v7263_v20 }
0x1b64   :  { %v3342_v11 = vsel %vm473_vm10, %v3341_v39, %v3340_v17 }
0x1b65   :  { %v3330_v8 = vsel %vm473_vm10, %v3329_v4, %v3328_v60 }
0x1b66   :  { %v3347_v5 = vsel %vm155_vm3, %v3330_v8, %v3346_v35 }
0x1b6a   :  { %v9314_v55 = vpop.xlane.xlu2 %3277 }
0x1b6b   :  { %v3331_v25 = vperm.slane %v9314_v55, %v7258_v36 }
0x1b72   :  { %v9318_v54 = vpop.xlane.xlu2 %3280 }
0x1b73   :  { %v3332_v43 = vperm.slane %v9318_v54, %v7263_v20 }
0x1b75   :  { %v3333_v52 = vsel %vm473_vm10, %v3332_v43, %v3331_v25 }
0x1b76   :  { %v3348_v27 = vsel %vm157_vm4, %v3333_v52, %v3347_v5 }
0x1b7a   :  { %v9320_v6 = vpop.xlane.xlu2 %3286 }
0x1b7b   :  { %v3335_v15 = vperm.slane %v9320_v6, %v7263_v20 }
0x1b7d   :  { %v3336_v10 = vsel %vm473_vm10, %v3335_v15, %v3334_v16 }
0x1b7e   :  { %v3349_v40 = vsel %vm159_vm5, %v3336_v10, %v3348_v27 }
0x1b82   :  { %v9336_v48 = vpop.xlane.xlu2 %3292 }
0x1b83   :  { %v3338_v22 = vperm.slane %v9336_v48, %v7263_v20 }
0x1b85   :  { %v3339_v13 = vsel %vm473_vm10, %v3338_v22, %v3337_v46 }
0x1b86   :  { %v3350_v56 = vsel %vm161_vm6, %v3339_v13, %v3349_v40 }
0x1b87   :  { %v3351_v42 = vsel %vm163_vm7, %v3342_v11, %v3350_v56 }
0x1b8a   :  { %v9364_v24 = vpop.xlane.xlu2 %3301 }
0x1b8b   :  { %v3343_v4 = vperm.slane %v9364_v24, %v7258_v36 }
0x1b8d   :  { %v3345_v62 = vsel %vm473_vm10, %v3344_v32, %v3343_v4 }
0x1b8e   :  { %v3352_v43 = vsel %vm165_vm8, %v3345_v62, %v3351_v42 }
0x1b8f   :  { %v3354_v60 = vsel %vm56_vm0, %v3352_v43, -inf }
0x1b90   :  { %3355 = vmax.xlane.f32.xlu1 %v3354_v60 }
0x1c03   :  { %v9376_v15 = vpop.xlane.xlu1 %3355 }
0x1c04   :  { %v3358_v47 = vperm.slane %v9376_v15, 0  ;;  %v3359_v25 = vperm.slane %v9376_v15, 1  ;;  %v3360_v57 = vperm.slane %v9376_v15, 2  ;;  %v3362_v39 = vperm.slane %v9376_v15, 4 }
0x1c05   :  { %v3361_v40 = vperm.slane %v9376_v15, 3  ;;  %v3363_v32 = vperm.slane %v9376_v15, 5 }
0x1c06   :  { %v3374_v22 = vsub.f32 %v3260_v63, %v3358_v47  ;;  %v3375_v16 = vsub.f32 %v3263_v14, %v3358_v47  ;;  %v3376_v8 = vsub.f32 %v3266_v31, %v3359_v25  ;;  %v3379_v10 = vsub.f32 %v3275_v9, %v3360_v57 }
0x1c07   :  { %v3377_v5 = vsub.f32 %v3269_v30, %v3359_v25  ;;  %v3378_v13 = vsub.f32 %v3272_v59, %v3360_v57  ;;  %v3382_v30 = vsub.f32 %v9316_v38, %v3362_v39  ;;  %v3380_v9 = vsub.f32 %v9314_v55, %v3361_v40 }
0x1c08   :  { %v3390_v46 = vmul.f32 1.442695, %v3374_v22  ;;  %v3392_v52 = vmul.f32 1.442695, %v3375_v16  ;;  %v3394_v35 = vmul.f32 1.442695, %v3376_v8  ;;  %v3381_v59 = vsub.f32 %v9318_v54, %v3361_v40 }
0x1c09   :  { %v3400_v27 = vmul.f32 1.442695, %v3379_v10  ;;  %v3396_v17 = vmul.f32 1.442695, %v3377_v5  ;;  %v3398_v31 = vmul.f32 1.442695, %v3378_v13  ;;  %v3385_v55 = vsub.f32 %v9336_v48, %v3363_v32 }
0x1c0a   :  { %6429 = vpow2.f32 %v3394_v35  ;;  %v3406_v4 = vmul.f32 1.442695, %v3382_v30  ;;  %v3402_v11 = vmul.f32 1.442695, %v3380_v9  ;;  %v3404_v42 = vmul.f32 1.442695, %v3381_v59 }
0x1c0b   :  { %6431 = vpow2.f32 %v3392_v52  ;;  %v3383_v54 = vsub.f32 %v9320_v6, %v3362_v39  ;;  %v3384_v60 = vsub.f32 %v9322_v49, %v3363_v32  ;;  %v3365_v47 = vperm.slane %v9376_v15, 7 }
0x1c0c   :  { %6433 = vpow2.f32 %v3390_v46  ;;  %v3412_v25 = vmul.f32 1.442695, %v3385_v55  ;;  %v3364_v22 = vperm.slane %v9376_v15, 6 }
0x1c0d   :  { %6435 = vpow2.f32 %v3400_v27  ;;  %v3408_v16 = vmul.f32 1.442695, %v3383_v54  ;;  %v3410_v48 = vmul.f32 1.442695, %v3384_v60  ;;  %v3388_v46 = vsub.f32 %v9364_v24, %v3365_v47 }
0x1c0e   :  { %6437 = vpow2.f32 %v3396_v17  ;;  %v3386_v49 = vsub.f32 %v9324_v37, %v3364_v22  ;;  %v3387_v15 = vsub.f32 %v9349_v3, %v3364_v22  ;;  %v3389_v37 = vsub.f32 %v9356_v51, %v3365_v47 }
0x1c0f   :  { %6439 = vpow2.f32 %v3398_v31  ;;  %v3418_v52 = vmul.f32 1.442695, %v3388_v46 }
0x1c10   :  { %v9383_v63 = vpop.eup %6429  ;;  %6441 = vpow2.f32 %v3406_v4  ;;  %v3414_v35 = vmul.f32 1.442695, %v3386_v49  ;;  %v3416_v5 = vmul.f32 1.442695, %v3387_v15  ;;  %v3420_v3 = vmul.f32 1.442695, %v3389_v37 }
0x1c11   :  { %v9385_v14 = vpop.eup %6431  ;;  %3445 = vperm.xlu1 %6093, %v9383_v63   ;;  %6443 = vpow2.f32 %v3402_v11 }
0x1c12   :  { %v9388_v56 = vpop.eup %6433  ;;  %3442 = vperm.xlu0 %6092, %v9385_v14   ;;  %6445 = vpow2.f32 %v3404_v42 }
0x1c13   :  { %3439 = vperm.xlu2 %6091, %v9388_v56   ;;  %v9396_v62 = vpop.eup %6435  ;;  %6447 = vpow2.f32 %v3412_v25 }
0x1c14   :  { %v9398_v43 = vpop.eup %6437  ;;  %6449 = vpow2.f32 %v3408_v16 }
0x1c15   :  { %v9401_v38 = vpop.eup %6439  ;;  %6451 = vpow2.f32 %v3410_v48 }
0x1c16   :  { %v9410_v8 = vpop.eup %6441  ;;  %6453 = vpow2.f32 %v3418_v52 }
0x1c17   :  { %v9412_v57 = vpop.eup %6443  ;;  %6455 = vpow2.f32 %v3414_v35 }
0x1c18   :  { %v9415_v6 = vpop.eup %6445  ;;  %6457 = vpow2.f32 %v3416_v5 }
0x1c19   :  { %3454 = vperm.xlu1 %6093, %v9396_v62   ;;  %v9422_v10 = vpop.eup %6447  ;;  %6459 = vpow2.f32 %v3420_v3 }
0x1c1a   :  { %3448 = vperm.xlu0 %6092, %v9398_v43   ;;  %v9424_v13 = vpop.eup %6449 }
0x1c1b   :  { %3451 = vperm.xlu2 %6091, %v9401_v38   ;;  %v9427_v24 = vpop.eup %6451 }
0x1c1c   :  { %v9432_v39 = vpop.eup %6453 }
0x1c1d   :  { %v9434_v27 = vpop.eup %6455 }
0x1c1e   :  { %v9437_v40 = vpop.eup %6457 }
0x1c1f   :  { %v9441_v17 = vpop.eup %6459 }
0x1c21   :  { %3463 = vperm.xlu1 %6093, %v9410_v8  }
0x1c22   :  { %3457 = vperm.xlu0 %6092, %v9412_v57  }
0x1c23   :  { %3460 = vperm.xlu2 %6091, %v9415_v6  }
0x1c29   :  { %3472 = vperm.xlu1 %6093, %v9422_v10  }
0x1c2a   :  { %3466 = vperm.xlu0 %6092, %v9424_v13  }
0x1c2b   :  { %3469 = vperm.xlu2 %6091, %v9427_v24  }
0x1c31   :  { %3481 = vperm.xlu1 %6093, %v9432_v39  }
0x1c32   :  { %3475 = vperm.xlu0 %6092, %v9434_v27  }
0x1c33   :  { %3478 = vperm.xlu2 %6091, %v9437_v40  }
0x1c3a   :  { %3484 = vperm.xlu0 %6092, %v9441_v17  }
0x1c6d   :  { %v3440_v51 = vpop.permute.xlu2 %3439 }
0x1c6e   :  { %v3486_v48 = vperm.slane %v3440_v51, %v7258_v36 }
0x1c75   :  { %v3452_v9 = vpop.permute.xlu2 %3451 }
0x1c76   :  { %v3492_v15 = vperm.slane %v3452_v9, %v7258_v36 }
0x1c7d   :  { %v3461_v4 = vpop.permute.xlu2 %3460 }
0x1c7e   :  { %v3496_v5 = vperm.slane %v3461_v4, %v7263_v20 }
0x1c83   :  { %v3446_v31 = vpop.permute.xlu1 %3445 }
0x1c84   :  { %v3443_v30 = vpop.permute.xlu0 %3442  ;;  %v3489_v25 = vperm.slane %v3446_v31, %v7258_v36 }
0x1c85   :  { %v3470_v54 = vpop.permute.xlu2 %3469  ;;  %v3487_v22 = vperm.slane %v3443_v30, %v7263_v20 }
0x1c87   :  { %v3488_v37 = vsel %vm473_vm10, %v3487_v22, %v3486_v48 }
0x1c8b   :  { %v3455_v59 = vpop.permute.xlu1 %3454 }
0x1c8c   :  { %v3449_v32 = vpop.permute.xlu0 %3448  ;;  %v3493_v16 = vperm.slane %v3455_v59, %v7263_v20 }
0x1c8d   :  { %v3490_v60 = vperm.slane %v3449_v32, %v7263_v20  ;;  %v3479_v51 = vpop.permute.xlu2 %3478 }
0x1c8e   :  { %v3494_v3 = vsel %vm473_vm10, %v3493_v16, %v3492_v15 }
0x1c8f   :  { %v3491_v46 = vsel %vm473_vm10, %v3490_v60, %v3489_v25  ;;  %v3505_v60 = vperm.slane %v3479_v51, %v7263_v20 }
0x1c90   :  { %v3510_v31 = vsel %vm153_vm2, %v3491_v46, %v3488_v37 }
0x1c91   :  { %v3511_v4 = vsel %vm155_vm3, %v3494_v3, %v3510_v31 }
0x1c93   :  { %v3464_v42 = vpop.permute.xlu1 %3463 }
0x1c94   :  { %v3458_v11 = vpop.permute.xlu0 %3457  ;;  %v3498_v30 = vperm.slane %v3464_v42, %v7258_v36 }
0x1c95   :  { %v3495_v49 = vperm.slane %v3458_v11, %v7258_v36 }
0x1c97   :  { %v3497_v59 = vsel %vm473_vm10, %v3496_v5, %v3495_v49 }
0x1c98   :  { %v3512_v25 = vsel %vm157_vm4, %v3497_v59, %v3511_v4 }
0x1c9b   :  { %v3473_v47 = vpop.permute.xlu1 %3472 }
0x1c9c   :  { %v3467_v55 = vpop.permute.xlu0 %3466  ;;  %v3502_v32 = vperm.slane %v3473_v47, %v7263_v20 }
0x1c9d   :  { %v3499_v52 = vperm.slane %v3467_v55, %v7263_v20  ;;  %v3501_v55 = vperm.slane %v3470_v54, %v7258_v36 }
0x1c9f   :  { %v3500_v9 = vsel %vm473_vm10, %v3499_v52, %v3498_v30  ;;  %v3503_v42 = vsel %vm473_vm10, %v3502_v32, %v3501_v55 }
0x1ca0   :  { %v3513_v16 = vsel %vm159_vm5, %v3500_v9, %v3512_v25 }
0x1ca1   :  { %v3514_v54 = vsel %vm161_vm6, %v3503_v42, %v3513_v16 }
0x1ca3   :  { %v3482_v22 = vpop.permute.xlu1 %3481 }
0x1ca4   :  { %v3476_v35 = vpop.permute.xlu0 %3475  ;;  %v3507_v46 = vperm.slane %v3482_v22, %v7258_v36 }
0x1ca5   :  { %v3504_v11 = vperm.slane %v3476_v35, %v7258_v36 }
0x1ca7   :  { %v3506_v48 = vsel %vm473_vm10, %v3505_v60, %v3504_v11 }
0x1ca8   :  { %v3515_v52 = vsel %vm163_vm7, %v3506_v48, %v3514_v54 }
0x1cac   :  { %v3485_v47 = vpop.permute.xlu0 %3484 }
0x1cad   :  { %v3508_v49 = vperm.slane %v3485_v47, %v7263_v20 }
0x1caf   :  { %v3509_v15 = vsel %vm473_vm10, %v3508_v49, %v3507_v46  ;;  %v6825_v49 = vld [vmem:[%s11110_s0 + $0x8] sm:$0xff] }
0x1cb0   :  { %v3516_v35 = vsel %vm165_vm8, %v3509_v15, %v3515_v52  ;;  %v6826_v15 = vld [vmem:[%s11110_s0] sm:$0xff] }
0x1cb1   :  { %v3518_v5 = vsel %vm56_vm0, %v3516_v35, 0.0  ;;  %v6827_v35 = vld [vmem:[%s11110_s0 + $0x18] sm:$0xff] }
0x1cb2   :  { %3519 = vadd.xlane.f32.xlu2 %v3518_v5 }
0x1d25   :  { %v3520_v37 = vpop.xlane.xlu2 %3519 }
0x1d26   :  { %6461 = vrcp.f32 %v3520_v37  ;;  %v6828_v37 = vld [vmem:[%s11110_s0 + $0x10] sm:$0xff] }
0x1d2c   :  { %v6462_v3 = vpop.eup %6461 }
0x1d2d   :  { %v3528_v31 = vperm.slane %v6462_v3, 5  ;;  %v3523_v30 = vperm.slane %v6462_v3, 0  ;;  %v3524_v9 = vperm.slane %v6462_v3, 1  ;;  %v3525_v4 = vperm.slane %v6462_v3, 2 }
0x1d2e   :  { %v3527_v22 = vperm.slane %v6462_v3, 4  ;;  %v3529_v42 = vperm.slane %v6462_v3, 6  ;;  %v3530_v16 = vperm.slane %v6462_v3, 7 }
0x1d2f   :  { %v3549_v51 = vmul.f32 %v9427_v24, %v3528_v31  ;;  %v3540_v59 = vmul.f32 %v9385_v14, %v3523_v30  ;;  %v3539_v32 = vmul.f32 %v9388_v56, %v3523_v30  ;;  %v3542_v11 = vmul.f32 %v9398_v43, %v3524_v9 }
0x1d30   :  { %v3541_v55 = vmul.f32 %v9383_v63, %v3524_v9  ;;  %v3544_v60 = vmul.f32 %v9396_v62, %v3525_v4  ;;  %v3543_v25 = vmul.f32 %v9401_v38, %v3525_v4  ;;  %v3526_v14 = vperm.slane %v6462_v3, 3 }
0x1d31   :  { %3607 = vperm.xlu2 %6091, %v3549_v51   ;;  %3562 = vperm.xlu0 %6092, %v3540_v59   ;;  %v3548_v43 = vmul.f32 %v9424_v13, %v3527_v22  ;;  %v3547_v63 = vmul.f32 %v9410_v8, %v3527_v22  ;;  %v3551_v62 = vmul.f32 %v9434_v27, %v3529_v42  ;;  %v3155_v8 = vsel %vm309_vm9, %v9232_v21, -inf  ;;  %v6829_v51 = vld [vmem:[%s11110_s0 + $0x28] sm:$0xff]  ;;  %v6832_v22 = vld [vmem:[%s11110_s0 + $0x30] sm:$0xff] }
0x1d32   :  { %3557 = vperm.xlu1 %6093, %v3539_v32   ;;  %v3546_v56 = vmul.f32 %v9415_v6, %v3526_v14  ;;  %v3545_v24 = vmul.f32 %v9412_v57, %v3526_v14  ;;  %v3550_v38 = vmul.f32 %v9422_v10, %v3528_v31  ;;  %v3553_v6 = vmul.f32 %v9432_v39, %v3530_v16  ;;  %v6830_v32 = vld [vmem:[%s11110_s0 + $0x20] sm:$0xff] }
0x1d33   :  { %v3552_v57 = vmul.f32 %v9437_v40, %v3529_v42  ;;  %v3554_v13 = vmul.f32 %v9441_v17, %v3530_v16 }
0x1d39   :  { %3572 = vperm.xlu0 %6092, %v3542_v11  }
0x1d3a   :  { %3567 = vperm.xlu1 %6093, %v3541_v55  }
0x1d41   :  { %3582 = vperm.xlu0 %6092, %v3544_v60  }
0x1d42   :  { %3577 = vperm.xlu1 %6093, %v3543_v25  }
0x1d49   :  { %3592 = vperm.xlu0 %6092, %v3546_v56   ;;  %v6831_v56 = vld [vmem:[%s11110_s0 + $0x38] sm:$0xff] }
0x1d4a   :  { %3587 = vperm.xlu1 %6093, %v3545_v24  }
0x1d51   :  { %3602 = vperm.xlu0 %6092, %v3548_v43  }
0x1d52   :  { %3597 = vperm.xlu1 %6093, %v3547_v63   ;;  %v6833_v63 = vld [vmem:[%s11110_s0 + $0x48] sm:$0xff] }
0x1d59   :  { %3617 = vperm.xlu0 %6092, %v3551_v62   ;;  %v6834_v62 = vld [vmem:[%s11110_s0 + $0x40] sm:$0xff] }
0x1d5a   :  { %3612 = vperm.xlu1 %6093, %v3550_v38  }
0x1d61   :  { %3627 = vperm.xlu0 %6092, %v3553_v6  }
0x1d62   :  { %3622 = vperm.xlu1 %6093, %v3552_v57  }
0x1d6a   :  { %3632 = vperm.xlu1 %6093, %v3554_v13   ;;  %v6835_v13 = vld [vmem:[%s11110_s0 + $0x50] sm:$0xff] }
0x1d8b   :  { %3156 = vmax.xlane.f32.xlu0 %v3155_v8  ;;  %v9542_v25 = vpop.permute.xlu2 %3607 }
0x1d8c   :  { %v3645_v8 = vmul.f32 %v6835_v13, %v9542_v25 }
0x1da3   :  { %v9494_v48 = vpop.permute.xlu0 %3562 }
0x1da4   :  { %v9496_v27 = vpop.permute.xlu1 %3557  ;;  %v3636_v54 = vmul.f32 %v6825_v49, %v9494_v48 }
0x1da5   :  { %v3635_v52 = vmul.f32 %v6826_v15, %v9496_v27 }
0x1da6   :  { %v3652_v31 = vsel %vm56_vm0, %v3636_v54, 0.0 }
0x1da7   :  { %v3651_v30 = vsel %vm56_vm0, %v3635_v52, 0.0 }
0x1da8   :  { %v3653_v14 = vadd.f32 %v3652_v31, %v3651_v30  ;;  %v3696_v31 = vsel %vm56_vm0, %v3645_v8, 0.0 }
0x1daa   :  { %v3654_v49 = vrot.slane %v3653_v14, 4 }
0x1dab   :  { %v9498_v10 = vpop.permute.xlu0 %3572 }
0x1dac   :  { %v9500_v47 = vpop.permute.xlu1 %3567  ;;  %v3638_v5 = vmul.f32 %v6827_v35, %v9498_v10 }
0x1dad   :  { %v3637_v3 = vmul.f32 %v6828_v37, %v9500_v47 }
0x1dae   :  { %v3661_v4 = vsel %vm56_vm0, %v3638_v5, 0.0 }
0x1daf   :  { %v3660_v60 = vsel %vm56_vm0, %v3637_v3, 0.0 }
0x1db0   :  { %v3662_v16 = vadd.f32 %v3661_v4, %v3660_v60  ;;  %v3833_v4 = vperm.slane %v9496_v27, %v7258_v36 }
0x1db2   :  { %v3663_v37 = vrot.slane %v3662_v16, 4 }
0x1db3   :  { %v9502_v39 = vpop.permute.xlu0 %3582 }
0x1db4   :  { %v9504_v40 = vpop.permute.xlu1 %3577  ;;  %v3640_v59 = vmul.f32 %v6829_v51, %v9502_v39  ;;  %v6836_v51 = vld [vmem:[%s11110_s0 + $0x58] sm:$0xff] }
0x1db5   :  { %v3639_v9 = vmul.f32 %v6830_v32, %v9504_v40  ;;  %v3834_v32 = vperm.slane %v9494_v48, %v7263_v20  ;;  %v3848_v48 = vperm.slane %v9542_v25, %v7258_v36 }
0x1db6   :  { %v3670_v6 = vsel %vm56_vm0, %v3640_v59, 0.0 }
0x1db7   :  { %v3669_v57 = vsel %vm56_vm0, %v3639_v9, 0.0  ;;  %v3655_v9 = vadd.f32 %v3654_v49, %v3653_v14  ;;  %v3835_v27 = vsel %vm473_vm10, %v3834_v32, %v3833_v4  ;;  %v3839_v49 = vperm.slane %v9504_v40, %v7258_v36 }
0x1db8   :  { %v3671_v52 = vadd.f32 %v3670_v6, %v3669_v57 }
0x1db9   :  { %v3656_v14 = vrot.slane %v3655_v9, 2 }
0x1dbb   :  { %v9506_v46 = vpop.permute.xlu0 %3592 }
0x1dbc   :  { %v9508_v17 = vpop.permute.xlu1 %3587  ;;  %v3642_v24 = vmul.f32 %v6831_v56, %v9506_v46 }
0x1dbd   :  { %v3641_v43 = vmul.f32 %v6832_v22, %v9508_v17  ;;  %v3836_v22 = vperm.slane %v9500_v47, %v7258_v36 }
0x1dbe   :  { %v3679_v54 = vsel %vm56_vm0, %v3642_v24, 0.0  ;;  %v3837_v24 = vperm.slane %v9498_v10, %v7263_v20  ;;  %v6837_v10 = vld [vmem:[%s11110_s0 + $0x60] sm:$0xff] }
0x1dbf   :  { %v3678_v15 = vsel %vm56_vm0, %v3641_v43, 0.0  ;;  %v3672_v43 = vrot.slane %v3671_v52, 4 }
0x1dc0   :  { %v3680_v30 = vadd.f32 %v3679_v54, %v3678_v15  ;;  %v3838_v57 = vsel %vm473_vm10, %v3837_v24, %v3836_v22  ;;  %v3843_v15 = vperm.slane %v9506_v46, %v7263_v20 }
0x1dc1   :  { %v3673_v13 = vadd.f32 %v3672_v43, %v3671_v52  ;;  %v3842_v52 = vperm.slane %v9508_v17, %v7258_v36 }
0x1dc3   :  { %v9536_v11 = vpop.permute.xlu0 %3602 }
0x1dc4   :  { %v9538_v55 = vpop.permute.xlu1 %3597  ;;  %v3644_v42 = vmul.f32 %v6833_v63, %v9536_v11 }
0x1dc5   :  { %v3643_v38 = vmul.f32 %v6834_v62, %v9538_v55  ;;  %v3845_v40 = vperm.slane %v9538_v55, %v7258_v36  ;;  %v3844_v55 = vsel %vm473_vm10, %v3843_v15, %v3842_v52 }
0x1dc6   :  { %v3688_v35 = vsel %vm56_vm0, %v3644_v42, 0.0  ;;  %v3664_v42 = vadd.f32 %v3663_v37, %v3662_v16  ;;  %v3840_v16 = vperm.slane %v9502_v39, %v7263_v20  ;;  %v3846_v39 = vperm.slane %v9536_v11, %v7263_v20 }
0x1dc7   :  { %v3687_v5 = vsel %vm56_vm0, %v3643_v38, 0.0  ;;  %v3681_v38 = vrot.slane %v3680_v30, 4  ;;  %v3857_v11 = vsel %vm153_vm2, %v3838_v57, %v3835_v27 }
0x1dc8   :  { %v3689_v60 = vadd.f32 %v3688_v35, %v3687_v5  ;;  %v3665_v8 = vrot.slane %v3664_v42, 2  ;;  %v6838_v5 = vld [vmem:[%s11110_s0 + $0x68] sm:$0xff]  ;;  %v3841_v32 = vsel %vm473_vm10, %v3840_v16, %v3839_v49 }
0x1dc9   :  { %v3682_v35 = vadd.f32 %v3681_v38, %v3680_v30  ;;  %v3847_v38 = vsel %vm473_vm10, %v3846_v39, %v3845_v40 }
0x1dca   :  { %v3690_v6 = vrot.slane %v3689_v60, 4  ;;  %v3666_v43 = vadd.f32 %v3665_v8, %v3664_v42  ;;  %v6839_v42 = vld [vmem:[%s11110_s0 + $0x70] sm:$0xff] }
0x1dcb   :  { %v3618_v56 = vpop.permute.xlu0 %3617 }
0x1dcc   :  { %v3613_v3 = vpop.permute.xlu1 %3612  ;;  %v3647_v47 = vmul.f32 %v6837_v10, %v3618_v56  ;;  %v3858_v10 = vsel %vm155_vm3, %v3841_v32, %v3857_v11 }
0x1dcd   :  { %v3646_v59 = vmul.f32 %v6836_v51, %v3613_v3  ;;  %v3691_v51 = vadd.f32 %v3690_v6, %v3689_v60  ;;  %v3849_v30 = vperm.slane %v3613_v3, %v7263_v20  ;;  %v3683_v60 = vrot.slane %v3682_v35, 2 }
0x1dce   :  { %v3705_v46 = vsel %vm56_vm0, %v3647_v47, 0.0  ;;  %v3851_v3 = vperm.slane %v3618_v56, %v7258_v36  ;;  %v3859_v27 = vsel %vm157_vm4, %v3844_v55, %v3858_v10 }
0x1dcf   :  { %v3697_v63 = vsel %vm56_vm0, %v3646_v59, 0.0  ;;  %v3674_v59 = vrot.slane %v3673_v13, 2  ;;  %v3860_v56 = vsel %vm159_vm5, %v3847_v38, %v3859_v27  ;;  %v3684_v15 = vadd.f32 %v3683_v60, %v3682_v35 }
0x1dd0   :  { %v3698_v62 = vadd.f32 %v3697_v63, %v3696_v31  ;;  %v3657_v31 = vadd.f32 %v3656_v14, %v3655_v9  ;;  %v3692_v63 = vrot.slane %v3691_v51, 2 }
0x1dd1   :  { %v3675_v6 = vadd.f32 %v3674_v59, %v3673_v13 }
0x1dd2   :  { %v3699_v25 = vrot.slane %v3698_v62, 4  ;;  %v3693_v52 = vadd.f32 %v3692_v63, %v3691_v51  ;;  %v3658_v35 = vrot.slane %v3657_v31, 1  ;;  %v3685_v51 = vrot.slane %v3684_v15, 1 }
0x1dd3   :  { %v3628_v24 = vpop.permute.xlu0 %3627 }
0x1dd4   :  { %v3623_v54 = vpop.permute.xlu1 %3622  ;;  %v3700_v4 = vadd.f32 %v3699_v25, %v3698_v62  ;;  %v3850_v62 = vsel %vm473_vm10, %v3849_v30, %v3848_v48  ;;  %v3649_v47 = vmul.f32 %v6839_v42, %v3628_v24  ;;  %v3854_v13 = vperm.slane %v3628_v24, %v7258_v36  ;;  %v6840_v48 = vld [vmem:[%s11110_s0 + $0x78] sm:$0xff] }
0x1dd5   :  { %v3648_v37 = vmul.f32 %v6838_v5, %v3623_v54  ;;  %v3852_v9 = vperm.slane %v3623_v54, %v7263_v20  ;;  %v3861_v5 = vsel %vm161_vm6, %v3850_v62, %v3860_v56  ;;  %v3667_v30 = vrot.slane %v3666_v43, 1 }
0x1dd6   :  { %v3701_v57 = vrot.slane %v3700_v4, 2  ;;  %v3714_v39 = vsel %vm56_vm0, %v3649_v47, 0.0  ;;  %v3694_v60 = vrot.slane %v3693_v52, 1  ;;  %v3686_v10 = vadd.f32 %v3685_v51, %v3684_v15 }
0x1dd7   :  { %v3706_v17 = vsel %vm56_vm0, %v3648_v37, 0.0  ;;  %v3853_v16 = vsel %vm473_vm10, %v3852_v9, %v3851_v3  ;;  %v3668_v55 = vadd.f32 %v3667_v30, %v3666_v43  ;;  %v6844_v30 = vld [vmem:[%s11109_s1 + $0xb0] sm:$0xff] }
0x1dd8   :  { %v3707_v22 = vadd.f32 %v3706_v17, %v3705_v46  ;;  %v3862_v40 = vsel %vm163_vm7, %v3853_v16, %v3861_v5  ;;  %v3702_v17 = vadd.f32 %v3701_v57, %v3700_v4  ;;  %v3659_v4 = vadd.f32 %v3658_v35, %v3657_v31 }
0x1dd9   :  { %v3695_v42 = vadd.f32 %v3694_v60, %v3693_v52 }
0x1dda   :  { %v3708_v14 = vrot.slane %v3707_v22, 4  ;;  %v3703_v63 = vrot.slane %v3702_v17, 1  ;;  %v3731_v57 = vsel %vm153_vm2, %v3668_v55, %v3659_v4 }
0x1ddc   :  { %v3709_v8 = vadd.f32 %v3708_v14, %v3707_v22  ;;  %v3633_v49 = vpop.permute.xlu1 %3632  ;;  %v3676_v22 = vrot.slane %v3675_v6, 1  ;;  %v3704_v47 = vadd.f32 %v3703_v63, %v3702_v17 }
0x1ddd   :  { %v3650_v25 = vmul.f32 %v6840_v48, %v3633_v49  ;;  %v3855_v54 = vperm.slane %v3633_v49, %v7263_v20 }
0x1dde   :  { %v3710_v37 = vrot.slane %v3709_v8, 2  ;;  %v3677_v3 = vadd.f32 %v3676_v22, %v3675_v6 }
0x1ddf   :  { %v3715_v59 = vsel %vm56_vm0, %v3650_v25, 0.0  ;;  %v3856_v46 = vsel %vm473_vm10, %v3855_v54, %v3854_v13 }
0x1de0   :  { %v3716_v32 = vadd.f32 %v3715_v59, %v3714_v39  ;;  %v3863_v24 = vsel %vm165_vm8, %v3856_v46, %v3862_v40  ;;  %v3711_v9 = vadd.f32 %v3710_v37, %v3709_v8  ;;  %v3732_v16 = vsel %vm155_vm3, %v3677_v3, %v3731_v57  ;;  %v6843_v46 = vld [vmem:[%s11109_s1 + $0xb8] sm:$0xff] }
0x1de1   :  { %6060 = vst.msk [vmem:[%s11111_s3 + $0x20] sm:$0xff] %vm56_vm0, %v3863_v24  ;;  %v3733_v56 = vsel %vm157_vm4, %v3686_v10, %v3732_v16 }
0x1de2   :  { %v3717_v11 = vrot.slane %v3716_v32, 4  ;;  %v3712_v14 = vrot.slane %v3711_v9, 1  ;;  %v3734_v43 = vsel %vm159_vm5, %v3695_v42, %v3733_v56 }
0x1de3   :  { %v3735_v6 = vsel %vm161_vm6, %v3704_v47, %v3734_v43 }
0x1de4   :  { %v3718_v38 = vadd.f32 %v3717_v11, %v3716_v32  ;;  %v3713_v8 = vadd.f32 %v3712_v14, %v3711_v9  ;;  %v6845_v32 = vld [vmem:[%s11109_s1 + $0x50] ss:$0 sm:$0xff] }
0x1de6   :  { %v3719_v62 = vrot.slane %v3718_v38, 2  ;;  %v3736_v31 = vsel %vm163_vm7, %v3713_v8, %v3735_v6  ;;  %v6848_v6 = vld [vmem:[%s11109_s1 + $0x40] sm:$0xff] }
0x1de8   :  { %v3720_v27 = vadd.f32 %v3719_v62, %v3718_v38 }
0x1dea   :  { %v3721_v49 = vrot.slane %v3720_v27, 1 }
0x1dec   :  { %v3722_v13 = vadd.f32 %v3721_v49, %v3720_v27 }
0x1dee   :  { %v3737_v48 = vsel %vm165_vm8, %v3722_v13, %v3736_v31  ;;  %v6847_v13 = vld [vmem:[%s11109_s1 + $0xa0] sm:$0xff]  ;;  %v6849_v31 = vld [vmem:[%s11109_s1 + $0x98] sm:$0xff] }
0x1def   :  { %3738 = vrot.lane.b32.xlu1 %v3737_v48, %s6935_s11  ;;  %v6850_v48 = vld [vmem:[%s11109_s1 + $0x38] sm:$0xff] }
0x1df7   :  { %3741 = vrot.lane.b32.xlu1 %v9181_v34, %s6938_s22  ;;  %v6841_v34 = vld [vmem:[%s11109_s1 + $0xc8] sm:$0xff] }
0x1dfe   :  { %v3157_v25 = vpop.xlane.xlu0 %3156 }
0x1dff   :  { %vm3158_vm1 = vcmp.eq.f32.partialorder %v9232_v21, %v3157_v25  ;;  %v6842_v21 = vld [vmem:[%s11109_s1 + $0xc0] sm:$0xff]  ;;  %v6851_v25 = vld [vmem:[%s11109_s1 + $0x90] sm:$0xff] }
0x1e00   :  { %v3159_v54 = vsel %vm3158_vm1, %v7690_v53, 32.0 }
0x1e01   :  { %v3160_v15 = vsel %vm309_vm9, %v3159_v54, inf  ;;  %v6852_v54 = vld [vmem:[%s11109_s1 + $0x30] sm:$0xff] }
0x1e02   :  { %3161 = vmin.xlane.f32.xlu2 %v3160_v15  ;;  %v6853_v15 = vld [vmem:[%s11109_s1 + $0x88] sm:$0xff] }
0x1e61   :  { %v3739_v52 = vpop.permute.xlu1 %3738 }
0x1e69   :  { %v3742_v39 = vpop.permute.xlu1 %3741 }
0x1e75   :  { %v3162_v5 = vpop.xlane.xlu2 %3161 }
0x1e76   :  { %vm3163_vm11 = vcmp.eq.f32.partialorder %v7690_v53, %v3162_v5  ;;  %v6855_v5 = vld [vmem:[%s11109_s1 + $0x20] sm:$0xff] }
0x1e77   :  { %v6054_v37 = vsel %vm3163_vm11, 1.0, %v6936_v0 }
0x1e78   :  { %v3744_v40 = vsel %vm309_vm9, %v6054_v37, %v3739_v52  ;;  %v6854_v52 = vld [vmem:[%s11109_s1 + $0x28] sm:$0xff]  ;;  %v6856_v37 = vld [vmem:[%s11109_s1 + $0x18] sm:$0xff] }
0x1e79   :  { %v3745_v59 = vsel %vm895_vm12, %v3744_v40, %v3742_v39  ;;  %v6857_v39 = vld [vmem:[%s11109_s1 + $0x10] sm:$0xff]  ;;  %v6858_v40 = vld [vmem:[%s11109_s1 + $0x8] sm:$0xff] }
0x1e7a   :  { %6056 = vmatmul.msk.f32.vlgmr.msra.gmra.mxu0 %vm898_vm13, %v3745_v59  ;;  %v6859_v59 = vld [vmem:[%s11109_s1] sm:$0xff] }
0x1e7b   :  { %5247 = vmatpush.msra.mxu0 %v6841_v34 }
0x1e7d   :  { %5248 = vmatpush.msra.mxu0 %v6842_v21 }
0x1e7f   :  { %5249 = vmatpush.msra.mxu0 %v6843_v46  ;;  %v6860_v46 = vld [vmem:[%s11109_s1 + $0xd0] ss:$0 sm:$0xff] }
0x1e81   :  { %5250 = vmatpush.msra.mxu0 %v6844_v30 }
0x1ef7   :  { %v3766_v17 = vpop.f32.mrf.mxu0 }
0x1ef8   :  { %v3767_v24 = vadd.f32 %v6845_v32, %v3766_v17 }
0x1efa   :  { %6463 = vtanh.f32 %v3767_v24  ;;  %v6057_v9 = vmul.f32 -1.442695, %v3767_v24 }
0x1efc   :  { %6465 = vpow2.f32 %v6057_v9 }
0x1f00   :  { %v6464_v22 = vpop.eup %6463 }
0x1f01   :  { %3791 = vrot.lane.b32.xlu1 %v6464_v22, %s6937_s24 }
0x1f02   :  { %v6466_v35 = vpop.eup %6465 }
0x1f03   :  { %v3772_v51 = vadd.f32 1.0, %v6466_v35 }
0x1f05   :  { %6467 = vrcp.f32 %v3772_v51  ;;  %v3784_v3 = vand.u32 2147483648, %v3772_v51  ;;  %vm3778_vm15 = vweird.f32 %v3772_v51  ;;  %v3782_v14 = vand.u32 2147483647, %v3772_v51 }
0x1f07   :  { %v3785_v10 = vor.u32 1.1754944e-38, %v3784_v3  ;;  %vm3783_vm11 = vcmp.eq.f32.partialorder %v3782_v14, 8.507059e+37 }
0x1f0b   :  { %v6468_v11 = vpop.eup %6467 }
0x1f0c   :  { %v3774_v60 = vmul.f32 %v6468_v11, %v3772_v51  ;;  %vm3779_vm14 = vweird.f32 %v6468_v11 }
0x1f0d   :  { %vm3780_vm1 = vmor %vm3778_vm15, %vm3779_vm14 }
0x1f0e   :  { %v3775_v55 = vsub.f32 1.0, %v3774_v60 }
0x1f10   :  { %v3776_v63 = vmul.f32 %v6468_v11, %v3775_v55 }
0x1f12   :  { %v3777_v38 = vadd.f32 %v6468_v11, %v3776_v63 }
0x1f14   :  { %v3781_v4 = vsel %vm3780_vm1, %v6468_v11, %v3777_v38 }
0x1f15   :  { %v3786_v42 = vsel %vm3783_vm11, %v3785_v10, %v3781_v4 }
0x1f16   :  { %v3789_v27 = vmul.f32 %v3786_v42, %v9177_v1  ;;  %v6846_v1 = vld [vmem:[%s11109_s1 + $0x48] sm:$0xff] }
0x1f73   :  { %v3792_v62 = vpop.permute.xlu1 %3791 }
0x1f74   :  { %v3794_v47 = vmul.f32 %v3792_v62, %v3786_v42 }
0x1f76   :  { %3796 = vrot.lane.b32.xlu1 %v3794_v47, %s6935_s11 }
0x1fe8   :  { %v3797_v57 = vpop.permute.xlu1 %3796 }
0x1fe9   :  { %v9673_v8 = vadd.f32 %v3797_v57, %v3789_v27  ;;  %v9757_v27 = vld [vmem:[%s11109_s1 + $0xa8] ss:$0 sm:$0xff] }
0x1feb   :  { %6469 = vtanh.f32 %v9673_v8 }
0x1ff1   :  { %v6470_v16 = vpop.eup %6469 }
0x1ff2   :  { %3802 = vrot.lane.b32.xlu1 %v6470_v16, %s6937_s24 }
0x2064   :  { %v3803_v49 = vpop.permute.xlu1 %3802 }
0x2065   :  { %v9677_v56 = vmul.f32 %v3803_v49, %v3786_v42 }
0x2067   :  { %3807 = vrot.lane.b32.xlu0 %v9677_v56, %s6935_s11 }
0x20d9   :  { %v3808_v43 = vpop.permute.xlu0 %3807 }
0x20da   :  { %6058 = vmatmul.msk.f32.vlgmr.msra.gmra.mxu2 %vm309_vm9, %v3808_v43  ;;  %6062 = vmatmul.msk.f32.vlgmr.msrb.gmra.mxu3 %vm309_vm9, %v3808_v43 }
0x20db   :  { %5179 = vmatpush.msrb.mxu3 %v6846_v1  ;;  %5314 = vmatpush.msra.mxu2 %v6847_v13 }
0x20dd   :  { %5180 = vmatpush.msrb.mxu3 %v6848_v6  ;;  %5315 = vmatpush.msra.mxu2 %v6849_v31 }
0x20df   :  { %5181 = vmatpush.msrb.mxu3 %v6850_v48  ;;  %5316 = vmatpush.msra.mxu2 %v6851_v25 }
0x20e1   :  { %5182 = vmatpush.msrb.mxu3 %v6852_v54  ;;  %5317 = vmatpush.msra.mxu2 %v6853_v15 }
0x20e3   :  { %5183 = vmatpush.msrb.mxu3 %v6854_v52 }
0x20e5   :  { %5184 = vmatpush.msrb.mxu3 %v6855_v5 }
0x20e7   :  { %5185 = vmatpush.msrb.mxu3 %v6856_v37 }
0x20e9   :  { %5186 = vmatpush.msrb.mxu3 %v6857_v39 }
0x20eb   :  { %5187 = vmatpush.msrb.mxu3 %v6858_v40 }
0x20ed   :  { %5188 = vmatpush.msrb.mxu3 %v6859_v59 }
0x215d   :  { %v3828_v34 = vpop.f32.mrf.mxu2  ;;  %v9725_v21 = vpop.f32.mrf.mxu3 }
0x215e   :  { %v9730_v30 = vadd.f32 %v6860_v46, %v3828_v34  ;;  %v3906_v17 = vperm.slane %v9725_v21, 0  ;;  %v3900_v32 = vrot.slane %v9725_v21, 2  ;;  %v3902_v24 = vrot.slane %v9725_v21, 4 }
0x215f   :  { %v3899_v22 = vrot.slane %v9725_v21, 1  ;;  %v3904_v9 = vrot.slane %v9725_v21, 6  ;;  %v3903_v14 = vrot.slane %v9725_v21, 5  ;;  %v3905_v40 = vrot.slane %v9725_v21, 7 }
0x2160   :  { %6059 = vst.msk [vmem:[%s11112_s2 + $0x20] sm:$0xff] %vm309_vm9, %v9730_v30  ;;  %v3923_v35 = vadd.f32 %v3906_v17, %v7144_v18  ;;  %v3922_v51 = vadd.f32 %v3906_v17, %v7138_v12  ;;  %v3908_v11 = vperm.slane %v3900_v32, 0  ;;  %v9744_v60 = vperm.slane %v3902_v24, 0 }
0x2161   :  { %v3907_v55 = vperm.slane %v3899_v22, 0  ;;  %v3912_v63 = vperm.slane %v3904_v9, 0  ;;  %v9752_v62 = vperm.slane %v3903_v14, 0  ;;  %v3901_v46 = vrot.slane %v9725_v21, 3 }
0x2162   :  { %6471 = vtanh.f32 %v3923_v35  ;;  %v3926_v38 = vadd.f32 %v3908_v11, %v7150_v23  ;;  %v3930_v3 = vadd.f32 %v9744_v60, %v7176_v44  ;;  %v3927_v34 = vadd.f32 %v3908_v11, %v7154_v28 }
0x2163   :  { %6473 = vtanh.f32 %v3922_v51  ;;  %v3924_v4 = vadd.f32 %v3907_v55, %v7147_v19  ;;  %v3935_v10 = vadd.f32 %v3912_v63, %v7218_v29  ;;  %v3932_v43 = vadd.f32 %v9752_v62, %v7198_v7 }
0x2164   :  { %6475 = vtanh.f32 %v3926_v38  ;;  %v3925_v6 = vadd.f32 %v3907_v55, %v7161_v33  ;;  %v3934_v39 = vadd.f32 %v3912_v63, %v7210_v2  ;;  %v3913_v9 = vperm.slane %v3905_v40, 0 }
0x2165   :  { %6477 = vtanh.f32 %v3930_v3  ;;  %v3909_v51 = vperm.slane %v3901_v46, 0 }
0x2166   :  { %6479 = vtanh.f32 %v3924_v4  ;;  %v3937_v11 = vadd.f32 %v3913_v9, %v7228_v45 }
0x2167   :  { %6481 = vtanh.f32 %v3935_v10  ;;  %v3928_v63 = vadd.f32 %v3909_v51, %v7172_v41 }
0x2168   :  { %v6472_v42 = vpop.eup %6471  ;;  %6483 = vtanh.f32 %v3932_v43 }
0x2169   :  { %v6474_v47 = vpop.eup %6473  ;;  %v3955_v57 = vmul.f32 %v9757_v27, %v6472_v42  ;;  %6485 = vtanh.f32 %v3925_v6  ;;  %v3931_v6 = vadd.f32 %v9744_v60, %v7190_v58  ;;  %v3936_v60 = vadd.f32 %v3913_v9, %v7215_v26 }
0x216a   :  { %v6476_v16 = vpop.eup %6475  ;;  %v3954_v49 = vmul.f32 %v9757_v27, %v6474_v47  ;;  %6487 = vtanh.f32 %v3934_v39  ;;  %v3929_v47 = vadd.f32 %v3909_v51, %v7180_v50 }
0x216b   :  { %v3973_v1 = vsel %vm56_vm0, %v3955_v57, 0.0  ;;  %v3958_v13 = vmul.f32 %v9757_v27, %v6476_v16  ;;  %v6478_v31 = vpop.eup %6477  ;;  %6489 = vtanh.f32 %v3927_v34 }
0x216c   :  { %3974 = vadd.xlane.f32.xlu1 %v3973_v1  ;;  %v3970_v48 = vsel %vm56_vm0, %v3954_v49, 0.0  ;;  %v6480_v25 = vpop.eup %6479  ;;  %v3962_v52 = vmul.f32 %v9757_v27, %v6478_v31  ;;  %6491 = vtanh.f32 %v3937_v11 }
0x216d   :  { %3971 = vadd.xlane.f32.xlu2 %v3970_v48  ;;  %v3982_v54 = vsel %vm56_vm0, %v3958_v13, 0.0  ;;  %v6482_v15 = vpop.eup %6481  ;;  %v3956_v5 = vmul.f32 %v9757_v27, %v6480_v25  ;;  %6493 = vtanh.f32 %v3928_v63 }
0x216e   :  { %3983 = vadd.xlane.f32.xlu0 %v3982_v54  ;;  %v3967_v37 = vmul.f32 %v9757_v27, %v6482_v15  ;;  %v3994_v59 = vsel %vm56_vm0, %v3962_v52, 0.0  ;;  %v6484_v17 = vpop.eup %6483  ;;  %6495 = vtanh.f32 %v3929_v47  ;;  %v3933_v54 = vadd.f32 %v9752_v62, %v7195_v61 }
0x216f   :  { %v3976_v32 = vsel %vm56_vm0, %v3956_v5, 0.0  ;;  %v6486_v24 = vpop.eup %6485  ;;  %v3964_v35 = vmul.f32 %v9757_v27, %v6484_v17  ;;  %6497 = vtanh.f32 %v3931_v6 }
0x2170   :  { %v4009_v22 = vsel %vm56_vm0, %v3967_v37, 0.0  ;;  %v3957_v55 = vmul.f32 %v9757_v27, %v6486_v24  ;;  %v6488_v38 = vpop.eup %6487  ;;  %6499 = vtanh.f32 %v3933_v54 }
0x2171   :  { %v4000_v21 = vsel %vm56_vm0, %v3964_v35, 0.0  ;;  %v6490_v14 = vpop.eup %6489  ;;  %v3966_v4 = vmul.f32 %v9757_v27, %v6488_v38  ;;  %6501 = vtanh.f32 %v3936_v60 }
0x2172   :  { %v3979_v3 = vsel %vm56_vm0, %v3957_v55, 0.0  ;;  %v3959_v10 = vmul.f32 %v9757_v27, %v6490_v14  ;;  %v6492_v57 = vpop.eup %6491 }
0x2173   :  { %v4006_v42 = vsel %vm56_vm0, %v3966_v4, 0.0  ;;  %v6494_v49 = vpop.eup %6493  ;;  %v3969_v43 = vmul.f32 %v9757_v27, %v6492_v57 }
0x2174   :  { %3995 = vadd.xlane.f32.xlu1 %v3994_v59  ;;  %v3985_v16 = vsel %vm56_vm0, %v3959_v10, 0.0  ;;  %v3960_v1 = vmul.f32 %v9757_v27, %v6494_v49  ;;  %v6496_v48 = vpop.eup %6495 }
0x2175   :  { %3977 = vadd.xlane.f32.xlu2 %v3976_v32  ;;  %v4015_v13 = vsel %vm56_vm0, %v3969_v43, 0.0  ;;  %v3961_v25 = vmul.f32 %v9757_v27, %v6496_v48  ;;  %v6498_v52 = vpop.eup %6497 }
0x2176   :  { %4010 = vadd.xlane.f32.xlu0 %v4009_v22  ;;  %v3988_v31 = vsel %vm56_vm0, %v3960_v1, 0.0  ;;  %v3963_v5 = vmul.f32 %v9757_v27, %v6498_v52  ;;  %v6500_v39 = vpop.eup %6499 }
0x2177   :  { %v3991_v15 = vsel %vm56_vm0, %v3961_v25, 0.0  ;;  %v3965_v40 = vmul.f32 %v9757_v27, %v6500_v39  ;;  %v6502_v34 = vpop.eup %6501 }
0x2178   :  { %v3997_v37 = vsel %vm56_vm0, %v3963_v5, 0.0  ;;  %v3968_v62 = vmul.f32 %v9757_v27, %v6502_v34 }
0x2179   :  { %v4003_v59 = vsel %vm56_vm0, %v3965_v40, 0.0 }
0x217a   :  { %v4012_v46 = vsel %vm56_vm0, %v3968_v62, 0.0 }
0x217c   :  { %4001 = vadd.xlane.f32.xlu1 %v4000_v21 }
0x217d   :  { %3980 = vadd.xlane.f32.xlu2 %v3979_v3 }
0x2184   :  { %4007 = vadd.xlane.f32.xlu1 %v4006_v42 }
0x2185   :  { %3986 = vadd.xlane.f32.xlu2 %v3985_v16 }
0x218c   :  { %4016 = vadd.xlane.f32.xlu1 %v4015_v13 }
0x218d   :  { %3989 = vadd.xlane.f32.xlu2 %v3988_v31 }
0x2195   :  { %3992 = vadd.xlane.f32.xlu2 %v3991_v15 }
0x219d   :  { %3998 = vadd.xlane.f32.xlu2 %v3997_v37 }
0x21a5   :  { %4004 = vadd.xlane.f32.xlu2 %v4003_v59 }
0x21ad   :  { %4013 = vadd.xlane.f32.xlu2 %v4012_v46 }
0x21df   :  { %v3975_v22 = vpop.xlane.xlu1 %3974 }
0x21e0   :  { %v3972_v17 = vpop.xlane.xlu2 %3971  ;;  %v4035_v14 = vperm.slane %v3975_v22, %v7263_v20 }
0x21e1   :  { %v3984_v63 = vpop.xlane.xlu0 %3983  ;;  %v4034_v4 = vperm.slane %v3972_v17, %v7258_v36 }
0x21e2   :  { %v4040_v47 = vperm.slane %v3984_v63, %v7258_v36 }
0x21e3   :  { %v4036_v31 = vsel %vm473_vm10, %v4035_v14, %v4034_v4 }
0x21e7   :  { %v9806_v35 = vpop.xlane.xlu1 %3995 }
0x21e8   :  { %v3978_v32 = vpop.xlane.xlu2 %3977  ;;  %v4046_v13 = vperm.slane %v9806_v35, %v7258_v36 }
0x21e9   :  { %v4037_v10 = vperm.slane %v3978_v32, %v7258_v36  ;;  %v9844_v52 = vpop.xlane.xlu0 %4010 }
0x21ea   :  { %v4053_v34 = vperm.slane %v9844_v52, %v7263_v20 }
0x21ef   :  { %v9812_v11 = vpop.xlane.xlu1 %4001 }
0x21f0   :  { %v3981_v24 = vpop.xlane.xlu2 %3980  ;;  %v4049_v48 = vperm.slane %v9812_v11, %v7258_v36 }
0x21f1   :  { %v4038_v38 = vperm.slane %v3981_v24, %v7263_v20 }
0x21f3   :  { %v4039_v49 = vsel %vm473_vm10, %v4038_v38, %v4037_v10 }
0x21f4   :  { %v4058_v54 = vsel %vm153_vm2, %v4039_v49, %v4036_v31 }
0x21f7   :  { %v9816_v27 = vpop.xlane.xlu1 %4007 }
0x21f8   :  { %v3987_v9 = vpop.xlane.xlu2 %3986  ;;  %v4052_v37 = vperm.slane %v9816_v27, %v7258_v36 }
0x21f9   :  { %v4041_v3 = vperm.slane %v3987_v9, %v7263_v20 }
0x21fa   :  { %v4054_v14 = vsel %vm473_vm10, %v4053_v34, %v4052_v37 }
0x21fb   :  { %v4042_v6 = vsel %vm473_vm10, %v4041_v3, %v4040_v47 }
0x21fc   :  { %v4059_v5 = vsel %vm155_vm3, %v4042_v6, %v4058_v54 }
0x21ff   :  { %v9850_v39 = vpop.xlane.xlu1 %4016 }
0x2200   :  { %v9808_v51 = vpop.xlane.xlu2 %3989  ;;  %v4056_v38 = vperm.slane %v9850_v39, %v7263_v20 }
0x2201   :  { %v4043_v43 = vperm.slane %v9808_v51, %v7258_v36 }
0x2208   :  { %v9810_v55 = vpop.xlane.xlu2 %3992 }
0x2209   :  { %v4044_v42 = vperm.slane %v9810_v55, %v7263_v20 }
0x220b   :  { %v4045_v25 = vsel %vm473_vm10, %v4044_v42, %v4043_v43 }
0x220c   :  { %v4060_v40 = vsel %vm157_vm4, %v4045_v25, %v4059_v5 }
0x2210   :  { %v9814_v21 = vpop.xlane.xlu2 %3998 }
0x2211   :  { %v4047_v57 = vperm.slane %v9814_v21, %v7263_v20 }
0x2213   :  { %v4048_v15 = vsel %vm473_vm10, %v4047_v57, %v4046_v13 }
0x2214   :  { %v4061_v59 = vsel %vm159_vm5, %v4048_v15, %v4060_v40 }
0x2218   :  { %v9828_v16 = vpop.xlane.xlu2 %4004 }
0x2219   :  { %v4050_v1 = vperm.slane %v9828_v16, %v7263_v20 }
0x221b   :  { %v4051_v60 = vsel %vm473_vm10, %v4050_v1, %v4049_v48 }
0x221c   :  { %v4062_v46 = vsel %vm161_vm6, %v4051_v60, %v4061_v59 }
0x221d   :  { %v4063_v10 = vsel %vm163_vm7, %v4054_v14, %v4062_v46 }
0x2220   :  { %v9856_v62 = vpop.xlane.xlu2 %4013 }
0x2221   :  { %v4055_v3 = vperm.slane %v9856_v62, %v7258_v36 }
0x2223   :  { %v4057_v4 = vsel %vm473_vm10, %v4056_v38, %v4055_v3 }
0x2224   :  { %v4064_v42 = vsel %vm165_vm8, %v4057_v4, %v4063_v10 }
0x2225   :  { %v4066_v47 = vsel %vm56_vm0, %v4064_v42, -inf }
0x2226   :  { %4067 = vmax.xlane.f32.xlu0 %v4066_v47 }
0x2299   :  { %v9868_v57 = vpop.xlane.xlu0 %4067 }
0x229a   :  { %v4070_v49 = vperm.slane %v9868_v57, 0  ;;  %v4071_v43 = vperm.slane %v9868_v57, 1  ;;  %v4072_v31 = vperm.slane %v9868_v57, 2  ;;  %v4073_v37 = vperm.slane %v9868_v57, 3 }
0x229b   :  { %v4074_v59 = vperm.slane %v9868_v57, 4  ;;  %v4075_v3 = vperm.slane %v9868_v57, 5 }
0x229c   :  { %v4086_v1 = vsub.f32 %v3972_v17, %v4070_v49  ;;  %v4087_v13 = vsub.f32 %v3975_v22, %v4070_v49  ;;  %v4088_v6 = vsub.f32 %v3978_v32, %v4071_v43  ;;  %v4089_v15 = vsub.f32 %v3981_v24, %v4071_v43 }
0x229d   :  { %v4091_v5 = vsub.f32 %v3987_v9, %v4072_v31  ;;  %v4090_v60 = vsub.f32 %v3984_v63, %v4072_v31  ;;  %v4092_v24 = vsub.f32 %v9808_v51, %v4073_v37  ;;  %v4094_v9 = vsub.f32 %v9806_v35, %v4074_v59 }
0x229e   :  { %v4102_v48 = vmul.f32 1.442695, %v4086_v1  ;;  %v4104_v25 = vmul.f32 1.442695, %v4087_v13  ;;  %v4106_v54 = vmul.f32 1.442695, %v4088_v6  ;;  %v4093_v63 = vsub.f32 %v9810_v55, %v4073_v37 }
0x229f   :  { %v4108_v40 = vmul.f32 1.442695, %v4089_v15  ;;  %v4112_v34 = vmul.f32 1.442695, %v4091_v5  ;;  %v4110_v32 = vmul.f32 1.442695, %v4090_v60  ;;  %v4095_v35 = vsub.f32 %v9814_v21, %v4074_v59 }
0x22a0   :  { %6503 = vpow2.f32 %v4102_v48  ;;  %v4114_v38 = vmul.f32 1.442695, %v4092_v24  ;;  %v4118_v14 = vmul.f32 1.442695, %v4094_v9  ;;  %v4116_v10 = vmul.f32 1.442695, %v4093_v63 }
0x22a1   :  { %6505 = vpow2.f32 %v4104_v25  ;;  %v4097_v55 = vsub.f32 %v9828_v16, %v4075_v3  ;;  %v4096_v47 = vsub.f32 %v9812_v11, %v4075_v3  ;;  %v4076_v49 = vperm.slane %v9868_v57, 6 }
0x22a2   :  { %6507 = vpow2.f32 %v4106_v54  ;;  %v4120_v43 = vmul.f32 1.442695, %v4095_v35  ;;  %v4077_v1 = vperm.slane %v9868_v57, 7 }
0x22a3   :  { %6509 = vpow2.f32 %v4108_v40  ;;  %v4124_v13 = vmul.f32 1.442695, %v4097_v55  ;;  %v4122_v21 = vmul.f32 1.442695, %v4096_v47  ;;  %v4098_v48 = vsub.f32 %v9816_v27, %v4076_v49 }
0x22a4   :  { %6511 = vpow2.f32 %v4112_v34  ;;  %v4100_v11 = vsub.f32 %v9856_v62, %v4077_v1  ;;  %v4099_v57 = vsub.f32 %v9844_v52, %v4076_v49  ;;  %v4101_v37 = vsub.f32 %v9850_v39, %v4077_v1 }
0x22a5   :  { %6513 = vpow2.f32 %v4110_v32  ;;  %v4126_v25 = vmul.f32 1.442695, %v4098_v48 }
0x22a6   :  { %v9875_v17 = vpop.eup %6503  ;;  %6515 = vpow2.f32 %v4114_v38  ;;  %v4130_v54 = vmul.f32 1.442695, %v4100_v11  ;;  %v4128_v5 = vmul.f32 1.442695, %v4099_v57  ;;  %v4132_v52 = vmul.f32 1.442695, %v4101_v37 }
0x22a7   :  { %v9877_v22 = vpop.eup %6505  ;;  %4151 = vperm.xlu2 %6091, %v9875_v17   ;;  %6517 = vpow2.f32 %v4118_v14 }
0x22a8   :  { %v9880_v46 = vpop.eup %6507  ;;  %4154 = vperm.xlu1 %6093, %v9877_v22   ;;  %6519 = vpow2.f32 %v4116_v10 }
0x22a9   :  { %4157 = vperm.xlu0 %6092, %v9880_v46   ;;  %v9888_v4 = vpop.eup %6509  ;;  %6521 = vpow2.f32 %v4120_v43 }
0x22aa   :  { %v9890_v42 = vpop.eup %6511  ;;  %6523 = vpow2.f32 %v4124_v13 }
0x22ab   :  { %v9893_v51 = vpop.eup %6513  ;;  %6525 = vpow2.f32 %v4122_v21 }
0x22ac   :  { %v9902_v6 = vpop.eup %6515  ;;  %6527 = vpow2.f32 %v4126_v25 }
0x22ad   :  { %v9904_v31 = vpop.eup %6517  ;;  %6529 = vpow2.f32 %v4130_v54 }
0x22ae   :  { %v9907_v16 = vpop.eup %6519  ;;  %6531 = vpow2.f32 %v4128_v5 }
0x22af   :  { %4160 = vperm.xlu2 %6091, %v9888_v4   ;;  %v9914_v15 = vpop.eup %6521  ;;  %6533 = vpow2.f32 %v4132_v52 }
0x22b0   :  { %4166 = vperm.xlu1 %6093, %v9890_v42   ;;  %v9916_v60 = vpop.eup %6523 }
0x22b1   :  { %4163 = vperm.xlu0 %6092, %v9893_v51   ;;  %v9919_v27 = vpop.eup %6525 }
0x22b2   :  { %v9924_v62 = vpop.eup %6527 }
0x22b3   :  { %v9926_v40 = vpop.eup %6529 }
0x22b4   :  { %v9929_v59 = vpop.eup %6531 }
0x22b5   :  { %v9933_v39 = vpop.eup %6533 }
0x22b7   :  { %4169 = vperm.xlu2 %6091, %v9902_v6  }
0x22b8   :  { %4175 = vperm.xlu1 %6093, %v9904_v31  }
0x22b9   :  { %4172 = vperm.xlu0 %6092, %v9907_v16  }
0x22bf   :  { %4178 = vperm.xlu2 %6091, %v9914_v15  }
0x22c0   :  { %4184 = vperm.xlu1 %6093, %v9916_v60  }
0x22c1   :  { %4181 = vperm.xlu0 %6092, %v9919_v27  }
0x22c7   :  { %4187 = vperm.xlu2 %6091, %v9924_v62  }
0x22c8   :  { %4193 = vperm.xlu1 %6093, %v9926_v40  }
0x22c9   :  { %4190 = vperm.xlu0 %6092, %v9929_v59  }
0x22cf   :  { %4196 = vperm.xlu2 %6091, %v9933_v39  }
0x2301   :  { %v4152_v34 = vpop.permute.xlu2 %4151 }
0x2302   :  { %v4198_v21 = vperm.slane %v4152_v34, %v7258_v36 }
0x2309   :  { %v4161_v32 = vpop.permute.xlu2 %4160 }
0x230a   :  { %v4202_v48 = vperm.slane %v4161_v32, %v7263_v20 }
0x2311   :  { %v4170_v24 = vpop.permute.xlu2 %4169 }
0x2312   :  { %v4207_v25 = vperm.slane %v4170_v24, %v7258_v36 }
0x2319   :  { %v4179_v14 = vpop.permute.xlu2 %4178 }
0x231a   :  { %v4155_v9 = vpop.permute.xlu1 %4154 }
0x231b   :  { %v4158_v63 = vpop.permute.xlu0 %4157  ;;  %v4199_v49 = vperm.slane %v4155_v9, %v7263_v20 }
0x231c   :  { %v4201_v47 = vperm.slane %v4158_v63, %v7258_v36 }
0x231d   :  { %v4200_v5 = vsel %vm473_vm10, %v4199_v49, %v4198_v21 }
0x231e   :  { %v4203_v54 = vsel %vm473_vm10, %v4202_v48, %v4201_v47 }
0x231f   :  { %v4222_v32 = vsel %vm153_vm2, %v4203_v54, %v4200_v5 }
0x2321   :  { %v4188_v55 = vpop.permute.xlu2 %4187 }
0x2322   :  { %v4167_v38 = vpop.permute.xlu1 %4166 }
0x2323   :  { %v4164_v3 = vpop.permute.xlu0 %4163  ;;  %v4205_v1 = vperm.slane %v4167_v38, %v7263_v20  ;;  %v4211_v38 = vperm.slane %v4179_v14, %v7263_v20 }
0x2324   :  { %v4204_v43 = vperm.slane %v4164_v3, %v7258_v36 }
0x2326   :  { %v4206_v37 = vsel %vm473_vm10, %v4205_v1, %v4204_v43 }
0x2327   :  { %v4223_v24 = vsel %vm155_vm3, %v4206_v37, %v4222_v32 }
0x2329   :  { %v4197_v3 = vpop.permute.xlu2 %4196 }
0x232a   :  { %v4176_v10 = vpop.permute.xlu1 %4175 }
0x232b   :  { %v4173_v35 = vpop.permute.xlu0 %4172  ;;  %v4210_v52 = vperm.slane %v4176_v10, %v7258_v36  ;;  %v4220_v10 = vperm.slane %v4197_v3, %v7263_v20 }
0x232c   :  { %v4208_v11 = vperm.slane %v4173_v35, %v7263_v20 }
0x232d   :  { %v4212_v47 = vsel %vm473_vm10, %v4211_v38, %v4210_v52 }
0x232e   :  { %v4209_v9 = vsel %vm473_vm10, %v4208_v11, %v4207_v25 }
0x232f   :  { %v4224_v35 = vsel %vm157_vm4, %v4209_v9, %v4223_v24 }
0x2330   :  { %v4225_v14 = vsel %vm159_vm5, %v4212_v47, %v4224_v35 }
0x2332   :  { %v4185_v13 = vpop.permute.xlu1 %4184 }
0x2333   :  { %v4182_v57 = vpop.permute.xlu0 %4181  ;;  %v4214_v34 = vperm.slane %v4185_v13, %v7263_v20  ;;  %v4216_v13 = vperm.slane %v4188_v55, %v7258_v36 }
0x2334   :  { %v4213_v63 = vperm.slane %v4182_v57, %v7258_v36 }
0x2336   :  { %v4215_v43 = vsel %vm473_vm10, %v4214_v34, %v4213_v63 }
0x2337   :  { %v4226_v25 = vsel %vm161_vm6, %v4215_v43, %v4225_v14 }
0x233a   :  { %v4194_v49 = vpop.permute.xlu1 %4193 }
0x233b   :  { %v4191_v1 = vpop.permute.xlu0 %4190  ;;  %v4219_v21 = vperm.slane %v4194_v49, %v7258_v36 }
0x233c   :  { %v4217_v48 = vperm.slane %v4191_v1, %v7263_v20 }
0x233d   :  { %v4221_v11 = vsel %vm473_vm10, %v4220_v10, %v4219_v21 }
0x233e   :  { %v4218_v57 = vsel %vm473_vm10, %v4217_v48, %v4216_v13 }
0x233f   :  { %v4227_v54 = vsel %vm163_vm7, %v4218_v57, %v4226_v25  ;;  %v6863_v25 = vld [vmem:[%s11110_s0 + $0x8] sm:$0xff] }
0x2340   :  { %v4228_v5 = vsel %vm165_vm8, %v4221_v11, %v4227_v54 }
0x2341   :  { %v4230_v37 = vsel %vm56_vm0, %v4228_v5, 0.0  ;;  %v6864_v5 = vld [vmem:[%s11110_s0 + $0x10] sm:$0xff] }
0x2342   :  { %4231 = vadd.xlane.f32.xlu0 %v4230_v37 }
0x23b5   :  { %v4232_v52 = vpop.xlane.xlu0 %4231 }
0x23b6   :  { %6535 = vrcp.f32 %v4232_v52 }
0x23bc   :  { %v6536_v55 = vpop.eup %6535 }
0x23bd   :  { %v4240_v9 = vperm.slane %v6536_v55, 5  ;;  %v4235_v63 = vperm.slane %v6536_v55, 0  ;;  %v4236_v3 = vperm.slane %v6536_v55, 1  ;;  %v4237_v47 = vperm.slane %v6536_v55, 2 }
0x23be   :  { %v4239_v43 = vperm.slane %v6536_v55, 4  ;;  %v4241_v1 = vperm.slane %v6536_v55, 6 }
0x23bf   :  { %v4261_v34 = vmul.f32 %v9919_v27, %v4240_v9  ;;  %v4252_v32 = vmul.f32 %v9877_v22, %v4235_v63  ;;  %v4251_v38 = vmul.f32 %v9875_v17, %v4235_v63  ;;  %v4254_v24 = vmul.f32 %v9888_v4, %v4236_v3 }
0x23c0   :  { %v4253_v35 = vmul.f32 %v9880_v46, %v4236_v3  ;;  %v4256_v49 = vmul.f32 %v9890_v42, %v4237_v47  ;;  %v4255_v10 = vmul.f32 %v9893_v51, %v4237_v47  ;;  %v4238_v22 = vperm.slane %v6536_v55, 3 }
0x23c1   :  { %4319 = vperm.xlu0 %6092, %v4261_v34   ;;  %4274 = vperm.xlu2 %6091, %v4252_v32   ;;  %v4260_v4 = vmul.f32 %v9914_v15, %v4239_v43  ;;  %v4259_v46 = vmul.f32 %v9904_v31, %v4239_v43  ;;  %v4263_v42 = vmul.f32 %v9924_v62, %v4241_v1  ;;  %v6869_v43 = vld [vmem:[%s11110_s0 + $0x40] sm:$0xff] }
0x23c2   :  { %4269 = vperm.xlu1 %6093, %v4251_v38   ;;  %v4258_v17 = vmul.f32 %v9907_v16, %v4238_v22  ;;  %v4257_v27 = vmul.f32 %v9902_v6, %v4238_v22  ;;  %v4262_v51 = vmul.f32 %v9916_v60, %v4240_v9  ;;  %v3867_v16 = vsel %vm309_vm9, %v9730_v30, -inf  ;;  %v6865_v9 = vld [vmem:[%s11110_s0 + $0x18] sm:$0xff] }
0x23c3   :  { %v4242_v6 = vperm.slane %v6536_v55, 7  ;;  %v4264_v15 = vmul.f32 %v9929_v59, %v4241_v1 }
0x23c5   :  { %v4265_v21 = vmul.f32 %v9926_v40, %v4242_v6  ;;  %v4266_v31 = vmul.f32 %v9933_v39, %v4242_v6  ;;  %v6862_v39 = vld [vmem:[%s11110_s0] sm:$0xff] }
0x23c9   :  { %4284 = vperm.xlu2 %6091, %v4254_v24  }
0x23ca   :  { %4279 = vperm.xlu1 %6093, %v4253_v35   ;;  %v6866_v35 = vld [vmem:[%s11110_s0 + $0x20] sm:$0xff] }
0x23d1   :  { %4294 = vperm.xlu2 %6091, %v4256_v49   ;;  %v6867_v49 = vld [vmem:[%s11110_s0 + $0x30] sm:$0xff] }
0x23d2   :  { %4289 = vperm.xlu1 %6093, %v4255_v10  }
0x23d9   :  { %4304 = vperm.xlu2 %6091, %v4258_v17   ;;  %v6868_v17 = vld [vmem:[%s11110_s0 + $0x28] sm:$0xff] }
0x23da   :  { %4299 = vperm.xlu1 %6093, %v4257_v27  }
0x23e1   :  { %4314 = vperm.xlu2 %6091, %v4260_v4  }
0x23e2   :  { %4309 = vperm.xlu1 %6093, %v4259_v46   ;;  %v6870_v46 = vld [vmem:[%s11110_s0 + $0x38] sm:$0xff] }
0x23e9   :  { %4329 = vperm.xlu2 %6091, %v4263_v42  }
0x23ea   :  { %4324 = vperm.xlu1 %6093, %v4262_v51   ;;  %v6871_v51 = vld [vmem:[%s11110_s0 + $0x50] sm:$0xff] }
0x23eb   :  { %3868 = vmax.xlane.f32.xlu0 %v3867_v16 }
0x23f1   :  { %4339 = vperm.xlu2 %6091, %v4265_v21   ;;  %v6872_v21 = vld [vmem:[%s11110_s0 + $0x48] sm:$0xff] }
0x23f2   :  { %4334 = vperm.xlu1 %6093, %v4264_v15  }
0x23fa   :  { %4344 = vperm.xlu1 %6093, %v4266_v31  }
0x241b   :  { %v9986_v13 = vpop.permute.xlu2 %4274 }
0x241c   :  { %v4348_v54 = vmul.f32 %v6863_v25, %v9986_v13 }
0x241e   :  { %v4364_v32 = vsel %vm56_vm0, %v4348_v54, 0.0 }
0x2423   :  { %v9990_v60 = vpop.permute.xlu2 %4284 }
0x2424   :  { %v4350_v63 = vmul.f32 %v6865_v9, %v9990_v60 }
0x2426   :  { %v4373_v22 = vsel %vm56_vm0, %v4350_v63, 0.0  ;;  %v6873_v63 = vld [vmem:[%s11110_s0 + $0x58] sm:$0xff] }
0x242b   :  { %v9994_v14 = vpop.permute.xlu2 %4294 }
0x242c   :  { %v4352_v27 = vmul.f32 %v6868_v17, %v9994_v14 }
0x2433   :  { %v9998_v40 = vpop.permute.xlu2 %4304  ;;  %v10024_v38 = vpop.permute.xlu0 %4319 }
0x2434   :  { %v9988_v62 = vpop.permute.xlu1 %4269  ;;  %v4354_v1 = vmul.f32 %v6870_v46, %v9998_v40  ;;  %v4357_v16 = vmul.f32 %v6871_v51, %v10024_v38 }
0x2435   :  { %v4347_v57 = vmul.f32 %v6862_v39, %v9988_v62 }
0x2437   :  { %v4363_v52 = vsel %vm56_vm0, %v4347_v57, 0.0  ;;  %v4382_v57 = vsel %vm56_vm0, %v4352_v27, 0.0 }
0x2438   :  { %v4365_v3 = vadd.f32 %v4364_v32, %v4363_v52 }
0x243a   :  { %v4366_v6 = vrot.slane %v4365_v3, 4 }
0x243b   :  { %v10015_v55 = vpop.permute.xlu2 %4314 }
0x243c   :  { %v9992_v48 = vpop.permute.xlu1 %4279  ;;  %v4356_v15 = vmul.f32 %v6872_v21, %v10015_v55 }
0x243d   :  { %v4349_v37 = vmul.f32 %v6864_v5, %v9992_v48  ;;  %v4391_v5 = vsel %vm56_vm0, %v4354_v1, 0.0  ;;  %v4549_v1 = vperm.slane %v9990_v60, %v7263_v20  ;;  %v6874_v60 = vld [vmem:[%s11110_s0 + $0x60] sm:$0xff] }
0x243f   :  { %v4372_v24 = vsel %vm56_vm0, %v4349_v37, 0.0 }
0x2440   :  { %v4374_v42 = vadd.f32 %v4373_v22, %v4372_v24  ;;  %v4408_v24 = vsel %vm56_vm0, %v4357_v16, 0.0  ;;  %v4548_v22 = vperm.slane %v9992_v48, %v7258_v36 }
0x2442   :  { %v4375_v37 = vrot.slane %v4374_v42, 4 }
0x2443   :  { %v10063_v52 = vpop.permute.xlu2 %4329 }
0x2444   :  { %v9996_v11 = vpop.permute.xlu1 %4289  ;;  %v4376_v51 = vadd.f32 %v4375_v37, %v4374_v42  ;;  %v4359_v42 = vmul.f32 %v6874_v60, %v10063_v52 }
0x2445   :  { %v4351_v47 = vmul.f32 %v6866_v35, %v9996_v11  ;;  %v4367_v35 = vadd.f32 %v4366_v6, %v4365_v3  ;;  %v4552_v6 = vperm.slane %v9994_v14, %v7263_v20 }
0x2447   :  { %v4381_v31 = vsel %vm56_vm0, %v4351_v47, 0.0  ;;  %v4400_v47 = vsel %vm56_vm0, %v4356_v15, 0.0  ;;  %v4550_v15 = vsel %vm473_vm10, %v4549_v1, %v4548_v22 }
0x2448   :  { %v4383_v9 = vadd.f32 %v4382_v57, %v4381_v31 }
0x244a   :  { %v4384_v16 = vrot.slane %v4383_v9, 4 }
0x244b   :  { %v4340_v22 = vpop.permute.xlu2 %4339 }
0x244c   :  { %v10000_v59 = vpop.permute.xlu1 %4299 }
0x244d   :  { %v4353_v10 = vmul.f32 %v6867_v49, %v10000_v59  ;;  %v4554_v37 = vperm.slane %v10000_v59, %v7258_v36 }
0x244f   :  { %v4390_v39 = vsel %vm56_vm0, %v4353_v10, 0.0 }
0x2450   :  { %v4392_v49 = vadd.f32 %v4391_v5, %v4390_v39  ;;  %v4551_v39 = vperm.slane %v9996_v11, %v7258_v36  ;;  %v4385_v5 = vadd.f32 %v4384_v16, %v4383_v9  ;;  %v4417_v11 = vsel %vm56_vm0, %v4359_v42, 0.0 }
0x2452   :  { %v4393_v21 = vrot.slane %v4392_v49, 4 }
0x2454   :  { %v10021_v34 = vpop.permute.xlu1 %4309 }
0x2455   :  { %v4355_v4 = vmul.f32 %v6869_v43, %v10021_v34  ;;  %v4546_v43 = vperm.slane %v9986_v13, %v7263_v20  ;;  %v4368_v13 = vrot.slane %v4367_v35, 2 }
0x2457   :  { %v4399_v25 = vsel %vm56_vm0, %v4355_v4, 0.0  ;;  %v4545_v4 = vperm.slane %v9988_v62, %v7258_v36  ;;  %v4555_v62 = vperm.slane %v9998_v40, %v7263_v20  ;;  %v4377_v40 = vrot.slane %v4376_v51, 2 }
0x2458   :  { %v4401_v17 = vadd.f32 %v4400_v47, %v4399_v25 }
0x2459   :  { %v4547_v14 = vsel %vm473_vm10, %v4546_v43, %v4545_v4  ;;  %v4553_v43 = vsel %vm473_vm10, %v4552_v6, %v4551_v39  ;;  %v4378_v1 = vadd.f32 %v4377_v40, %v4376_v51  ;;  %v4556_v16 = vsel %vm473_vm10, %v4555_v62, %v4554_v37 }
0x245a   :  { %v4402_v31 = vrot.slane %v4401_v17, 4  ;;  %v4569_v47 = vsel %vm153_vm2, %v4550_v15, %v4547_v14 }
0x245c   :  { %v10060_v54 = vpop.permute.xlu1 %4324 }
0x245d   :  { %v4358_v32 = vmul.f32 %v6873_v63, %v10060_v54  ;;  %v6875_v63 = vld [vmem:[%s11110_s0 + $0x68] sm:$0xff]  ;;  %v4561_v9 = vperm.slane %v10060_v54, %v7263_v20 }
0x245e   :  { %v3869_v10 = vpop.xlane.xlu0 %3868 }
0x245f   :  { %v4409_v27 = vsel %vm56_vm0, %v4358_v32, 0.0  ;;  %vm3870_vm14 = vcmp.eq.f32.partialorder %v9730_v30, %v3869_v10  ;;  %v4560_v30 = vperm.slane %v10024_v38, %v7258_v36  ;;  %v4558_v38 = vperm.slane %v10015_v55, %v7263_v20 }
0x2460   :  { %v4410_v46 = vadd.f32 %v4409_v27, %v4408_v24  ;;  %v3871_v3 = vsel %vm3870_vm14, %v7690_v53, 32.0  ;;  %v4369_v24 = vadd.f32 %v4368_v13, %v4367_v35  ;;  %v4394_v10 = vadd.f32 %v4393_v21, %v4392_v49 }
0x2461   :  { %v3872_v48 = vsel %vm309_vm9, %v3871_v3, inf  ;;  %v4557_v55 = vperm.slane %v10021_v34, %v7258_v36  ;;  %v4403_v27 = vadd.f32 %v4402_v31, %v4401_v17  ;;  %v4563_v49 = vperm.slane %v10063_v52, %v7258_v36  ;;  %v6876_v17 = vld [vmem:[%s11110_s0 + $0x70] sm:$0xff] }
0x2462   :  { %3873 = vmin.xlane.f32.xlu2 %v3872_v48  ;;  %v4411_v57 = vrot.slane %v4410_v46, 4  ;;  %v4386_v34 = vrot.slane %v4385_v5, 2  ;;  %v4361_v54 = vmul.f32 %v6876_v17, %v4340_v22  ;;  %v4395_v48 = vrot.slane %v4394_v10, 2 }
0x2463   :  { %v4559_v13 = vsel %vm473_vm10, %v4558_v38, %v4557_v55  ;;  %v4566_v21 = vperm.slane %v4340_v22, %v7258_v36  ;;  %v4404_v51 = vrot.slane %v4403_v27, 2  ;;  %v4562_v15 = vsel %vm473_vm10, %v4561_v9, %v4560_v30  ;;  %v6877_v38 = vld [vmem:[%s11110_s0 + $0x78] sm:$0xff] }
0x2464   :  { %v4335_v25 = vpop.permute.xlu1 %4334  ;;  %v4412_v4 = vadd.f32 %v4411_v57, %v4410_v46  ;;  %v4570_v46 = vsel %vm155_vm3, %v4553_v43, %v4569_v47  ;;  %v4387_v14 = vadd.f32 %v4386_v34, %v4385_v5  ;;  %v4426_v40 = vsel %vm56_vm0, %v4361_v54, 0.0 }
0x2465   :  { %v4360_v32 = vmul.f32 %v6875_v63, %v4335_v25  ;;  %v4564_v35 = vperm.slane %v4335_v25, %v7263_v20  ;;  %v4571_v52 = vsel %vm157_vm4, %v4556_v16, %v4570_v46  ;;  %v4396_v30 = vadd.f32 %v4395_v48, %v4394_v10 }
0x2466   :  { %v4413_v60 = vrot.slane %v4412_v4, 2  ;;  %v4572_v39 = vsel %vm159_vm5, %v4559_v13, %v4571_v52  ;;  %v4388_v43 = vrot.slane %v4387_v14, 1  ;;  %v4370_v10 = vrot.slane %v4369_v24, 1 }
0x2467   :  { %v4418_v59 = vsel %vm56_vm0, %v4360_v32, 0.0  ;;  %v4565_v42 = vsel %vm473_vm10, %v4564_v35, %v4563_v49  ;;  %v4573_v37 = vsel %vm161_vm6, %v4562_v15, %v4572_v39  ;;  %v4405_v32 = vadd.f32 %v4404_v51, %v4403_v27 }
0x2468   :  { %v4419_v3 = vadd.f32 %v4418_v59, %v4417_v11  ;;  %v4574_v47 = vsel %vm163_vm7, %v4565_v42, %v4573_v37  ;;  %v4379_v11 = vrot.slane %v4378_v1, 1  ;;  %v4414_v22 = vadd.f32 %v4413_v60, %v4412_v4 }
0x2469   :  { %v4397_v27 = vrot.slane %v4396_v30, 1  ;;  %v4406_v49 = vrot.slane %v4405_v32, 1  ;;  %v4389_v54 = vadd.f32 %v4388_v43, %v4387_v14  ;;  %v4371_v4 = vadd.f32 %v4370_v10, %v4369_v24 }
0x246a   :  { %v4420_v6 = vrot.slane %v4419_v3, 4  ;;  %v4380_v34 = vadd.f32 %v4379_v11, %v4378_v1  ;;  %v4415_v16 = vrot.slane %v4414_v22, 1 }
0x246b   :  { %v4398_v13 = vadd.f32 %v4397_v27, %v4396_v30  ;;  %v4407_v46 = vadd.f32 %v4406_v49, %v4405_v32  ;;  %v6880_v32 = vld [vmem:[%s11109_s1 + $0xb8] sm:$0xff] }
0x246c   :  { %v4421_v62 = vadd.f32 %v4420_v6, %v4419_v3  ;;  %v4345_v31 = vpop.permute.xlu1 %4344  ;;  %v4443_v15 = vsel %vm153_vm2, %v4380_v34, %v4371_v4 }
0x246d   :  { %v4362_v57 = vmul.f32 %v6877_v38, %v4345_v31  ;;  %v4567_v25 = vperm.slane %v4345_v31, %v7263_v20  ;;  %v4444_v60 = vsel %vm155_vm3, %v4389_v54, %v4443_v15 }
0x246e   :  { %v4422_v63 = vrot.slane %v4421_v62, 2  ;;  %v4445_v42 = vsel %vm157_vm4, %v4398_v13, %v4444_v60 }
0x246f   :  { %v4427_v5 = vsel %vm56_vm0, %v4362_v57, 0.0  ;;  %v4568_v55 = vsel %vm473_vm10, %v4567_v25, %v4566_v21  ;;  %v4416_v21 = vadd.f32 %v4415_v16, %v4414_v22  ;;  %v4446_v1 = vsel %vm159_vm5, %v4407_v46, %v4445_v42  ;;  %v6885_v42 = vld [vmem:[%s11109_s1 + $0x38] sm:$0xff] }
0x2470   :  { %v4428_v9 = vadd.f32 %v4427_v5, %v4426_v40  ;;  %v4575_v59 = vsel %vm165_vm8, %v4568_v55, %v4574_v47  ;;  %v4423_v3 = vadd.f32 %v4422_v63, %v4421_v62  ;;  %v6878_v63 = vld [vmem:[%s11109_s1 + $0xc8] sm:$0xff]  ;;  %v6881_v47 = vld [vmem:[%s11109_s1 + $0xb0] sm:$0xff] }
0x2471   :  { %6067 = vst.msk [vmem:[%s11111_s3 + $0x28] sm:$0xff] %vm56_vm0, %v4575_v59  ;;  %v4447_v14 = vsel %vm161_vm6, %v4416_v21, %v4446_v1  ;;  %v6882_v55 = vld [vmem:[%s11109_s1 + $0x50] ss:$0 sm:$0xff] }
0x2472   :  { %v4429_v35 = vrot.slane %v4428_v9, 4  ;;  %v4424_v48 = vrot.slane %v4423_v3, 1  ;;  %v6886_v1 = vld [vmem:[%s11109_s1 + $0x30] sm:$0xff] }
0x2474   :  { %v4430_v17 = vadd.f32 %v4429_v35, %v4428_v9  ;;  %v4425_v52 = vadd.f32 %v4424_v48, %v4423_v3 }
0x2476   :  { %v4431_v6 = vrot.slane %v4430_v17, 2  ;;  %v4448_v24 = vsel %vm163_vm7, %v4425_v52, %v4447_v14  ;;  %v6888_v14 = vld [vmem:[%s11109_s1 + $0x20] sm:$0xff] }
0x2478   :  { %v4432_v51 = vadd.f32 %v4431_v6, %v4430_v17 }
0x247a   :  { %v4433_v62 = vrot.slane %v4432_v51, 1 }
0x247c   :  { %v4434_v31 = vadd.f32 %v4433_v62, %v4432_v51  ;;  %v6884_v62 = vld [vmem:[%s11109_s1 + $0x40] sm:$0xff] }
0x247e   :  { %v4449_v39 = vsel %vm165_vm8, %v4434_v31, %v4448_v24  ;;  %v6887_v31 = vld [vmem:[%s11109_s1 + $0x28] sm:$0xff]  ;;  %v6889_v24 = vld [vmem:[%s11109_s1 + $0x18] sm:$0xff] }
0x247f   :  { %4450 = vrot.lane.b32.xlu1 %v4449_v39, %s6935_s11  ;;  %v6890_v39 = vld [vmem:[%s11109_s1 + $0x10] sm:$0xff] }
0x2487   :  { %4453 = vrot.lane.b32.xlu1 %v9677_v56, %s6938_s22  ;;  %v6879_v56 = vld [vmem:[%s11109_s1 + $0xc0] sm:$0xff] }
0x24d5   :  { %v3874_v57 = vpop.xlane.xlu2 %3873 }
0x24d6   :  { %vm3875_vm15 = vcmp.eq.f32.partialorder %v7690_v53, %v3874_v57  ;;  %v6892_v57 = vld [vmem:[%s11109_s1] sm:$0xff] }
0x24d7   :  { %v6061_v25 = vsel %vm3875_vm15, 1.0, %v6936_v0 }
0x24f1   :  { %v4451_v38 = vpop.permute.xlu1 %4450 }
0x24f2   :  { %v4456_v40 = vsel %vm309_vm9, %v6061_v25, %v4451_v38  ;;  %v6891_v38 = vld [vmem:[%s11109_s1 + $0x8] sm:$0xff] }
0x24f9   :  { %v4454_v30 = vpop.permute.xlu1 %4453 }
0x24fa   :  { %v4457_v37 = vsel %vm895_vm12, %v4456_v40, %v4454_v30 }
0x24fb   :  { %6063 = vmatmul.msk.f32.vlgmr.msrb.gmra.mxu2 %vm898_vm13, %v4457_v37 }
0x24fc   :  { %5959 = vmatpush.msrb.mxu2 %v6878_v63 }
0x24fe   :  { %5960 = vmatpush.msrb.mxu2 %v6879_v56 }
0x2500   :  { %5961 = vmatpush.msrb.mxu2 %v6880_v32 }
0x2502   :  { %5962 = vmatpush.msrb.mxu2 %v6881_v47 }
0x257e   :  { %v4478_v5 = vpop.f32.mrf.mxu2 }
0x257f   :  { %v4479_v11 = vadd.f32 %v6882_v55, %v4478_v5 }
0x2581   :  { %6537 = vtanh.f32 %v4479_v11  ;;  %v6064_v9 = vmul.f32 -1.442695, %v4479_v11 }
0x2583   :  { %6539 = vpow2.f32 %v6064_v9 }
0x2587   :  { %v6538_v22 = vpop.eup %6537 }
0x2588   :  { %4503 = vrot.lane.b32.xlu1 %v6538_v22, %s6937_s24 }
0x2589   :  { %v6540_v59 = vpop.eup %6539 }
0x258a   :  { %v4484_v43 = vadd.f32 1.0, %v6540_v59 }
0x258c   :  { %6541 = vrcp.f32 %v4484_v43  ;;  %v4496_v34 = vand.u32 2147483648, %v4484_v43  ;;  %vm4490_vm11 = vweird.f32 %v4484_v43  ;;  %v4494_v16 = vand.u32 2147483647, %v4484_v43 }
0x258e   :  { %v4497_v54 = vor.u32 1.1754944e-38, %v4496_v34  ;;  %vm4495_vm15 = vcmp.eq.f32.partialorder %v4494_v16, 8.507059e+37 }
0x2592   :  { %v6542_v3 = vpop.eup %6541 }
0x2593   :  { %v4486_v10 = vmul.f32 %v6542_v3, %v4484_v43  ;;  %vm4491_vm1 = vweird.f32 %v6542_v3 }
0x2594   :  { %vm4492_vm14 = vmor %vm4490_vm11, %vm4491_vm1 }
0x2595   :  { %v4487_v27 = vsub.f32 1.0, %v4486_v10 }
0x2597   :  { %v4488_v35 = vmul.f32 %v6542_v3, %v4487_v27  ;;  %v6893_v27 = vld [vmem:[%s11109_s1 + $0xd0] ss:$0 sm:$0xff] }
0x2599   :  { %v4489_v49 = vadd.f32 %v6542_v3, %v4488_v35 }
0x259b   :  { %v4493_v17 = vsel %vm4492_vm14, %v6542_v3, %v4489_v49 }
0x259c   :  { %v4498_v4 = vsel %vm4495_vm15, %v4497_v54, %v4493_v17 }
0x259d   :  { %v4501_v6 = vmul.f32 %v4498_v4, %v9673_v8  ;;  %v6883_v8 = vld [vmem:[%s11109_s1 + $0x48] sm:$0xff] }
0x25fa   :  { %v4504_v48 = vpop.permute.xlu1 %4503 }
0x25fb   :  { %v4506_v13 = vmul.f32 %v4504_v48, %v4498_v4 }
0x25fd   :  { %4508 = vrot.lane.b32.xlu1 %v4506_v13, %s6935_s11 }
0x266f   :  { %v4509_v46 = vpop.permute.xlu1 %4508 }
0x2670   :  { %v10173_v21 = vadd.f32 %v4509_v46, %v4501_v6 }
0x2672   :  { %6543 = vtanh.f32 %v10173_v21 }
0x2678   :  { %v6544_v51 = vpop.eup %6543 }
0x2679   :  { %4514 = vrot.lane.b32.xlu1 %v6544_v51, %s6937_s24 }
0x26eb   :  { %v4515_v15 = vpop.permute.xlu1 %4514 }
0x26ec   :  { %v10177_v52 = vmul.f32 %v4515_v15, %v4498_v4  ;;  %v10248_v4 = vld [vmem:[%s11109_s1 + $0xa8] ss:$0 sm:$0xff] }
0x26ee   :  { %4519 = vrot.lane.b32.xlu0 %v10177_v52, %s6935_s11 }
0x2760   :  { %v4520_v60 = vpop.permute.xlu0 %4519 }
0x2761   :  { %6065 = vmatmul.msk.f32.vlgmr.msra.gmra.mxu3 %vm309_vm9, %v4520_v60  ;;  %6069 = vmatmul.msk.f32.vlgmr.msrb.gmra.mxu0 %vm309_vm9, %v4520_v60 }
0x2762   :  { %5891 = vmatpush.msrb.mxu0 %v6883_v8 }
0x2764   :  { %5892 = vmatpush.msrb.mxu0 %v6884_v62 }
0x2766   :  { %5893 = vmatpush.msrb.mxu0 %v6885_v42 }
0x2768   :  { %5894 = vmatpush.msrb.mxu0 %v6886_v1 }
0x276a   :  { %5895 = vmatpush.msrb.mxu0 %v6887_v31 }
0x276c   :  { %5896 = vmatpush.msrb.mxu0 %v6888_v14 }
0x276e   :  { %5897 = vmatpush.msrb.mxu0 %v6889_v24 }
0x2770   :  { %5898 = vmatpush.msrb.mxu0 %v6890_v39 }
0x2772   :  { %5899 = vmatpush.msrb.mxu0 %v6891_v38 }
0x2774   :  { %5900 = vmatpush.msrb.mxu0 %v6892_v57 }
0x27de   :  { %v10213_v25 = vpop.f32.mrf.mxu0 }
0x27df   :  { %v4618_v40 = vperm.slane %v10213_v25, 0  ;;  %v4612_v30 = vrot.slane %v10213_v25, 2  ;;  %v4614_v37 = vrot.slane %v10213_v25, 4  ;;  %v4611_v63 = vrot.slane %v10213_v25, 1 }
0x27e0   :  { %v4616_v56 = vrot.slane %v10213_v25, 6  ;;  %v4615_v43 = vrot.slane %v10213_v25, 5  ;;  %v4617_v34 = vrot.slane %v10213_v25, 7 }
0x27e1   :  { %v4635_v32 = vadd.f32 %v4618_v40, %v7144_v18  ;;  %v4634_v47 = vadd.f32 %v4618_v40, %v7138_v12  ;;  %v4620_v5 = vperm.slane %v4612_v30, 0  ;;  %v10222_v55 = vperm.slane %v4614_v37, 0 }
0x27e2   :  { %v4619_v11 = vperm.slane %v4611_v63, 0  ;;  %v4624_v22 = vperm.slane %v4616_v56, 0  ;;  %v10241_v16 = vperm.slane %v4615_v43, 0  ;;  %v10243_v54 = vperm.slane %v4617_v34, 0 }
0x27e3   :  { %6545 = vtanh.f32 %v4635_v32  ;;  %v4638_v9 = vadd.f32 %v4620_v5, %v7150_v23  ;;  %v4642_v59 = vadd.f32 %v10222_v55, %v7176_v44  ;;  %v4639_v37 = vadd.f32 %v4620_v5, %v7154_v28 }
0x27e4   :  { %v4540_v3 = vpop.f32.mrf.mxu3  ;;  %6547 = vtanh.f32 %v4634_v47  ;;  %v4636_v10 = vadd.f32 %v4619_v11, %v7147_v19  ;;  %v4646_v49 = vadd.f32 %v4624_v22, %v7210_v2  ;;  %v4644_v51 = vadd.f32 %v10241_v16, %v7198_v7 }
0x27e5   :  { %v10232_v35 = vadd.f32 %v6893_v27, %v4540_v3  ;;  %6549 = vtanh.f32 %v4638_v9  ;;  %v4637_v8 = vadd.f32 %v4619_v11, %v7161_v33  ;;  %v4649_v1 = vadd.f32 %v10243_v54, %v7228_v45 }
0x27e6   :  { %6551 = vtanh.f32 %v4642_v59  ;;  %v4647_v40 = vadd.f32 %v4624_v22, %v7218_v29  ;;  %v4613_v63 = vrot.slane %v10213_v25, 3 }
0x27e7   :  { %6066 = vst.msk [vmem:[%s11112_s2 + $0x28] sm:$0xff] %vm309_vm9, %v10232_v35  ;;  %6553 = vtanh.f32 %v4636_v10 }
0x27e8   :  { %6555 = vtanh.f32 %v4646_v49  ;;  %v4621_v22 = vperm.slane %v4613_v63, 0 }
0x27e9   :  { %v6546_v17 = vpop.eup %6545  ;;  %6557 = vtanh.f32 %v4644_v51 }
0x27ea   :  { %v6548_v48 = vpop.eup %6547  ;;  %v4667_v13 = vmul.f32 %v10248_v4, %v6546_v17  ;;  %6559 = vtanh.f32 %v4637_v8  ;;  %v4640_v3 = vadd.f32 %v4621_v22, %v7172_v41 }
0x27eb   :  { %v6550_v6 = vpop.eup %6549  ;;  %v4666_v46 = vmul.f32 %v10248_v4, %v6548_v48  ;;  %6561 = vtanh.f32 %v4649_v1  ;;  %v4645_v1 = vadd.f32 %v10241_v16, %v7195_v61 }
0x27ec   :  { %v4685_v15 = vsel %vm56_vm0, %v4667_v13, 0.0  ;;  %v4670_v60 = vmul.f32 %v10248_v4, %v6550_v6  ;;  %v6552_v62 = vpop.eup %6551  ;;  %6563 = vtanh.f32 %v4647_v40  ;;  %v4641_v6 = vadd.f32 %v4621_v22, %v7180_v50 }
0x27ed   :  { %4686 = vadd.xlane.f32.xlu1 %v4685_v15  ;;  %v4682_v42 = vsel %vm56_vm0, %v4666_v46, 0.0  ;;  %v6554_v31 = vpop.eup %6553  ;;  %v4674_v39 = vmul.f32 %v10248_v4, %v6552_v62  ;;  %6565 = vtanh.f32 %v4639_v37 }
0x27ee   :  { %4683 = vadd.xlane.f32.xlu2 %v4682_v42  ;;  %v4694_v14 = vsel %vm56_vm0, %v4670_v60, 0.0  ;;  %v6556_v24 = vpop.eup %6555  ;;  %v4668_v38 = vmul.f32 %v10248_v4, %v6554_v31  ;;  %6567 = vtanh.f32 %v4640_v3  ;;  %v4643_v60 = vadd.f32 %v10222_v55, %v7190_v58 }
0x27ef   :  { %4695 = vadd.xlane.f32.xlu0 %v4694_v14  ;;  %v4678_v57 = vmul.f32 %v10248_v4, %v6556_v24  ;;  %v4706_v30 = vsel %vm56_vm0, %v4674_v39, 0.0  ;;  %v6558_v56 = vpop.eup %6557  ;;  %6569 = vtanh.f32 %v4641_v6  ;;  %v4648_v55 = vadd.f32 %v10243_v54, %v7215_v26 }
0x27f0   :  { %v4688_v32 = vsel %vm56_vm0, %v4668_v38, 0.0  ;;  %v6560_v47 = vpop.eup %6559  ;;  %v4676_v59 = vmul.f32 %v10248_v4, %v6558_v56  ;;  %6571 = vtanh.f32 %v4643_v60 }
0x27f1   :  { %v4718_v11 = vsel %vm56_vm0, %v4678_v57, 0.0  ;;  %v6562_v9 = vpop.eup %6561  ;;  %v4669_v43 = vmul.f32 %v10248_v4, %v6560_v47  ;;  %6573 = vtanh.f32 %v4645_v1 }
0x27f2   :  { %v4681_v5 = vmul.f32 %v10248_v4, %v6562_v9  ;;  %v4712_v25 = vsel %vm56_vm0, %v4676_v59, 0.0  ;;  %v6564_v10 = vpop.eup %6563  ;;  %6575 = vtanh.f32 %v4648_v55 }
0x27f3   :  { %v4691_v27 = vsel %vm56_vm0, %v4669_v43, 0.0  ;;  %v6566_v49 = vpop.eup %6565  ;;  %v4679_v17 = vmul.f32 %v10248_v4, %v6564_v10 }
0x27f4   :  { %v4727_v34 = vsel %vm56_vm0, %v4681_v5, 0.0  ;;  %v4671_v48 = vmul.f32 %v10248_v4, %v6566_v49  ;;  %v6568_v51 = vpop.eup %6567 }
0x27f5   :  { %4707 = vadd.xlane.f32.xlu1 %v4706_v30  ;;  %v4721_v13 = vsel %vm56_vm0, %v4679_v17, 0.0  ;;  %v4672_v15 = vmul.f32 %v10248_v4, %v6568_v51  ;;  %v6570_v62 = vpop.eup %6569 }
0x27f6   :  { %4689 = vadd.xlane.f32.xlu2 %v4688_v32  ;;  %v4697_v46 = vsel %vm56_vm0, %v4671_v48, 0.0  ;;  %v4673_v42 = vmul.f32 %v10248_v4, %v6570_v62  ;;  %v6572_v14 = vpop.eup %6571 }
0x27f7   :  { %4719 = vadd.xlane.f32.xlu0 %v4718_v11  ;;  %v4700_v8 = vsel %vm56_vm0, %v4672_v15, 0.0  ;;  %v4675_v24 = vmul.f32 %v10248_v4, %v6572_v14  ;;  %v6574_v38 = vpop.eup %6573 }
0x27f8   :  { %v4703_v31 = vsel %vm56_vm0, %v4673_v42, 0.0  ;;  %v4677_v57 = vmul.f32 %v10248_v4, %v6574_v38  ;;  %v6576_v16 = vpop.eup %6575 }
0x27f9   :  { %v4709_v39 = vsel %vm56_vm0, %v4675_v24, 0.0  ;;  %v4680_v30 = vmul.f32 %v10248_v4, %v6576_v16 }
0x27fa   :  { %v4715_v40 = vsel %vm56_vm0, %v4677_v57, 0.0 }
0x27fb   :  { %v4724_v37 = vsel %vm56_vm0, %v4680_v30, 0.0 }
0x27fd   :  { %4713 = vadd.xlane.f32.xlu1 %v4712_v25 }
0x27fe   :  { %4692 = vadd.xlane.f32.xlu2 %v4691_v27 }
0x27ff   :  { %4728 = vadd.xlane.f32.xlu0 %v4727_v34 }
0x2805   :  { %4722 = vadd.xlane.f32.xlu1 %v4721_v13 }
0x2806   :  { %4698 = vadd.xlane.f32.xlu2 %v4697_v46 }
0x280e   :  { %4701 = vadd.xlane.f32.xlu2 %v4700_v8 }
0x2816   :  { %4704 = vadd.xlane.f32.xlu2 %v4703_v31 }
0x281e   :  { %4710 = vadd.xlane.f32.xlu2 %v4709_v39 }
0x2826   :  { %4716 = vadd.xlane.f32.xlu2 %v4715_v40 }
0x282e   :  { %4725 = vadd.xlane.f32.xlu2 %v4724_v37 }
0x2860   :  { %v4687_v47 = vpop.xlane.xlu1 %4686 }
0x2861   :  { %v4684_v63 = vpop.xlane.xlu2 %4683  ;;  %v4747_v10 = vperm.slane %v4687_v47, %v7263_v20 }
0x2862   :  { %v4696_v22 = vpop.xlane.xlu0 %4695  ;;  %v4746_v27 = vperm.slane %v4684_v63, %v7258_v36 }
0x2863   :  { %v4752_v17 = vperm.slane %v4696_v22, %v7258_v36 }
0x2864   :  { %v4748_v8 = vsel %vm473_vm10, %v4747_v10, %v4746_v27 }
0x2868   :  { %v10300_v9 = vpop.xlane.xlu1 %4707 }
0x2869   :  { %v4690_v56 = vpop.xlane.xlu2 %4689  ;;  %v4758_v15 = vperm.slane %v10300_v9, %v7258_v36 }
0x286a   :  { %v10308_v4 = vpop.xlane.xlu0 %4719  ;;  %v4749_v49 = vperm.slane %v4690_v56, %v7258_v36 }
0x286b   :  { %v4764_v16 = vperm.slane %v10308_v4, %v7258_v36 }
0x2870   :  { %v10306_v5 = vpop.xlane.xlu1 %4713 }
0x2871   :  { %v4693_v32 = vpop.xlane.xlu2 %4692  ;;  %v4761_v62 = vperm.slane %v10306_v5, %v7258_v36 }
0x2872   :  { %v4750_v25 = vperm.slane %v4693_v32, %v7263_v20  ;;  %v10340_v39 = vpop.xlane.xlu0 %4728 }
0x2874   :  { %v4751_v6 = vsel %vm473_vm10, %v4750_v25, %v4749_v49  ;;  %v4768_v25 = vperm.slane %v10340_v39, %v7263_v20 }
0x2875   :  { %v4770_v31 = vsel %vm153_vm2, %v4751_v6, %v4748_v8 }
0x2878   :  { %v10333_v42 = vpop.xlane.xlu1 %4722 }
0x2879   :  { %v4699_v54 = vpop.xlane.xlu2 %4698  ;;  %v4765_v38 = vperm.slane %v10333_v42, %v7263_v20 }
0x287a   :  { %v4753_v3 = vperm.slane %v4699_v54, %v7263_v20 }
0x287b   :  { %v4766_v10 = vsel %vm473_vm10, %v4765_v38, %v4764_v16 }
0x287c   :  { %v4754_v60 = vsel %vm473_vm10, %v4753_v3, %v4752_v17 }
0x287d   :  { %v4771_v24 = vsel %vm155_vm3, %v4754_v60, %v4770_v31 }
0x2881   :  { %v10298_v11 = vpop.xlane.xlu2 %4701 }
0x2882   :  { %v4755_v46 = vperm.slane %v10298_v11, %v7258_v36 }
0x2889   :  { %v10302_v59 = vpop.xlane.xlu2 %4704 }
0x288a   :  { %v4756_v34 = vperm.slane %v10302_v59, %v7263_v20 }
0x288c   :  { %v4757_v1 = vsel %vm473_vm10, %v4756_v34, %v4755_v46 }
0x288d   :  { %v4772_v57 = vsel %vm157_vm4, %v4757_v1, %v4771_v24 }
0x2891   :  { %v10304_v43 = vpop.xlane.xlu2 %4710 }
0x2892   :  { %v4759_v48 = vperm.slane %v10304_v43, %v7263_v20 }
0x2894   :  { %v4760_v14 = vsel %vm473_vm10, %v4759_v48, %v4758_v15 }
0x2895   :  { %v4773_v40 = vsel %vm159_vm5, %v4760_v14, %v4772_v57 }
0x2899   :  { %v10320_v13 = vpop.xlane.xlu2 %4716 }
0x289a   :  { %v4762_v51 = vperm.slane %v10320_v13, %v7263_v20 }
0x289c   :  { %v4763_v55 = vsel %vm473_vm10, %v4762_v51, %v4761_v62 }
0x289d   :  { %v4774_v37 = vsel %vm161_vm6, %v4763_v55, %v4773_v40 }
0x289e   :  { %v4775_v49 = vsel %vm163_vm7, %v4766_v10, %v4774_v37 }
0x28a1   :  { %v10348_v30 = vpop.xlane.xlu2 %4725 }
0x28a2   :  { %v4767_v3 = vperm.slane %v10348_v30, %v7258_v36 }
0x28a4   :  { %v4769_v27 = vsel %vm473_vm10, %v4768_v25, %v4767_v3 }
0x28a5   :  { %v4776_v34 = vsel %vm165_vm8, %v4769_v27, %v4775_v49 }
0x28a6   :  { %v4778_v17 = vsel %vm56_vm0, %v4776_v34, -inf }
0x28a7   :  { %4779 = vmax.xlane.f32.xlu1 %v4778_v17 }
0x291a   :  { %v10360_v48 = vpop.xlane.xlu1 %4779 }
0x291b   :  { %v4782_v6 = vperm.slane %v10360_v48, 0  ;;  %v4783_v46 = vperm.slane %v10360_v48, 1  ;;  %v4784_v8 = vperm.slane %v10360_v48, 2  ;;  %v4785_v38 = vperm.slane %v10360_v48, 3 }
0x291c   :  { %v4787_v3 = vperm.slane %v10360_v48, 5 }
0x291d   :  { %v4798_v51 = vsub.f32 %v4684_v63, %v4782_v6  ;;  %v4799_v15 = vsub.f32 %v4687_v47, %v4782_v6  ;;  %v4800_v60 = vsub.f32 %v4690_v56, %v4783_v46  ;;  %v4801_v14 = vsub.f32 %v4693_v32, %v4783_v46 }
0x291e   :  { %v4802_v24 = vsub.f32 %v4696_v22, %v4784_v8  ;;  %v4803_v55 = vsub.f32 %v4699_v54, %v4784_v8  ;;  %v4786_v63 = vperm.slane %v10360_v48, 4  ;;  %v4804_v32 = vsub.f32 %v10298_v11, %v4785_v38 }
0x291f   :  { %v4814_v62 = vmul.f32 1.442695, %v4798_v51  ;;  %v4816_v1 = vmul.f32 1.442695, %v4799_v15  ;;  %v4818_v31 = vmul.f32 1.442695, %v4800_v60  ;;  %v4805_v54 = vsub.f32 %v10302_v59, %v4785_v38 }
0x2920   :  { %v4820_v57 = vmul.f32 1.442695, %v4801_v14  ;;  %v4822_v40 = vmul.f32 1.442695, %v4802_v24  ;;  %v4824_v56 = vmul.f32 1.442695, %v4803_v55  ;;  %v4806_v22 = vsub.f32 %v10300_v9, %v4786_v63 }
0x2921   :  { %6577 = vpow2.f32 %v4814_v62  ;;  %v4826_v25 = vmul.f32 1.442695, %v4804_v32  ;;  %v4828_v10 = vmul.f32 1.442695, %v4805_v54  ;;  %v4807_v59 = vsub.f32 %v10304_v43, %v4786_v63 }
0x2922   :  { %6579 = vpow2.f32 %v4816_v1  ;;  %v4830_v49 = vmul.f32 1.442695, %v4806_v22  ;;  %v4808_v9 = vsub.f32 %v10306_v5, %v4787_v3  ;;  %v4809_v17 = vsub.f32 %v10320_v13, %v4787_v3 }
0x2923   :  { %6581 = vpow2.f32 %v4818_v31  ;;  %v4788_v6 = vperm.slane %v10360_v48, 6  ;;  %v4832_v46 = vmul.f32 1.442695, %v4807_v59  ;;  %v4789_v60 = vperm.slane %v10360_v48, 7 }
0x2924   :  { %6583 = vpow2.f32 %v4820_v57  ;;  %v4834_v51 = vmul.f32 1.442695, %v4808_v9  ;;  %v4836_v43 = vmul.f32 1.442695, %v4809_v17 }
0x2925   :  { %6585 = vpow2.f32 %v4822_v40  ;;  %v4810_v62 = vsub.f32 %v10308_v4, %v4788_v6  ;;  %v4811_v13 = vsub.f32 %v10333_v42, %v4788_v6  ;;  %v4812_v1 = vsub.f32 %v10348_v30, %v4789_v60 }
0x2926   :  { %6587 = vpow2.f32 %v4824_v56  ;;  %v4813_v38 = vsub.f32 %v10340_v39, %v4789_v60 }
0x2927   :  { %v10366_v16 = vpop.eup %6577  ;;  %6589 = vpow2.f32 %v4826_v25  ;;  %v4838_v48 = vmul.f32 1.442695, %v4810_v62  ;;  %v4840_v31 = vmul.f32 1.442695, %v4811_v13  ;;  %v4842_v24 = vmul.f32 1.442695, %v4812_v1 }
0x2928   :  { %v10369_v47 = vpop.eup %6579  ;;  %4863 = vperm.xlu2 %6091, %v10366_v16   ;;  %6591 = vpow2.f32 %v4828_v10  ;;  %v4844_v42 = vmul.f32 1.442695, %v4813_v38 }
0x2929   :  { %v10372_v37 = vpop.eup %6581  ;;  %4866 = vperm.xlu0 %6092, %v10369_v47   ;;  %6593 = vpow2.f32 %v4830_v49 }
0x292a   :  { %4869 = vperm.xlu1 %6093, %v10372_v37   ;;  %v10380_v27 = vpop.eup %6583  ;;  %6595 = vpow2.f32 %v4832_v46 }
0x292b   :  { %v10382_v34 = vpop.eup %6585  ;;  %6597 = vpow2.f32 %v4834_v51 }
0x292c   :  { %v10385_v11 = vpop.eup %6587  ;;  %6599 = vpow2.f32 %v4836_v43 }
0x292d   :  { %v10393_v15 = vpop.eup %6589  ;;  %6601 = vpow2.f32 %v4838_v48 }
0x292e   :  { %v10396_v8 = vpop.eup %6591  ;;  %6603 = vpow2.f32 %v4840_v31 }
0x292f   :  { %v10399_v5 = vpop.eup %6593  ;;  %6605 = vpow2.f32 %v4842_v24 }
0x2930   :  { %4872 = vperm.xlu2 %6091, %v10380_v27   ;;  %v10406_v14 = vpop.eup %6595  ;;  %6607 = vpow2.f32 %v4844_v42 }
0x2931   :  { %4875 = vperm.xlu0 %6092, %v10382_v34   ;;  %v10408_v55 = vpop.eup %6597 }
0x2932   :  { %4878 = vperm.xlu1 %6093, %v10385_v11   ;;  %v10411_v4 = vpop.eup %6599 }
0x2933   :  { %v10416_v30 = vpop.eup %6601 }
0x2934   :  { %v10418_v57 = vpop.eup %6603 }
0x2935   :  { %v10421_v40 = vpop.eup %6605 }
0x2936   :  { %v10425_v39 = vpop.eup %6607 }
0x2938   :  { %4881 = vperm.xlu2 %6091, %v10393_v15  }
0x2939   :  { %4884 = vperm.xlu0 %6092, %v10396_v8  }
0x293a   :  { %4887 = vperm.xlu1 %6093, %v10399_v5  }
0x2940   :  { %4890 = vperm.xlu2 %6091, %v10406_v14  }
0x2941   :  { %4893 = vperm.xlu0 %6092, %v10408_v55  }
0x2942   :  { %4896 = vperm.xlu1 %6093, %v10411_v4  }
0x2948   :  { %4899 = vperm.xlu2 %6091, %v10416_v30  }
0x2949   :  { %4902 = vperm.xlu0 %6092, %v10418_v57  }
0x294a   :  { %4905 = vperm.xlu1 %6093, %v10421_v40  }
0x2950   :  { %4908 = vperm.xlu2 %6091, %v10425_v39  }
0x2982   :  { %v4864_v63 = vpop.permute.xlu2 %4863 }
0x2983   :  { %v4910_v60 = vperm.slane %v4864_v63, %v7258_v36 }
0x298a   :  { %v4873_v56 = vpop.permute.xlu2 %4872 }
0x298b   :  { %v4914_v43 = vperm.slane %v4873_v56, %v7263_v20 }
0x2992   :  { %v4882_v54 = vpop.permute.xlu2 %4881 }
0x2993   :  { %v4919_v48 = vperm.slane %v4882_v54, %v7258_v36 }
0x299a   :  { %v4891_v10 = vpop.permute.xlu2 %4890 }
0x299b   :  { %v4867_v32 = vpop.permute.xlu0 %4866 }
0x299c   :  { %v4870_v22 = vpop.permute.xlu1 %4869  ;;  %v4911_v6 = vperm.slane %v4867_v32, %v7263_v20 }
0x299d   :  { %v4913_v17 = vperm.slane %v4870_v22, %v7258_v36 }
0x299e   :  { %v4912_v24 = vsel %vm473_vm10, %v4911_v6, %v4910_v60 }
0x299f   :  { %v4915_v31 = vsel %vm473_vm10, %v4914_v43, %v4913_v17 }
0x29a0   :  { %v4934_v22 = vsel %vm153_vm2, %v4915_v31, %v4912_v24 }
0x29a2   :  { %v4900_v9 = vpop.permute.xlu2 %4899 }
0x29a3   :  { %v4876_v25 = vpop.permute.xlu0 %4875 }
0x29a4   :  { %v4879_v3 = vpop.permute.xlu1 %4878  ;;  %v4916_v51 = vperm.slane %v4876_v25, %v7258_v36  ;;  %v4923_v25 = vperm.slane %v4891_v10, %v7263_v20 }
0x29a5   :  { %v4917_v46 = vperm.slane %v4879_v3, %v7263_v20 }
0x29a7   :  { %v4918_v38 = vsel %vm473_vm10, %v4917_v46, %v4916_v51  ;;  %v4928_v46 = vperm.slane %v4900_v9, %v7258_v36 }
0x29a8   :  { %v4935_v54 = vsel %vm155_vm3, %v4918_v38, %v4934_v22 }
0x29aa   :  { %v4909_v17 = vpop.permute.xlu2 %4908 }
0x29ab   :  { %v4885_v49 = vpop.permute.xlu0 %4884  ;;  %v4932_v43 = vperm.slane %v4909_v17, %v7263_v20 }
0x29ac   :  { %v4888_v59 = vpop.permute.xlu1 %4887  ;;  %v4920_v62 = vperm.slane %v4885_v49, %v7263_v20 }
0x29ad   :  { %v4922_v42 = vperm.slane %v4888_v59, %v7258_v36 }
0x29ae   :  { %v4921_v32 = vsel %vm473_vm10, %v4920_v62, %v4919_v48 }
0x29af   :  { %v4924_v3 = vsel %vm473_vm10, %v4923_v25, %v4922_v42  ;;  %v4936_v49 = vsel %vm157_vm4, %v4921_v32, %v4935_v54 }
0x29b0   :  { %v4937_v10 = vsel %vm159_vm5, %v4924_v3, %v4936_v49 }
0x29b3   :  { %v4894_v13 = vpop.permute.xlu0 %4893 }
0x29b4   :  { %v4897_v1 = vpop.permute.xlu1 %4896  ;;  %v4925_v56 = vperm.slane %v4894_v13, %v7258_v36 }
0x29b5   :  { %v4926_v63 = vperm.slane %v4897_v1, %v7263_v20 }
0x29b7   :  { %v4927_v6 = vsel %vm473_vm10, %v4926_v63, %v4925_v56 }
0x29b8   :  { %v4938_v1 = vsel %vm161_vm6, %v4927_v6, %v4937_v10 }
0x29bb   :  { %v4903_v59 = vpop.permute.xlu0 %4902 }
0x29bc   :  { %v4906_v51 = vpop.permute.xlu1 %4905  ;;  %v4929_v60 = vperm.slane %v4903_v59, %v7263_v20 }
0x29bd   :  { %v4931_v62 = vperm.slane %v4906_v51, %v7258_v36 }
0x29be   :  { %v4930_v13 = vsel %vm473_vm10, %v4929_v60, %v4928_v46 }
0x29bf   :  { %v4933_v48 = vsel %vm473_vm10, %v4932_v43, %v4931_v62  ;;  %v4939_v31 = vsel %vm163_vm7, %v4930_v13, %v4938_v1 }
0x29c0   :  { %v4940_v24 = vsel %vm165_vm8, %v4933_v48, %v4939_v31  ;;  %v6896_v48 = vld [vmem:[%s11110_s0 + $0x8] sm:$0xff] }
0x29c1   :  { %v4942_v9 = vsel %vm56_vm0, %v4940_v24, 0.0  ;;  %v6897_v24 = vld [vmem:[%s11110_s0 + $0x10] sm:$0xff] }
0x29c2   :  { %4943 = vadd.xlane.f32.xlu0 %v4942_v9 }
0x2a35   :  { %v4944_v38 = vpop.xlane.xlu0 %4943 }
0x2a36   :  { %6609 = vrcp.f32 %v4944_v38 }
0x2a3c   :  { %v6610_v42 = vpop.eup %6609 }
0x2a3d   :  { %v4952_v32 = vperm.slane %v6610_v42, 5  ;;  %v4947_v63 = vperm.slane %v6610_v42, 0  ;;  %v4948_v54 = vperm.slane %v6610_v42, 1  ;;  %v4949_v17 = vperm.slane %v6610_v42, 2 }
0x2a3e   :  { %v4951_v46 = vperm.slane %v6610_v42, 4  ;;  %v4953_v51 = vperm.slane %v6610_v42, 6 }
0x2a3f   :  { %v4973_v56 = vmul.f32 %v10408_v55, %v4952_v32  ;;  %v4964_v22 = vmul.f32 %v10369_v47, %v4947_v63  ;;  %v4963_v25 = vmul.f32 %v10366_v16, %v4947_v63  ;;  %v4966_v3 = vmul.f32 %v10380_v27, %v4948_v54 }
0x2a40   :  { %v4965_v49 = vmul.f32 %v10372_v37, %v4948_v54  ;;  %v4968_v6 = vmul.f32 %v10385_v11, %v4949_v17  ;;  %v4967_v59 = vmul.f32 %v10382_v34, %v4949_v17  ;;  %v4950_v47 = vperm.slane %v6610_v42, 3 }
0x2a41   :  { %5031 = vperm.xlu0 %6092, %v4973_v56   ;;  %4986 = vperm.xlu2 %6091, %v4964_v22   ;;  %v4972_v27 = vmul.f32 %v10406_v14, %v4951_v46  ;;  %v4971_v37 = vmul.f32 %v10399_v5, %v4951_v46  ;;  %v4975_v11 = vmul.f32 %v10416_v30, %v4953_v51  ;;  %v6902_v46 = vld [vmem:[%s11110_s0 + $0x40] sm:$0xff] }
0x2a42   :  { %4981 = vperm.xlu1 %6093, %v4963_v25   ;;  %v4970_v16 = vmul.f32 %v10396_v8, %v4950_v47  ;;  %v4969_v55 = vmul.f32 %v10393_v15, %v4950_v47  ;;  %v4974_v34 = vmul.f32 %v10411_v4, %v4952_v32  ;;  %v4579_v8 = vsel %vm309_vm9, %v10232_v35, -inf  ;;  %v6898_v32 = vld [vmem:[%s11110_s0 + $0x18] sm:$0xff] }
0x2a43   :  { %v4954_v15 = vperm.slane %v6610_v42, 7  ;;  %v4976_v14 = vmul.f32 %v10418_v57, %v4953_v51 }
0x2a45   :  { %v4977_v60 = vmul.f32 %v10421_v40, %v4954_v15  ;;  %v4978_v5 = vmul.f32 %v10425_v39, %v4954_v15  ;;  %v6895_v39 = vld [vmem:[%s11110_s0] sm:$0xff] }
0x2a49   :  { %4996 = vperm.xlu2 %6091, %v4966_v3  }
0x2a4a   :  { %4991 = vperm.xlu1 %6093, %v4965_v49   ;;  %v6899_v49 = vld [vmem:[%s11110_s0 + $0x20] sm:$0xff] }
0x2a51   :  { %5006 = vperm.xlu2 %6091, %v4968_v6   ;;  %v6900_v6 = vld [vmem:[%s11110_s0 + $0x30] sm:$0xff] }
0x2a52   :  { %5001 = vperm.xlu1 %6093, %v4967_v59  }
0x2a59   :  { %5016 = vperm.xlu2 %6091, %v4970_v16   ;;  %v6901_v16 = vld [vmem:[%s11110_s0 + $0x28] sm:$0xff] }
0x2a5a   :  { %5011 = vperm.xlu1 %6093, %v4969_v55  }
0x2a61   :  { %5026 = vperm.xlu2 %6091, %v4972_v27  }
0x2a62   :  { %5021 = vperm.xlu1 %6093, %v4971_v37   ;;  %v6903_v37 = vld [vmem:[%s11110_s0 + $0x38] sm:$0xff] }
0x2a69   :  { %5041 = vperm.xlu2 %6091, %v4975_v11  }
0x2a6a   :  { %5036 = vperm.xlu1 %6093, %v4974_v34   ;;  %v6904_v34 = vld [vmem:[%s11110_s0 + $0x50] sm:$0xff] }
0x2a6b   :  { %4580 = vmax.xlane.f32.xlu0 %v4579_v8 }
0x2a71   :  { %5051 = vperm.xlu2 %6091, %v4977_v60   ;;  %v6905_v60 = vld [vmem:[%s11110_s0 + $0x48] sm:$0xff] }
0x2a72   :  { %5046 = vperm.xlu1 %6093, %v4976_v14  }
0x2a7a   :  { %5056 = vperm.xlu1 %6093, %v4978_v5  }
0x2a9b   :  { %v10478_v43 = vpop.permute.xlu2 %4986 }
0x2a9c   :  { %v5060_v31 = vmul.f32 %v6896_v48, %v10478_v43 }
0x2a9e   :  { %v5076_v22 = vsel %vm56_vm0, %v5060_v31, 0.0 }
0x2aa3   :  { %v10482_v4 = vpop.permute.xlu2 %4996 }
0x2aa4   :  { %v5062_v63 = vmul.f32 %v6898_v32, %v10482_v4 }
0x2aa6   :  { %v5085_v47 = vsel %vm56_vm0, %v5062_v63, 0.0  ;;  %v6906_v63 = vld [vmem:[%s11110_s0 + $0x58] sm:$0xff] }
0x2aab   :  { %v10486_v10 = vpop.permute.xlu2 %5006 }
0x2aac   :  { %v5064_v55 = vmul.f32 %v6901_v16, %v10486_v10 }
0x2ab3   :  { %v10490_v40 = vpop.permute.xlu2 %5016  ;;  %v10516_v25 = vpop.permute.xlu0 %5031 }
0x2ab4   :  { %v10480_v30 = vpop.permute.xlu1 %4981  ;;  %v5066_v51 = vmul.f32 %v6903_v37, %v10490_v40  ;;  %v5069_v8 = vmul.f32 %v6904_v34, %v10516_v25 }
0x2ab5   :  { %v5059_v1 = vmul.f32 %v6895_v39, %v10480_v30 }
0x2ab7   :  { %v5075_v38 = vsel %vm56_vm0, %v5059_v1, 0.0  ;;  %v5094_v1 = vsel %vm56_vm0, %v5064_v55, 0.0 }
0x2ab8   :  { %v5077_v54 = vadd.f32 %v5076_v22, %v5075_v38 }
0x2aba   :  { %v5078_v15 = vrot.slane %v5077_v54, 4 }
0x2abb   :  { %v10507_v42 = vpop.permute.xlu2 %5026 }
0x2abc   :  { %v10484_v62 = vpop.permute.xlu1 %4991  ;;  %v5068_v14 = vmul.f32 %v6905_v60, %v10507_v42 }
0x2abd   :  { %v5061_v9 = vmul.f32 %v6897_v24, %v10484_v62  ;;  %v5103_v24 = vsel %vm56_vm0, %v5066_v51, 0.0  ;;  %v5261_v51 = vperm.slane %v10482_v4, %v7263_v20  ;;  %v6907_v4 = vld [vmem:[%s11110_s0 + $0x60] sm:$0xff] }
0x2abf   :  { %v5084_v3 = vsel %vm56_vm0, %v5061_v9, 0.0 }
0x2ac0   :  { %v5086_v11 = vadd.f32 %v5085_v47, %v5084_v3  ;;  %v5120_v3 = vsel %vm56_vm0, %v5069_v8, 0.0  ;;  %v5260_v47 = vperm.slane %v10484_v62, %v7258_v36 }
0x2ac2   :  { %v5087_v9 = vrot.slane %v5086_v11, 4 }
0x2ac3   :  { %v10555_v38 = vpop.permute.xlu2 %5041 }
0x2ac4   :  { %v10488_v13 = vpop.permute.xlu1 %5001  ;;  %v5088_v34 = vadd.f32 %v5087_v9, %v5086_v11  ;;  %v5071_v11 = vmul.f32 %v6907_v4, %v10555_v38 }
0x2ac5   :  { %v5063_v17 = vmul.f32 %v6899_v49, %v10488_v13  ;;  %v5079_v49 = vadd.f32 %v5078_v15, %v5077_v54  ;;  %v5264_v15 = vperm.slane %v10486_v10, %v7263_v20 }
0x2ac7   :  { %v5093_v5 = vsel %vm56_vm0, %v5063_v17, 0.0  ;;  %v5112_v17 = vsel %vm56_vm0, %v5068_v14, 0.0  ;;  %v5262_v14 = vsel %vm473_vm10, %v5261_v51, %v5260_v47 }
0x2ac8   :  { %v5095_v32 = vadd.f32 %v5094_v1, %v5093_v5 }
0x2aca   :  { %v5096_v8 = vrot.slane %v5095_v32, 4 }
0x2acb   :  { %v5052_v47 = vpop.permute.xlu2 %5051 }
0x2acc   :  { %v10492_v57 = vpop.permute.xlu1 %5011 }
0x2acd   :  { %v5065_v59 = vmul.f32 %v6900_v6, %v10492_v57  ;;  %v5266_v9 = vperm.slane %v10492_v57, %v7258_v36 }
0x2acf   :  { %v5102_v39 = vsel %vm56_vm0, %v5065_v59, 0.0 }
0x2ad0   :  { %v5104_v6 = vadd.f32 %v5103_v24, %v5102_v39  ;;  %v5263_v39 = vperm.slane %v10488_v13, %v7258_v36  ;;  %v5097_v24 = vadd.f32 %v5096_v8, %v5095_v32  ;;  %v5129_v13 = vsel %vm56_vm0, %v5071_v11, 0.0 }
0x2ad2   :  { %v5105_v60 = vrot.slane %v5104_v6, 4 }
0x2ad4   :  { %v10513_v56 = vpop.permute.xlu1 %5021 }
0x2ad5   :  { %v5067_v27 = vmul.f32 %v6902_v46, %v10513_v56  ;;  %v5258_v46 = vperm.slane %v10478_v43, %v7263_v20  ;;  %v5080_v43 = vrot.slane %v5079_v49, 2 }
0x2ad7   :  { %v5111_v48 = vsel %vm56_vm0, %v5067_v27, 0.0  ;;  %v5257_v27 = vperm.slane %v10480_v30, %v7258_v36  ;;  %v5267_v30 = vperm.slane %v10490_v40, %v7263_v20  ;;  %v5089_v40 = vrot.slane %v5088_v34, 2 }
0x2ad8   :  { %v5113_v16 = vadd.f32 %v5112_v17, %v5111_v48 }
0x2ad9   :  { %v5259_v10 = vsel %vm473_vm10, %v5258_v46, %v5257_v27  ;;  %v5265_v46 = vsel %vm473_vm10, %v5264_v15, %v5263_v39  ;;  %v5090_v51 = vadd.f32 %v5089_v40, %v5088_v34  ;;  %v5268_v8 = vsel %vm473_vm10, %v5267_v30, %v5266_v9 }
0x2ada   :  { %v5114_v5 = vrot.slane %v5113_v16, 4  ;;  %v5281_v17 = vsel %vm153_vm2, %v5262_v14, %v5259_v10 }
0x2adc   :  { %v10552_v31 = vpop.permute.xlu1 %5036 }
0x2add   :  { %v5070_v22 = vmul.f32 %v6906_v63, %v10552_v31  ;;  %v6908_v63 = vld [vmem:[%s11110_s0 + $0x68] sm:$0xff]  ;;  %v5273_v32 = vperm.slane %v10552_v31, %v7263_v20 }
0x2ade   :  { %v4581_v59 = vpop.xlane.xlu0 %4580 }
0x2adf   :  { %v5121_v55 = vsel %vm56_vm0, %v5070_v22, 0.0  ;;  %vm4582_vm1 = vcmp.eq.f32.partialorder %v10232_v35, %v4581_v59  ;;  %v5272_v35 = vperm.slane %v10516_v25, %v7258_v36  ;;  %v5270_v25 = vperm.slane %v10507_v42, %v7263_v20 }
0x2ae0   :  { %v5122_v37 = vadd.f32 %v5121_v55, %v5120_v3  ;;  %v4583_v54 = vsel %vm4582_vm1, %v7690_v53, 32.0  ;;  %v5081_v3 = vadd.f32 %v5080_v43, %v5079_v49  ;;  %v5106_v59 = vadd.f32 %v5105_v60, %v5104_v6 }
0x2ae1   :  { %v4584_v62 = vsel %vm309_vm9, %v4583_v54, inf  ;;  %v5269_v42 = vperm.slane %v10513_v56, %v7258_v36  ;;  %v5115_v55 = vadd.f32 %v5114_v5, %v5113_v16  ;;  %v5275_v6 = vperm.slane %v10555_v38, %v7258_v36  ;;  %v6909_v16 = vld [vmem:[%s11110_s0 + $0x70] sm:$0xff] }
0x2ae2   :  { %4585 = vmin.xlane.f32.xlu2 %v4584_v62  ;;  %v5123_v1 = vrot.slane %v5122_v37, 4  ;;  %v5098_v56 = vrot.slane %v5097_v24, 2  ;;  %v5073_v31 = vmul.f32 %v6909_v16, %v5052_v47  ;;  %v5107_v62 = vrot.slane %v5106_v59, 2 }
0x2ae3   :  { %v5271_v43 = vsel %vm473_vm10, %v5270_v25, %v5269_v42  ;;  %v5278_v60 = vperm.slane %v5052_v47, %v7258_v36  ;;  %v5116_v34 = vrot.slane %v5115_v55, 2  ;;  %v5274_v14 = vsel %vm473_vm10, %v5273_v32, %v5272_v35  ;;  %v6910_v25 = vld [vmem:[%s11110_s0 + $0x78] sm:$0xff] }
0x2ae4   :  { %v5047_v48 = vpop.permute.xlu1 %5046  ;;  %v5124_v27 = vadd.f32 %v5123_v1, %v5122_v37  ;;  %v5282_v37 = vsel %vm155_vm3, %v5265_v46, %v5281_v17  ;;  %v5099_v10 = vadd.f32 %v5098_v56, %v5097_v24  ;;  %v5138_v40 = vsel %vm56_vm0, %v5073_v31, 0.0 }
0x2ae5   :  { %v5072_v22 = vmul.f32 %v6908_v63, %v5047_v48  ;;  %v5276_v49 = vperm.slane %v5047_v48, %v7263_v20  ;;  %v5283_v38 = vsel %vm157_vm4, %v5268_v8, %v5282_v37  ;;  %v5108_v35 = vadd.f32 %v5107_v62, %v5106_v59 }
0x2ae6   :  { %v5125_v4 = vrot.slane %v5124_v27, 2  ;;  %v5284_v39 = vsel %vm159_vm5, %v5271_v43, %v5283_v38  ;;  %v5100_v46 = vrot.slane %v5099_v10, 1  ;;  %v5082_v59 = vrot.slane %v5081_v3, 1 }
0x2ae7   :  { %v5130_v57 = vsel %vm56_vm0, %v5072_v22, 0.0  ;;  %v5277_v11 = vsel %vm473_vm10, %v5276_v49, %v5275_v6  ;;  %v5285_v9 = vsel %vm161_vm6, %v5274_v14, %v5284_v39  ;;  %v5117_v22 = vadd.f32 %v5116_v34, %v5115_v55 }
0x2ae8   :  { %v5131_v54 = vadd.f32 %v5130_v57, %v5129_v13  ;;  %v5286_v17 = vsel %vm163_vm7, %v5277_v11, %v5285_v9  ;;  %v5091_v13 = vrot.slane %v5090_v51, 1  ;;  %v5126_v47 = vadd.f32 %v5125_v4, %v5124_v27 }
0x2ae9   :  { %v5109_v55 = vrot.slane %v5108_v35, 1  ;;  %v5118_v6 = vrot.slane %v5117_v22, 1  ;;  %v5101_v31 = vadd.f32 %v5100_v46, %v5099_v10  ;;  %v5083_v27 = vadd.f32 %v5082_v59, %v5081_v3 }
0x2aea   :  { %v5132_v15 = vrot.slane %v5131_v54, 4  ;;  %v5092_v56 = vadd.f32 %v5091_v13, %v5090_v51  ;;  %v5127_v8 = vrot.slane %v5126_v47, 1 }
0x2aeb   :  { %v5110_v43 = vadd.f32 %v5109_v55, %v5108_v35  ;;  %v5119_v37 = vadd.f32 %v5118_v6, %v5117_v22  ;;  %v6911_v22 = vld [vmem:[%s11109_s1 + $0x50] ss:$0 sm:$0xff] }
0x2aec   :  { %v5133_v30 = vadd.f32 %v5132_v15, %v5131_v54  ;;  %v5057_v5 = vpop.permute.xlu1 %5056  ;;  %v5128_v34 = vadd.f32 %v5127_v8, %v5126_v47 }
0x2aed   :  { %v5074_v1 = vmul.f32 %v6910_v25, %v5057_v5  ;;  %v5279_v48 = vperm.slane %v5057_v5, %v7263_v20 }
0x2aee   :  { %v5134_v63 = vrot.slane %v5133_v30, 2 }
0x2aef   :  { %v5139_v24 = vsel %vm56_vm0, %v5074_v1, 0.0  ;;  %v5280_v42 = vsel %vm473_vm10, %v5279_v48, %v5278_v60  ;;  %v5155_v60 = vsel %vm153_vm2, %v5092_v56, %v5083_v27 }
0x2af0   :  { %v5140_v32 = vadd.f32 %v5139_v24, %v5138_v40  ;;  %v5287_v57 = vsel %vm165_vm8, %v5280_v42, %v5286_v17  ;;  %v5135_v54 = vadd.f32 %v5134_v63, %v5133_v30  ;;  %v5156_v4 = vsel %vm155_vm3, %v5101_v31, %v5155_v60 }
0x2af1   :  { %6074 = vst.msk [vmem:[%s11111_s3 + $0x30] sm:$0xff] %vm56_vm0, %v5287_v57  ;;  %v5157_v11 = vsel %vm157_vm4, %v5110_v43, %v5156_v4 }
0x2af2   :  { %v5141_v49 = vrot.slane %v5140_v32, 4  ;;  %v5136_v62 = vrot.slane %v5135_v54, 1  ;;  %v5158_v51 = vsel %vm159_vm5, %v5119_v37, %v5157_v11 }
0x2af3   :  { %v5159_v10 = vsel %vm161_vm6, %v5128_v34, %v5158_v51  ;;  %v6912_v34 = vld [vmem:[%s11109_s1 + $0xd0] ss:$0 sm:$0xff] }
0x2af4   :  { %v5142_v16 = vadd.f32 %v5141_v49, %v5140_v32  ;;  %v5137_v38 = vadd.f32 %v5136_v62, %v5135_v54 }
0x2af6   :  { %v5143_v15 = vrot.slane %v5142_v16, 2  ;;  %v5160_v3 = vsel %vm163_vm7, %v5137_v38, %v5159_v10 }
0x2af8   :  { %v5144_v14 = vadd.f32 %v5143_v15, %v5142_v16 }
0x2afa   :  { %v5145_v30 = vrot.slane %v5144_v14, 1 }
0x2afc   :  { %v5146_v5 = vadd.f32 %v5145_v30, %v5144_v14 }
0x2afe   :  { %v5161_v39 = vsel %vm165_vm8, %v5146_v5, %v5160_v3 }
0x2aff   :  { %5162 = vrot.lane.b32.xlu1 %v5161_v39, %s6935_s11 }
0x2b07   :  { %5165 = vrot.lane.b32.xlu1 %v10177_v52, %s6938_s22 }
0x2b55   :  { %v4586_v1 = vpop.xlane.xlu2 %4585 }
0x2b56   :  { %vm4587_vm11 = vcmp.eq.f32.partialorder %v7690_v53, %v4586_v1 }
0x2b57   :  { %v6068_v48 = vsel %vm4587_vm11, 1.0, %v6936_v0 }
0x2b71   :  { %v5163_v25 = vpop.permute.xlu1 %5162 }
0x2b72   :  { %v5168_v40 = vsel %vm309_vm9, %v6068_v48, %v5163_v25 }
0x2b79   :  { %v5166_v35 = vpop.permute.xlu1 %5165 }
0x2b7a   :  { %v5169_v9 = vsel %vm895_vm12, %v5168_v40, %v5166_v35 }
0x2b7b   :  { %6070 = vmatmul.msk.f32.vlgmr.msrb.gmra.mxu3 %vm898_vm13, %v5169_v9 }
0x2bfe   :  { %v5190_v63 = vpop.f32.mrf.mxu3 }
0x2bff   :  { %v5191_v17 = vadd.f32 %v6911_v22, %v5190_v63 }
0x2c01   :  { %6611 = vtanh.f32 %v5191_v17  ;;  %v6071_v24 = vmul.f32 -1.442695, %v5191_v17 }
0x2c03   :  { %6613 = vpow2.f32 %v6071_v24 }
0x2c07   :  { %v6612_v52 = vpop.eup %6611 }
0x2c08   :  { %5215 = vrot.lane.b32.xlu1 %v6612_v52, %s6937_s24 }
0x2c09   :  { %v6614_v42 = vpop.eup %6613 }
0x2c0a   :  { %v5196_v13 = vadd.f32 1.0, %v6614_v42 }
0x2c0c   :  { %6615 = vrcp.f32 %v5196_v13  ;;  %v5208_v59 = vand.u32 2147483648, %v5196_v13  ;;  %vm5202_vm15 = vweird.f32 %v5196_v13  ;;  %v5206_v55 = vand.u32 2147483647, %v5196_v13 }
0x2c0e   :  { %v5209_v6 = vor.u32 1.1754944e-38, %v5208_v59  ;;  %vm5207_vm11 = vcmp.eq.f32.partialorder %v5206_v55, 8.507059e+37 }
0x2c12   :  { %v6616_v47 = vpop.eup %6615 }
0x2c13   :  { %v5198_v32 = vmul.f32 %v6616_v47, %v5196_v13  ;;  %vm5203_vm14 = vweird.f32 %v6616_v47 }
0x2c14   :  { %vm5204_vm1 = vmor %vm5202_vm15, %vm5203_vm14 }
0x2c15   :  { %v5199_v57 = vsub.f32 1.0, %v5198_v32 }
0x2c17   :  { %v5200_v46 = vmul.f32 %v6616_v47, %v5199_v57 }
0x2c19   :  { %v5201_v54 = vadd.f32 %v6616_v47, %v5200_v46 }
0x2c1b   :  { %v5205_v49 = vsel %vm5204_vm1, %v6616_v47, %v5201_v54 }
0x2c1c   :  { %v5210_v8 = vsel %vm5207_vm11, %v5209_v6, %v5205_v49 }
0x2c1d   :  { %v5213_v31 = vmul.f32 %v5210_v8, %v10173_v21 }
0x2c7a   :  { %v5216_v56 = vpop.permute.xlu1 %5215 }
0x2c7b   :  { %v5218_v16 = vmul.f32 %v5216_v56, %v5210_v8 }
0x2c7d   :  { %5220 = vrot.lane.b32.xlu1 %v5218_v16, %s6935_s11 }
0x2cef   :  { %v5221_v62 = vpop.permute.xlu1 %5220 }
0x2cf0   :  { %v10653_v27 = vadd.f32 %v5221_v62, %v5213_v31 }
0x2cf2   :  { %6617 = vtanh.f32 %v10653_v27 }
0x2cf8   :  { %v6618_v43 = vpop.eup %6617 }
0x2cf9   :  { %5226 = vrot.lane.b32.xlu1 %v6618_v43, %s6937_s24 }
0x2d6b   :  { %v5227_v15 = vpop.permute.xlu1 %5226 }
0x2d6c   :  { %v10657_v37 = vmul.f32 %v5227_v15, %v5210_v8 }
0x2d6e   :  { %5231 = vrot.lane.b32.xlu2 %v10657_v37, %s6935_s11 }
0x2dc8   :  { %v5232_v60 = vpop.permute.xlu2 %5231 }
0x2dc9   :  { %6072 = vmatmul.msk.f32.vlgmr.msra.gmra.mxu0 %vm309_vm9, %v5232_v60  ;;  %6076 = vmatmul.msk.f32.vlgmr.msra.gmra.mxu2 %vm309_vm9, %v5232_v60 }
0x2e46   :  { %v5252_v21 = vpop.f32.mrf.mxu0 }
0x2e47   :  { %v10666_v14 = vadd.f32 %v6912_v34, %v5252_v21 }
0x2e49   :  { %6073 = vst.msk [vmem:[%s11112_s2 + $0x30] sm:$0xff] %vm309_vm9, %v10666_v14 }
0x2e4c   :  { %v10673_v38 = vpop.f32.mrf.mxu2 }
0x2e4d   :  { %v5330_v4 = vperm.slane %v10673_v38, 0  ;;  %v5324_v30 = vrot.slane %v10673_v38, 2  ;;  %v5326_v11 = vrot.slane %v10673_v38, 4  ;;  %v5323_v51 = vrot.slane %v10673_v38, 1 }
0x2e4e   :  { %v5329_v5 = vrot.slane %v10673_v38, 7  ;;  %v5327_v9 = vrot.slane %v10673_v38, 5  ;;  %v5328_v24 = vrot.slane %v10673_v38, 6  ;;  %v5325_v16 = vrot.slane %v10673_v38, 3 }
0x2e4f   :  { %v5347_v10 = vadd.f32 %v5330_v4, %v7144_v18  ;;  %v5346_v3 = vadd.f32 %v5330_v4, %v7138_v12  ;;  %v5332_v39 = vperm.slane %v5324_v30, 0  ;;  %v10682_v25 = vperm.slane %v5326_v11, 0 }
0x2e50   :  { %v5331_v1 = vperm.slane %v5323_v51, 0  ;;  %v5337_v48 = vperm.slane %v5329_v5, 0  ;;  %v10690_v12 = vperm.slane %v5327_v9, 0 }
0x2e51   :  { %6619 = vtanh.f32 %v5347_v10  ;;  %v5350_v40 = vadd.f32 %v5332_v39, %v7150_v23  ;;  %v5354_v35 = vadd.f32 %v10682_v25, %v7176_v44  ;;  %v10695_v23 = vld [vmem:[%s11109_s1 + $0xa8] ss:$0 sm:$0xff]  ;;  %v5351_v8 = vadd.f32 %v5332_v39, %v7154_v28 }
0x2e52   :  { %6621 = vtanh.f32 %v5346_v3  ;;  %v5348_v63 = vadd.f32 %v5331_v1, %v7147_v19  ;;  %v5360_v18 = vadd.f32 %v5337_v48, %v7215_v26  ;;  %v5356_v26 = vadd.f32 %v10690_v12, %v7198_v7 }
0x2e53   :  { %6623 = vtanh.f32 %v5350_v40  ;;  %v5349_v47 = vadd.f32 %v5331_v1, %v7161_v33  ;;  %v5336_v7 = vperm.slane %v5328_v24, 0  ;;  %v5361_v28 = vadd.f32 %v5337_v48, %v7228_v45 }
0x2e54   :  { %6625 = vtanh.f32 %v5354_v35  ;;  %v5355_v35 = vadd.f32 %v10682_v25, %v7190_v58 }
0x2e55   :  { %6627 = vtanh.f32 %v5348_v63  ;;  %v5358_v33 = vadd.f32 %v5336_v7, %v7210_v2  ;;  %v5333_v2 = vperm.slane %v5325_v16, 0  ;;  %v5359_v58 = vadd.f32 %v5336_v7, %v7218_v29 }
0x2e56   :  { %6629 = vtanh.f32 %v5360_v18  ;;  %v5357_v18 = vadd.f32 %v10690_v12, %v7195_v61 }
0x2e57   :  { %v6620_v22 = vpop.eup %6619  ;;  %6631 = vtanh.f32 %v5356_v26  ;;  %v5352_v38 = vadd.f32 %v5333_v2, %v7172_v41  ;;  %v5353_v45 = vadd.f32 %v5333_v2, %v7180_v50 }
0x2e58   :  { %v6622_v17 = vpop.eup %6621  ;;  %v5379_v44 = vmul.f32 %v10695_v23, %v6620_v22  ;;  %6633 = vtanh.f32 %v5349_v47 }
0x2e59   :  { %v6624_v52 = vpop.eup %6623  ;;  %v5378_v19 = vmul.f32 %v10695_v23, %v6622_v17  ;;  %6635 = vtanh.f32 %v5358_v33 }
0x2e5a   :  { %v5397_v42 = vsel %vm56_vm0, %v5379_v44, 0.0  ;;  %v5382_v13 = vmul.f32 %v10695_v23, %v6624_v52  ;;  %v6626_v32 = vpop.eup %6625  ;;  %6637 = vtanh.f32 %v5351_v8 }
0x2e5b   :  { %5398 = vadd.xlane.f32.xlu1 %v5397_v42  ;;  %v5394_v57 = vsel %vm56_vm0, %v5378_v19, 0.0  ;;  %v6628_v46 = vpop.eup %6627  ;;  %v5386_v55 = vmul.f32 %v10695_v23, %v6626_v32  ;;  %6639 = vtanh.f32 %v5361_v28 }
0x2e5c   :  { %5395 = vadd.xlane.f32.xlu0 %v5394_v57  ;;  %v5406_v54 = vsel %vm56_vm0, %v5382_v13, 0.0  ;;  %v6630_v59 = vpop.eup %6629  ;;  %v5380_v49 = vmul.f32 %v10695_v23, %v6628_v46  ;;  %6641 = vtanh.f32 %v5352_v38 }
0x2e5d   :  { %5407 = vadd.xlane.f32.xlu2 %v5406_v54  ;;  %v5392_v6 = vmul.f32 %v10695_v23, %v6630_v59  ;;  %v5418_v56 = vsel %vm56_vm0, %v5386_v55, 0.0  ;;  %v6632_v31 = vpop.eup %6631  ;;  %6643 = vtanh.f32 %v5353_v45 }
0x2e5e   :  { %v5400_v62 = vsel %vm56_vm0, %v5380_v49, 0.0  ;;  %v6634_v43 = vpop.eup %6633  ;;  %v5388_v60 = vmul.f32 %v10695_v23, %v6632_v31  ;;  %6645 = vtanh.f32 %v5355_v35 }
0x2e5f   :  { %v5436_v15 = vsel %vm56_vm0, %v5392_v6, 0.0  ;;  %v5381_v21 = vmul.f32 %v10695_v23, %v6634_v43  ;;  %v6636_v4 = vpop.eup %6635  ;;  %6647 = vtanh.f32 %v5357_v18 }
0x2e60   :  { %v5424_v34 = vsel %vm56_vm0, %v5388_v60, 0.0  ;;  %v6638_v11 = vpop.eup %6637  ;;  %v5390_v51 = vmul.f32 %v10695_v23, %v6636_v4  ;;  %6649 = vtanh.f32 %v5359_v58 }
0x2e61   :  { %v5403_v30 = vsel %vm56_vm0, %v5381_v21, 0.0  ;;  %v5383_v5 = vmul.f32 %v10695_v23, %v6638_v11  ;;  %v6640_v3 = vpop.eup %6639 }
0x2e62   :  { %v5430_v10 = vsel %vm56_vm0, %v5390_v51, 0.0  ;;  %v6642_v39 = vpop.eup %6641  ;;  %v5393_v1 = vmul.f32 %v10695_v23, %v6640_v3 }
0x2e63   :  { %5419 = vadd.xlane.f32.xlu1 %v5418_v56  ;;  %v5409_v41 = vsel %vm56_vm0, %v5383_v5, 0.0  ;;  %v5384_v48 = vmul.f32 %v10695_v23, %v6642_v39  ;;  %v6644_v50 = vpop.eup %6643 }
0x2e64   :  { %5401 = vadd.xlane.f32.xlu0 %v5400_v62  ;;  %v5439_v40 = vsel %vm56_vm0, %v5393_v1, 0.0  ;;  %v5385_v63 = vmul.f32 %v10695_v23, %v6644_v50  ;;  %v6646_v17 = vpop.eup %6645 }
0x2e65   :  { %5437 = vadd.xlane.f32.xlu2 %v5436_v15  ;;  %v5412_v9 = vsel %vm56_vm0, %v5384_v48, 0.0  ;;  %v5387_v44 = vmul.f32 %v10695_v23, %v6646_v17  ;;  %v6648_v52 = vpop.eup %6647 }
0x2e66   :  { %v5415_v22 = vsel %vm56_vm0, %v5385_v63, 0.0  ;;  %v5389_v19 = vmul.f32 %v10695_v23, %v6648_v52  ;;  %v6650_v24 = vpop.eup %6649 }
0x2e67   :  { %v5421_v25 = vsel %vm56_vm0, %v5387_v44, 0.0  ;;  %v5391_v61 = vmul.f32 %v10695_v23, %v6650_v24 }
0x2e68   :  { %v5427_v26 = vsel %vm56_vm0, %v5389_v19, 0.0 }
0x2e69   :  { %v5433_v12 = vsel %vm56_vm0, %v5391_v61, 0.0 }
0x2e6b   :  { %5425 = vadd.xlane.f32.xlu1 %v5424_v34 }
0x2e6c   :  { %5404 = vadd.xlane.f32.xlu0 %v5403_v30 }
0x2e73   :  { %5431 = vadd.xlane.f32.xlu1 %v5430_v10 }
0x2e74   :  { %5410 = vadd.xlane.f32.xlu0 %v5409_v41 }
0x2e7b   :  { %5440 = vadd.xlane.f32.xlu1 %v5439_v40 }
0x2e7c   :  { %5413 = vadd.xlane.f32.xlu0 %v5412_v9 }
0x2e84   :  { %5416 = vadd.xlane.f32.xlu0 %v5415_v22 }
0x2e8c   :  { %5422 = vadd.xlane.f32.xlu0 %v5421_v25 }
0x2e94   :  { %5428 = vadd.xlane.f32.xlu0 %v5427_v26 }
0x2e9c   :  { %5434 = vadd.xlane.f32.xlu0 %v5433_v12 }
0x2ece   :  { %v5399_v29 = vpop.xlane.xlu1 %5398 }
0x2ecf   :  { %v5396_v42 = vpop.xlane.xlu0 %5395  ;;  %v5459_v56 = vperm.slane %v5399_v29, %v7263_v20 }
0x2ed0   :  { %v5408_v23 = vpop.xlane.xlu2 %5407  ;;  %v5458_v8 = vperm.slane %v5396_v42, %v7258_v36 }
0x2ed1   :  { %v5464_v62 = vperm.slane %v5408_v23, %v7258_v36 }
0x2ed2   :  { %v5460_v38 = vsel %vm473_vm10, %v5459_v56, %v5458_v8 }
0x2ed6   :  { %v10744_v57 = vpop.xlane.xlu1 %5419 }
0x2ed7   :  { %v5402_v13 = vpop.xlane.xlu0 %5401  ;;  %v5470_v21 = vperm.slane %v10744_v57, %v7258_v36 }
0x2ed8   :  { %v5461_v16 = vperm.slane %v5402_v13, %v7258_v36  ;;  %v10782_v11 = vpop.xlane.xlu2 %5437 }
0x2ed9   :  { %v5479_v40 = vperm.slane %v10782_v11, %v7258_v36 }
0x2ede   :  { %v10750_v59 = vpop.xlane.xlu1 %5425 }
0x2edf   :  { %v5405_v47 = vpop.xlane.xlu0 %5404  ;;  %v5473_v4 = vperm.slane %v10750_v59, %v7258_v36 }
0x2ee0   :  { %v5462_v49 = vperm.slane %v5405_v47, %v7263_v20 }
0x2ee2   :  { %v5463_v15 = vsel %vm473_vm10, %v5462_v49, %v5461_v16 }
0x2ee3   :  { %v5482_v51 = vsel %vm153_vm2, %v5463_v15, %v5460_v38 }
0x2ee6   :  { %v10754_v55 = vpop.xlane.xlu1 %5431 }
0x2ee7   :  { %v5411_v32 = vpop.xlane.xlu0 %5410  ;;  %v5476_v39 = vperm.slane %v10754_v55, %v7258_v36 }
0x2ee8   :  { %v5465_v33 = vperm.slane %v5411_v32, %v7263_v20 }
0x2eea   :  { %v5466_v28 = vsel %vm473_vm10, %v5465_v33, %v5464_v62 }
0x2eeb   :  { %v5483_v10 = vsel %vm155_vm3, %v5466_v28, %v5482_v51 }
0x2eee   :  { %v10776_v34 = vpop.xlane.xlu1 %5440 }
0x2eef   :  { %v10746_v46 = vpop.xlane.xlu0 %5413  ;;  %v5480_v45 = vperm.slane %v10776_v34, %v7263_v20 }
0x2ef0   :  { %v5467_v60 = vperm.slane %v10746_v46, %v7258_v36 }
0x2ef1   :  { %v5481_v63 = vsel %vm473_vm10, %v5480_v45, %v5479_v40 }
0x2ef7   :  { %v10748_v54 = vpop.xlane.xlu0 %5416 }
0x2ef8   :  { %v5468_v31 = vperm.slane %v10748_v54, %v7263_v20 }
0x2efa   :  { %v5469_v30 = vsel %vm473_vm10, %v5468_v31, %v5467_v60 }
0x2efb   :  { %v5484_v1 = vsel %vm157_vm4, %v5469_v30, %v5483_v10 }
0x2eff   :  { %v10752_v7 = vpop.xlane.xlu0 %5422 }
0x2f00   :  { %v5471_v43 = vperm.slane %v10752_v7, %v7263_v20 }
0x2f02   :  { %v5472_v5 = vsel %vm473_vm10, %v5471_v43, %v5470_v21 }
0x2f03   :  { %v5485_v35 = vsel %vm159_vm5, %v5472_v5, %v5484_v1 }
0x2f07   :  { %v10757_v6 = vpop.xlane.xlu0 %5428 }
0x2f08   :  { %v5474_v2 = vperm.slane %v10757_v6, %v7263_v20 }
0x2f0a   :  { %v5475_v3 = vsel %vm473_vm10, %v5474_v2, %v5473_v4 }
0x2f0b   :  { %v5486_v50 = vsel %vm161_vm6, %v5475_v3, %v5485_v35 }
0x2f0f   :  { %v10790_v41 = vpop.xlane.xlu0 %5434 }
0x2f10   :  { %v5477_v48 = vperm.slane %v10790_v41, %v7263_v20 }
0x2f12   :  { %v5478_v9 = vsel %vm473_vm10, %v5477_v48, %v5476_v39 }
0x2f13   :  { %v5487_v18 = vsel %vm163_vm7, %v5478_v9, %v5486_v50 }
0x2f14   :  { %v5488_v22 = vsel %vm165_vm8, %v5481_v63, %v5487_v18 }
0x2f15   :  { %v5490_v17 = vsel %vm56_vm0, %v5488_v22, -inf }
0x2f16   :  { %5491 = vmax.xlane.f32.xlu0 %v5490_v17 }
0x2f89   :  { %v10806_v44 = vpop.xlane.xlu0 %5491 }
0x2f8a   :  { %v5494_v58 = vperm.slane %v10806_v44, 0  ;;  %v5495_v25 = vperm.slane %v10806_v44, 1  ;;  %v5496_v24 = vperm.slane %v10806_v44, 2  ;;  %v5497_v16 = vperm.slane %v10806_v44, 3 }
0x2f8b   :  { %v5498_v62 = vperm.slane %v10806_v44, 4  ;;  %v5499_v2 = vperm.slane %v10806_v44, 5  ;;  %v5500_v51 = vperm.slane %v10806_v44, 6  ;;  %v5501_v10 = vperm.slane %v10806_v44, 7 }
0x2f8c   :  { %v5510_v52 = vsub.f32 %v5396_v42, %v5494_v58  ;;  %v5511_v19 = vsub.f32 %v5399_v29, %v5494_v58  ;;  %v5512_v26 = vsub.f32 %v5402_v13, %v5495_v25  ;;  %v5513_v33 = vsub.f32 %v5405_v47, %v5495_v25 }
0x2f8d   :  { %v5515_v56 = vsub.f32 %v5411_v32, %v5496_v24  ;;  %v5514_v8 = vsub.f32 %v5408_v23, %v5496_v24  ;;  %v5516_v47 = vsub.f32 %v10746_v46, %v5497_v16  ;;  %v5518_v32 = vsub.f32 %v10744_v57, %v5498_v62 }
0x2f8e   :  { %v5526_v61 = vmul.f32 1.442695, %v5510_v52  ;;  %v5528_v12 = vmul.f32 1.442695, %v5511_v19  ;;  %v5530_v49 = vmul.f32 1.442695, %v5512_v26  ;;  %v5517_v23 = vsub.f32 %v10748_v54, %v5497_v16 }
0x2f8f   :  { %v5532_v31 = vmul.f32 1.442695, %v5513_v33  ;;  %v5536_v43 = vmul.f32 1.442695, %v5515_v56  ;;  %v5534_v13 = vmul.f32 1.442695, %v5514_v8  ;;  %v5519_v57 = vsub.f32 %v10752_v7, %v5498_v62 }
0x2f90   :  { %6651 = vpow2.f32 %v5526_v61  ;;  %v5538_v60 = vmul.f32 1.442695, %v5516_v47  ;;  %v5542_v21 = vmul.f32 1.442695, %v5518_v32  ;;  %v5540_v38 = vmul.f32 1.442695, %v5517_v23 }
0x2f91   :  { %6653 = vpow2.f32 %v5528_v12  ;;  %v5521_v54 = vsub.f32 %v10757_v6, %v5499_v2  ;;  %v5520_v30 = vsub.f32 %v10750_v59, %v5499_v2  ;;  %v5544_v5 = vmul.f32 1.442695, %v5519_v57 }
0x2f92   :  { %6655 = vpow2.f32 %v5530_v49  ;;  %v5522_v1 = vsub.f32 %v10754_v55, %v5500_v51  ;;  %v5524_v59 = vsub.f32 %v10782_v11, %v5501_v10  ;;  %v5523_v48 = vsub.f32 %v10790_v41, %v5500_v51 }
0x2f93   :  { %6657 = vpow2.f32 %v5532_v31  ;;  %v5548_v45 = vmul.f32 1.442695, %v5521_v54  ;;  %v5546_v7 = vmul.f32 1.442695, %v5520_v30  ;;  %v5525_v18 = vsub.f32 %v10776_v34, %v5501_v10 }
0x2f94   :  { %6659 = vpow2.f32 %v5536_v43  ;;  %v5550_v40 = vmul.f32 1.442695, %v5522_v1  ;;  %v5554_v35 = vmul.f32 1.442695, %v5524_v59  ;;  %v5552_v50 = vmul.f32 1.442695, %v5523_v48 }
0x2f95   :  { %6661 = vpow2.f32 %v5534_v13  ;;  %v5556_v11 = vmul.f32 1.442695, %v5525_v18 }
0x2f96   :  { %v10813_v42 = vpop.eup %6651  ;;  %6663 = vpow2.f32 %v5538_v60 }
0x2f97   :  { %v10815_v29 = vpop.eup %6653  ;;  %5575 = vperm.xlu2 %6091, %v10813_v42   ;;  %6665 = vpow2.f32 %v5542_v21 }
0x2f98   :  { %v10818_v15 = vpop.eup %6655  ;;  %5578 = vperm.xlu1 %6093, %v10815_v29   ;;  %6667 = vpow2.f32 %v5540_v38 }
0x2f99   :  { %5581 = vperm.xlu0 %6092, %v10818_v15   ;;  %v10826_v28 = vpop.eup %6657  ;;  %6669 = vpow2.f32 %v5544_v5 }
0x2f9a   :  { %v10828_v4 = vpop.eup %6659  ;;  %6671 = vpow2.f32 %v5548_v45 }
0x2f9b   :  { %v10831_v46 = vpop.eup %6661  ;;  %6673 = vpow2.f32 %v5546_v7 }
0x2f9c   :  { %v10840_v3 = vpop.eup %6663  ;;  %6675 = vpow2.f32 %v5550_v40 }
0x2f9d   :  { %v10842_v39 = vpop.eup %6665  ;;  %6677 = vpow2.f32 %v5554_v35 }
0x2f9e   :  { %v10845_v6 = vpop.eup %6667  ;;  %6679 = vpow2.f32 %v5552_v50 }
0x2f9f   :  { %5584 = vperm.xlu2 %6091, %v10826_v28   ;;  %v10852_v9 = vpop.eup %6669  ;;  %6681 = vpow2.f32 %v5556_v11 }
0x2fa0   :  { %5590 = vperm.xlu1 %6093, %v10828_v4   ;;  %v10854_v63 = vpop.eup %6671 }
0x2fa1   :  { %5587 = vperm.xlu0 %6092, %v10831_v46   ;;  %v10857_v55 = vpop.eup %6673 }
0x2fa2   :  { %v10862_v41 = vpop.eup %6675 }
0x2fa3   :  { %v10864_v22 = vpop.eup %6677 }
0x2fa4   :  { %v10867_v17 = vpop.eup %6679 }
0x2fa5   :  { %v10871_v34 = vpop.eup %6681 }
0x2fa7   :  { %5593 = vperm.xlu2 %6091, %v10840_v3  }
0x2fa8   :  { %5599 = vperm.xlu1 %6093, %v10842_v39  }
0x2fa9   :  { %5596 = vperm.xlu0 %6092, %v10845_v6  }
0x2faf   :  { %5602 = vperm.xlu2 %6091, %v10852_v9  }
0x2fb0   :  { %5608 = vperm.xlu1 %6093, %v10854_v63  }
0x2fb1   :  { %5605 = vperm.xlu0 %6092, %v10857_v55  }
0x2fb7   :  { %5611 = vperm.xlu2 %6091, %v10862_v41  }
0x2fb8   :  { %5617 = vperm.xlu1 %6093, %v10864_v22  }
0x2fb9   :  { %5614 = vperm.xlu0 %6092, %v10867_v17  }
0x2fbf   :  { %5620 = vperm.xlu2 %6091, %v10871_v34  }
0x2ff1   :  { %v5576_v44 = vpop.permute.xlu2 %5575 }
0x2ff2   :  { %v5622_v43 = vperm.slane %v5576_v44, %v7258_v36 }
0x2ff9   :  { %v5585_v58 = vpop.permute.xlu2 %5584 }
0x2ffa   :  { %v5626_v13 = vperm.slane %v5585_v58, %v7263_v20 }
0x3001   :  { %v5594_v25 = vpop.permute.xlu2 %5593 }
0x3002   :  { %v5631_v23 = vperm.slane %v5594_v25, %v7258_v36 }
0x3009   :  { %v5603_v61 = vpop.permute.xlu2 %5602 }
0x300a   :  { %v5579_v52 = vpop.permute.xlu1 %5578  ;;  %v5635_v5 = vperm.slane %v5603_v61, %v7263_v20 }
0x300b   :  { %v5582_v19 = vpop.permute.xlu0 %5581  ;;  %v5623_v8 = vperm.slane %v5579_v52, %v7263_v20 }
0x300c   :  { %v5625_v56 = vperm.slane %v5582_v19, %v7258_v36 }
0x300d   :  { %v5624_v2 = vsel %vm473_vm10, %v5623_v8, %v5622_v43 }
0x300e   :  { %v5627_v60 = vsel %vm473_vm10, %v5626_v13, %v5625_v56 }
0x300f   :  { %v5646_v51 = vsel %vm153_vm2, %v5627_v60, %v5624_v2 }
0x3011   :  { %v5612_v33 = vpop.permute.xlu2 %5611 }
0x3012   :  { %v5591_v26 = vpop.permute.xlu1 %5590  ;;  %v5640_v18 = vperm.slane %v5612_v33, %v7258_v36 }
0x3013   :  { %v5588_v24 = vpop.permute.xlu0 %5587  ;;  %v5629_v31 = vperm.slane %v5591_v26, %v7263_v20 }
0x3014   :  { %v5628_v16 = vperm.slane %v5588_v24, %v7258_v36 }
0x3016   :  { %v5630_v21 = vsel %vm473_vm10, %v5629_v31, %v5628_v16 }
0x3017   :  { %v5647_v45 = vsel %vm155_vm3, %v5630_v21, %v5646_v51  ;;  %v6915_v51 = vld [vmem:[%s11110_s0 + $0x8] sm:$0xff] }
0x3019   :  { %v5621_v10 = vpop.permute.xlu2 %5620 }
0x301a   :  { %v5600_v12 = vpop.permute.xlu1 %5599  ;;  %v5644_v48 = vperm.slane %v5621_v10, %v7263_v20  ;;  %v6916_v10 = vld [vmem:[%s11110_s0 + $0x10] sm:$0xff] }
0x301b   :  { %v5597_v49 = vpop.permute.xlu0 %5596  ;;  %v5634_v38 = vperm.slane %v5600_v12, %v7258_v36 }
0x301c   :  { %v5632_v47 = vperm.slane %v5597_v49, %v7263_v20 }
0x301d   :  { %v5636_v1 = vsel %vm473_vm10, %v5635_v5, %v5634_v38 }
0x301e   :  { %v5633_v57 = vsel %vm473_vm10, %v5632_v47, %v5631_v23 }
0x301f   :  { %v5648_v7 = vsel %vm157_vm4, %v5633_v57, %v5647_v45 }
0x3020   :  { %v5649_v44 = vsel %vm159_vm5, %v5636_v1, %v5648_v7 }
0x3022   :  { %v5609_v62 = vpop.permute.xlu1 %5608 }
0x3023   :  { %v5606_v32 = vpop.permute.xlu0 %5605  ;;  %v5638_v30 = vperm.slane %v5609_v62, %v7263_v20 }
0x3024   :  { %v5637_v54 = vperm.slane %v5606_v32, %v7258_v36 }
0x3026   :  { %v5639_v40 = vsel %vm473_vm10, %v5638_v30, %v5637_v54  ;;  %v6914_v54 = vld [vmem:[%s11110_s0] sm:$0xff] }
0x3027   :  { %v5650_v52 = vsel %vm161_vm6, %v5639_v40, %v5649_v44 }
0x302a   :  { %v5618_v59 = vpop.permute.xlu1 %5617 }
0x302b   :  { %v5615_v35 = vpop.permute.xlu0 %5614  ;;  %v5643_v50 = vperm.slane %v5618_v59, %v7258_v36  ;;  %v6917_v59 = vld [vmem:[%s11110_s0 + $0x18] sm:$0xff] }
0x302c   :  { %v5641_v11 = vperm.slane %v5615_v35, %v7263_v20 }
0x302d   :  { %v5645_v58 = vsel %vm473_vm10, %v5644_v48, %v5643_v50 }
0x302e   :  { %v5642_v25 = vsel %vm473_vm10, %v5641_v11, %v5640_v18  ;;  %v6918_v11 = vld [vmem:[%s11110_s0 + $0x20] sm:$0xff] }
0x302f   :  { %v5651_v19 = vsel %vm163_vm7, %v5642_v25, %v5650_v52 }
0x3030   :  { %v5652_v26 = vsel %vm165_vm8, %v5645_v58, %v5651_v19  ;;  %v6919_v58 = vld [vmem:[%s11110_s0 + $0x30] sm:$0xff]  ;;  %v6920_v19 = vld [vmem:[%s11110_s0 + $0x28] sm:$0xff] }
0x3031   :  { %v5654_v24 = vsel %vm56_vm0, %v5652_v26, 0.0 }
0x3032   :  { %5655 = vadd.xlane.f32.xlu0 %v5654_v24 }
0x30a5   :  { %v5656_v61 = vpop.xlane.xlu0 %5655 }
0x30a6   :  { %6683 = vrcp.f32 %v5656_v61  ;;  %v6921_v61 = vld [vmem:[%s11110_s0 + $0x40] sm:$0xff] }
0x30ac   :  { %v6684_v12 = vpop.eup %6683 }
0x30ad   :  { %v5664_v49 = vperm.slane %v6684_v12, 5  ;;  %v5659_v33 = vperm.slane %v6684_v12, 0  ;;  %v5660_v31 = vperm.slane %v6684_v12, 1  ;;  %v5661_v13 = vperm.slane %v6684_v12, 2 }
0x30ae   :  { %v5663_v23 = vperm.slane %v6684_v12, 4  ;;  %v5665_v60 = vperm.slane %v6684_v12, 6  ;;  %v5666_v2 = vperm.slane %v6684_v12, 7 }
0x30af   :  { %v5685_v56 = vmul.f32 %v10857_v55, %v5664_v49  ;;  %v5676_v8 = vmul.f32 %v10815_v29, %v5659_v33  ;;  %v5675_v16 = vmul.f32 %v10813_v42, %v5659_v33  ;;  %v5678_v62 = vmul.f32 %v10826_v28, %v5660_v31 }
0x30b0   :  { %v5677_v43 = vmul.f32 %v10818_v15, %v5660_v31  ;;  %v5680_v47 = vmul.f32 %v10828_v4, %v5661_v13  ;;  %v5679_v32 = vmul.f32 %v10831_v46, %v5661_v13  ;;  %v5662_v29 = vperm.slane %v6684_v12, 3 }
0x30b1   :  { %5743 = vperm.xlu0 %6092, %v5685_v56   ;;  %5698 = vperm.xlu2 %6091, %v5676_v8   ;;  %v5684_v28 = vmul.f32 %v10852_v9, %v5663_v23  ;;  %v5683_v15 = vmul.f32 %v10842_v39, %v5663_v23  ;;  %v5687_v4 = vmul.f32 %v10862_v41, %v5665_v60  ;;  %v5291_v39 = vsel %vm309_vm9, %v10666_v14, -inf }
0x30b2   :  { %5693 = vperm.xlu1 %6093, %v5675_v16   ;;  %v5682_v42 = vmul.f32 %v10845_v6, %v5662_v29  ;;  %v5681_v55 = vmul.f32 %v10840_v3, %v5662_v29  ;;  %v5686_v46 = vmul.f32 %v10854_v63, %v5664_v49  ;;  %v5689_v6 = vmul.f32 %v10864_v22, %v5666_v2  ;;  %v6922_v49 = vld [vmem:[%s11110_s0 + $0x38] sm:$0xff]  ;;  %v6923_v16 = vld [vmem:[%s11110_s0 + $0x48] sm:$0xff] }
0x30b3   :  { %v5688_v3 = vmul.f32 %v10867_v17, %v5665_v60  ;;  %v5690_v9 = vmul.f32 %v10871_v34, %v5666_v2  ;;  %v6925_v60 = vld [vmem:[%s11110_s0 + $0x58] sm:$0xff] }
0x30b9   :  { %5708 = vperm.xlu2 %6091, %v5678_v62  }
0x30ba   :  { %5703 = vperm.xlu1 %6093, %v5677_v43   ;;  %v6924_v43 = vld [vmem:[%s11110_s0 + $0x50] sm:$0xff] }
0x30c1   :  { %5718 = vperm.xlu2 %6091, %v5680_v47  }
0x30c2   :  { %5713 = vperm.xlu1 %6093, %v5679_v32  }
0x30c9   :  { %5728 = vperm.xlu2 %6091, %v5682_v42  }
0x30ca   :  { %5723 = vperm.xlu1 %6093, %v5681_v55  }
0x30d1   :  { %5738 = vperm.xlu2 %6091, %v5684_v28  }
0x30d2   :  { %5733 = vperm.xlu1 %6093, %v5683_v15  }
0x30d9   :  { %5753 = vperm.xlu2 %6091, %v5687_v4  }
0x30da   :  { %5748 = vperm.xlu1 %6093, %v5686_v46  }
0x30e1   :  { %5763 = vperm.xlu2 %6091, %v5689_v6  }
0x30e2   :  { %5758 = vperm.xlu1 %6093, %v5688_v3  }
0x30ea   :  { %5768 = vperm.xlu1 %6093, %v5690_v9  }
0x310a   :  { %5292 = vmax.xlane.f32.xlu2 %v5291_v39 }
0x310b   :  { %v10924_v21 = vpop.permute.xlu2 %5698 }
0x310c   :  { %v5772_v5 = vmul.f32 %v6915_v51, %v10924_v21 }
0x310e   :  { %v5788_v35 = vsel %vm56_vm0, %v5772_v5, 0.0  ;;  %v5970_v5 = vperm.slane %v10924_v21, %v7263_v20  ;;  %v6926_v21 = vld [vmem:[%s11110_s0 + $0x60] sm:$0xff] }
0x3113   :  { %v10928_v63 = vpop.permute.xlu2 %5708 }
0x3114   :  { %v5774_v48 = vmul.f32 %v6917_v59, %v10928_v63 }
0x3116   :  { %v5797_v52 = vsel %vm56_vm0, %v5774_v48, 0.0 }
0x311b   :  { %v10932_v22 = vpop.permute.xlu2 %5718 }
0x311c   :  { %v5776_v26 = vmul.f32 %v6920_v19, %v10932_v22  ;;  %v5976_v59 = vperm.slane %v10932_v22, %v7263_v20 }
0x311e   :  { %v5806_v32 = vsel %vm56_vm0, %v5776_v26, 0.0  ;;  %v6927_v26 = vld [vmem:[%s11110_s0 + $0x68] sm:$0xff] }
0x3123   :  { %v10936_v57 = vpop.permute.xlu2 %5728  ;;  %v10976_v24 = vpop.permute.xlu0 %5743 }
0x3124   :  { %v10926_v41 = vpop.permute.xlu1 %5693  ;;  %v5778_v33 = vmul.f32 %v6922_v49, %v10936_v57  ;;  %v5781_v13 = vmul.f32 %v6924_v43, %v10976_v24 }
0x3125   :  { %v5771_v30 = vmul.f32 %v6914_v54, %v10926_v41 }
0x3126   :  { %v5815_v55 = vsel %vm56_vm0, %v5778_v33, 0.0  ;;  %v5832_v3 = vsel %vm56_vm0, %v5781_v13, 0.0 }
0x3127   :  { %v5787_v7 = vsel %vm56_vm0, %v5771_v30, 0.0  ;;  %v5969_v30 = vperm.slane %v10926_v41, %v7258_v36  ;;  %v5979_v41 = vperm.slane %v10936_v57, %v7263_v20 }
0x3128   :  { %v5789_v50 = vadd.f32 %v5788_v35, %v5787_v7 }
0x312a   :  { %v5790_v8 = vrot.slane %v5789_v50, 4 }
0x312b   :  { %v10953_v1 = vpop.permute.xlu2 %5738 }
0x312c   :  { %v10930_v38 = vpop.permute.xlu1 %5703  ;;  %v5780_v31 = vmul.f32 %v6923_v16, %v10953_v1  ;;  %v5791_v46 = vadd.f32 %v5790_v8, %v5789_v50  ;;  %v5982_v22 = vperm.slane %v10953_v1, %v7263_v20 }
0x312d   :  { %v5773_v45 = vmul.f32 %v6916_v10, %v10930_v38  ;;  %v5972_v9 = vperm.slane %v10930_v38, %v7258_v36  ;;  %v5973_v10 = vperm.slane %v10928_v63, %v7263_v20  ;;  %v5984_v38 = vperm.slane %v10976_v24, %v7258_v36 }
0x312e   :  { %v5824_v2 = vsel %vm56_vm0, %v5780_v31, 0.0  ;;  %v5792_v48 = vrot.slane %v5791_v46, 2 }
0x312f   :  { %v5796_v18 = vsel %vm56_vm0, %v5773_v45, 0.0  ;;  %v5974_v50 = vsel %vm473_vm10, %v5973_v10, %v5972_v9 }
0x3130   :  { %v5798_v56 = vadd.f32 %v5797_v52, %v5796_v18 }
0x3132   :  { %v5799_v23 = vrot.slane %v5798_v56, 4 }
0x3133   :  { %v11001_v28 = vpop.permute.xlu2 %5753 }
0x3134   :  { %v10934_v17 = vpop.permute.xlu1 %5713  ;;  %v5800_v45 = vadd.f32 %v5799_v23, %v5798_v56  ;;  %v5783_v63 = vmul.f32 %v6926_v21, %v11001_v28 }
0x3135   :  { %v5775_v44 = vmul.f32 %v6918_v11, %v10934_v17  ;;  %v5971_v11 = vsel %vm473_vm10, %v5970_v5, %v5969_v30 }
0x3136   :  { %v5801_v57 = vrot.slane %v5800_v45, 2 }
0x3137   :  { %v5805_v62 = vsel %vm56_vm0, %v5775_v44, 0.0  ;;  %v5975_v44 = vperm.slane %v10934_v17, %v7258_v36  ;;  %v5841_v17 = vsel %vm56_vm0, %v5783_v63, 0.0 }
0x3138   :  { %v5807_v15 = vadd.f32 %v5806_v32, %v5805_v62  ;;  %v5802_v13 = vadd.f32 %v5801_v57, %v5800_v45 }
0x3139   :  { %v5977_v16 = vsel %vm473_vm10, %v5976_v59, %v5975_v44 }
0x313a   :  { %v5808_v7 = vrot.slane %v5807_v15, 4 }
0x313b   :  { %v5764_v33 = vpop.permute.xlu2 %5763 }
0x313c   :  { %v10938_v34 = vpop.permute.xlu1 %5723  ;;  %v5809_v52 = vadd.f32 %v5808_v7, %v5807_v15 }
0x313d   :  { %v5777_v25 = vmul.f32 %v6919_v58, %v10938_v34  ;;  %v5978_v19 = vperm.slane %v10938_v34, %v7258_v36 }
0x313f   :  { %v5814_v47 = vsel %vm56_vm0, %v5777_v25, 0.0  ;;  %v5980_v32 = vsel %vm473_vm10, %v5979_v41, %v5978_v19 }
0x3140   :  { %v5816_v6 = vadd.f32 %v5815_v55, %v5814_v47  ;;  %v5987_v47 = vperm.slane %v11001_v28, %v7258_v36 }
0x3142   :  { %v5817_v35 = vrot.slane %v5816_v6, 4 }
0x3144   :  { %v10959_v40 = vpop.permute.xlu1 %5733  ;;  %v5818_v49 = vadd.f32 %v5817_v35, %v5816_v6 }
0x3145   :  { %v5779_v12 = vmul.f32 %v6921_v61, %v10959_v40  ;;  %v5793_v61 = vadd.f32 %v5792_v48, %v5791_v46  ;;  %v5981_v1 = vperm.slane %v10959_v40, %v7258_v36  ;;  %v5810_v40 = vrot.slane %v5809_v52, 2 }
0x3146   :  { %v5819_v55 = vrot.slane %v5818_v49, 2 }
0x3147   :  { %v5823_v29 = vsel %vm56_vm0, %v5779_v12, 0.0  ;;  %v5993_v12 = vsel %vm153_vm2, %v5974_v50, %v5971_v11  ;;  %v5983_v23 = vsel %vm473_vm10, %v5982_v22, %v5981_v1  ;;  %v5803_v50 = vrot.slane %v5802_v13, 1 }
0x3148   :  { %v5825_v39 = vadd.f32 %v5824_v2, %v5823_v29  ;;  %v6928_v29 = vld [vmem:[%s11110_s0 + $0x70] sm:$0xff]  ;;  %v5820_v45 = vadd.f32 %v5819_v55, %v5818_v49  ;;  %v5794_v22 = vrot.slane %v5793_v61, 1 }
0x3149   :  { %v5804_v57 = vadd.f32 %v5803_v50, %v5802_v13 }
0x314a   :  { %v5826_v18 = vrot.slane %v5825_v39, 4  ;;  %v5821_v44 = vrot.slane %v5820_v45, 1 }
0x314c   :  { %v10998_v42 = vpop.permute.xlu1 %5748  ;;  %v5827_v56 = vadd.f32 %v5826_v18, %v5825_v39  ;;  %v5822_v49 = vadd.f32 %v5821_v44, %v5820_v45 }
0x314d   :  { %v5782_v4 = vmul.f32 %v6925_v60, %v10998_v42  ;;  %v5985_v8 = vperm.slane %v10998_v42, %v7263_v20  ;;  %v5785_v42 = vmul.f32 %v6928_v29, %v5764_v33  ;;  %v5994_v60 = vsel %vm155_vm3, %v5977_v16, %v5993_v12 }
0x314e   :  { %v5828_v46 = vrot.slane %v5827_v56, 2  ;;  %v5995_v28 = vsel %vm157_vm4, %v5980_v32, %v5994_v60  ;;  %v5795_v12 = vadd.f32 %v5794_v22, %v5793_v61 }
0x314f   :  { %v5833_v54 = vsel %vm56_vm0, %v5782_v4, 0.0  ;;  %v5990_v4 = vperm.slane %v5764_v33, %v7258_v36  ;;  %v5986_v2 = vsel %vm473_vm10, %v5985_v8, %v5984_v38  ;;  %v5996_v30 = vsel %vm159_vm5, %v5983_v23, %v5995_v28 }
0x3150   :  { %v5834_v51 = vadd.f32 %v5833_v54, %v5832_v3  ;;  %v5811_v54 = vadd.f32 %v5810_v40, %v5809_v52  ;;  %v5850_v10 = vsel %vm56_vm0, %v5785_v42, 0.0  ;;  %v5997_v7 = vsel %vm161_vm6, %v5986_v2, %v5996_v30 }
0x3151   :  { %v5829_v38 = vadd.f32 %v5828_v46, %v5827_v56  ;;  %v5867_v33 = vsel %vm153_vm2, %v5804_v57, %v5795_v12 }
0x3152   :  { %v5835_v58 = vrot.slane %v5834_v51, 4  ;;  %v5812_v11 = vrot.slane %v5811_v54, 1 }
0x3154   :  { %v5759_v25 = vpop.permute.xlu1 %5758  ;;  %v5836_v31 = vadd.f32 %v5835_v58, %v5834_v51  ;;  %v6929_v51 = vld [vmem:[%s11110_s0 + $0x78] sm:$0xff] }
0x3155   :  { %v5784_v24 = vmul.f32 %v6927_v26, %v5759_v25  ;;  %v5988_v43 = vperm.slane %v5759_v25, %v7263_v20  ;;  %v5830_v25 = vrot.slane %v5829_v38, 1  ;;  %v5813_v26 = vadd.f32 %v5812_v11, %v5811_v54  ;;  %v6931_v11 = vld [vmem:[%s11109_s1 + $0xd0] ss:$0 sm:$0xff] }
0x3156   :  { %v5837_v6 = vrot.slane %v5836_v31, 2 }
0x3157   :  { %v5842_v34 = vsel %vm56_vm0, %v5784_v24, 0.0  ;;  %v5989_v9 = vsel %vm473_vm10, %v5988_v43, %v5987_v47  ;;  %v5868_v16 = vsel %vm155_vm3, %v5813_v26, %v5867_v33 }
0x3158   :  { %v5843_v62 = vadd.f32 %v5842_v34, %v5841_v17  ;;  %v5998_v48 = vsel %vm163_vm7, %v5989_v9, %v5997_v7  ;;  %v5838_v21 = vadd.f32 %v5837_v6, %v5836_v31  ;;  %v5831_v17 = vadd.f32 %v5830_v25, %v5829_v38 }
0x315a   :  { %v5844_v15 = vrot.slane %v5843_v62, 4  ;;  %v5839_v52 = vrot.slane %v5838_v21, 1 }
0x315c   :  { %v5845_v3 = vadd.f32 %v5844_v15, %v5843_v62  ;;  %v5769_v39 = vpop.permute.xlu1 %5768  ;;  %v5840_v56 = vadd.f32 %v5839_v52, %v5838_v21  ;;  %v5869_v62 = vsel %vm157_vm4, %v5822_v49, %v5868_v16 }
0x315d   :  { %v5786_v5 = vmul.f32 %v6929_v51, %v5769_v39  ;;  %v5991_v36 = vperm.slane %v5769_v39, %v7263_v20  ;;  %v5870_v43 = vsel %vm159_vm5, %v5831_v17, %v5869_v62 }
0x315e   :  { %v5846_v59 = vrot.slane %v5845_v3, 2  ;;  %v5871_v47 = vsel %vm161_vm6, %v5840_v56, %v5870_v43 }
0x315f   :  { %v5851_v35 = vsel %vm56_vm0, %v5786_v5, 0.0  ;;  %v5992_v41 = vsel %vm473_vm10, %v5991_v36, %v5990_v4 }
0x3160   :  { %v5852_v63 = vadd.f32 %v5851_v35, %v5850_v10  ;;  %v5999_v18 = vsel %vm165_vm8, %v5992_v41, %v5998_v48  ;;  %v5847_v20 = vadd.f32 %v5846_v59, %v5845_v3 }
0x3161   :  { %6081 = vst.msk [vmem:[%s11111_s3 + $0x38] sm:$0xff] %vm56_vm0, %v5999_v18 }
0x3162   :  { %v5853_v58 = vrot.slane %v5852_v63, 4  ;;  %v5848_v24 = vrot.slane %v5847_v20, 1 }
0x3164   :  { %v5854_v19 = vadd.f32 %v5853_v58, %v5852_v63  ;;  %v5849_v34 = vadd.f32 %v5848_v24, %v5847_v20 }
0x3166   :  { %v5855_v1 = vrot.slane %v5854_v19, 2  ;;  %v5872_v61 = vsel %vm163_vm7, %v5849_v34, %v5871_v47 }
0x3168   :  { %v5856_v8 = vadd.f32 %v5855_v1, %v5854_v19 }
0x316a   :  { %v5857_v31 = vrot.slane %v5856_v8, 1 }
0x316c   :  { %v5858_v13 = vadd.f32 %v5857_v31, %v5856_v8 }
0x316e   :  { %v5873_v40 = vsel %vm165_vm8, %v5858_v13, %v5872_v61 }
0x316f   :  { %5874 = vrot.lane.b32.xlu1 %v5873_v40, %s6935_s11 }
0x3177   :  { %5877 = vrot.lane.b32.xlu1 %v10657_v37, %s6938_s22 }
0x317d   :  { %v5293_v32 = vpop.xlane.xlu2 %5292 }
0x317e   :  { %vm5294_vm0 = vcmp.eq.f32.partialorder %v10666_v14, %v5293_v32  ;;  %v6930_v14 = vld [vmem:[%s11109_s1 + $0x50] ss:$0 sm:$0xff] }
0x317f   :  { %v5295_v29 = vsel %vm5294_vm0, %v7690_v53, 32.0 }
0x3180   :  { %v5296_v42 = vsel %vm309_vm9, %v5295_v29, inf }
0x3181   :  { %5297 = vmin.xlane.f32.xlu0 %v5296_v42 }
0x31e1   :  { %v5875_v55 = vpop.permute.xlu1 %5874 }
0x31e9   :  { %v5878_v60 = vpop.permute.xlu1 %5877 }
0x31f4   :  { %v5298_v23 = vpop.xlane.xlu0 %5297 }
0x31f5   :  { %vm5299_vm2 = vcmp.eq.f32.partialorder %v7690_v53, %v5298_v23 }
0x31f6   :  { %v6075_v15 = vsel %vm5299_vm2, 1.0, %v6936_v0 }
0x31f7   :  { %v5880_v4 = vsel %vm309_vm9, %v6075_v15, %v5875_v55 }
0x31f8   :  { %v5881_v46 = vsel %vm895_vm12, %v5880_v4, %v5878_v60 }
0x31f9   :  { %6077 = vmatmul.msk.f32.vlgmr.msrb.gmra.mxu0 %vm898_vm13, %v5881_v46 }
0x3276   :  { %v5902_v37 = vpop.f32.mrf.mxu0 }
0x3277   :  { %v5903_v2 = vadd.f32 %v6930_v14, %v5902_v37 }
0x3279   :  { %6685 = vtanh.f32 %v5903_v2  ;;  %v6078_v53 = vmul.f32 -1.442695, %v5903_v2 }
0x327b   :  { %6687 = vpow2.f32 %v6078_v53 }
0x327f   :  { %v6686_v28 = vpop.eup %6685 }
0x3280   :  { %5927 = vrot.lane.b32.xlu1 %v6686_v28, %s6937_s24 }
0x3281   :  { %v6688_v0 = vpop.eup %6687 }
0x3282   :  { %v5908_v6 = vadd.f32 1.0, %v6688_v0 }
0x3284   :  { %6689 = vrcp.f32 %v5908_v6  ;;  %v5920_v51 = vand.u32 2147483648, %v5908_v6  ;;  %vm5914_vm4 = vweird.f32 %v5908_v6  ;;  %v5918_v5 = vand.u32 2147483647, %v5908_v6 }
0x3286   :  { %v5921_v10 = vor.u32 1.1754944e-38, %v5920_v51  ;;  %vm5919_vm6 = vcmp.eq.f32.partialorder %v5918_v5, 8.507059e+37 }
0x328a   :  { %v6690_v3 = vpop.eup %6689 }
0x328b   :  { %v5910_v9 = vmul.f32 %v6690_v3, %v5908_v6  ;;  %vm5915_vm3 = vweird.f32 %v6690_v3 }
0x328c   :  { %vm5916_vm5 = vmor %vm5914_vm4, %vm5915_vm3 }
0x328d   :  { %v5911_v39 = vsub.f32 1.0, %v5910_v9 }
0x328f   :  { %v5912_v54 = vmul.f32 %v6690_v3, %v5911_v39 }
0x3291   :  { %v5913_v30 = vadd.f32 %v6690_v3, %v5912_v54 }
0x3293   :  { %v5917_v36 = vsel %vm5916_vm5, %v6690_v3, %v5913_v30 }
0x3294   :  { %v5922_v7 = vsel %vm5919_vm6, %v5921_v10, %v5917_v36 }
0x3295   :  { %v5925_v38 = vmul.f32 %v5922_v7, %v10653_v27 }
0x32f2   :  { %v5928_v45 = vpop.permute.xlu1 %5927 }
0x32f3   :  { %v5930_v59 = vmul.f32 %v5928_v45, %v5922_v7 }
0x32f5   :  { %5932 = vrot.lane.b32.xlu1 %v5930_v59, %s6935_s11 }
0x3367   :  { %v5933_v48 = vpop.permute.xlu1 %5932 }
0x3368   :  { %v5935_v35 = vadd.f32 %v5933_v48, %v5925_v38 }
0x336a   :  { %6691 = vtanh.f32 %v5935_v35 }
0x3370   :  { %v6692_v41 = vpop.eup %6691 }
0x3371   :  { %5938 = vrot.lane.b32.xlu1 %v6692_v41, %s6937_s24 }
0x33e3   :  { %v5939_v50 = vpop.permute.xlu1 %5938 }
0x33e4   :  { %v5941_v21 = vmul.f32 %v5939_v50, %v5922_v7 }
0x33e6   :  { %5943 = vrot.lane.b32.xlu2 %v5941_v21, %s6935_s11 }
0x3440   :  { %v5944_v63 = vpop.permute.xlu2 %5943 }
0x3441   :  { %6079 = vmatmul.msk.f32.vlgmr.msrb.gmra.mxu2 %vm309_vm9, %v5944_v63 }
0x34c4   :  { %v5964_v18 = vpop.f32.mrf.mxu2 }
0x34c5   :  { %v5965_v20 = vadd.f32 %v6931_v11, %v5964_v18 }
0x34c7   :  { %6080 = vst.msk [vmem:[%s11112_s2 + $0x38] sm:$0xff] %vm309_vm9, %v5965_v20 }

</bundles_post_ra>
